<compile_context>
chip_gen: v7x
topology: tpu7x:2x2x1
jax: 0.10.0
libtpu: 0.0.40
codegen_flags: <defaults>
</compile_context>

<pallas_src>
import functools

import numpy as np
import jax
import jax.numpy as jnp
from jax.experimental import pallas as pl
from jax.experimental.pallas import tpu as pltpu


# --------------------------------------------------------------------------
# In-kernel helpers
# --------------------------------------------------------------------------

def _mm(a, b):
    """bf16-operand MXU matmul with f32 accumulation."""
    return jnp.dot(a.astype(jnp.bfloat16), b.astype(jnp.bfloat16),
                   preferred_element_type=jnp.float32)


def _ln(x, g, b):
    mu = jnp.mean(x, axis=-1, keepdims=True)
    var = jnp.mean((x - mu) ** 2, axis=-1, keepdims=True)
    return (x - mu) * jax.lax.rsqrt(var + 1e-5) * g + b


def _softmax_rows(s):
    m = jnp.max(s, axis=-1, keepdims=True)
    p = jnp.exp(s - m)
    return p * pl.reciprocal(jnp.sum(p, axis=-1, keepdims=True), approx=True)


def _gelu_tanh(x):
    c = 0.7978845608028654  # sqrt(2/pi)
    return 0.5 * x * (1.0 + jnp.tanh(c * (x + 0.044715 * x * x * x)))


def _full_spec(*shape):
    """Whole-array block, broadcast across the (rank-1) grid."""
    return pl.BlockSpec(shape, lambda b: (0,) * len(shape))


# --------------------------------------------------------------------------
# Kernel 1: protein preprocess  (Conv1d x2 + LayerNorm), grid=(B,)
# --------------------------------------------------------------------------

def _protein_pre_kernel(x_ref, w1_ref, b1_ref, w2_ref, b2_ref, g_ref, beta_ref,
                        o_ref):
    x = x_ref[0]                                          # (Lp, 384) f32
    L = x.shape[0]
    ri = jax.lax.broadcasted_iota(jnp.int32, (L, L), 0)
    ci = jax.lax.broadcasted_iota(jnp.int32, (L, L), 1)
    s_prev = (ci == ri - 1).astype(jnp.float32)           # row i picks y[i-1]
    s_next = (ci == ri + 1).astype(jnp.float32)           # row i picks y[i+1]

    def conv3(a, w_ref, b_ref):
        # out[l] = x[l-1] @ W0 + x[l] @ W1 + x[l+1] @ W2 + b   (zero-padded ends)
        t0 = _mm(a, w_ref[0])
        t1 = _mm(a, w_ref[1])
        t2 = _mm(a, w_ref[2])
        y = jnp.dot(s_prev, t0, preferred_element_type=jnp.float32)
        y = y + t1
        y = y + jnp.dot(s_next, t2, preferred_element_type=jnp.float32)
        return y + b_ref[...]

    y = conv3(x, w1_ref, b1_ref)                          # (Lp, 256)
    y = conv3(y, w2_ref, b2_ref)                          # (Lp, 128)
    o_ref[0] = _ln(y, g_ref[...], beta_ref[...])


def protein_preprocess(prot_emb, p):
    B, Lp, E = prot_emb.shape
    H = p["pln_g"].shape[-1]
    C1 = p["conv1_wt"].shape[-1]
    return pl.pallas_call(
        _protein_pre_kernel,
        out_shape=jax.ShapeDtypeStruct((B, Lp, H), jnp.float32),
        grid=(B,),
        in_specs=[
            pl.BlockSpec((1, Lp, E), lambda b: (b, 0, 0)),
            _full_spec(3, E, C1), _full_spec(1, C1),
            _full_spec(3, C1, H), _full_spec(1, H),
            _full_spec(1, H), _full_spec(1, H),
        ],
        out_specs=pl.BlockSpec((1, Lp, H), lambda b: (b, 0, 0)),
        compiler_params=pltpu.CompilerParams(dimension_semantics=("parallel",)),
    )(prot_emb, p["conv1_wt"], p["conv1_b"], p["conv2_wt"], p["conv2_b"],
      p["pln_g"], p["pln_b"])


# --------------------------------------------------------------------------
# Kernel 2: drug FFN + LayerNorm + 3-layer GAT, grid=(B,)
# --------------------------------------------------------------------------

def _drug_gat_kernel(x_ref, adjb_ref, nm_ref,
                     fw_ref, fb_ref, fg_ref, fbt_ref,
                     gw_ref, gb_ref, asrc_ref, adst_ref,
                     o_ref, *, heads, dh, n_layers):
    x = x_ref[0]                                          # (Ld, F)
    d = _ln(_mm(x, fw_ref[...]) + fb_ref[...], fg_ref[...], fbt_ref[...])
    adjb = adjb_ref[0]                                    # (Ld, Ld) 0 / -1e9
    nm = nm_ref[0]                                        # (Ld, 1)
    H = d.shape[-1]

    for i in range(n_layers):
        h = _mm(d, gw_ref[i]) + gb_ref[i]                 # (Ld, 128)
        asrc = asrc_ref[i].reshape(1, H)
        adst = adst_ref[i].reshape(1, H)
        outs = []
        for hd in range(heads):
            sl = slice(hd * dh, (hd + 1) * dh)
            hh = h[:, sl]                                 # (Ld, dh)
            a_s = asrc[:, sl]                             # (1, dh)
            a_d = adst[:, sl]                             # (1, dh)
            e_src = jax.lax.dot_general(hh, a_s, (((1,), (1,)), ((), ())),
                                        preferred_element_type=jnp.float32)
            e_dst = jax.lax.dot_general(a_d, hh, (((1,), (1,)), ((), ())),
                                        preferred_element_type=jnp.float32)
            e = e_src + e_dst                             # (Ld, Ld)
            e = jnp.where(e > 0, e, 0.2 * e)              # LeakyReLU(0.2)
            e = e + adjb                                  # adjacency mask
            pr = _softmax_rows(e)
            outs.append(_mm(pr, hh))                      # (Ld, dh)
        agg = jnp.concatenate(outs, axis=-1)              # (Ld, 128)
        out = d + agg                                     # residual
        out = jnp.where(out > 0, out, jnp.exp(jnp.minimum(out, 0.0)) - 1.0)  # ELU
        d = out * nm                                      # zero padded nodes
    o_ref[0] = d


def drug_gat(drug_x, adj_bias, nm_col, p, *, heads, dh):
    B, Ld, F = drug_x.shape
    H = p["dffn_ln_g"].shape[-1]
    n_layers = p["gat_w"].shape[0]
    kernel = functools.partial(_drug_gat_kernel, heads=heads, dh=dh,
                               n_layers=n_layers)
    return pl.pallas_call(
        kernel,
        out_shape=jax.ShapeDtypeStruct((B, Ld, H), jnp.float32),
        grid=(B,),
        in_specs=[
            pl.BlockSpec((1, Ld, F), lambda b: (b, 0, 0)),
            pl.BlockSpec((1, Ld, Ld), lambda b: (b, 0, 0)),
            pl.BlockSpec((1, Ld, 1), lambda b: (b, 0, 0)),
            _full_spec(F, H), _full_spec(1, H), _full_spec(1, H), _full_spec(1, H),
            _full_spec(n_layers, H, H), _full_spec(n_layers, H),
            _full_spec(n_layers, H), _full_spec(n_layers, H),
        ],
        out_specs=pl.BlockSpec((1, Ld, H), lambda b: (b, 0, 0)),
        compiler_params=pltpu.CompilerParams(dimension_semantics=("parallel",)),
    )(drug_x, adj_bias, nm_col,
      p["dffn_w"], p["dffn_b"], p["dffn_ln_g"], p["dffn_ln_b"],
      p["gat_w"], p["gat_b"], p["gat_asrc"], p["gat_adst"])


# --------------------------------------------------------------------------
# Kernel 3/4: fused cross-attention transformer block, grid=(B,)
# --------------------------------------------------------------------------

def _xattn_kernel(q_ref, kv_ref, bias_ref,
                  wq_ref, bq_ref, wkv_ref, bkv_ref, wo_ref, bo_ref,
                  g1_ref, be1_ref, w1_ref, fb1_ref, w2_ref, fb2_ref,
                  g2_ref, be2_ref,
                  o_ref, *, heads, dh, scale):
    xq = q_ref[0]                                         # (Lq, 128)
    xkv = kv_ref[0]                                       # (Lk, 128)
    bias = bias_ref[0]                                    # (1, Lk) additive
    H = xq.shape[-1]

    q = _mm(xq, wq_ref[...]) + bq_ref[...]                # (Lq, 128)
    kv = _mm(xkv, wkv_ref[...]) + bkv_ref[...]            # (Lk, 256)  packed K|V
    k = kv[:, :H]
    v = kv[:, H:]

    outs = []
    for hd in range(heads):
        sl = slice(hd * dh, (hd + 1) * dh)
        qh = q[:, sl]
        kh = k[:, sl]
        vh = v[:, sl]
        s = jax.lax.dot_general(qh.astype(jnp.bfloat16), kh.astype(jnp.bfloat16),
                                (((1,), (1,)), ((), ())),
                                preferred_element_type=jnp.float32) * scale
        s = s + bias                                      # key padding mask (f32)
        pr = _softmax_rows(s)
        outs.append(_mm(pr, vh))                          # (Lq, dh)
    o = jnp.concatenate(outs, axis=-1)                    # (Lq, 128)
    o = _mm(o, wo_ref[...]) + bo_ref[...]

    x1 = _ln(xq + o, g1_ref[...], be1_ref[...])
    f = jnp.maximum(_mm(x1, w1_ref[...]) + fb1_ref[...], 0.0)
    f = _mm(f, w2_ref[...]) + fb2_ref[...]
    o_ref[0] = _ln(x1 + f, g2_ref[...], be2_ref[...])


def cross_attn_block(q_in, kv_in, key_bias, pp, *, heads, dh):
    B, Lq, H = q_in.shape
    Lk = kv_in.shape[1]
    F = pp["ffn_w1"].shape[-1]
    scale = 1.0 / float(np.sqrt(dh))
    kernel = functools.partial(_xattn_kernel, heads=heads, dh=dh, scale=scale)
    return pl.pallas_call(
        kernel,
        out_shape=jax.ShapeDtypeStruct((B, Lq, H), jnp.float32),
        grid=(B,),
        in_specs=[
            pl.BlockSpec((1, Lq, H), lambda b: (b, 0, 0)),
            pl.BlockSpec((1, Lk, H), lambda b: (b, 0, 0)),
            pl.BlockSpec((1, 1, Lk), lambda b: (b, 0, 0)),
            _full_spec(H, H), _full_spec(1, H),             # Wq, bq
            _full_spec(H, 2 * H), _full_spec(1, 2 * H),     # packed Wk|Wv, bk|bv
            _full_spec(H, H), _full_spec(1, H),             # Wo, bo
            _full_spec(1, H), _full_spec(1, H),             # LN1
            _full_spec(H, F), _full_spec(1, F),             # FFN w1
            _full_spec(F, H), _full_spec(1, H),             # FFN w2
            _full_spec(1, H), _full_spec(1, H),             # LN2
        ],
        out_specs=pl.BlockSpec((1, Lq, H), lambda b: (b, 0, 0)),
        compiler_params=pltpu.CompilerParams(dimension_semantics=("parallel",)),
    )(q_in, kv_in, key_bias,
      pp["wq"], pp["bq"], pp["wkv"], pp["bkv"], pp["wo"], pp["bo"],
      pp["ln1_g"], pp["ln1_b"], pp["ffn_w1"], pp["ffn_b1"],
      pp["ffn_w2"], pp["ffn_b2"], pp["ln2_g"], pp["ln2_b"])


# --------------------------------------------------------------------------
# Kernel 5: both SAP poolings + final MLP head, grid=(1,)
# --------------------------------------------------------------------------

def _sap_fc_kernel(d_ref, p_ref, dmask_ref, pmask_ref,
                   dw1_ref, db1_ref, dw2t_ref,
                   pw1_ref, pb1_ref, pw2t_ref,
                   fw1_ref, fcb1_ref, fw2_ref, fcb2_ref,
                   o_ref):
    B = d_ref.shape[0]

    def pool(feat, mask_row, w1, b1, w2t):
        s = jnp.tanh(_mm(feat, w1) + b1)                  # (L, 64)
        # score linear produced directly as a row vector (1, L)
        sc = jax.lax.dot_general(w2t, s, (((1,), (1,)), ((), ())),
                                 preferred_element_type=jnp.float32)
        sc = sc + mask_row                                # (1, L) masked logits
        pr = _softmax_rows(sc)
        return _mm(pr, feat)                              # (1, 128)

    rows = []
    for b in range(B):
        pd = pool(d_ref[b], dmask_ref[b], dw1_ref[...], db1_ref[...], dw2t_ref[...])
        pp = pool(p_ref[b], pmask_ref[b], pw1_ref[...], pb1_ref[...], pw2t_ref[...])
        rows.append(jnp.concatenate([pd, pp], axis=-1))   # (1, 256)
    pooled = jnp.concatenate(rows, axis=0)                # (B, 256)
    h1 = _gelu_tanh(_mm(pooled, fw1_ref[...]) + fcb1_ref[...])   # (B, 64)
    o_ref[...] = _mm(h1, fw2_ref[...]) + fcb2_ref[...]           # (B, 1)


def sap_and_head(d, prot, dmask, pmask, p):
    B, Ld, H = d.shape
    Lp = prot.shape[1]
    return pl.pallas_call(
        _sap_fc_kernel,
        out_shape=jax.ShapeDtypeStruct((B, 1), jnp.float32),
        grid=(1,),
        in_specs=[
            _full_spec(B, Ld, H), _full_spec(B, Lp, H),
            _full_spec(B, 1, Ld), _full_spec(B, 1, Lp),
            _full_spec(H, 64), _full_spec(1, 64), _full_spec(1, 64),
            _full_spec(H, 64), _full_spec(1, 64), _full_spec(1, 64),
            _full_spec(2 * H, 64), _full_spec(1, 64),
            _full_spec(64, 1), _full_spec(1, 1),
        ],
        out_specs=_full_spec(B, 1),
        compiler_params=pltpu.CompilerParams(dimension_semantics=("arbitrary",)),
    )(d, prot, dmask, pmask,
      p["sap_drug"]["w1"], p["sap_drug"]["b1"], p["sap_drug"]["w2t"],
      p["sap_prot"]["w1"], p["sap_prot"]["b1"], p["sap_prot"]["w2t"],
      p["fc1_w"], p["fc1_b"], p["fc2_w"], p["fc2_b"])


# --------------------------------------------------------------------------
# Parameter init (deterministic, synthetic) — stored in kernel-friendly packing
# --------------------------------------------------------------------------

def init_params(key, cfg):
    keys = iter(jax.random.split(key, 64))
    H, heads, Dh = 128, 4, 32
    E = cfg["emb_size"]
    F = cfg["drug_feat_dim"]

    def nrm(shape, s=0.05):
        return jax.random.normal(next(keys), shape, jnp.float32) * s

    p = {}
    p["emb"] = nrm((cfg["protein_vocab_size"], E), 0.02)
    # drug_preprocess_FFN: LazyLinear(128) + LayerNorm(128)
    p["dffn_w"] = nrm((F, H)); p["dffn_b"] = jnp.zeros((1, H))
    p["dffn_ln_g"] = jnp.ones((1, H)); p["dffn_ln_b"] = jnp.zeros((1, H))
    # protein conv1d weights pre-packed per tap: (3, Cin, Cout) == w.transpose(2,1,0)
    p["conv1_wt"] = nrm((3, E, 256)); p["conv1_b"] = jnp.zeros((1, 256))
    p["conv2_wt"] = nrm((3, 256, H)); p["conv2_b"] = jnp.zeros((1, H))
    p["pln_g"] = jnp.ones((1, H)); p["pln_b"] = jnp.zeros((1, H))
    # NormalGAT (3 layers, 128 dim, 4 heads, residual), stacked over layers
    p["gat_w"] = nrm((3, H, H)); p["gat_b"] = jnp.zeros((3, H))
    p["gat_asrc"] = nrm((3, heads * Dh)); p["gat_adst"] = nrm((3, heads * Dh))
    # SimpleCrossTransformerEncoderBlock(4 heads, 128, 256 FFN); K|V packed
    def attn_params():
        return {
            "wq": nrm((H, H)), "bq": jnp.zeros((1, H)),
            "wkv": nrm((H, 2 * H)), "bkv": jnp.zeros((1, 2 * H)),
            "wo": nrm((H, H)), "bo": jnp.zeros((1, H)),
            "ln1_g": jnp.ones((1, H)), "ln1_b": jnp.zeros((1, H)),
            "ffn_w1": nrm((H, 256)), "ffn_b1": jnp.zeros((1, 256)),
            "ffn_w2": nrm((256, H)), "ffn_b2": jnp.zeros((1, H)),
            "ln2_g": jnp.ones((1, H)), "ln2_b": jnp.zeros((1, H)),
        }
    p["xattn_drug"] = attn_params()   # drug queries attend to protein
    p["xattn_prot"] = attn_params()   # protein queries attend to drug
    # SAPBlock(64, 1): self-attentive pooling.  (score bias b2 omitted: adding a
    # constant to all logits is softmax-invariant.)
    def sap_params():
        return {"w1": nrm((H, 64)), "b1": jnp.zeros((1, 64)), "w2t": nrm((1, 64))}
    p["sap_drug"] = sap_params()
    p["sap_prot"] = sap_params()
    # last_fc: Dropout(id) -> LazyLinear(64) -> GELU(tanh) -> LazyLinear(1)
    p["fc1_w"] = nrm((2 * H, 64)); p["fc1_b"] = jnp.zeros((1, 64))
    p["fc2_w"] = nrm((64, 1)); p["fc2_b"] = jnp.zeros((1, 1))
    return p


def positional_encoding(L, D):
    pos = np.arange(L)[:, None].astype(np.float32)
    i = np.arange(D)[None, :].astype(np.float32)
    angle = pos / np.power(10000.0, (2.0 * np.floor(i / 2.0)) / D)
    pe = np.where((np.arange(D)[None, :] % 2) == 0, np.sin(angle), np.cos(angle))
    return jnp.asarray(pe, jnp.float32)


# --------------------------------------------------------------------------
# Forward pass (5 Pallas launches + cheap glue)
# --------------------------------------------------------------------------

def forward(params, atom_num, drug_x, drug_adj, protein_len, protein_idx, cfg):
    Lp = cfg["protein_length_max"]
    Ld = cfg["drug_length_max"]
    E = cfg["emb_size"]
    heads, Dh = 4, 32

    # ---- WordEmbeddingAndPosEncoding (glue: gather + sinusoidal PE) ----
    # TODO(synk): nn.Dropout layers are identity (eval mode).
    prot_emb = params["emb"][protein_idx] * jnp.sqrt(float(E)) \
        + positional_encoding(Lp, E)[None]

    # ---- masks / additive biases (cheap glue, built once) ----
    # TODO(synk): sparse edge_index / bincount / pad_sequence replaced by a
    # dense padded adjacency + node mask (equivalent under masking).
    node_mask = jnp.arange(Ld)[None, :] < atom_num[:, None]            # (B,Ld)
    prot_mask = jnp.arange(Lp)[None, :] < protein_len[:, None]         # (B,Lp)
    adj = drug_adj * node_mask[:, :, None] * node_mask[:, None, :]
    adj = jnp.maximum(adj, jnp.eye(Ld, dtype=jnp.float32)[None])       # self loops
    adj_bias = jnp.where(adj > 0, 0.0, -1e9).astype(jnp.float32)       # (B,Ld,Ld)
    nm_col = node_mask[:, :, None].astype(jnp.float32)                 # (B,Ld,1)
    drug_key_bias = jnp.where(node_mask, 0.0, -1e9)[:, None, :].astype(jnp.float32)
    prot_key_bias = jnp.where(prot_mask, 0.0, -1e9)[:, None, :].astype(jnp.float32)

    # ---- fused Pallas kernels ----
    prot = protein_preprocess(prot_emb, params)                        # conv x2 + LN
    d = drug_gat(drug_x, adj_bias, nm_col, params, heads=heads, dh=Dh)  # FFN+LN+GATx3
    d_new = cross_attn_block(d, prot, prot_key_bias, params["xattn_drug"],
                             heads=heads, dh=Dh)
    p_new = cross_attn_block(prot, d, drug_key_bias, params["xattn_prot"],
                             heads=heads, dh=Dh)
    out = sap_and_head(d_new, p_new, drug_key_bias, prot_key_bias, params)
    return out                                                          # (B,1)


# --------------------------------------------------------------------------

if __name__ == "__main__":
    cfg = dict(
        drug_length_max=16,
        protein_vocab_size=25,
        protein_length_max=32,
        emb_size=384,          # fixed by Conv1d(384, 256, ...) in the module
        dropout_rate=0.1,
        batch_size=2,
        drug_feat_dim=32,      # LazyLinear input feature dim for drug atoms
    )
    key = jax.random.PRNGKey(0)
    pkey, dkey, akey, ikey = jax.random.split(key, 4)
    params = init_params(pkey, cfg)

    B, Ld, Lp = cfg["batch_size"], cfg["drug_length_max"], cfg["protein_length_max"]
    atom_num = jnp.array([10, 14], jnp.int32)
    protein_sequence_length = jnp.array([28, 32], jnp.int32)
    protein_one_hot_index_list = jax.random.randint(
        ikey, (B, Lp), 0, cfg["protein_vocab_size"])

    drug_x = jax.random.normal(dkey, (B, Ld, cfg["drug_feat_dim"]), jnp.float32)
    drug_x = drug_x * (jnp.arange(Ld)[None, :, None] < atom_num[:, None, None])
    adj_raw = jax.random.bernoulli(akey, 0.3, (B, Ld, Ld)).astype(jnp.float32)
    drug_adj = jnp.maximum(adj_raw, jnp.transpose(adj_raw, (0, 2, 1)))

    fwd = jax.jit(functools.partial(forward, cfg=cfg))
    out = fwd(params, atom_num, drug_x, drug_adj,
              protein_sequence_length, protein_one_hot_index_list)
    out = jax.block_until_ready(out)
    assert out.shape == (B, 1) and out.dtype == jnp.float32
    print("KERNEL_OK")
</pallas_src>

<mosaic_0001>
module attributes {stable_mosaic.version = 11 : i64} {
  func.func @_protein_pre_kernel(%arg0: i32, %arg1: memref<1x32x384xf32, #tpu.memory_space<vmem>>, %arg2: memref<3x384x256xf32, #tpu.memory_space<vmem>>, %arg3: memref<1x256xf32, #tpu.memory_space<vmem>>, %arg4: memref<3x256x128xf32, #tpu.memory_space<vmem>>, %arg5: memref<1x128xf32, #tpu.memory_space<vmem>>, %arg6: memref<1x128xf32, #tpu.memory_space<vmem>>, %arg7: memref<1x128xf32, #tpu.memory_space<vmem>>, %arg8: memref<1x32x128xf32, #tpu.memory_space<vmem>>) attributes {dimension_semantics = [#tpu.dimension_semantics<parallel>], iteration_bounds = array<i64: 2>, scalar_prefetch = 0 : i64, scratch_operands = 0 : i64, tpu.core_type = #tpu.core_type<tc>, window_params = [{transform_indices = @transform_0, window_bounds = array<i64: 1, 32, 384>}, {pipeline_mode = #tpu.pipeline_mode<synchronous>, transform_indices = @transform_1, window_bounds = array<i64: 3, 384, 256>}, {pipeline_mode = #tpu.pipeline_mode<synchronous>, transform_indices = @transform_2, window_bounds = array<i64: 1, 256>}, {pipeline_mode = #tpu.pipeline_mode<synchronous>, transform_indices = @transform_3, window_bounds = array<i64: 3, 256, 128>}, {pipeline_mode = #tpu.pipeline_mode<synchronous>, transform_indices = @transform_4, window_bounds = array<i64: 1, 128>}, {pipeline_mode = #tpu.pipeline_mode<synchronous>, transform_indices = @transform_5, window_bounds = array<i64: 1, 128>}, {pipeline_mode = #tpu.pipeline_mode<synchronous>, transform_indices = @transform_6, window_bounds = array<i64: 1, 128>}, {transform_indices = @transform_7, window_bounds = array<i64: 1, 32, 128>}]} {
    %c0 = arith.constant 0 : index
    %c0_0 = arith.constant 0 : index
    %c0_1 = arith.constant 0 : index
    %0 = vector.load %arg1[%c0, %c0_0, %c0_1] : memref<1x32x384xf32, #tpu.memory_space<vmem>>, vector<1x32x384xf32>
    %1 = vector.shape_cast %0 : vector<1x32x384xf32> to vector<32x384xf32>
    %2 = tpu.iota {dimensions = array<i32: 0>} : vector<32x32xi32>
    %3 = tpu.iota {dimensions = array<i32: 1>} : vector<32x32xi32>
    %c1_i32 = arith.constant 1 : i32
    %4 = vector.broadcast %c1_i32 : i32 to vector<32x32xi32>
    %5 = arith.subi %2, %4 : vector<32x32xi32>
    %6 = arith.cmpi eq, %3, %5 : vector<32x32xi32>
    %7 = arith.extui %6 : vector<32x32xi1> to vector<32x32xi32>
    %8 = arith.sitofp %7 : vector<32x32xi32> to vector<32x32xf32>
    %c1_i32_2 = arith.constant 1 : i32
    %9 = vector.broadcast %c1_i32_2 : i32 to vector<32x32xi32>
    %10 = arith.addi %2, %9 : vector<32x32xi32>
    %11 = arith.cmpi eq, %3, %10 : vector<32x32xi32>
    %12 = arith.extui %11 : vector<32x32xi1> to vector<32x32xi32>
    %13 = arith.sitofp %12 : vector<32x32xi32> to vector<32x32xf32>
    %c0_3 = arith.constant 0 : index
    %c0_4 = arith.constant 0 : index
    %c0_5 = arith.constant 0 : index
    %14 = vector.load %arg2[%c0_3, %c0_4, %c0_5] : memref<3x384x256xf32, #tpu.memory_space<vmem>>, vector<1x384x256xf32>
    %15 = vector.shape_cast %14 : vector<1x384x256xf32> to vector<384x256xf32>
    %16 = arith.truncf %1 : vector<32x384xf32> to vector<32x384xbf16>
    %17 = arith.truncf %15 : vector<384x256xf32> to vector<384x256xbf16>
    %cst = arith.constant dense<0.000000e+00> : vector<32x256xf32>
    %18 = tpu.matmul %16, %17, %cst {dimension_numbers = #tpu.dot_dimension_numbers<[1], [0], [0], [1], [0, 0, 1, 1], [], []>} : vector<32x384xbf16>, vector<384x256xbf16>, vector<32x256xf32> -> vector<32x256xf32>
    %c1 = arith.constant 1 : index
    %c0_6 = arith.constant 0 : index
    %c0_7 = arith.constant 0 : index
    %19 = vector.load %arg2[%c1, %c0_6, %c0_7] : memref<3x384x256xf32, #tpu.memory_space<vmem>>, vector<1x384x256xf32>
    %20 = vector.shape_cast %19 : vector<1x384x256xf32> to vector<384x256xf32>
    %21 = arith.truncf %1 : vector<32x384xf32> to vector<32x384xbf16>
    %22 = arith.truncf %20 : vector<384x256xf32> to vector<384x256xbf16>
    %cst_8 = arith.constant dense<0.000000e+00> : vector<32x256xf32>
    %23 = tpu.matmul %21, %22, %cst_8 {dimension_numbers = #tpu.dot_dimension_numbers<[1], [0], [0], [1], [0, 0, 1, 1], [], []>} : vector<32x384xbf16>, vector<384x256xbf16>, vector<32x256xf32> -> vector<32x256xf32>
    %c2 = arith.constant 2 : index
    %c0_9 = arith.constant 0 : index
    %c0_10 = arith.constant 0 : index
    %24 = vector.load %arg2[%c2, %c0_9, %c0_10] : memref<3x384x256xf32, #tpu.memory_space<vmem>>, vector<1x384x256xf32>
    %25 = vector.shape_cast %24 : vector<1x384x256xf32> to vector<384x256xf32>
    %26 = arith.truncf %1 : vector<32x384xf32> to vector<32x384xbf16>
    %27 = arith.truncf %25 : vector<384x256xf32> to vector<384x256xbf16>
    %cst_11 = arith.constant dense<0.000000e+00> : vector<32x256xf32>
    %28 = tpu.matmul %26, %27, %cst_11 {dimension_numbers = #tpu.dot_dimension_numbers<[1], [0], [0], [1], [0, 0, 1, 1], [], []>} : vector<32x384xbf16>, vector<384x256xbf16>, vector<32x256xf32> -> vector<32x256xf32>
    %cst_12 = arith.constant dense<0.000000e+00> : vector<32x256xf32>
    %29 = tpu.matmul %8, %18, %cst_12 {dimension_numbers = #tpu.dot_dimension_numbers<[1], [0], [0], [1], [0, 0, 1, 1], [], []>} : vector<32x32xf32>, vector<32x256xf32>, vector<32x256xf32> -> vector<32x256xf32>
    %30 = arith.addf %29, %23 : vector<32x256xf32>
    %cst_13 = arith.constant dense<0.000000e+00> : vector<32x256xf32>
    %31 = tpu.matmul %13, %28, %cst_13 {dimension_numbers = #tpu.dot_dimension_numbers<[1], [0], [0], [1], [0, 0, 1, 1], [], []>} : vector<32x32xf32>, vector<32x256xf32>, vector<32x256xf32> -> vector<32x256xf32>
    %32 = arith.addf %30, %31 : vector<32x256xf32>
    %c0_14 = arith.constant 0 : index
    %c0_15 = arith.constant 0 : index
    %33 = vector.load %arg3[%c0_14, %c0_15] : memref<1x256xf32, #tpu.memory_space<vmem>>, vector<1x256xf32>
    %34 = vector.broadcast %33 : vector<1x256xf32> to vector<32x256xf32>
    %35 = arith.addf %32, %34 : vector<32x256xf32>
    %c0_16 = arith.constant 0 : index
    %c0_17 = arith.constant 0 : index
    %c0_18 = arith.constant 0 : index
    %36 = vector.load %arg4[%c0_16, %c0_17, %c0_18] : memref<3x256x128xf32, #tpu.memory_space<vmem>>, vector<1x256x128xf32>
    %37 = vector.shape_cast %36 : vector<1x256x128xf32> to vector<256x128xf32>
    %38 = arith.truncf %35 : vector<32x256xf32> to vector<32x256xbf16>
    %39 = arith.truncf %37 : vector<256x128xf32> to vector<256x128xbf16>
    %cst_19 = arith.constant dense<0.000000e+00> : vector<32x128xf32>
    %40 = tpu.matmul %38, %39, %cst_19 {dimension_numbers = #tpu.dot_dimension_numbers<[1], [0], [0], [1], [0, 0, 1, 1], [], []>} : vector<32x256xbf16>, vector<256x128xbf16>, vector<32x128xf32> -> vector<32x128xf32>
    %c1_20 = arith.constant 1 : index
    %c0_21 = arith.constant 0 : index
    %c0_22 = arith.constant 0 : index
    %41 = vector.load %arg4[%c1_20, %c0_21, %c0_22] : memref<3x256x128xf32, #tpu.memory_space<vmem>>, vector<1x256x128xf32>
    %42 = vector.shape_cast %41 : vector<1x256x128xf32> to vector<256x128xf32>
    %43 = arith.truncf %35 : vector<32x256xf32> to vector<32x256xbf16>
    %44 = arith.truncf %42 : vector<256x128xf32> to vector<256x128xbf16>
    %cst_23 = arith.constant dense<0.000000e+00> : vector<32x128xf32>
    %45 = tpu.matmul %43, %44, %cst_23 {dimension_numbers = #tpu.dot_dimension_numbers<[1], [0], [0], [1], [0, 0, 1, 1], [], []>} : vector<32x256xbf16>, vector<256x128xbf16>, vector<32x128xf32> -> vector<32x128xf32>
    %c2_24 = arith.constant 2 : index
    %c0_25 = arith.constant 0 : index
    %c0_26 = arith.constant 0 : index
    %46 = vector.load %arg4[%c2_24, %c0_25, %c0_26] : memref<3x256x128xf32, #tpu.memory_space<vmem>>, vector<1x256x128xf32>
    %47 = vector.shape_cast %46 : vector<1x256x128xf32> to vector<256x128xf32>
    %48 = arith.truncf %35 : vector<32x256xf32> to vector<32x256xbf16>
    %49 = arith.truncf %47 : vector<256x128xf32> to vector<256x128xbf16>
    %cst_27 = arith.constant dense<0.000000e+00> : vector<32x128xf32>
    %50 = tpu.matmul %48, %49, %cst_27 {dimension_numbers = #tpu.dot_dimension_numbers<[1], [0], [0], [1], [0, 0, 1, 1], [], []>} : vector<32x256xbf16>, vector<256x128xbf16>, vector<32x128xf32> -> vector<32x128xf32>
    %cst_28 = arith.constant dense<0.000000e+00> : vector<32x128xf32>
    %51 = tpu.matmul %8, %40, %cst_28 {dimension_numbers = #tpu.dot_dimension_numbers<[1], [0], [0], [1], [0, 0, 1, 1], [], []>} : vector<32x32xf32>, vector<32x128xf32>, vector<32x128xf32> -> vector<32x128xf32>
    %52 = arith.addf %51, %45 : vector<32x128xf32>
    %cst_29 = arith.constant dense<0.000000e+00> : vector<32x128xf32>
    %53 = tpu.matmul %13, %50, %cst_29 {dimension_numbers = #tpu.dot_dimension_numbers<[1], [0], [0], [1], [0, 0, 1, 1], [], []>} : vector<32x32xf32>, vector<32x128xf32>, vector<32x128xf32> -> vector<32x128xf32>
    %54 = arith.addf %52, %53 : vector<32x128xf32>
    %c0_30 = arith.constant 0 : index
    %c0_31 = arith.constant 0 : index
    %55 = vector.load %arg5[%c0_30, %c0_31] : memref<1x128xf32, #tpu.memory_space<vmem>>, vector<1x128xf32>
    %56 = vector.broadcast %55 : vector<1x128xf32> to vector<32x128xf32>
    %57 = arith.addf %54, %56 : vector<32x128xf32>
    %c0_32 = arith.constant 0 : index
    %c0_33 = arith.constant 0 : index
    %58 = vector.load %arg6[%c0_32, %c0_33] : memref<1x128xf32, #tpu.memory_space<vmem>>, vector<1x128xf32>
    %c0_34 = arith.constant 0 : index
    %c0_35 = arith.constant 0 : index
    %59 = vector.load %arg7[%c0_34, %c0_35] : memref<1x128xf32, #tpu.memory_space<vmem>>, vector<1x128xf32>
    %cst_36 = arith.constant dense<0.000000e+00> : vector<32xf32>
    %60 = vector.multi_reduction <add>, %57, %cst_36 [1] : vector<32x128xf32> to vector<32xf32>
    %61 = vector.shape_cast %60 : vector<32xf32> to vector<32x1xf32>
    %cst_37 = arith.constant 1.280000e+02 : f32
    %62 = vector.broadcast %cst_37 : f32 to vector<32x1xf32>
    %63 = arith.divf %61, %62 : vector<32x1xf32>
    %64 = vector.broadcast %63 : vector<32x1xf32> to vector<32x128xf32>
    %65 = arith.subf %57, %64 : vector<32x128xf32>
    %66 = arith.mulf %65, %65 : vector<32x128xf32>
    %cst_38 = arith.constant dense<0.000000e+00> : vector<32xf32>
    %67 = vector.multi_reduction <add>, %66, %cst_38 [1] : vector<32x128xf32> to vector<32xf32>
    %68 = vector.shape_cast %67 : vector<32xf32> to vector<32x1xf32>
    %cst_39 = arith.constant 1.280000e+02 : f32
    %69 = vector.broadcast %cst_39 : f32 to vector<32x1xf32>
    %70 = arith.divf %68, %69 : vector<32x1xf32>
    %71 = vector.broadcast %63 : vector<32x1xf32> to vector<32x128xf32>
    %72 = arith.subf %57, %71 : vector<32x128xf32>
    %cst_40 = arith.constant 9.99999974E-6 : f32
    %73 = vector.broadcast %cst_40 : f32 to vector<32x1xf32>
    %74 = arith.addf %70, %73 : vector<32x1xf32>
    %75 = math.rsqrt %74 : vector<32x1xf32>
    %76 = vector.broadcast %75 : vector<32x1xf32> to vector<32x128xf32>
    %77 = arith.mulf %72, %76 : vector<32x128xf32>
    %78 = vector.broadcast %58 : vector<1x128xf32> to vector<32x128xf32>
    %79 = arith.mulf %77, %78 : vector<32x128xf32>
    %80 = vector.broadcast %59 : vector<1x128xf32> to vector<32x128xf32>
    %81 = arith.addf %79, %80 : vector<32x128xf32>
    %c0_41 = arith.constant 0 : index
    %c0_42 = arith.constant 0 : index
    %c0_43 = arith.constant 0 : index
    %82 = vector.load %arg8[%c0_41, %c0_42, %c0_43] : memref<1x32x128xf32, #tpu.memory_space<vmem>>, vector<1x32x128xf32>
    %83 = vector.shape_cast %82 : vector<1x32x128xf32> to vector<32x128xf32>
    %84 = vector.shape_cast %81 : vector<32x128xf32> to vector<1x32x128xf32>
    tpu.vector_store %arg8[%c0_41, %c0_42, %c0_43], %84 {strides = array<i32>} : memref<1x32x128xf32, #tpu.memory_space<vmem>>, vector<1x32x128xf32>,
    return
  }
  func.func @transform_0(%arg0: i32) -> (i32, i32, i32) {
    %c0_i32 = arith.constant 0 : i32
    %c0_i32_0 = arith.constant 0 : i32
    %c0_i32_1 = arith.constant 0 : i32
    return %arg0, %c0_i32, %c0_i32_0 : i32, i32, i32
  }
  func.func @transform_1(%arg0: i32) -> (i32, i32, i32) {
    %c0_i32 = arith.constant 0 : i32
    %c0_i32_0 = arith.constant 0 : i32
    %c0_i32_1 = arith.constant 0 : i32
    %c0_i32_2 = arith.constant 0 : i32
    return %c0_i32, %c0_i32_0, %c0_i32_1 : i32, i32, i32
  }
  func.func @transform_2(%arg0: i32) -> (i32, i32) {
    %c0_i32 = arith.constant 0 : i32
    %c0_i32_0 = arith.constant 0 : i32
    %c0_i32_1 = arith.constant 0 : i32
    return %c0_i32, %c0_i32_0 : i32, i32
  }
  func.func @transform_3(%arg0: i32) -> (i32, i32, i32) {
    %c0_i32 = arith.constant 0 : i32
    %c0_i32_0 = arith.constant 0 : i32
    %c0_i32_1 = arith.constant 0 : i32
    %c0_i32_2 = arith.constant 0 : i32
    return %c0_i32, %c0_i32_0, %c0_i32_1 : i32, i32, i32
  }
  func.func @transform_4(%arg0: i32) -> (i32, i32) {
    %c0_i32 = arith.constant 0 : i32
    %c0_i32_0 = arith.constant 0 : i32
    %c0_i32_1 = arith.constant 0 : i32
    return %c0_i32, %c0_i32_0 : i32, i32
  }
  func.func @transform_5(%arg0: i32) -> (i32, i32) {
    %c0_i32 = arith.constant 0 : i32
    %c0_i32_0 = arith.constant 0 : i32
    %c0_i32_1 = arith.constant 0 : i32
    return %c0_i32, %c0_i32_0 : i32, i32
  }
  func.func @transform_6(%arg0: i32) -> (i32, i32) {
    %c0_i32 = arith.constant 0 : i32
    %c0_i32_0 = arith.constant 0 : i32
    %c0_i32_1 = arith.constant 0 : i32
    return %c0_i32, %c0_i32_0 : i32, i32
  }
  func.func @transform_7(%arg0: i32) -> (i32, i32, i32) {
    %c0_i32 = arith.constant 0 : i32
    %c0_i32_0 = arith.constant 0 : i32
    %c0_i32_1 = arith.constant 0 : i32
    return %arg0, %c0_i32, %c0_i32_0 : i32, i32, i32
  }
}

module attributes {stable_mosaic.version = 11 : i64} {
  func.func @_xattn_kernel(%arg0: i32, %arg1: memref<1x32x128xf32, #tpu.memory_space<vmem>>, %arg2: memref<1x16x128xf32, #tpu.memory_space<vmem>>, %arg3: memref<1x1x16xf32, #tpu.memory_space<vmem>>, %arg4: memref<128x128xf32, #tpu.memory_space<vmem>>, %arg5: memref<1x128xf32, #tpu.memory_space<vmem>>, %arg6: memref<128x256xf32, #tpu.memory_space<vmem>>, %arg7: memref<1x256xf32, #tpu.memory_space<vmem>>, %arg8: memref<128x128xf32, #tpu.memory_space<vmem>>, %arg9: memref<1x128xf32, #tpu.memory_space<vmem>>, %arg10: memref<1x128xf32, #tpu.memory_space<vmem>>, %arg11: memref<1x128xf32, #tpu.memory_space<vmem>>, %arg12: memref<128x256xf32, #tpu.memory_space<vmem>>, %arg13: memref<1x256xf32, #tpu.memory_space<vmem>>, %arg14: memref<256x128xf32, #tpu.memory_space<vmem>>, %arg15: memref<1x128xf32, #tpu.memory_space<vmem>>, %arg16: memref<1x128xf32, #tpu.memory_space<vmem>>, %arg17: memref<1x128xf32, #tpu.memory_space<vmem>>, %arg18: memref<1x32x128xf32, #tpu.memory_space<vmem>>) attributes {dimension_semantics = [#tpu.dimension_semantics<parallel>], iteration_bounds = array<i64: 2>, scalar_prefetch = 0 : i64, scratch_operands = 0 : i64, tpu.core_type = #tpu.core_type<tc>, window_params = [{transform_indices = @transform_0, window_bounds = array<i64: 1, 32, 128>}, {transform_indices = @transform_1, window_bounds = array<i64: 1, 16, 128>}, {transform_indices = @transform_2, window_bounds = array<i64: 1, 1, 16>}, {pipeline_mode = #tpu.pipeline_mode<synchronous>, transform_indices = @transform_3, window_bounds = array<i64: 128, 128>}, {pipeline_mode = #tpu.pipeline_mode<synchronous>, transform_indices = @transform_4, window_bounds = array<i64: 1, 128>}, {pipeline_mode = #tpu.pipeline_mode<synchronous>, transform_indices = @transform_5, window_bounds = array<i64: 128, 256>}, {pipeline_mode = #tpu.pipeline_mode<synchronous>, transform_indices = @transform_6, window_bounds = array<i64: 1, 256>}, {pipeline_mode = #tpu.pipeline_mode<synchronous>, transform_indices = @transform_7, window_bounds = array<i64: 128, 128>}, {pipeline_mode = #tpu.pipeline_mode<synchronous>, transform_indices = @transform_8, window_bounds = array<i64: 1, 128>}, {pipeline_mode = #tpu.pipeline_mode<synchronous>, transform_indices = @transform_9, window_bounds = array<i64: 1, 128>}, {pipeline_mode = #tpu.pipeline_mode<synchronous>, transform_indices = @transform_10, window_bounds = array<i64: 1, 128>}, {pipeline_mode = #tpu.pipeline_mode<synchronous>, transform_indices = @transform_11, window_bounds = array<i64: 128, 256>}, {pipeline_mode = #tpu.pipeline_mode<synchronous>, transform_indices = @transform_12, window_bounds = array<i64: 1, 256>}, {pipeline_mode = #tpu.pipeline_mode<synchronous>, transform_indices = @transform_13, window_bounds = array<i64: 256, 128>}, {pipeline_mode = #tpu.pipeline_mode<synchronous>, transform_indices = @transform_14, window_bounds = array<i64: 1, 128>}, {pipeline_mode = #tpu.pipeline_mode<synchronous>, transform_indices = @transform_15, window_bounds = array<i64: 1, 128>}, {pipeline_mode = #tpu.pipeline_mode<synchronous>, transform_indices = @transform_16, window_bounds = array<i64: 1, 128>}, {transform_indices = @transform_17, window_bounds = array<i64: 1, 32, 128>}]} {
    %c0 = arith.constant 0 : index
    %c0_0 = arith.constant 0 : index
    %c0_1 = arith.constant 0 : index
    %0 = vector.load %arg1[%c0, %c0_0, %c0_1] : memref<1x32x128xf32, #tpu.memory_space<vmem>>, vector<1x32x128xf32>
    %1 = vector.shape_cast %0 : vector<1x32x128xf32> to vector<32x128xf32>
    %c0_2 = arith.constant 0 : index
    %c0_3 = arith.constant 0 : index
    %c0_4 = arith.constant 0 : index
    %2 = vector.load %arg2[%c0_2, %c0_3, %c0_4] : memref<1x16x128xf32, #tpu.memory_space<vmem>>, vector<1x16x128xf32>
    %3 = vector.shape_cast %2 : vector<1x16x128xf32> to vector<16x128xf32>
    %c0_5 = arith.constant 0 : index
    %c0_6 = arith.constant 0 : index
    %c0_7 = arith.constant 0 : index
    %4 = vector.load %arg3[%c0_5, %c0_6, %c0_7] : memref<1x1x16xf32, #tpu.memory_space<vmem>>, vector<1x1x16xf32>
    %5 = vector.shape_cast %4 : vector<1x1x16xf32> to vector<1x16xf32>
    %c0_8 = arith.constant 0 : index
    %c0_9 = arith.constant 0 : index
    %6 = vector.load %arg4[%c0_8, %c0_9] : memref<128x128xf32, #tpu.memory_space<vmem>>, vector<128x128xf32>
    %7 = arith.truncf %1 : vector<32x128xf32> to vector<32x128xbf16>
    %8 = arith.truncf %6 : vector<128x128xf32> to vector<128x128xbf16>
    %cst = arith.constant dense<0.000000e+00> : vector<32x128xf32>
    %9 = tpu.matmul %7, %8, %cst {dimension_numbers = #tpu.dot_dimension_numbers<[1], [0], [0], [1], [0, 0, 1, 1], [], []>} : vector<32x128xbf16>, vector<128x128xbf16>, vector<32x128xf32> -> vector<32x128xf32>
    %c0_10 = arith.constant 0 : index
    %c0_11 = arith.constant 0 : index
    %10 = vector.load %arg5[%c0_10, %c0_11] : memref<1x128xf32, #tpu.memory_space<vmem>>, vector<1x128xf32>
    %11 = vector.broadcast %10 : vector<1x128xf32> to vector<32x128xf32>
    %12 = arith.addf %9, %11 : vector<32x128xf32>
    %c0_12 = arith.constant 0 : index
    %c0_13 = arith.constant 0 : index
    %13 = vector.load %arg6[%c0_12, %c0_13] : memref<128x256xf32, #tpu.memory_space<vmem>>, vector<128x256xf32>
    %14 = arith.truncf %3 : vector<16x128xf32> to vector<16x128xbf16>
    %15 = arith.truncf %13 : vector<128x256xf32> to vector<128x256xbf16>
    %cst_14 = arith.constant dense<0.000000e+00> : vector<16x256xf32>
    %16 = tpu.matmul %14, %15, %cst_14 {dimension_numbers = #tpu.dot_dimension_numbers<[1], [0], [0], [1], [0, 0, 1, 1], [], []>} : vector<16x128xbf16>, vector<128x256xbf16>, vector<16x256xf32> -> vector<16x256xf32>
    %c0_15 = arith.constant 0 : index
    %c0_16 = arith.constant 0 : index
    %17 = vector.load %arg7[%c0_15, %c0_16] : memref<1x256xf32, #tpu.memory_space<vmem>>, vector<1x256xf32>
    %18 = vector.broadcast %17 : vector<1x256xf32> to vector<16x256xf32>
    %19 = arith.addf %16, %18 : vector<16x256xf32>
    %20 = vector.extract_strided_slice %19 {offsets = [0, 0], sizes = [16, 128], strides = [1, 1]} : vector<16x256xf32> to vector<16x128xf32>
    %21 = vector.extract_strided_slice %19 {offsets = [0, 128], sizes = [16, 128], strides = [1, 1]} : vector<16x256xf32> to vector<16x128xf32>
    %22 = vector.extract_strided_slice %12 {offsets = [0, 0], sizes = [32, 32], strides = [1, 1]} : vector<32x128xf32> to vector<32x32xf32>
    %23 = vector.extract_strided_slice %20 {offsets = [0, 0], sizes = [16, 32], strides = [1, 1]} : vector<16x128xf32> to vector<16x32xf32>
    %24 = vector.extract_strided_slice %21 {offsets = [0, 0], sizes = [16, 32], strides = [1, 1]} : vector<16x128xf32> to vector<16x32xf32>
    %25 = arith.truncf %22 : vector<32x32xf32> to vector<32x32xbf16>
    %26 = arith.truncf %23 : vector<16x32xf32> to vector<16x32xbf16>
    %cst_17 = arith.constant dense<0.000000e+00> : vector<32x16xf32>
    %27 = tpu.matmul %25, %26, %cst_17 {dimension_numbers = #tpu.dot_dimension_numbers<[1], [1], [0], [0], [0, 0, 1, 0], [], []>} : vector<32x32xbf16>, vector<16x32xbf16>, vector<32x16xf32> -> vector<32x16xf32>
    %cst_18 = arith.constant 0.176776692 : f32
    %28 = vector.broadcast %cst_18 : f32 to vector<32x16xf32>
    %29 = arith.mulf %27, %28 : vector<32x16xf32>
    %30 = vector.broadcast %5 : vector<1x16xf32> to vector<32x16xf32>
    %31 = arith.addf %29, %30 : vector<32x16xf32>
    %cst_19 = arith.constant dense<0xFF800000> : vector<32xf32>
    %32 = vector.multi_reduction <maximumf>, %31, %cst_19 [1] : vector<32x16xf32> to vector<32xf32>
    %33 = vector.shape_cast %32 : vector<32xf32> to vector<32x1xf32>
    %34 = vector.broadcast %33 : vector<32x1xf32> to vector<32x16xf32>
    %35 = arith.subf %31, %34 : vector<32x16xf32>
    %36 = math.exp %35 : vector<32x16xf32>
    %cst_20 = arith.constant dense<0.000000e+00> : vector<32xf32>
    %37 = vector.multi_reduction <add>, %36, %cst_20 [1] : vector<32x16xf32> to vector<32xf32>
    %38 = vector.shape_cast %37 : vector<32xf32> to vector<32x1xf32>
    %39 = tpu.reciprocal %38 {approx = true} : vector<32x1xf32> -> vector<32x1xf32>
    %40 = vector.broadcast %39 : vector<32x1xf32> to vector<32x16xf32>
    %41 = arith.mulf %36, %40 : vector<32x16xf32>
    %42 = arith.truncf %41 : vector<32x16xf32> to vector<32x16xbf16>
    %43 = arith.truncf %24 : vector<16x32xf32> to vector<16x32xbf16>
    %cst_21 = arith.constant dense<0.000000e+00> : vector<32x32xf32>
    %44 = tpu.matmul %42, %43, %cst_21 {dimension_numbers = #tpu.dot_dimension_numbers<[1], [0], [0], [1], [0, 0, 1, 1], [], []>} : vector<32x16xbf16>, vector<16x32xbf16>, vector<32x32xf32> -> vector<32x32xf32>
    %45 = vector.extract_strided_slice %12 {offsets = [0, 32], sizes = [32, 32], strides = [1, 1]} : vector<32x128xf32> to vector<32x32xf32>
    %46 = vector.extract_strided_slice %20 {offsets = [0, 32], sizes = [16, 32], strides = [1, 1]} : vector<16x128xf32> to vector<16x32xf32>
    %47 = vector.extract_strided_slice %21 {offsets = [0, 32], sizes = [16, 32], strides = [1, 1]} : vector<16x128xf32> to vector<16x32xf32>
    %48 = arith.truncf %45 : vector<32x32xf32> to vector<32x32xbf16>
    %49 = arith.truncf %46 : vector<16x32xf32> to vector<16x32xbf16>
    %cst_22 = arith.constant dense<0.000000e+00> : vector<32x16xf32>
    %50 = tpu.matmul %48, %49, %cst_22 {dimension_numbers = #tpu.dot_dimension_numbers<[1], [1], [0], [0], [0, 0, 1, 0], [], []>} : vector<32x32xbf16>, vector<16x32xbf16>, vector<32x16xf32> -> vector<32x16xf32>
    %cst_23 = arith.constant 0.176776692 : f32
    %51 = vector.broadcast %cst_23 : f32 to vector<32x16xf32>
    %52 = arith.mulf %50, %51 : vector<32x16xf32>
    %53 = vector.broadcast %5 : vector<1x16xf32> to vector<32x16xf32>
    %54 = arith.addf %52, %53 : vector<32x16xf32>
    %cst_24 = arith.constant dense<0xFF800000> : vector<32xf32>
    %55 = vector.multi_reduction <maximumf>, %54, %cst_24 [1] : vector<32x16xf32> to vector<32xf32>
    %56 = vector.shape_cast %55 : vector<32xf32> to vector<32x1xf32>
    %57 = vector.broadcast %56 : vector<32x1xf32> to vector<32x16xf32>
    %58 = arith.subf %54, %57 : vector<32x16xf32>
    %59 = math.exp %58 : vector<32x16xf32>
    %cst_25 = arith.constant dense<0.000000e+00> : vector<32xf32>
    %60 = vector.multi_reduction <add>, %59, %cst_25 [1] : vector<32x16xf32> to vector<32xf32>
    %61 = vector.shape_cast %60 : vector<32xf32> to vector<32x1xf32>
    %62 = tpu.reciprocal %61 {approx = true} : vector<32x1xf32> -> vector<32x1xf32>
    %63 = vector.broadcast %62 : vector<32x1xf32> to vector<32x16xf32>
    %64 = arith.mulf %59, %63 : vector<32x16xf32>
    %65 = arith.truncf %64 : vector<32x16xf32> to vector<32x16xbf16>
    %66 = arith.truncf %47 : vector<16x32xf32> to vector<16x32xbf16>
    %cst_26 = arith.constant dense<0.000000e+00> : vector<32x32xf32>
    %67 = tpu.matmul %65, %66, %cst_26 {dimension_numbers = #tpu.dot_dimension_numbers<[1], [0], [0], [1], [0, 0, 1, 1], [], []>} : vector<32x16xbf16>, vector<16x32xbf16>, vector<32x32xf32> -> vector<32x32xf32>
    %68 = vector.extract_strided_slice %12 {offsets = [0, 64], sizes = [32, 32], strides = [1, 1]} : vector<32x128xf32> to vector<32x32xf32>
    %69 = vector.extract_strided_slice %20 {offsets = [0, 64], sizes = [16, 32], strides = [1, 1]} : vector<16x128xf32> to vector<16x32xf32>
    %70 = vector.extract_strided_slice %21 {offsets = [0, 64], sizes = [16, 32], strides = [1, 1]} : vector<16x128xf32> to vector<16x32xf32>
    %71 = arith.truncf %68 : vector<32x32xf32> to vector<32x32xbf16>
    %72 = arith.truncf %69 : vector<16x32xf32> to vector<16x32xbf16>
    %cst_27 = arith.constant dense<0.000000e+00> : vector<32x16xf32>
    %73 = tpu.matmul %71, %72, %cst_27 {dimension_numbers = #tpu.dot_dimension_numbers<[1], [1], [0], [0], [0, 0, 1, 0], [], []>} : vector<32x32xbf16>, vector<16x32xbf16>, vector<32x16xf32> -> vector<32x16xf32>
    %cst_28 = arith.constant 0.176776692 : f32
    %74 = vector.broadcast %cst_28 : f32 to vector<32x16xf32>
    %75 = arith.mulf %73, %74 : vector<32x16xf32>
    %76 = vector.broadcast %5 : vector<1x16xf32> to vector<32x16xf32>
    %77 = arith.addf %75, %76 : vector<32x16xf32>
    %cst_29 = arith.constant dense<0xFF800000> : vector<32xf32>
    %78 = vector.multi_reduction <maximumf>, %77, %cst_29 [1] : vector<32x16xf32> to vector<32xf32>
    %79 = vector.shape_cast %78 : vector<32xf32> to vector<32x1xf32>
    %80 = vector.broadcast %79 : vector<32x1xf32> to vector<32x16xf32>
    %81 = arith.subf %77, %80 : vector<32x16xf32>
    %82 = math.exp %81 : vector<32x16xf32>
    %cst_30 = arith.constant dense<0.000000e+00> : vector<32xf32>
    %83 = vector.multi_reduction <add>, %82, %cst_30 [1] : vector<32x16xf32> to vector<32xf32>
    %84 = vector.shape_cast %83 : vector<32xf32> to vector<32x1xf32>
    %85 = tpu.reciprocal %84 {approx = true} : vector<32x1xf32> -> vector<32x1xf32>
    %86 = vector.broadcast %85 : vector<32x1xf32> to vector<32x16xf32>
    %87 = arith.mulf %82, %86 : vector<32x16xf32>
    %88 = arith.truncf %87 : vector<32x16xf32> to vector<32x16xbf16>
    %89 = arith.truncf %70 : vector<16x32xf32> to vector<16x32xbf16>
    %cst_31 = arith.constant dense<0.000000e+00> : vector<32x32xf32>
    %90 = tpu.matmul %88, %89, %cst_31 {dimension_numbers = #tpu.dot_dimension_numbers<[1], [0], [0], [1], [0, 0, 1, 1], [], []>} : vector<32x16xbf16>, vector<16x32xbf16>, vector<32x32xf32> -> vector<32x32xf32>
    %91 = vector.extract_strided_slice %12 {offsets = [0, 96], sizes = [32, 32], strides = [1, 1]} : vector<32x128xf32> to vector<32x32xf32>
    %92 = vector.extract_strided_slice %20 {offsets = [0, 96], sizes = [16, 32], strides = [1, 1]} : vector<16x128xf32> to vector<16x32xf32>
    %93 = vector.extract_strided_slice %21 {offsets = [0, 96], sizes = [16, 32], strides = [1, 1]} : vector<16x128xf32> to vector<16x32xf32>
    %94 = arith.truncf %91 : vector<32x32xf32> to vector<32x32xbf16>
    %95 = arith.truncf %92 : vector<16x32xf32> to vector<16x32xbf16>
    %cst_32 = arith.constant dense<0.000000e+00> : vector<32x16xf32>
    %96 = tpu.matmul %94, %95, %cst_32 {dimension_numbers = #tpu.dot_dimension_numbers<[1], [1], [0], [0], [0, 0, 1, 0], [], []>} : vector<32x32xbf16>, vector<16x32xbf16>, vector<32x16xf32> -> vector<32x16xf32>
    %cst_33 = arith.constant 0.176776692 : f32
    %97 = vector.broadcast %cst_33 : f32 to vector<32x16xf32>
    %98 = arith.mulf %96, %97 : vector<32x16xf32>
    %99 = vector.broadcast %5 : vector<1x16xf32> to vector<32x16xf32>
    %100 = arith.addf %98, %99 : vector<32x16xf32>
    %cst_34 = arith.constant dense<0xFF800000> : vector<32xf32>
    %101 = vector.multi_reduction <maximumf>, %100, %cst_34 [1] : vector<32x16xf32> to vector<32xf32>
    %102 = vector.shape_cast %101 : vector<32xf32> to vector<32x1xf32>
    %103 = vector.broadcast %102 : vector<32x1xf32> to vector<32x16xf32>
    %104 = arith.subf %100, %103 : vector<32x16xf32>
    %105 = math.exp %104 : vector<32x16xf32>
    %cst_35 = arith.constant dense<0.000000e+00> : vector<32xf32>
    %106 = vector.multi_reduction <add>, %105, %cst_35 [1] : vector<32x16xf32> to vector<32xf32>
    %107 = vector.shape_cast %106 : vector<32xf32> to vector<32x1xf32>
    %108 = tpu.reciprocal %107 {approx = true} : vector<32x1xf32> -> vector<32x1xf32>
    %109 = vector.broadcast %108 : vector<32x1xf32> to vector<32x16xf32>
    %110 = arith.mulf %105, %109 : vector<32x16xf32>
    %111 = arith.truncf %110 : vector<32x16xf32> to vector<32x16xbf16>
    %112 = arith.truncf %93 : vector<16x32xf32> to vector<16x32xbf16>
    %cst_36 = arith.constant dense<0.000000e+00> : vector<32x32xf32>
    %113 = tpu.matmul %111, %112, %cst_36 {dimension_numbers = #tpu.dot_dimension_numbers<[1], [0], [0], [1], [0, 0, 1, 1], [], []>} : vector<32x16xbf16>, vector<16x32xbf16>, vector<32x32xf32> -> vector<32x32xf32>
    %114 = tpu.concatenate %44, %67, %90, %113 in 1 : vector<32x32xf32>, vector<32x32xf32>, vector<32x32xf32>, vector<32x32xf32> -> vector<32x128xf32>
    %c0_37 = arith.constant 0 : index
    %c0_38 = arith.constant 0 : index
    %115 = vector.load %arg8[%c0_37, %c0_38] : memref<128x128xf32, #tpu.memory_space<vmem>>, vector<128x128xf32>
    %116 = arith.truncf %114 : vector<32x128xf32> to vector<32x128xbf16>
    %117 = arith.truncf %115 : vector<128x128xf32> to vector<128x128xbf16>
    %cst_39 = arith.constant dense<0.000000e+00> : vector<32x128xf32>
    %118 = tpu.matmul %116, %117, %cst_39 {dimension_numbers = #tpu.dot_dimension_numbers<[1], [0], [0], [1], [0, 0, 1, 1], [], []>} : vector<32x128xbf16>, vector<128x128xbf16>, vector<32x128xf32> -> vector<32x128xf32>
    %c0_40 = arith.constant 0 : index
    %c0_41 = arith.constant 0 : index
    %119 = vector.load %arg9[%c0_40, %c0_41] : memref<1x128xf32, #tpu.memory_space<vmem>>, vector<1x128xf32>
    %120 = vector.broadcast %119 : vector<1x128xf32> to vector<32x128xf32>
    %121 = arith.addf %118, %120 : vector<32x128xf32>
    %122 = arith.addf %1, %121 : vector<32x128xf32>
    %c0_42 = arith.constant 0 : index
    %c0_43 = arith.constant 0 : index
    %123 = vector.load %arg10[%c0_42, %c0_43] : memref<1x128xf32, #tpu.memory_space<vmem>>, vector<1x128xf32>
    %c0_44 = arith.constant 0 : index
    %c0_45 = arith.constant 0 : index
    %124 = vector.load %arg11[%c0_44, %c0_45] : memref<1x128xf32, #tpu.memory_space<vmem>>, vector<1x128xf32>
    %cst_46 = arith.constant dense<0.000000e+00> : vector<32xf32>
    %125 = vector.multi_reduction <add>, %122, %cst_46 [1] : vector<32x128xf32> to vector<32xf32>
    %126 = vector.shape_cast %125 : vector<32xf32> to vector<32x1xf32>
    %cst_47 = arith.constant 1.280000e+02 : f32
    %127 = vector.broadcast %cst_47 : f32 to vector<32x1xf32>
    %128 = arith.divf %126, %127 : vector<32x1xf32>
    %129 = vector.broadcast %128 : vector<32x1xf32> to vector<32x128xf32>
    %130 = arith.subf %122, %129 : vector<32x128xf32>
    %131 = arith.mulf %130, %130 : vector<32x128xf32>
    %cst_48 = arith.constant dense<0.000000e+00> : vector<32xf32>
    %132 = vector.multi_reduction <add>, %131, %cst_48 [1] : vector<32x128xf32> to vector<32xf32>
    %133 = vector.shape_cast %132 : vector<32xf32> to vector<32x1xf32>
    %cst_49 = arith.constant 1.280000e+02 : f32
    %134 = vector.broadcast %cst_49 : f32 to vector<32x1xf32>
    %135 = arith.divf %133, %134 : vector<32x1xf32>
    %136 = vector.broadcast %128 : vector<32x1xf32> to vector<32x128xf32>
    %137 = arith.subf %122, %136 : vector<32x128xf32>
    %cst_50 = arith.constant 9.99999974E-6 : f32
    %138 = vector.broadcast %cst_50 : f32 to vector<32x1xf32>
    %139 = arith.addf %135, %138 : vector<32x1xf32>
    %140 = math.rsqrt %139 : vector<32x1xf32>
    %141 = vector.broadcast %140 : vector<32x1xf32> to vector<32x128xf32>
    %142 = arith.mulf %137, %141 : vector<32x128xf32>
    %143 = vector.broadcast %123 : vector<1x128xf32> to vector<32x128xf32>
    %144 = arith.mulf %142, %143 : vector<32x128xf32>
    %145 = vector.broadcast %124 : vector<1x128xf32> to vector<32x128xf32>
    %146 = arith.addf %144, %145 : vector<32x128xf32>
    %c0_51 = arith.constant 0 : index
    %c0_52 = arith.constant 0 : index
    %147 = vector.load %arg12[%c0_51, %c0_52] : memref<128x256xf32, #tpu.memory_space<vmem>>, vector<128x256xf32>
    %148 = arith.truncf %146 : vector<32x128xf32> to vector<32x128xbf16>
    %149 = arith.truncf %147 : vector<128x256xf32> to vector<128x256xbf16>
    %cst_53 = arith.constant dense<0.000000e+00> : vector<32x256xf32>
    %150 = tpu.matmul %148, %149, %cst_53 {dimension_numbers = #tpu.dot_dimension_numbers<[1], [0], [0], [1], [0, 0, 1, 1], [], []>} : vector<32x128xbf16>, vector<128x256xbf16>, vector<32x256xf32> -> vector<32x256xf32>
    %c0_54 = arith.constant 0 : index
    %c0_55 = arith.constant 0 : index
    %151 = vector.load %arg13[%c0_54, %c0_55] : memref<1x256xf32, #tpu.memory_space<vmem>>, vector<1x256xf32>
    %152 = vector.broadcast %151 : vector<1x256xf32> to vector<32x256xf32>
    %153 = arith.addf %150, %152 : vector<32x256xf32>
    %cst_56 = arith.constant 0.000000e+00 : f32
    %154 = vector.broadcast %cst_56 : f32 to vector<32x256xf32>
    %155 = arith.maximumf %153, %154 : vector<32x256xf32>
    %c0_57 = arith.constant 0 : index
    %c0_58 = arith.constant 0 : index
    %156 = vector.load %arg14[%c0_57, %c0_58] : memref<256x128xf32, #tpu.memory_space<vmem>>, vector<256x128xf32>
    %157 = arith.truncf %155 : vector<32x256xf32> to vector<32x256xbf16>
    %158 = arith.truncf %156 : vector<256x128xf32> to vector<256x128xbf16>
    %cst_59 = arith.constant dense<0.000000e+00> : vector<32x128xf32>
    %159 = tpu.matmul %157, %158, %cst_59 {dimension_numbers = #tpu.dot_dimension_numbers<[1], [0], [0], [1], [0, 0, 1, 1], [], []>} : vector<32x256xbf16>, vector<256x128xbf16>, vector<32x128xf32> -> vector<32x128xf32>
    %c0_60 = arith.constant 0 : index
    %c0_61 = arith.constant 0 : index
    %160 = vector.load %arg15[%c0_60, %c0_61] : memref<1x128xf32, #tpu.memory_space<vmem>>, vector<1x128xf32>
    %161 = vector.broadcast %160 : vector<1x128xf32> to vector<32x128xf32>
    %162 = arith.addf %159, %161 : vector<32x128xf32>
    %163 = arith.addf %146, %162 : vector<32x128xf32>
    %c0_62 = arith.constant 0 : index
    %c0_63 = arith.constant 0 : index
    %164 = vector.load %arg16[%c0_62, %c0_63] : memref<1x128xf32, #tpu.memory_space<vmem>>, vector<1x128xf32>
    %c0_64 = arith.constant 0 : index
    %c0_65 = arith.constant 0 : index
    %165 = vector.load %arg17[%c0_64, %c0_65] : memref<1x128xf32, #tpu.memory_space<vmem>>, vector<1x128xf32>
    %cst_66 = arith.constant dense<0.000000e+00> : vector<32xf32>
    %166 = vector.multi_reduction <add>, %163, %cst_66 [1] : vector<32x128xf32> to vector<32xf32>
    %167 = vector.shape_cast %166 : vector<32xf32> to vector<32x1xf32>
    %cst_67 = arith.constant 1.280000e+02 : f32
    %168 = vector.broadcast %cst_67 : f32 to vector<32x1xf32>
    %169 = arith.divf %167, %168 : vector<32x1xf32>
    %170 = vector.broadcast %169 : vector<32x1xf32> to vector<32x128xf32>
    %171 = arith.subf %163, %170 : vector<32x128xf32>
    %172 = arith.mulf %171, %171 : vector<32x128xf32>
    %cst_68 = arith.constant dense<0.000000e+00> : vector<32xf32>
    %173 = vector.multi_reduction <add>, %172, %cst_68 [1] : vector<32x128xf32> to vector<32xf32>
    %174 = vector.shape_cast %173 : vector<32xf32> to vector<32x1xf32>
    %cst_69 = arith.constant 1.280000e+02 : f32
    %175 = vector.broadcast %cst_69 : f32 to vector<32x1xf32>
    %176 = arith.divf %174, %175 : vector<32x1xf32>
    %177 = vector.broadcast %169 : vector<32x1xf32> to vector<32x128xf32>
    %178 = arith.subf %163, %177 : vector<32x128xf32>
    %cst_70 = arith.constant 9.99999974E-6 : f32
    %179 = vector.broadcast %cst_70 : f32 to vector<32x1xf32>
    %180 = arith.addf %176, %179 : vector<32x1xf32>
    %181 = math.rsqrt %180 : vector<32x1xf32>
    %182 = vector.broadcast %181 : vector<32x1xf32> to vector<32x128xf32>
    %183 = arith.mulf %178, %182 : vector<32x128xf32>
    %184 = vector.broadcast %164 : vector<1x128xf32> to vector<32x128xf32>
    %185 = arith.mulf %183, %184 : vector<32x128xf32>
    %186 = vector.broadcast %165 : vector<1x128xf32> to vector<32x128xf32>
    %187 = arith.addf %185, %186 : vector<32x128xf32>
    %c0_71 = arith.constant 0 : index
    %c0_72 = arith.constant 0 : index
    %c0_73 = arith.constant 0 : index
    %188 = vector.load %arg18[%c0_71, %c0_72, %c0_73] : memref<1x32x128xf32, #tpu.memory_space<vmem>>, vector<1x32x128xf32>
    %189 = vector.shape_cast %188 : vector<1x32x128xf32> to vector<32x128xf32>
    %190 = vector.shape_cast %187 : vector<32x128xf32> to vector<1x32x128xf32>
    tpu.vector_store %arg18[%c0_71, %c0_72, %c0_73], %190 {strides = array<i32>} : memref<1x32x128xf32, #tpu.memory_space<vmem>>, vector<1x32x128xf32>,
    return
  }
  func.func @transform_0(%arg0: i32) -> (i32, i32, i32) {
    %c0_i32 = arith.constant 0 : i32
    %c0_i32_0 = arith.constant 0 : i32
    %c0_i32_1 = arith.constant 0 : i32
    return %arg0, %c0_i32, %c0_i32_0 : i32, i32, i32
  }
  func.func @transform_1(%arg0: i32) -> (i32, i32, i32) {
    %c0_i32 = arith.constant 0 : i32
    %c0_i32_0 = arith.constant 0 : i32
    %c0_i32_1 = arith.constant 0 : i32
    return %arg0, %c0_i32, %c0_i32_0 : i32, i32, i32
  }
  func.func @transform_2(%arg0: i32) -> (i32, i32, i32) {
    %c0_i32 = arith.constant 0 : i32
    %c0_i32_0 = arith.constant 0 : i32
    %c0_i32_1 = arith.constant 0 : i32
    return %arg0, %c0_i32, %c0_i32_0 : i32, i32, i32
  }
  func.func @transform_3(%arg0: i32) -> (i32, i32) {
    %c0_i32 = arith.constant 0 : i32
    %c0_i32_0 = arith.constant 0 : i32
    %c0_i32_1 = arith.constant 0 : i32
    return %c0_i32, %c0_i32_0 : i32, i32
  }
  func.func @transform_4(%arg0: i32) -> (i32, i32) {
    %c0_i32 = arith.constant 0 : i32
    %c0_i32_0 = arith.constant 0 : i32
    %c0_i32_1 = arith.constant 0 : i32
    return %c0_i32, %c0_i32_0 : i32, i32
  }
  func.func @transform_5(%arg0: i32) -> (i32, i32) {
    %c0_i32 = arith.constant 0 : i32
    %c0_i32_0 = arith.constant 0 : i32
    %c0_i32_1 = arith.constant 0 : i32
    return %c0_i32, %c0_i32_0 : i32, i32
  }
  func.func @transform_6(%arg0: i32) -> (i32, i32) {
    %c0_i32 = arith.constant 0 : i32
    %c0_i32_0 = arith.constant 0 : i32
    %c0_i32_1 = arith.constant 0 : i32
    return %c0_i32, %c0_i32_0 : i32, i32
  }
  func.func @transform_7(%arg0: i32) -> (i32, i32) {
    %c0_i32 = arith.constant 0 : i32
    %c0_i32_0 = arith.constant 0 : i32
    %c0_i32_1 = arith.constant 0 : i32
    return %c0_i32, %c0_i32_0 : i32, i32
  }
  func.func @transform_8(%arg0: i32) -> (i32, i32) {
    %c0_i32 = arith.constant 0 : i32
    %c0_i32_0 = arith.constant 0 : i32
    %c0_i32_1 = arith.constant 0 : i32
    return %c0_i32, %c0_i32_0 : i32, i32
  }
  func.func @transform_9(%arg0: i32) -> (i32, i32) {
    %c0_i32 = arith.constant 0 : i32
    %c0_i32_0 = arith.constant 0 : i32
    %c0_i32_1 = arith.constant 0 : i32
    return %c0_i32, %c0_i32_0 : i32, i32
  }
  func.func @transform_10(%arg0: i32) -> (i32, i32) {
    %c0_i32 = arith.constant 0 : i32
    %c0_i32_0 = arith.constant 0 : i32
    %c0_i32_1 = arith.constant 0 : i32
    return %c0_i32, %c0_i32_0 : i32, i32
  }
  func.func @transform_11(%arg0: i32) -> (i32, i32) {
    %c0_i32 = arith.constant 0 : i32
    %c0_i32_0 = arith.constant 0 : i32
    %c0_i32_1 = arith.constant 0 : i32
    return %c0_i32, %c0_i32_0 : i32, i32
  }
  func.func @transform_12(%arg0: i32) -> (i32, i32) {
    %c0_i32 = arith.constant 0 : i32
    %c0_i32_0 = arith.constant 0 : i32
    %c0_i32_1 = arith.constant 0 : i32
    return %c0_i32, %c0_i32_0 : i32, i32
  }
  func.func @transform_13(%arg0: i32) -> (i32, i32) {
    %c0_i32 = arith.constant 0 : i32
    %c0_i32_0 = arith.constant 0 : i32
    %c0_i32_1 = arith.constant 0 : i32
    return %c0_i32, %c0_i32_0 : i32, i32
  }
  func.func @transform_14(%arg0: i32) -> (i32, i32) {
    %c0_i32 = arith.constant 0 : i32
    %c0_i32_0 = arith.constant 0 : i32
    %c0_i32_1 = arith.constant 0 : i32
    return %c0_i32, %c0_i32_0 : i32, i32
  }
  func.func @transform_15(%arg0: i32) -> (i32, i32) {
    %c0_i32 = arith.constant 0 : i32
    %c0_i32_0 = arith.constant 0 : i32
    %c0_i32_1 = arith.constant 0 : i32
    return %c0_i32, %c0_i32_0 : i32, i32
  }
  func.func @transform_16(%arg0: i32) -> (i32, i32) {
    %c0_i32 = arith.constant 0 : i32
    %c0_i32_0 = arith.constant 0 : i32
    %c0_i32_1 = arith.constant 0 : i32
    return %c0_i32, %c0_i32_0 : i32, i32
  }
  func.func @transform_17(%arg0: i32) -> (i32, i32, i32) {
    %c0_i32 = arith.constant 0 : i32
    %c0_i32_0 = arith.constant 0 : i32
    %c0_i32_1 = arith.constant 0 : i32
    return %arg0, %c0_i32, %c0_i32_0 : i32, i32, i32
  }
}

module attributes {stable_mosaic.version = 11 : i64} {
  func.func @_drug_gat_kernel(%arg0: i32, %arg1: memref<1x16x32xf32, #tpu.memory_space<vmem>>, %arg2: memref<1x16x16xf32, #tpu.memory_space<vmem>>, %arg3: memref<1x16x1xf32, #tpu.memory_space<vmem>>, %arg4: memref<32x128xf32, #tpu.memory_space<vmem>>, %arg5: memref<1x128xf32, #tpu.memory_space<vmem>>, %arg6: memref<1x128xf32, #tpu.memory_space<vmem>>, %arg7: memref<1x128xf32, #tpu.memory_space<vmem>>, %arg8: memref<3x128x128xf32, #tpu.memory_space<vmem>>, %arg9: memref<3x128xf32, #tpu.memory_space<vmem>>, %arg10: memref<3x128xf32, #tpu.memory_space<vmem>>, %arg11: memref<3x128xf32, #tpu.memory_space<vmem>>, %arg12: memref<1x16x128xf32, #tpu.memory_space<vmem>>) attributes {dimension_semantics = [#tpu.dimension_semantics<parallel>], iteration_bounds = array<i64: 2>, scalar_prefetch = 0 : i64, scratch_operands = 0 : i64, tpu.core_type = #tpu.core_type<tc>, window_params = [{transform_indices = @transform_0, window_bounds = array<i64: 1, 16, 32>}, {transform_indices = @transform_1, window_bounds = array<i64: 1, 16, 16>}, {transform_indices = @transform_2, window_bounds = array<i64: 1, 16, 1>}, {pipeline_mode = #tpu.pipeline_mode<synchronous>, transform_indices = @transform_3, window_bounds = array<i64: 32, 128>}, {pipeline_mode = #tpu.pipeline_mode<synchronous>, transform_indices = @transform_4, window_bounds = array<i64: 1, 128>}, {pipeline_mode = #tpu.pipeline_mode<synchronous>, transform_indices = @transform_5, window_bounds = array<i64: 1, 128>}, {pipeline_mode = #tpu.pipeline_mode<synchronous>, transform_indices = @transform_6, window_bounds = array<i64: 1, 128>}, {pipeline_mode = #tpu.pipeline_mode<synchronous>, transform_indices = @transform_7, window_bounds = array<i64: 3, 128, 128>}, {pipeline_mode = #tpu.pipeline_mode<synchronous>, transform_indices = @transform_8, window_bounds = array<i64: 3, 128>}, {pipeline_mode = #tpu.pipeline_mode<synchronous>, transform_indices = @transform_9, window_bounds = array<i64: 3, 128>}, {pipeline_mode = #tpu.pipeline_mode<synchronous>, transform_indices = @transform_10, window_bounds = array<i64: 3, 128>}, {transform_indices = @transform_11, window_bounds = array<i64: 1, 16, 128>}]} {
    %c0 = arith.constant 0 : index
    %c0_0 = arith.constant 0 : index
    %c0_1 = arith.constant 0 : index
    %0 = vector.load %arg1[%c0, %c0_0, %c0_1] : memref<1x16x32xf32, #tpu.memory_space<vmem>>, vector<1x16x32xf32>
    %1 = vector.shape_cast %0 : vector<1x16x32xf32> to vector<16x32xf32>
    %c0_2 = arith.constant 0 : index
    %c0_3 = arith.constant 0 : index
    %2 = vector.load %arg4[%c0_2, %c0_3] : memref<32x128xf32, #tpu.memory_space<vmem>>, vector<32x128xf32>
    %3 = arith.truncf %1 : vector<16x32xf32> to vector<16x32xbf16>
    %4 = arith.truncf %2 : vector<32x128xf32> to vector<32x128xbf16>
    %cst = arith.constant dense<0.000000e+00> : vector<16x128xf32>
    %5 = tpu.matmul %3, %4, %cst {dimension_numbers = #tpu.dot_dimension_numbers<[1], [0], [0], [1], [0, 0, 1, 1], [], []>} : vector<16x32xbf16>, vector<32x128xbf16>, vector<16x128xf32> -> vector<16x128xf32>
    %c0_4 = arith.constant 0 : index
    %c0_5 = arith.constant 0 : index
    %6 = vector.load %arg5[%c0_4, %c0_5] : memref<1x128xf32, #tpu.memory_space<vmem>>, vector<1x128xf32>
    %7 = vector.broadcast %6 : vector<1x128xf32> to vector<16x128xf32>
    %8 = arith.addf %5, %7 : vector<16x128xf32>
    %c0_6 = arith.constant 0 : index
    %c0_7 = arith.constant 0 : index
    %9 = vector.load %arg6[%c0_6, %c0_7] : memref<1x128xf32, #tpu.memory_space<vmem>>, vector<1x128xf32>
    %c0_8 = arith.constant 0 : index
    %c0_9 = arith.constant 0 : index
    %10 = vector.load %arg7[%c0_8, %c0_9] : memref<1x128xf32, #tpu.memory_space<vmem>>, vector<1x128xf32>
    %cst_10 = arith.constant dense<0.000000e+00> : vector<16xf32>
    %11 = vector.multi_reduction <add>, %8, %cst_10 [1] : vector<16x128xf32> to vector<16xf32>
    %12 = vector.shape_cast %11 : vector<16xf32> to vector<16x1xf32>
    %cst_11 = arith.constant 1.280000e+02 : f32
    %13 = vector.broadcast %cst_11 : f32 to vector<16x1xf32>
    %14 = arith.divf %12, %13 : vector<16x1xf32>
    %15 = vector.broadcast %14 : vector<16x1xf32> to vector<16x128xf32>
    %16 = arith.subf %8, %15 : vector<16x128xf32>
    %17 = arith.mulf %16, %16 : vector<16x128xf32>
    %cst_12 = arith.constant dense<0.000000e+00> : vector<16xf32>
    %18 = vector.multi_reduction <add>, %17, %cst_12 [1] : vector<16x128xf32> to vector<16xf32>
    %19 = vector.shape_cast %18 : vector<16xf32> to vector<16x1xf32>
    %cst_13 = arith.constant 1.280000e+02 : f32
    %20 = vector.broadcast %cst_13 : f32 to vector<16x1xf32>
    %21 = arith.divf %19, %20 : vector<16x1xf32>
    %22 = vector.broadcast %14 : vector<16x1xf32> to vector<16x128xf32>
    %23 = arith.subf %8, %22 : vector<16x128xf32>
    %cst_14 = arith.constant 9.99999974E-6 : f32
    %24 = vector.broadcast %cst_14 : f32 to vector<16x1xf32>
    %25 = arith.addf %21, %24 : vector<16x1xf32>
    %26 = math.rsqrt %25 : vector<16x1xf32>
    %27 = vector.broadcast %26 : vector<16x1xf32> to vector<16x128xf32>
    %28 = arith.mulf %23, %27 : vector<16x128xf32>
    %29 = vector.broadcast %9 : vector<1x128xf32> to vector<16x128xf32>
    %30 = arith.mulf %28, %29 : vector<16x128xf32>
    %31 = vector.broadcast %10 : vector<1x128xf32> to vector<16x128xf32>
    %32 = arith.addf %30, %31 : vector<16x128xf32>
    %c0_15 = arith.constant 0 : index
    %c0_16 = arith.constant 0 : index
    %c0_17 = arith.constant 0 : index
    %33 = vector.load %arg2[%c0_15, %c0_16, %c0_17] : memref<1x16x16xf32, #tpu.memory_space<vmem>>, vector<1x16x16xf32>
    %34 = vector.shape_cast %33 : vector<1x16x16xf32> to vector<16x16xf32>
    %c0_18 = arith.constant 0 : index
    %c0_19 = arith.constant 0 : index
    %c0_20 = arith.constant 0 : index
    %35 = vector.load %arg3[%c0_18, %c0_19, %c0_20] : memref<1x16x1xf32, #tpu.memory_space<vmem>>, vector<1x16x1xf32>
    %36 = vector.shape_cast %35 : vector<1x16x1xf32> to vector<16x1xf32>
    %c0_21 = arith.constant 0 : index
    %c0_22 = arith.constant 0 : index
    %c0_23 = arith.constant 0 : index
    %37 = vector.load %arg8[%c0_21, %c0_22, %c0_23] : memref<3x128x128xf32, #tpu.memory_space<vmem>>, vector<1x128x128xf32>
    %38 = vector.shape_cast %37 : vector<1x128x128xf32> to vector<128x128xf32>
    %39 = arith.truncf %32 : vector<16x128xf32> to vector<16x128xbf16>
    %40 = arith.truncf %38 : vector<128x128xf32> to vector<128x128xbf16>
    %cst_24 = arith.constant dense<0.000000e+00> : vector<16x128xf32>
    %41 = tpu.matmul %39, %40, %cst_24 {dimension_numbers = #tpu.dot_dimension_numbers<[1], [0], [0], [1], [0, 0, 1, 1], [], []>} : vector<16x128xbf16>, vector<128x128xbf16>, vector<16x128xf32> -> vector<16x128xf32>
    %c0_25 = arith.constant 0 : index
    %c0_26 = arith.constant 0 : index
    %42 = vector.load %arg9[%c0_25, %c0_26] : memref<3x128xf32, #tpu.memory_space<vmem>>, vector<1x128xf32>
    %43 = vector.shape_cast %42 : vector<1x128xf32> to vector<128xf32>
    %44 = vector.shape_cast %43 : vector<128xf32> to vector<1x128xf32>
    %45 = vector.broadcast %44 : vector<1x128xf32> to vector<16x128xf32>
    %46 = arith.addf %41, %45 : vector<16x128xf32>
    %c0_27 = arith.constant 0 : index
    %c0_28 = arith.constant 0 : index
    %47 = vector.load %arg10[%c0_27, %c0_28] : memref<3x128xf32, #tpu.memory_space<vmem>>, vector<1x128xf32>
    %48 = vector.shape_cast %47 : vector<1x128xf32> to vector<128xf32>
    %49 = vector.shape_cast %48 : vector<128xf32> to vector<1x128xf32>
    %c0_29 = arith.constant 0 : index
    %c0_30 = arith.constant 0 : index
    %50 = vector.load %arg11[%c0_29, %c0_30] : memref<3x128xf32, #tpu.memory_space<vmem>>, vector<1x128xf32>
    %51 = vector.shape_cast %50 : vector<1x128xf32> to vector<128xf32>
    %52 = vector.shape_cast %51 : vector<128xf32> to vector<1x128xf32>
    %53 = vector.extract_strided_slice %46 {offsets = [0, 0], sizes = [16, 32], strides = [1, 1]} : vector<16x128xf32> to vector<16x32xf32>
    %54 = vector.extract_strided_slice %49 {offsets = [0, 0], sizes = [1, 32], strides = [1, 1]} : vector<1x128xf32> to vector<1x32xf32>
    %55 = vector.extract_strided_slice %52 {offsets = [0, 0], sizes = [1, 32], strides = [1, 1]} : vector<1x128xf32> to vector<1x32xf32>
    %cst_31 = arith.constant dense<0.000000e+00> : vector<16x1xf32>
    %56 = tpu.matmul %53, %54, %cst_31 {dimension_numbers = #tpu.dot_dimension_numbers<[1], [1], [0], [0], [0, 0, 1, 0], [], []>} : vector<16x32xf32>, vector<1x32xf32>, vector<16x1xf32> -> vector<16x1xf32>
    %cst_32 = arith.constant dense<0.000000e+00> : vector<1x16xf32>
    %57 = tpu.matmul %55, %53, %cst_32 {dimension_numbers = #tpu.dot_dimension_numbers<[1], [1], [0], [0], [0, 0, 1, 0], [], []>} : vector<1x32xf32>, vector<16x32xf32>, vector<1x16xf32> -> vector<1x16xf32>
    %58 = vector.broadcast %56 : vector<16x1xf32> to vector<16x16xf32>
    %59 = vector.broadcast %57 : vector<1x16xf32> to vector<16x16xf32>
    %60 = arith.addf %58, %59 : vector<16x16xf32>
    %cst_33 = arith.constant 0.000000e+00 : f32
    %61 = vector.broadcast %cst_33 : f32 to vector<16x16xf32>
    %62 = arith.cmpf ogt, %60, %61 : vector<16x16xf32>
    %cst_34 = arith.constant 2.000000e-01 : f32
    %63 = vector.broadcast %cst_34 : f32 to vector<16x16xf32>
    %64 = arith.mulf %63, %60 : vector<16x16xf32>
    %65 = arith.select %62, %60, %64 : vector<16x16xi1>, vector<16x16xf32>
    %66 = arith.addf %65, %34 : vector<16x16xf32>
    %cst_35 = arith.constant dense<0xFF800000> : vector<16xf32>
    %67 = vector.multi_reduction <maximumf>, %66, %cst_35 [1] : vector<16x16xf32> to vector<16xf32>
    %68 = vector.shape_cast %67 : vector<16xf32> to vector<16x1xf32>
    %69 = vector.broadcast %68 : vector<16x1xf32> to vector<16x16xf32>
    %70 = arith.subf %66, %69 : vector<16x16xf32>
    %71 = math.exp %70 : vector<16x16xf32>
    %cst_36 = arith.constant dense<0.000000e+00> : vector<16xf32>
    %72 = vector.multi_reduction <add>, %71, %cst_36 [1] : vector<16x16xf32> to vector<16xf32>
    %73 = vector.shape_cast %72 : vector<16xf32> to vector<16x1xf32>
    %74 = tpu.reciprocal %73 {approx = true} : vector<16x1xf32> -> vector<16x1xf32>
    %75 = vector.broadcast %74 : vector<16x1xf32> to vector<16x16xf32>
    %76 = arith.mulf %71, %75 : vector<16x16xf32>
    %77 = arith.truncf %76 : vector<16x16xf32> to vector<16x16xbf16>
    %78 = arith.truncf %53 : vector<16x32xf32> to vector<16x32xbf16>
    %cst_37 = arith.constant dense<0.000000e+00> : vector<16x32xf32>
    %79 = tpu.matmul %77, %78, %cst_37 {dimension_numbers = #tpu.dot_dimension_numbers<[1], [0], [0], [1], [0, 0, 1, 1], [], []>} : vector<16x16xbf16>, vector<16x32xbf16>, vector<16x32xf32> -> vector<16x32xf32>
    %80 = vector.extract_strided_slice %46 {offsets = [0, 32], sizes = [16, 32], strides = [1, 1]} : vector<16x128xf32> to vector<16x32xf32>
    %81 = vector.extract_strided_slice %49 {offsets = [0, 32], sizes = [1, 32], strides = [1, 1]} : vector<1x128xf32> to vector<1x32xf32>
    %82 = vector.extract_strided_slice %52 {offsets = [0, 32], sizes = [1, 32], strides = [1, 1]} : vector<1x128xf32> to vector<1x32xf32>
    %cst_38 = arith.constant dense<0.000000e+00> : vector<16x1xf32>
    %83 = tpu.matmul %80, %81, %cst_38 {dimension_numbers = #tpu.dot_dimension_numbers<[1], [1], [0], [0], [0, 0, 1, 0], [], []>} : vector<16x32xf32>, vector<1x32xf32>, vector<16x1xf32> -> vector<16x1xf32>
    %cst_39 = arith.constant dense<0.000000e+00> : vector<1x16xf32>
    %84 = tpu.matmul %82, %80, %cst_39 {dimension_numbers = #tpu.dot_dimension_numbers<[1], [1], [0], [0], [0, 0, 1, 0], [], []>} : vector<1x32xf32>, vector<16x32xf32>, vector<1x16xf32> -> vector<1x16xf32>
    %85 = vector.broadcast %83 : vector<16x1xf32> to vector<16x16xf32>
    %86 = vector.broadcast %84 : vector<1x16xf32> to vector<16x16xf32>
    %87 = arith.addf %85, %86 : vector<16x16xf32>
    %cst_40 = arith.constant 0.000000e+00 : f32
    %88 = vector.broadcast %cst_40 : f32 to vector<16x16xf32>
    %89 = arith.cmpf ogt, %87, %88 : vector<16x16xf32>
    %cst_41 = arith.constant 2.000000e-01 : f32
    %90 = vector.broadcast %cst_41 : f32 to vector<16x16xf32>
    %91 = arith.mulf %90, %87 : vector<16x16xf32>
    %92 = arith.select %89, %87, %91 : vector<16x16xi1>, vector<16x16xf32>
    %93 = arith.addf %92, %34 : vector<16x16xf32>
    %cst_42 = arith.constant dense<0xFF800000> : vector<16xf32>
    %94 = vector.multi_reduction <maximumf>, %93, %cst_42 [1] : vector<16x16xf32> to vector<16xf32>
    %95 = vector.shape_cast %94 : vector<16xf32> to vector<16x1xf32>
    %96 = vector.broadcast %95 : vector<16x1xf32> to vector<16x16xf32>
    %97 = arith.subf %93, %96 : vector<16x16xf32>
    %98 = math.exp %97 : vector<16x16xf32>
    %cst_43 = arith.constant dense<0.000000e+00> : vector<16xf32>
    %99 = vector.multi_reduction <add>, %98, %cst_43 [1] : vector<16x16xf32> to vector<16xf32>
    %100 = vector.shape_cast %99 : vector<16xf32> to vector<16x1xf32>
    %101 = tpu.reciprocal %100 {approx = true} : vector<16x1xf32> -> vector<16x1xf32>
    %102 = vector.broadcast %101 : vector<16x1xf32> to vector<16x16xf32>
    %103 = arith.mulf %98, %102 : vector<16x16xf32>
    %104 = arith.truncf %103 : vector<16x16xf32> to vector<16x16xbf16>
    %105 = arith.truncf %80 : vector<16x32xf32> to vector<16x32xbf16>
    %cst_44 = arith.constant dense<0.000000e+00> : vector<16x32xf32>
    %106 = tpu.matmul %104, %105, %cst_44 {dimension_numbers = #tpu.dot_dimension_numbers<[1], [0], [0], [1], [0, 0, 1, 1], [], []>} : vector<16x16xbf16>, vector<16x32xbf16>, vector<16x32xf32> -> vector<16x32xf32>
    %107 = vector.extract_strided_slice %46 {offsets = [0, 64], sizes = [16, 32], strides = [1, 1]} : vector<16x128xf32> to vector<16x32xf32>
    %108 = vector.extract_strided_slice %49 {offsets = [0, 64], sizes = [1, 32], strides = [1, 1]} : vector<1x128xf32> to vector<1x32xf32>
    %109 = vector.extract_strided_slice %52 {offsets = [0, 64], sizes = [1, 32], strides = [1, 1]} : vector<1x128xf32> to vector<1x32xf32>
    %cst_45 = arith.constant dense<0.000000e+00> : vector<16x1xf32>
    %110 = tpu.matmul %107, %108, %cst_45 {dimension_numbers = #tpu.dot_dimension_numbers<[1], [1], [0], [0], [0, 0, 1, 0], [], []>} : vector<16x32xf32>, vector<1x32xf32>, vector<16x1xf32> -> vector<16x1xf32>
    %cst_46 = arith.constant dense<0.000000e+00> : vector<1x16xf32>
    %111 = tpu.matmul %109, %107, %cst_46 {dimension_numbers = #tpu.dot_dimension_numbers<[1], [1], [0], [0], [0, 0, 1, 0], [], []>} : vector<1x32xf32>, vector<16x32xf32>, vector<1x16xf32> -> vector<1x16xf32>
    %112 = vector.broadcast %110 : vector<16x1xf32> to vector<16x16xf32>
    %113 = vector.broadcast %111 : vector<1x16xf32> to vector<16x16xf32>
    %114 = arith.addf %112, %113 : vector<16x16xf32>
    %cst_47 = arith.constant 0.000000e+00 : f32
    %115 = vector.broadcast %cst_47 : f32 to vector<16x16xf32>
    %116 = arith.cmpf ogt, %114, %115 : vector<16x16xf32>
    %cst_48 = arith.constant 2.000000e-01 : f32
    %117 = vector.broadcast %cst_48 : f32 to vector<16x16xf32>
    %118 = arith.mulf %117, %114 : vector<16x16xf32>
    %119 = arith.select %116, %114, %118 : vector<16x16xi1>, vector<16x16xf32>
    %120 = arith.addf %119, %34 : vector<16x16xf32>
    %cst_49 = arith.constant dense<0xFF800000> : vector<16xf32>
    %121 = vector.multi_reduction <maximumf>, %120, %cst_49 [1] : vector<16x16xf32> to vector<16xf32>
    %122 = vector.shape_cast %121 : vector<16xf32> to vector<16x1xf32>
    %123 = vector.broadcast %122 : vector<16x1xf32> to vector<16x16xf32>
    %124 = arith.subf %120, %123 : vector<16x16xf32>
    %125 = math.exp %124 : vector<16x16xf32>
    %cst_50 = arith.constant dense<0.000000e+00> : vector<16xf32>
    %126 = vector.multi_reduction <add>, %125, %cst_50 [1] : vector<16x16xf32> to vector<16xf32>
    %127 = vector.shape_cast %126 : vector<16xf32> to vector<16x1xf32>
    %128 = tpu.reciprocal %127 {approx = true} : vector<16x1xf32> -> vector<16x1xf32>
    %129 = vector.broadcast %128 : vector<16x1xf32> to vector<16x16xf32>
    %130 = arith.mulf %125, %129 : vector<16x16xf32>
    %131 = arith.truncf %130 : vector<16x16xf32> to vector<16x16xbf16>
    %132 = arith.truncf %107 : vector<16x32xf32> to vector<16x32xbf16>
    %cst_51 = arith.constant dense<0.000000e+00> : vector<16x32xf32>
    %133 = tpu.matmul %131, %132, %cst_51 {dimension_numbers = #tpu.dot_dimension_numbers<[1], [0], [0], [1], [0, 0, 1, 1], [], []>} : vector<16x16xbf16>, vector<16x32xbf16>, vector<16x32xf32> -> vector<16x32xf32>
    %134 = vector.extract_strided_slice %46 {offsets = [0, 96], sizes = [16, 32], strides = [1, 1]} : vector<16x128xf32> to vector<16x32xf32>
    %135 = vector.extract_strided_slice %49 {offsets = [0, 96], sizes = [1, 32], strides = [1, 1]} : vector<1x128xf32> to vector<1x32xf32>
    %136 = vector.extract_strided_slice %52 {offsets = [0, 96], sizes = [1, 32], strides = [1, 1]} : vector<1x128xf32> to vector<1x32xf32>
    %cst_52 = arith.constant dense<0.000000e+00> : vector<16x1xf32>
    %137 = tpu.matmul %134, %135, %cst_52 {dimension_numbers = #tpu.dot_dimension_numbers<[1], [1], [0], [0], [0, 0, 1, 0], [], []>} : vector<16x32xf32>, vector<1x32xf32>, vector<16x1xf32> -> vector<16x1xf32>
    %cst_53 = arith.constant dense<0.000000e+00> : vector<1x16xf32>
    %138 = tpu.matmul %136, %134, %cst_53 {dimension_numbers = #tpu.dot_dimension_numbers<[1], [1], [0], [0], [0, 0, 1, 0], [], []>} : vector<1x32xf32>, vector<16x32xf32>, vector<1x16xf32> -> vector<1x16xf32>
    %139 = vector.broadcast %137 : vector<16x1xf32> to vector<16x16xf32>
    %140 = vector.broadcast %138 : vector<1x16xf32> to vector<16x16xf32>
    %141 = arith.addf %139, %140 : vector<16x16xf32>
    %cst_54 = arith.constant 0.000000e+00 : f32
    %142 = vector.broadcast %cst_54 : f32 to vector<16x16xf32>
    %143 = arith.cmpf ogt, %141, %142 : vector<16x16xf32>
    %cst_55 = arith.constant 2.000000e-01 : f32
    %144 = vector.broadcast %cst_55 : f32 to vector<16x16xf32>
    %145 = arith.mulf %144, %141 : vector<16x16xf32>
    %146 = arith.select %143, %141, %145 : vector<16x16xi1>, vector<16x16xf32>
    %147 = arith.addf %146, %34 : vector<16x16xf32>
    %cst_56 = arith.constant dense<0xFF800000> : vector<16xf32>
    %148 = vector.multi_reduction <maximumf>, %147, %cst_56 [1] : vector<16x16xf32> to vector<16xf32>
    %149 = vector.shape_cast %148 : vector<16xf32> to vector<16x1xf32>
    %150 = vector.broadcast %149 : vector<16x1xf32> to vector<16x16xf32>
    %151 = arith.subf %147, %150 : vector<16x16xf32>
    %152 = math.exp %151 : vector<16x16xf32>
    %cst_57 = arith.constant dense<0.000000e+00> : vector<16xf32>
    %153 = vector.multi_reduction <add>, %152, %cst_57 [1] : vector<16x16xf32> to vector<16xf32>
    %154 = vector.shape_cast %153 : vector<16xf32> to vector<16x1xf32>
    %155 = tpu.reciprocal %154 {approx = true} : vector<16x1xf32> -> vector<16x1xf32>
    %156 = vector.broadcast %155 : vector<16x1xf32> to vector<16x16xf32>
    %157 = arith.mulf %152, %156 : vector<16x16xf32>
    %158 = arith.truncf %157 : vector<16x16xf32> to vector<16x16xbf16>
    %159 = arith.truncf %134 : vector<16x32xf32> to vector<16x32xbf16>
    %cst_58 = arith.constant dense<0.000000e+00> : vector<16x32xf32>
    %160 = tpu.matmul %158, %159, %cst_58 {dimension_numbers = #tpu.dot_dimension_numbers<[1], [0], [0], [1], [0, 0, 1, 1], [], []>} : vector<16x16xbf16>, vector<16x32xbf16>, vector<16x32xf32> -> vector<16x32xf32>
    %161 = tpu.concatenate %79, %106, %133, %160 in 1 : vector<16x32xf32>, vector<16x32xf32>, vector<16x32xf32>, vector<16x32xf32> -> vector<16x128xf32>
    %162 = arith.addf %32, %161 : vector<16x128xf32>
    %cst_59 = arith.constant 0.000000e+00 : f32
    %163 = vector.broadcast %cst_59 : f32 to vector<16x128xf32>
    %164 = arith.cmpf ogt, %162, %163 : vector<16x128xf32>
    %cst_60 = arith.constant 0.000000e+00 : f32
    %165 = vector.broadcast %cst_60 : f32 to vector<16x128xf32>
    %166 = arith.minimumf %162, %165 : vector<16x128xf32>
    %167 = math.exp %166 : vector<16x128xf32>
    %cst_61 = arith.constant 1.000000e+00 : f32
    %168 = vector.broadcast %cst_61 : f32 to vector<16x128xf32>
    %169 = arith.subf %167, %168 : vector<16x128xf32>
    %170 = arith.select %164, %162, %169 : vector<16x128xi1>, vector<16x128xf32>
    %171 = vector.broadcast %36 : vector<16x1xf32> to vector<16x128xf32>
    %172 = arith.mulf %170, %171 : vector<16x128xf32>
    %c1 = arith.constant 1 : index
    %c0_62 = arith.constant 0 : index
    %c0_63 = arith.constant 0 : index
    %173 = vector.load %arg8[%c1, %c0_62, %c0_63] : memref<3x128x128xf32, #tpu.memory_space<vmem>>, vector<1x128x128xf32>
    %174 = vector.shape_cast %173 : vector<1x128x128xf32> to vector<128x128xf32>
    %175 = arith.truncf %172 : vector<16x128xf32> to vector<16x128xbf16>
    %176 = arith.truncf %174 : vector<128x128xf32> to vector<128x128xbf16>
    %cst_64 = arith.constant dense<0.000000e+00> : vector<16x128xf32>
    %177 = tpu.matmul %175, %176, %cst_64 {dimension_numbers = #tpu.dot_dimension_numbers<[1], [0], [0], [1], [0, 0, 1, 1], [], []>} : vector<16x128xbf16>, vector<128x128xbf16>, vector<16x128xf32> -> vector<16x128xf32>
    %c1_65 = arith.constant 1 : index
    %c0_66 = arith.constant 0 : index
    %178 = vector.load %arg9[%c1_65, %c0_66] : memref<3x128xf32, #tpu.memory_space<vmem>>, vector<1x128xf32>
    %179 = vector.shape_cast %178 : vector<1x128xf32> to vector<128xf32>
    %180 = vector.shape_cast %179 : vector<128xf32> to vector<1x128xf32>
    %181 = vector.broadcast %180 : vector<1x128xf32> to vector<16x128xf32>
    %182 = arith.addf %177, %181 : vector<16x128xf32>
    %c1_67 = arith.constant 1 : index
    %c0_68 = arith.constant 0 : index
    %183 = vector.load %arg10[%c1_67, %c0_68] : memref<3x128xf32, #tpu.memory_space<vmem>>, vector<1x128xf32>
    %184 = vector.shape_cast %183 : vector<1x128xf32> to vector<128xf32>
    %185 = vector.shape_cast %184 : vector<128xf32> to vector<1x128xf32>
    %c1_69 = arith.constant 1 : index
    %c0_70 = arith.constant 0 : index
    %186 = vector.load %arg11[%c1_69, %c0_70] : memref<3x128xf32, #tpu.memory_space<vmem>>, vector<1x128xf32>
    %187 = vector.shape_cast %186 : vector<1x128xf32> to vector<128xf32>
    %188 = vector.shape_cast %187 : vector<128xf32> to vector<1x128xf32>
    %189 = vector.extract_strided_slice %182 {offsets = [0, 0], sizes = [16, 32], strides = [1, 1]} : vector<16x128xf32> to vector<16x32xf32>
    %190 = vector.extract_strided_slice %185 {offsets = [0, 0], sizes = [1, 32], strides = [1, 1]} : vector<1x128xf32> to vector<1x32xf32>
    %191 = vector.extract_strided_slice %188 {offsets = [0, 0], sizes = [1, 32], strides = [1, 1]} : vector<1x128xf32> to vector<1x32xf32>
    %cst_71 = arith.constant dense<0.000000e+00> : vector<16x1xf32>
    %192 = tpu.matmul %189, %190, %cst_71 {dimension_numbers = #tpu.dot_dimension_numbers<[1], [1], [0], [0], [0, 0, 1, 0], [], []>} : vector<16x32xf32>, vector<1x32xf32>, vector<16x1xf32> -> vector<16x1xf32>
    %cst_72 = arith.constant dense<0.000000e+00> : vector<1x16xf32>
    %193 = tpu.matmul %191, %189, %cst_72 {dimension_numbers = #tpu.dot_dimension_numbers<[1], [1], [0], [0], [0, 0, 1, 0], [], []>} : vector<1x32xf32>, vector<16x32xf32>, vector<1x16xf32> -> vector<1x16xf32>
    %194 = vector.broadcast %192 : vector<16x1xf32> to vector<16x16xf32>
    %195 = vector.broadcast %193 : vector<1x16xf32> to vector<16x16xf32>
    %196 = arith.addf %194, %195 : vector<16x16xf32>
    %cst_73 = arith.constant 0.000000e+00 : f32
    %197 = vector.broadcast %cst_73 : f32 to vector<16x16xf32>
    %198 = arith.cmpf ogt, %196, %197 : vector<16x16xf32>
    %cst_74 = arith.constant 2.000000e-01 : f32
    %199 = vector.broadcast %cst_74 : f32 to vector<16x16xf32>
    %200 = arith.mulf %199, %196 : vector<16x16xf32>
    %201 = arith.select %198, %196, %200 : vector<16x16xi1>, vector<16x16xf32>
    %202 = arith.addf %201, %34 : vector<16x16xf32>
    %cst_75 = arith.constant dense<0xFF800000> : vector<16xf32>
    %203 = vector.multi_reduction <maximumf>, %202, %cst_75 [1] : vector<16x16xf32> to vector<16xf32>
    %204 = vector.shape_cast %203 : vector<16xf32> to vector<16x1xf32>
    %205 = vector.broadcast %204 : vector<16x1xf32> to vector<16x16xf32>
    %206 = arith.subf %202, %205 : vector<16x16xf32>
    %207 = math.exp %206 : vector<16x16xf32>
    %cst_76 = arith.constant dense<0.000000e+00> : vector<16xf32>
    %208 = vector.multi_reduction <add>, %207, %cst_76 [1] : vector<16x16xf32> to vector<16xf32>
    %209 = vector.shape_cast %208 : vector<16xf32> to vector<16x1xf32>
    %210 = tpu.reciprocal %209 {approx = true} : vector<16x1xf32> -> vector<16x1xf32>
    %211 = vector.broadcast %210 : vector<16x1xf32> to vector<16x16xf32>
    %212 = arith.mulf %207, %211 : vector<16x16xf32>
    %213 = arith.truncf %212 : vector<16x16xf32> to vector<16x16xbf16>
    %214 = arith.truncf %189 : vector<16x32xf32> to vector<16x32xbf16>
    %cst_77 = arith.constant dense<0.000000e+00> : vector<16x32xf32>
    %215 = tpu.matmul %213, %214, %cst_77 {dimension_numbers = #tpu.dot_dimension_numbers<[1], [0], [0], [1], [0, 0, 1, 1], [], []>} : vector<16x16xbf16>, vector<16x32xbf16>, vector<16x32xf32> -> vector<16x32xf32>
    %216 = vector.extract_strided_slice %182 {offsets = [0, 32], sizes = [16, 32], strides = [1, 1]} : vector<16x128xf32> to vector<16x32xf32>
    %217 = vector.extract_strided_slice %185 {offsets = [0, 32], sizes = [1, 32], strides = [1, 1]} : vector<1x128xf32> to vector<1x32xf32>
    %218 = vector.extract_strided_slice %188 {offsets = [0, 32], sizes = [1, 32], strides = [1, 1]} : vector<1x128xf32> to vector<1x32xf32>
    %cst_78 = arith.constant dense<0.000000e+00> : vector<16x1xf32>
    %219 = tpu.matmul %216, %217, %cst_78 {dimension_numbers = #tpu.dot_dimension_numbers<[1], [1], [0], [0], [0, 0, 1, 0], [], []>} : vector<16x32xf32>, vector<1x32xf32>, vector<16x1xf32> -> vector<16x1xf32>
    %cst_79 = arith.constant dense<0.000000e+00> : vector<1x16xf32>
    %220 = tpu.matmul %218, %216, %cst_79 {dimension_numbers = #tpu.dot_dimension_numbers<[1], [1], [0], [0], [0, 0, 1, 0], [], []>} : vector<1x32xf32>, vector<16x32xf32>, vector<1x16xf32> -> vector<1x16xf32>
    %221 = vector.broadcast %219 : vector<16x1xf32> to vector<16x16xf32>
    %222 = vector.broadcast %220 : vector<1x16xf32> to vector<16x16xf32>
    %223 = arith.addf %221, %222 : vector<16x16xf32>
    %cst_80 = arith.constant 0.000000e+00 : f32
    %224 = vector.broadcast %cst_80 : f32 to vector<16x16xf32>
    %225 = arith.cmpf ogt, %223, %224 : vector<16x16xf32>
    %cst_81 = arith.constant 2.000000e-01 : f32
    %226 = vector.broadcast %cst_81 : f32 to vector<16x16xf32>
    %227 = arith.mulf %226, %223 : vector<16x16xf32>
    %228 = arith.select %225, %223, %227 : vector<16x16xi1>, vector<16x16xf32>
    %229 = arith.addf %228, %34 : vector<16x16xf32>
    %cst_82 = arith.constant dense<0xFF800000> : vector<16xf32>
    %230 = vector.multi_reduction <maximumf>, %229, %cst_82 [1] : vector<16x16xf32> to vector<16xf32>
    %231 = vector.shape_cast %230 : vector<16xf32> to vector<16x1xf32>
    %232 = vector.broadcast %231 : vector<16x1xf32> to vector<16x16xf32>
    %233 = arith.subf %229, %232 : vector<16x16xf32>
    %234 = math.exp %233 : vector<16x16xf32>
    %cst_83 = arith.constant dense<0.000000e+00> : vector<16xf32>
    %235 = vector.multi_reduction <add>, %234, %cst_83 [1] : vector<16x16xf32> to vector<16xf32>
    %236 = vector.shape_cast %235 : vector<16xf32> to vector<16x1xf32>
    %237 = tpu.reciprocal %236 {approx = true} : vector<16x1xf32> -> vector<16x1xf32>
    %238 = vector.broadcast %237 : vector<16x1xf32> to vector<16x16xf32>
    %239 = arith.mulf %234, %238 : vector<16x16xf32>
    %240 = arith.truncf %239 : vector<16x16xf32> to vector<16x16xbf16>
    %241 = arith.truncf %216 : vector<16x32xf32> to vector<16x32xbf16>
    %cst_84 = arith.constant dense<0.000000e+00> : vector<16x32xf32>
    %242 = tpu.matmul %240, %241, %cst_84 {dimension_numbers = #tpu.dot_dimension_numbers<[1], [0], [0], [1], [0, 0, 1, 1], [], []>} : vector<16x16xbf16>, vector<16x32xbf16>, vector<16x32xf32> -> vector<16x32xf32>
    %243 = vector.extract_strided_slice %182 {offsets = [0, 64], sizes = [16, 32], strides = [1, 1]} : vector<16x128xf32> to vector<16x32xf32>
    %244 = vector.extract_strided_slice %185 {offsets = [0, 64], sizes = [1, 32], strides = [1, 1]} : vector<1x128xf32> to vector<1x32xf32>
    %245 = vector.extract_strided_slice %188 {offsets = [0, 64], sizes = [1, 32], strides = [1, 1]} : vector<1x128xf32> to vector<1x32xf32>
    %cst_85 = arith.constant dense<0.000000e+00> : vector<16x1xf32>
    %246 = tpu.matmul %243, %244, %cst_85 {dimension_numbers = #tpu.dot_dimension_numbers<[1], [1], [0], [0], [0, 0, 1, 0], [], []>} : vector<16x32xf32>, vector<1x32xf32>, vector<16x1xf32> -> vector<16x1xf32>
    %cst_86 = arith.constant dense<0.000000e+00> : vector<1x16xf32>
    %247 = tpu.matmul %245, %243, %cst_86 {dimension_numbers = #tpu.dot_dimension_numbers<[1], [1], [0], [0], [0, 0, 1, 0], [], []>} : vector<1x32xf32>, vector<16x32xf32>, vector<1x16xf32> -> vector<1x16xf32>
    %248 = vector.broadcast %246 : vector<16x1xf32> to vector<16x16xf32>
    %249 = vector.broadcast %247 : vector<1x16xf32> to vector<16x16xf32>
    %250 = arith.addf %248, %249 : vector<16x16xf32>
    %cst_87 = arith.constant 0.000000e+00 : f32
    %251 = vector.broadcast %cst_87 : f32 to vector<16x16xf32>
    %252 = arith.cmpf ogt, %250, %251 : vector<16x16xf32>
    %cst_88 = arith.constant 2.000000e-01 : f32
    %253 = vector.broadcast %cst_88 : f32 to vector<16x16xf32>
    %254 = arith.mulf %253, %250 : vector<16x16xf32>
    %255 = arith.select %252, %250, %254 : vector<16x16xi1>, vector<16x16xf32>
    %256 = arith.addf %255, %34 : vector<16x16xf32>
    %cst_89 = arith.constant dense<0xFF800000> : vector<16xf32>
    %257 = vector.multi_reduction <maximumf>, %256, %cst_89 [1] : vector<16x16xf32> to vector<16xf32>
    %258 = vector.shape_cast %257 : vector<16xf32> to vector<16x1xf32>
    %259 = vector.broadcast %258 : vector<16x1xf32> to vector<16x16xf32>
    %260 = arith.subf %256, %259 : vector<16x16xf32>
    %261 = math.exp %260 : vector<16x16xf32>
    %cst_90 = arith.constant dense<0.000000e+00> : vector<16xf32>
    %262 = vector.multi_reduction <add>, %261, %cst_90 [1] : vector<16x16xf32> to vector<16xf32>
    %263 = vector.shape_cast %262 : vector<16xf32> to vector<16x1xf32>
    %264 = tpu.reciprocal %263 {approx = true} : vector<16x1xf32> -> vector<16x1xf32>
    %265 = vector.broadcast %264 : vector<16x1xf32> to vector<16x16xf32>
    %266 = arith.mulf %261, %265 : vector<16x16xf32>
    %267 = arith.truncf %266 : vector<16x16xf32> to vector<16x16xbf16>
    %268 = arith.truncf %243 : vector<16x32xf32> to vector<16x32xbf16>
    %cst_91 = arith.constant dense<0.000000e+00> : vector<16x32xf32>
    %269 = tpu.matmul %267, %268, %cst_91 {dimension_numbers = #tpu.dot_dimension_numbers<[1], [0], [0], [1], [0, 0, 1, 1], [], []>} : vector<16x16xbf16>, vector<16x32xbf16>, vector<16x32xf32> -> vector<16x32xf32>
    %270 = vector.extract_strided_slice %182 {offsets = [0, 96], sizes = [16, 32], strides = [1, 1]} : vector<16x128xf32> to vector<16x32xf32>
    %271 = vector.extract_strided_slice %185 {offsets = [0, 96], sizes = [1, 32], strides = [1, 1]} : vector<1x128xf32> to vector<1x32xf32>
    %272 = vector.extract_strided_slice %188 {offsets = [0, 96], sizes = [1, 32], strides = [1, 1]} : vector<1x128xf32> to vector<1x32xf32>
    %cst_92 = arith.constant dense<0.000000e+00> : vector<16x1xf32>
    %273 = tpu.matmul %270, %271, %cst_92 {dimension_numbers = #tpu.dot_dimension_numbers<[1], [1], [0], [0], [0, 0, 1, 0], [], []>} : vector<16x32xf32>, vector<1x32xf32>, vector<16x1xf32> -> vector<16x1xf32>
    %cst_93 = arith.constant dense<0.000000e+00> : vector<1x16xf32>
    %274 = tpu.matmul %272, %270, %cst_93 {dimension_numbers = #tpu.dot_dimension_numbers<[1], [1], [0], [0], [0, 0, 1, 0], [], []>} : vector<1x32xf32>, vector<16x32xf32>, vector<1x16xf32> -> vector<1x16xf32>
    %275 = vector.broadcast %273 : vector<16x1xf32> to vector<16x16xf32>
    %276 = vector.broadcast %274 : vector<1x16xf32> to vector<16x16xf32>
    %277 = arith.addf %275, %276 : vector<16x16xf32>
    %cst_94 = arith.constant 0.000000e+00 : f32
    %278 = vector.broadcast %cst_94 : f32 to vector<16x16xf32>
    %279 = arith.cmpf ogt, %277, %278 : vector<16x16xf32>
    %cst_95 = arith.constant 2.000000e-01 : f32
    %280 = vector.broadcast %cst_95 : f32 to vector<16x16xf32>
    %281 = arith.mulf %280, %277 : vector<16x16xf32>
    %282 = arith.select %279, %277, %281 : vector<16x16xi1>, vector<16x16xf32>
    %283 = arith.addf %282, %34 : vector<16x16xf32>
    %cst_96 = arith.constant dense<0xFF800000> : vector<16xf32>
    %284 = vector.multi_reduction <maximumf>, %283, %cst_96 [1] : vector<16x16xf32> to vector<16xf32>
    %285 = vector.shape_cast %284 : vector<16xf32> to vector<16x1xf32>
    %286 = vector.broadcast %285 : vector<16x1xf32> to vector<16x16xf32>
    %287 = arith.subf %283, %286 : vector<16x16xf32>
    %288 = math.exp %287 : vector<16x16xf32>
    %cst_97 = arith.constant dense<0.000000e+00> : vector<16xf32>
    %289 = vector.multi_reduction <add>, %288, %cst_97 [1] : vector<16x16xf32> to vector<16xf32>
    %290 = vector.shape_cast %289 : vector<16xf32> to vector<16x1xf32>
    %291 = tpu.reciprocal %290 {approx = true} : vector<16x1xf32> -> vector<16x1xf32>
    %292 = vector.broadcast %291 : vector<16x1xf32> to vector<16x16xf32>
    %293 = arith.mulf %288, %292 : vector<16x16xf32>
    %294 = arith.truncf %293 : vector<16x16xf32> to vector<16x16xbf16>
    %295 = arith.truncf %270 : vector<16x32xf32> to vector<16x32xbf16>
    %cst_98 = arith.constant dense<0.000000e+00> : vector<16x32xf32>
    %296 = tpu.matmul %294, %295, %cst_98 {dimension_numbers = #tpu.dot_dimension_numbers<[1], [0], [0], [1], [0, 0, 1, 1], [], []>} : vector<16x16xbf16>, vector<16x32xbf16>, vector<16x32xf32> -> vector<16x32xf32>
    %297 = tpu.concatenate %215, %242, %269, %296 in 1 : vector<16x32xf32>, vector<16x32xf32>, vector<16x32xf32>, vector<16x32xf32> -> vector<16x128xf32>
    %298 = arith.addf %172, %297 : vector<16x128xf32>
    %cst_99 = arith.constant 0.000000e+00 : f32
    %299 = vector.broadcast %cst_99 : f32 to vector<16x128xf32>
    %300 = arith.cmpf ogt, %298, %299 : vector<16x128xf32>
    %cst_100 = arith.constant 0.000000e+00 : f32
    %301 = vector.broadcast %cst_100 : f32 to vector<16x128xf32>
    %302 = arith.minimumf %298, %301 : vector<16x128xf32>
    %303 = math.exp %302 : vector<16x128xf32>
    %cst_101 = arith.constant 1.000000e+00 : f32
    %304 = vector.broadcast %cst_101 : f32 to vector<16x128xf32>
    %305 = arith.subf %303, %304 : vector<16x128xf32>
    %306 = arith.select %300, %298, %305 : vector<16x128xi1>, vector<16x128xf32>
    %307 = vector.broadcast %36 : vector<16x1xf32> to vector<16x128xf32>
    %308 = arith.mulf %306, %307 : vector<16x128xf32>
    %c2 = arith.constant 2 : index
    %c0_102 = arith.constant 0 : index
    %c0_103 = arith.constant 0 : index
    %309 = vector.load %arg8[%c2, %c0_102, %c0_103] : memref<3x128x128xf32, #tpu.memory_space<vmem>>, vector<1x128x128xf32>
    %310 = vector.shape_cast %309 : vector<1x128x128xf32> to vector<128x128xf32>
    %311 = arith.truncf %308 : vector<16x128xf32> to vector<16x128xbf16>
    %312 = arith.truncf %310 : vector<128x128xf32> to vector<128x128xbf16>
    %cst_104 = arith.constant dense<0.000000e+00> : vector<16x128xf32>
    %313 = tpu.matmul %311, %312, %cst_104 {dimension_numbers = #tpu.dot_dimension_numbers<[1], [0], [0], [1], [0, 0, 1, 1], [], []>} : vector<16x128xbf16>, vector<128x128xbf16>, vector<16x128xf32> -> vector<16x128xf32>
    %c2_105 = arith.constant 2 : index
    %c0_106 = arith.constant 0 : index
    %314 = vector.load %arg9[%c2_105, %c0_106] : memref<3x128xf32, #tpu.memory_space<vmem>>, vector<1x128xf32>
    %315 = vector.shape_cast %314 : vector<1x128xf32> to vector<128xf32>
    %316 = vector.shape_cast %315 : vector<128xf32> to vector<1x128xf32>
    %317 = vector.broadcast %316 : vector<1x128xf32> to vector<16x128xf32>
    %318 = arith.addf %313, %317 : vector<16x128xf32>
    %c2_107 = arith.constant 2 : index
    %c0_108 = arith.constant 0 : index
    %319 = vector.load %arg10[%c2_107, %c0_108] : memref<3x128xf32, #tpu.memory_space<vmem>>, vector<1x128xf32>
    %320 = vector.shape_cast %319 : vector<1x128xf32> to vector<128xf32>
    %321 = vector.shape_cast %320 : vector<128xf32> to vector<1x128xf32>
    %c2_109 = arith.constant 2 : index
    %c0_110 = arith.constant 0 : index
    %322 = vector.load %arg11[%c2_109, %c0_110] : memref<3x128xf32, #tpu.memory_space<vmem>>, vector<1x128xf32>
    %323 = vector.shape_cast %322 : vector<1x128xf32> to vector<128xf32>
    %324 = vector.shape_cast %323 : vector<128xf32> to vector<1x128xf32>
    %325 = vector.extract_strided_slice %318 {offsets = [0, 0], sizes = [16, 32], strides = [1, 1]} : vector<16x128xf32> to vector<16x32xf32>
    %326 = vector.extract_strided_slice %321 {offsets = [0, 0], sizes = [1, 32], strides = [1, 1]} : vector<1x128xf32> to vector<1x32xf32>
    %327 = vector.extract_strided_slice %324 {offsets = [0, 0], sizes = [1, 32], strides = [1, 1]} : vector<1x128xf32> to vector<1x32xf32>
    %cst_111 = arith.constant dense<0.000000e+00> : vector<16x1xf32>
    %328 = tpu.matmul %325, %326, %cst_111 {dimension_numbers = #tpu.dot_dimension_numbers<[1], [1], [0], [0], [0, 0, 1, 0], [], []>} : vector<16x32xf32>, vector<1x32xf32>, vector<16x1xf32> -> vector<16x1xf32>
    %cst_112 = arith.constant dense<0.000000e+00> : vector<1x16xf32>
    %329 = tpu.matmul %327, %325, %cst_112 {dimension_numbers = #tpu.dot_dimension_numbers<[1], [1], [0], [0], [0, 0, 1, 0], [], []>} : vector<1x32xf32>, vector<16x32xf32>, vector<1x16xf32> -> vector<1x16xf32>
    %330 = vector.broadcast %328 : vector<16x1xf32> to vector<16x16xf32>
    %331 = vector.broadcast %329 : vector<1x16xf32> to vector<16x16xf32>
    %332 = arith.addf %330, %331 : vector<16x16xf32>
    %cst_113 = arith.constant 0.000000e+00 : f32
    %333 = vector.broadcast %cst_113 : f32 to vector<16x16xf32>
    %334 = arith.cmpf ogt, %332, %333 : vector<16x16xf32>
    %cst_114 = arith.constant 2.000000e-01 : f32
    %335 = vector.broadcast %cst_114 : f32 to vector<16x16xf32>
    %336 = arith.mulf %335, %332 : vector<16x16xf32>
    %337 = arith.select %334, %332, %336 : vector<16x16xi1>, vector<16x16xf32>
    %338 = arith.addf %337, %34 : vector<16x16xf32>
    %cst_115 = arith.constant dense<0xFF800000> : vector<16xf32>
    %339 = vector.multi_reduction <maximumf>, %338, %cst_115 [1] : vector<16x16xf32> to vector<16xf32>
    %340 = vector.shape_cast %339 : vector<16xf32> to vector<16x1xf32>
    %341 = vector.broadcast %340 : vector<16x1xf32> to vector<16x16xf32>
    %342 = arith.subf %338, %341 : vector<16x16xf32>
    %343 = math.exp %342 : vector<16x16xf32>
    %cst_116 = arith.constant dense<0.000000e+00> : vector<16xf32>
    %344 = vector.multi_reduction <add>, %343, %cst_116 [1] : vector<16x16xf32> to vector<16xf32>
    %345 = vector.shape_cast %344 : vector<16xf32> to vector<16x1xf32>
    %346 = tpu.reciprocal %345 {approx = true} : vector<16x1xf32> -> vector<16x1xf32>
    %347 = vector.broadcast %346 : vector<16x1xf32> to vector<16x16xf32>
    %348 = arith.mulf %343, %347 : vector<16x16xf32>
    %349 = arith.truncf %348 : vector<16x16xf32> to vector<16x16xbf16>
    %350 = arith.truncf %325 : vector<16x32xf32> to vector<16x32xbf16>
    %cst_117 = arith.constant dense<0.000000e+00> : vector<16x32xf32>
    %351 = tpu.matmul %349, %350, %cst_117 {dimension_numbers = #tpu.dot_dimension_numbers<[1], [0], [0], [1], [0, 0, 1, 1], [], []>} : vector<16x16xbf16>, vector<16x32xbf16>, vector<16x32xf32> -> vector<16x32xf32>
    %352 = vector.extract_strided_slice %318 {offsets = [0, 32], sizes = [16, 32], strides = [1, 1]} : vector<16x128xf32> to vector<16x32xf32>
    %353 = vector.extract_strided_slice %321 {offsets = [0, 32], sizes = [1, 32], strides = [1, 1]} : vector<1x128xf32> to vector<1x32xf32>
    %354 = vector.extract_strided_slice %324 {offsets = [0, 32], sizes = [1, 32], strides = [1, 1]} : vector<1x128xf32> to vector<1x32xf32>
    %cst_118 = arith.constant dense<0.000000e+00> : vector<16x1xf32>
    %355 = tpu.matmul %352, %353, %cst_118 {dimension_numbers = #tpu.dot_dimension_numbers<[1], [1], [0], [0], [0, 0, 1, 0], [], []>} : vector<16x32xf32>, vector<1x32xf32>, vector<16x1xf32> -> vector<16x1xf32>
    %cst_119 = arith.constant dense<0.000000e+00> : vector<1x16xf32>
    %356 = tpu.matmul %354, %352, %cst_119 {dimension_numbers = #tpu.dot_dimension_numbers<[1], [1], [0], [0], [0, 0, 1, 0], [], []>} : vector<1x32xf32>, vector<16x32xf32>, vector<1x16xf32> -> vector<1x16xf32>
    %357 = vector.broadcast %355 : vector<16x1xf32> to vector<16x16xf32>
    %358 = vector.broadcast %356 : vector<1x16xf32> to vector<16x16xf32>
    %359 = arith.addf %357, %358 : vector<16x16xf32>
    %cst_120 = arith.constant 0.000000e+00 : f32
    %360 = vector.broadcast %cst_120 : f32 to vector<16x16xf32>
    %361 = arith.cmpf ogt, %359, %360 : vector<16x16xf32>
    %cst_121 = arith.constant 2.000000e-01 : f32
    %362 = vector.broadcast %cst_121 : f32 to vector<16x16xf32>
    %363 = arith.mulf %362, %359 : vector<16x16xf32>
    %364 = arith.select %361, %359, %363 : vector<16x16xi1>, vector<16x16xf32>
    %365 = arith.addf %364, %34 : vector<16x16xf32>
    %cst_122 = arith.constant dense<0xFF800000> : vector<16xf32>
    %366 = vector.multi_reduction <maximumf>, %365, %cst_122 [1] : vector<16x16xf32> to vector<16xf32>
    %367 = vector.shape_cast %366 : vector<16xf32> to vector<16x1xf32>
    %368 = vector.broadcast %367 : vector<16x1xf32> to vector<16x16xf32>
    %369 = arith.subf %365, %368 : vector<16x16xf32>
    %370 = math.exp %369 : vector<16x16xf32>
    %cst_123 = arith.constant dense<0.000000e+00> : vector<16xf32>
    %371 = vector.multi_reduction <add>, %370, %cst_123 [1] : vector<16x16xf32> to vector<16xf32>
    %372 = vector.shape_cast %371 : vector<16xf32> to vector<16x1xf32>
    %373 = tpu.reciprocal %372 {approx = true} : vector<16x1xf32> -> vector<16x1xf32>
    %374 = vector.broadcast %373 : vector<16x1xf32> to vector<16x16xf32>
    %375 = arith.mulf %370, %374 : vector<16x16xf32>
    %376 = arith.truncf %375 : vector<16x16xf32> to vector<16x16xbf16>
    %377 = arith.truncf %352 : vector<16x32xf32> to vector<16x32xbf16>
    %cst_124 = arith.constant dense<0.000000e+00> : vector<16x32xf32>
    %378 = tpu.matmul %376, %377, %cst_124 {dimension_numbers = #tpu.dot_dimension_numbers<[1], [0], [0], [1], [0, 0, 1, 1], [], []>} : vector<16x16xbf16>, vector<16x32xbf16>, vector<16x32xf32> -> vector<16x32xf32>
    %379 = vector.extract_strided_slice %318 {offsets = [0, 64], sizes = [16, 32], strides = [1, 1]} : vector<16x128xf32> to vector<16x32xf32>
    %380 = vector.extract_strided_slice %321 {offsets = [0, 64], sizes = [1, 32], strides = [1, 1]} : vector<1x128xf32> to vector<1x32xf32>
    %381 = vector.extract_strided_slice %324 {offsets = [0, 64], sizes = [1, 32], strides = [1, 1]} : vector<1x128xf32> to vector<1x32xf32>
    %cst_125 = arith.constant dense<0.000000e+00> : vector<16x1xf32>
    %382 = tpu.matmul %379, %380, %cst_125 {dimension_numbers = #tpu.dot_dimension_numbers<[1], [1], [0], [0], [0, 0, 1, 0], [], []>} : vector<16x32xf32>, vector<1x32xf32>, vector<16x1xf32> -> vector<16x1xf32>
    %cst_126 = arith.constant dense<0.000000e+00> : vector<1x16xf32>
    %383 = tpu.matmul %381, %379, %cst_126 {dimension_numbers = #tpu.dot_dimension_numbers<[1], [1], [0], [0], [0, 0, 1, 0], [], []>} : vector<1x32xf32>, vector<16x32xf32>, vector<1x16xf32> -> vector<1x16xf32>
    %384 = vector.broadcast %382 : vector<16x1xf32> to vector<16x16xf32>
    %385 = vector.broadcast %383 : vector<1x16xf32> to vector<16x16xf32>
    %386 = arith.addf %384, %385 : vector<16x16xf32>
    %cst_127 = arith.constant 0.000000e+00 : f32
    %387 = vector.broadcast %cst_127 : f32 to vector<16x16xf32>
    %388 = arith.cmpf ogt, %386, %387 : vector<16x16xf32>
    %cst_128 = arith.constant 2.000000e-01 : f32
    %389 = vector.broadcast %cst_128 : f32 to vector<16x16xf32>
    %390 = arith.mulf %389, %386 : vector<16x16xf32>
    %391 = arith.select %388, %386, %390 : vector<16x16xi1>, vector<16x16xf32>
    %392 = arith.addf %391, %34 : vector<16x16xf32>
    %cst_129 = arith.constant dense<0xFF800000> : vector<16xf32>
    %393 = vector.multi_reduction <maximumf>, %392, %cst_129 [1] : vector<16x16xf32> to vector<16xf32>
    %394 = vector.shape_cast %393 : vector<16xf32> to vector<16x1xf32>
    %395 = vector.broadcast %394 : vector<16x1xf32> to vector<16x16xf32>
    %396 = arith.subf %392, %395 : vector<16x16xf32>
    %397 = math.exp %396 : vector<16x16xf32>
    %cst_130 = arith.constant dense<0.000000e+00> : vector<16xf32>
    %398 = vector.multi_reduction <add>, %397, %cst_130 [1] : vector<16x16xf32> to vector<16xf32>
    %399 = vector.shape_cast %398 : vector<16xf32> to vector<16x1xf32>
    %400 = tpu.reciprocal %399 {approx = true} : vector<16x1xf32> -> vector<16x1xf32>
    %401 = vector.broadcast %400 : vector<16x1xf32> to vector<16x16xf32>
    %402 = arith.mulf %397, %401 : vector<16x16xf32>
    %403 = arith.truncf %402 : vector<16x16xf32> to vector<16x16xbf16>
    %404 = arith.truncf %379 : vector<16x32xf32> to vector<16x32xbf16>
    %cst_131 = arith.constant dense<0.000000e+00> : vector<16x32xf32>
    %405 = tpu.matmul %403, %404, %cst_131 {dimension_numbers = #tpu.dot_dimension_numbers<[1], [0], [0], [1], [0, 0, 1, 1], [], []>} : vector<16x16xbf16>, vector<16x32xbf16>, vector<16x32xf32> -> vector<16x32xf32>
    %406 = vector.extract_strided_slice %318 {offsets = [0, 96], sizes = [16, 32], strides = [1, 1]} : vector<16x128xf32> to vector<16x32xf32>
    %407 = vector.extract_strided_slice %321 {offsets = [0, 96], sizes = [1, 32], strides = [1, 1]} : vector<1x128xf32> to vector<1x32xf32>
    %408 = vector.extract_strided_slice %324 {offsets = [0, 96], sizes = [1, 32], strides = [1, 1]} : vector<1x128xf32> to vector<1x32xf32>
    %cst_132 = arith.constant dense<0.000000e+00> : vector<16x1xf32>
    %409 = tpu.matmul %406, %407, %cst_132 {dimension_numbers = #tpu.dot_dimension_numbers<[1], [1], [0], [0], [0, 0, 1, 0], [], []>} : vector<16x32xf32>, vector<1x32xf32>, vector<16x1xf32> -> vector<16x1xf32>
    %cst_133 = arith.constant dense<0.000000e+00> : vector<1x16xf32>
    %410 = tpu.matmul %408, %406, %cst_133 {dimension_numbers = #tpu.dot_dimension_numbers<[1], [1], [0], [0], [0, 0, 1, 0], [], []>} : vector<1x32xf32>, vector<16x32xf32>, vector<1x16xf32> -> vector<1x16xf32>
    %411 = vector.broadcast %409 : vector<16x1xf32> to vector<16x16xf32>
    %412 = vector.broadcast %410 : vector<1x16xf32> to vector<16x16xf32>
    %413 = arith.addf %411, %412 : vector<16x16xf32>
    %cst_134 = arith.constant 0.000000e+00 : f32
    %414 = vector.broadcast %cst_134 : f32 to vector<16x16xf32>
    %415 = arith.cmpf ogt, %413, %414 : vector<16x16xf32>
    %cst_135 = arith.constant 2.000000e-01 : f32
    %416 = vector.broadcast %cst_135 : f32 to vector<16x16xf32>
    %417 = arith.mulf %416, %413 : vector<16x16xf32>
    %418 = arith.select %415, %413, %417 : vector<16x16xi1>, vector<16x16xf32>
    %419 = arith.addf %418, %34 : vector<16x16xf32>
    %cst_136 = arith.constant dense<0xFF800000> : vector<16xf32>
    %420 = vector.multi_reduction <maximumf>, %419, %cst_136 [1] : vector<16x16xf32> to vector<16xf32>
    %421 = vector.shape_cast %420 : vector<16xf32> to vector<16x1xf32>
    %422 = vector.broadcast %421 : vector<16x1xf32> to vector<16x16xf32>
    %423 = arith.subf %419, %422 : vector<16x16xf32>
    %424 = math.exp %423 : vector<16x16xf32>
    %cst_137 = arith.constant dense<0.000000e+00> : vector<16xf32>
    %425 = vector.multi_reduction <add>, %424, %cst_137 [1] : vector<16x16xf32> to vector<16xf32>
    %426 = vector.shape_cast %425 : vector<16xf32> to vector<16x1xf32>
    %427 = tpu.reciprocal %426 {approx = true} : vector<16x1xf32> -> vector<16x1xf32>
    %428 = vector.broadcast %427 : vector<16x1xf32> to vector<16x16xf32>
    %429 = arith.mulf %424, %428 : vector<16x16xf32>
    %430 = arith.truncf %429 : vector<16x16xf32> to vector<16x16xbf16>
    %431 = arith.truncf %406 : vector<16x32xf32> to vector<16x32xbf16>
    %cst_138 = arith.constant dense<0.000000e+00> : vector<16x32xf32>
    %432 = tpu.matmul %430, %431, %cst_138 {dimension_numbers = #tpu.dot_dimension_numbers<[1], [0], [0], [1], [0, 0, 1, 1], [], []>} : vector<16x16xbf16>, vector<16x32xbf16>, vector<16x32xf32> -> vector<16x32xf32>
    %433 = tpu.concatenate %351, %378, %405, %432 in 1 : vector<16x32xf32>, vector<16x32xf32>, vector<16x32xf32>, vector<16x32xf32> -> vector<16x128xf32>
    %434 = arith.addf %308, %433 : vector<16x128xf32>
    %cst_139 = arith.constant 0.000000e+00 : f32
    %435 = vector.broadcast %cst_139 : f32 to vector<16x128xf32>
    %436 = arith.cmpf ogt, %434, %435 : vector<16x128xf32>
    %cst_140 = arith.constant 0.000000e+00 : f32
    %437 = vector.broadcast %cst_140 : f32 to vector<16x128xf32>
    %438 = arith.minimumf %434, %437 : vector<16x128xf32>
    %439 = math.exp %438 : vector<16x128xf32>
    %cst_141 = arith.constant 1.000000e+00 : f32
    %440 = vector.broadcast %cst_141 : f32 to vector<16x128xf32>
    %441 = arith.subf %439, %440 : vector<16x128xf32>
    %442 = arith.select %436, %434, %441 : vector<16x128xi1>, vector<16x128xf32>
    %443 = vector.broadcast %36 : vector<16x1xf32> to vector<16x128xf32>
    %444 = arith.mulf %442, %443 : vector<16x128xf32>
    %c0_142 = arith.constant 0 : index
    %c0_143 = arith.constant 0 : index
    %c0_144 = arith.constant 0 : index
    %445 = vector.load %arg12[%c0_142, %c0_143, %c0_144] : memref<1x16x128xf32, #tpu.memory_space<vmem>>, vector<1x16x128xf32>
    %446 = vector.shape_cast %445 : vector<1x16x128xf32> to vector<16x128xf32>
    %447 = vector.shape_cast %444 : vector<16x128xf32> to vector<1x16x128xf32>
    tpu.vector_store %arg12[%c0_142, %c0_143, %c0_144], %447 {strides = array<i32>} : memref<1x16x128xf32, #tpu.memory_space<vmem>>, vector<1x16x128xf32>,
    return
  }
  func.func @transform_0(%arg0: i32) -> (i32, i32, i32) {
    %c0_i32 = arith.constant 0 : i32
    %c0_i32_0 = arith.constant 0 : i32
    %c0_i32_1 = arith.constant 0 : i32
    return %arg0, %c0_i32, %c0_i32_0 : i32, i32, i32
  }
  func.func @transform_1(%arg0: i32) -> (i32, i32, i32) {
    %c0_i32 = arith.constant 0 : i32
    %c0_i32_0 = arith.constant 0 : i32
    %c0_i32_1 = arith.constant 0 : i32
    return %arg0, %c0_i32, %c0_i32_0 : i32, i32, i32
  }
  func.func @transform_2(%arg0: i32) -> (i32, i32, i32) {
    %c0_i32 = arith.constant 0 : i32
    %c0_i32_0 = arith.constant 0 : i32
    %c0_i32_1 = arith.constant 0 : i32
    return %arg0, %c0_i32, %c0_i32_0 : i32, i32, i32
  }
  func.func @transform_3(%arg0: i32) -> (i32, i32) {
    %c0_i32 = arith.constant 0 : i32
    %c0_i32_0 = arith.constant 0 : i32
    %c0_i32_1 = arith.constant 0 : i32
    return %c0_i32, %c0_i32_0 : i32, i32
  }
  func.func @transform_4(%arg0: i32) -> (i32, i32) {
    %c0_i32 = arith.constant 0 : i32
    %c0_i32_0 = arith.constant 0 : i32
    %c0_i32_1 = arith.constant 0 : i32
    return %c0_i32, %c0_i32_0 : i32, i32
  }
  func.func @transform_5(%arg0: i32) -> (i32, i32) {
    %c0_i32 = arith.constant 0 : i32
    %c0_i32_0 = arith.constant 0 : i32
    %c0_i32_1 = arith.constant 0 : i32
    return %c0_i32, %c0_i32_0 : i32, i32
  }
  func.func @transform_6(%arg0: i32) -> (i32, i32) {
    %c0_i32 = arith.constant 0 : i32
    %c0_i32_0 = arith.constant 0 : i32
    %c0_i32_1 = arith.constant 0 : i32
    return %c0_i32, %c0_i32_0 : i32, i32
  }
  func.func @transform_7(%arg0: i32) -> (i32, i32, i32) {
    %c0_i32 = arith.constant 0 : i32
    %c0_i32_0 = arith.constant 0 : i32
    %c0_i32_1 = arith.constant 0 : i32
    %c0_i32_2 = arith.constant 0 : i32
    return %c0_i32, %c0_i32_0, %c0_i32_1 : i32, i32, i32
  }
  func.func @transform_8(%arg0: i32) -> (i32, i32) {
    %c0_i32 = arith.constant 0 : i32
    %c0_i32_0 = arith.constant 0 : i32
    %c0_i32_1 = arith.constant 0 : i32
    return %c0_i32, %c0_i32_0 : i32, i32
  }
  func.func @transform_9(%arg0: i32) -> (i32, i32) {
    %c0_i32 = arith.constant 0 : i32
    %c0_i32_0 = arith.constant 0 : i32
    %c0_i32_1 = arith.constant 0 : i32
    return %c0_i32, %c0_i32_0 : i32, i32
  }
  func.func @transform_10(%arg0: i32) -> (i32, i32) {
    %c0_i32 = arith.constant 0 : i32
    %c0_i32_0 = arith.constant 0 : i32
    %c0_i32_1 = arith.constant 0 : i32
    return %c0_i32, %c0_i32_0 : i32, i32
  }
  func.func @transform_11(%arg0: i32) -> (i32, i32, i32) {
    %c0_i32 = arith.constant 0 : i32
    %c0_i32_0 = arith.constant 0 : i32
    %c0_i32_1 = arith.constant 0 : i32
    return %arg0, %c0_i32, %c0_i32_0 : i32, i32, i32
  }
}

module attributes {stable_mosaic.version = 11 : i64} {
  func.func @_xattn_kernel(%arg0: i32, %arg1: memref<1x16x128xf32, #tpu.memory_space<vmem>>, %arg2: memref<1x32x128xf32, #tpu.memory_space<vmem>>, %arg3: memref<1x1x32xf32, #tpu.memory_space<vmem>>, %arg4: memref<128x128xf32, #tpu.memory_space<vmem>>, %arg5: memref<1x128xf32, #tpu.memory_space<vmem>>, %arg6: memref<128x256xf32, #tpu.memory_space<vmem>>, %arg7: memref<1x256xf32, #tpu.memory_space<vmem>>, %arg8: memref<128x128xf32, #tpu.memory_space<vmem>>, %arg9: memref<1x128xf32, #tpu.memory_space<vmem>>, %arg10: memref<1x128xf32, #tpu.memory_space<vmem>>, %arg11: memref<1x128xf32, #tpu.memory_space<vmem>>, %arg12: memref<128x256xf32, #tpu.memory_space<vmem>>, %arg13: memref<1x256xf32, #tpu.memory_space<vmem>>, %arg14: memref<256x128xf32, #tpu.memory_space<vmem>>, %arg15: memref<1x128xf32, #tpu.memory_space<vmem>>, %arg16: memref<1x128xf32, #tpu.memory_space<vmem>>, %arg17: memref<1x128xf32, #tpu.memory_space<vmem>>, %arg18: memref<1x16x128xf32, #tpu.memory_space<vmem>>) attributes {dimension_semantics = [#tpu.dimension_semantics<parallel>], iteration_bounds = array<i64: 2>, scalar_prefetch = 0 : i64, scratch_operands = 0 : i64, tpu.core_type = #tpu.core_type<tc>, window_params = [{transform_indices = @transform_0, window_bounds = array<i64: 1, 16, 128>}, {transform_indices = @transform_1, window_bounds = array<i64: 1, 32, 128>}, {transform_indices = @transform_2, window_bounds = array<i64: 1, 1, 32>}, {pipeline_mode = #tpu.pipeline_mode<synchronous>, transform_indices = @transform_3, window_bounds = array<i64: 128, 128>}, {pipeline_mode = #tpu.pipeline_mode<synchronous>, transform_indices = @transform_4, window_bounds = array<i64: 1, 128>}, {pipeline_mode = #tpu.pipeline_mode<synchronous>, transform_indices = @transform_5, window_bounds = array<i64: 128, 256>}, {pipeline_mode = #tpu.pipeline_mode<synchronous>, transform_indices = @transform_6, window_bounds = array<i64: 1, 256>}, {pipeline_mode = #tpu.pipeline_mode<synchronous>, transform_indices = @transform_7, window_bounds = array<i64: 128, 128>}, {pipeline_mode = #tpu.pipeline_mode<synchronous>, transform_indices = @transform_8, window_bounds = array<i64: 1, 128>}, {pipeline_mode = #tpu.pipeline_mode<synchronous>, transform_indices = @transform_9, window_bounds = array<i64: 1, 128>}, {pipeline_mode = #tpu.pipeline_mode<synchronous>, transform_indices = @transform_10, window_bounds = array<i64: 1, 128>}, {pipeline_mode = #tpu.pipeline_mode<synchronous>, transform_indices = @transform_11, window_bounds = array<i64: 128, 256>}, {pipeline_mode = #tpu.pipeline_mode<synchronous>, transform_indices = @transform_12, window_bounds = array<i64: 1, 256>}, {pipeline_mode = #tpu.pipeline_mode<synchronous>, transform_indices = @transform_13, window_bounds = array<i64: 256, 128>}, {pipeline_mode = #tpu.pipeline_mode<synchronous>, transform_indices = @transform_14, window_bounds = array<i64: 1, 128>}, {pipeline_mode = #tpu.pipeline_mode<synchronous>, transform_indices = @transform_15, window_bounds = array<i64: 1, 128>}, {pipeline_mode = #tpu.pipeline_mode<synchronous>, transform_indices = @transform_16, window_bounds = array<i64: 1, 128>}, {transform_indices = @transform_17, window_bounds = array<i64: 1, 16, 128>}]} {
    %c0 = arith.constant 0 : index
    %c0_0 = arith.constant 0 : index
    %c0_1 = arith.constant 0 : index
    %0 = vector.load %arg1[%c0, %c0_0, %c0_1] : memref<1x16x128xf32, #tpu.memory_space<vmem>>, vector<1x16x128xf32>
    %1 = vector.shape_cast %0 : vector<1x16x128xf32> to vector<16x128xf32>
    %c0_2 = arith.constant 0 : index
    %c0_3 = arith.constant 0 : index
    %c0_4 = arith.constant 0 : index
    %2 = vector.load %arg2[%c0_2, %c0_3, %c0_4] : memref<1x32x128xf32, #tpu.memory_space<vmem>>, vector<1x32x128xf32>
    %3 = vector.shape_cast %2 : vector<1x32x128xf32> to vector<32x128xf32>
    %c0_5 = arith.constant 0 : index
    %c0_6 = arith.constant 0 : index
    %c0_7 = arith.constant 0 : index
    %4 = vector.load %arg3[%c0_5, %c0_6, %c0_7] : memref<1x1x32xf32, #tpu.memory_space<vmem>>, vector<1x1x32xf32>
    %5 = vector.shape_cast %4 : vector<1x1x32xf32> to vector<1x32xf32>
    %c0_8 = arith.constant 0 : index
    %c0_9 = arith.constant 0 : index
    %6 = vector.load %arg4[%c0_8, %c0_9] : memref<128x128xf32, #tpu.memory_space<vmem>>, vector<128x128xf32>
    %7 = arith.truncf %1 : vector<16x128xf32> to vector<16x128xbf16>
    %8 = arith.truncf %6 : vector<128x128xf32> to vector<128x128xbf16>
    %cst = arith.constant dense<0.000000e+00> : vector<16x128xf32>
    %9 = tpu.matmul %7, %8, %cst {dimension_numbers = #tpu.dot_dimension_numbers<[1], [0], [0], [1], [0, 0, 1, 1], [], []>} : vector<16x128xbf16>, vector<128x128xbf16>, vector<16x128xf32> -> vector<16x128xf32>
    %c0_10 = arith.constant 0 : index
    %c0_11 = arith.constant 0 : index
    %10 = vector.load %arg5[%c0_10, %c0_11] : memref<1x128xf32, #tpu.memory_space<vmem>>, vector<1x128xf32>
    %11 = vector.broadcast %10 : vector<1x128xf32> to vector<16x128xf32>
    %12 = arith.addf %9, %11 : vector<16x128xf32>
    %c0_12 = arith.constant 0 : index
    %c0_13 = arith.constant 0 : index
    %13 = vector.load %arg6[%c0_12, %c0_13] : memref<128x256xf32, #tpu.memory_space<vmem>>, vector<128x256xf32>
    %14 = arith.truncf %3 : vector<32x128xf32> to vector<32x128xbf16>
    %15 = arith.truncf %13 : vector<128x256xf32> to vector<128x256xbf16>
    %cst_14 = arith.constant dense<0.000000e+00> : vector<32x256xf32>
    %16 = tpu.matmul %14, %15, %cst_14 {dimension_numbers = #tpu.dot_dimension_numbers<[1], [0], [0], [1], [0, 0, 1, 1], [], []>} : vector<32x128xbf16>, vector<128x256xbf16>, vector<32x256xf32> -> vector<32x256xf32>
    %c0_15 = arith.constant 0 : index
    %c0_16 = arith.constant 0 : index
    %17 = vector.load %arg7[%c0_15, %c0_16] : memref<1x256xf32, #tpu.memory_space<vmem>>, vector<1x256xf32>
    %18 = vector.broadcast %17 : vector<1x256xf32> to vector<32x256xf32>
    %19 = arith.addf %16, %18 : vector<32x256xf32>
    %20 = vector.extract_strided_slice %19 {offsets = [0, 0], sizes = [32, 128], strides = [1, 1]} : vector<32x256xf32> to vector<32x128xf32>
    %21 = vector.extract_strided_slice %19 {offsets = [0, 128], sizes = [32, 128], strides = [1, 1]} : vector<32x256xf32> to vector<32x128xf32>
    %22 = vector.extract_strided_slice %12 {offsets = [0, 0], sizes = [16, 32], strides = [1, 1]} : vector<16x128xf32> to vector<16x32xf32>
    %23 = vector.extract_strided_slice %20 {offsets = [0, 0], sizes = [32, 32], strides = [1, 1]} : vector<32x128xf32> to vector<32x32xf32>
    %24 = vector.extract_strided_slice %21 {offsets = [0, 0], sizes = [32, 32], strides = [1, 1]} : vector<32x128xf32> to vector<32x32xf32>
    %25 = arith.truncf %22 : vector<16x32xf32> to vector<16x32xbf16>
    %26 = arith.truncf %23 : vector<32x32xf32> to vector<32x32xbf16>
    %cst_17 = arith.constant dense<0.000000e+00> : vector<16x32xf32>
    %27 = tpu.matmul %25, %26, %cst_17 {dimension_numbers = #tpu.dot_dimension_numbers<[1], [1], [0], [0], [0, 0, 1, 0], [], []>} : vector<16x32xbf16>, vector<32x32xbf16>, vector<16x32xf32> -> vector<16x32xf32>
    %cst_18 = arith.constant 0.176776692 : f32
    %28 = vector.broadcast %cst_18 : f32 to vector<16x32xf32>
    %29 = arith.mulf %27, %28 : vector<16x32xf32>
    %30 = vector.broadcast %5 : vector<1x32xf32> to vector<16x32xf32>
    %31 = arith.addf %29, %30 : vector<16x32xf32>
    %cst_19 = arith.constant dense<0xFF800000> : vector<16xf32>
    %32 = vector.multi_reduction <maximumf>, %31, %cst_19 [1] : vector<16x32xf32> to vector<16xf32>
    %33 = vector.shape_cast %32 : vector<16xf32> to vector<16x1xf32>
    %34 = vector.broadcast %33 : vector<16x1xf32> to vector<16x32xf32>
    %35 = arith.subf %31, %34 : vector<16x32xf32>
    %36 = math.exp %35 : vector<16x32xf32>
    %cst_20 = arith.constant dense<0.000000e+00> : vector<16xf32>
    %37 = vector.multi_reduction <add>, %36, %cst_20 [1] : vector<16x32xf32> to vector<16xf32>
    %38 = vector.shape_cast %37 : vector<16xf32> to vector<16x1xf32>
    %39 = tpu.reciprocal %38 {approx = true} : vector<16x1xf32> -> vector<16x1xf32>
    %40 = vector.broadcast %39 : vector<16x1xf32> to vector<16x32xf32>
    %41 = arith.mulf %36, %40 : vector<16x32xf32>
    %42 = arith.truncf %41 : vector<16x32xf32> to vector<16x32xbf16>
    %43 = arith.truncf %24 : vector<32x32xf32> to vector<32x32xbf16>
    %cst_21 = arith.constant dense<0.000000e+00> : vector<16x32xf32>
    %44 = tpu.matmul %42, %43, %cst_21 {dimension_numbers = #tpu.dot_dimension_numbers<[1], [0], [0], [1], [0, 0, 1, 1], [], []>} : vector<16x32xbf16>, vector<32x32xbf16>, vector<16x32xf32> -> vector<16x32xf32>
    %45 = vector.extract_strided_slice %12 {offsets = [0, 32], sizes = [16, 32], strides = [1, 1]} : vector<16x128xf32> to vector<16x32xf32>
    %46 = vector.extract_strided_slice %20 {offsets = [0, 32], sizes = [32, 32], strides = [1, 1]} : vector<32x128xf32> to vector<32x32xf32>
    %47 = vector.extract_strided_slice %21 {offsets = [0, 32], sizes = [32, 32], strides = [1, 1]} : vector<32x128xf32> to vector<32x32xf32>
    %48 = arith.truncf %45 : vector<16x32xf32> to vector<16x32xbf16>
    %49 = arith.truncf %46 : vector<32x32xf32> to vector<32x32xbf16>
    %cst_22 = arith.constant dense<0.000000e+00> : vector<16x32xf32>
    %50 = tpu.matmul %48, %49, %cst_22 {dimension_numbers = #tpu.dot_dimension_numbers<[1], [1], [0], [0], [0, 0, 1, 0], [], []>} : vector<16x32xbf16>, vector<32x32xbf16>, vector<16x32xf32> -> vector<16x32xf32>
    %cst_23 = arith.constant 0.176776692 : f32
    %51 = vector.broadcast %cst_23 : f32 to vector<16x32xf32>
    %52 = arith.mulf %50, %51 : vector<16x32xf32>
    %53 = vector.broadcast %5 : vector<1x32xf32> to vector<16x32xf32>
    %54 = arith.addf %52, %53 : vector<16x32xf32>
    %cst_24 = arith.constant dense<0xFF800000> : vector<16xf32>
    %55 = vector.multi_reduction <maximumf>, %54, %cst_24 [1] : vector<16x32xf32> to vector<16xf32>
    %56 = vector.shape_cast %55 : vector<16xf32> to vector<16x1xf32>
    %57 = vector.broadcast %56 : vector<16x1xf32> to vector<16x32xf32>
    %58 = arith.subf %54, %57 : vector<16x32xf32>
    %59 = math.exp %58 : vector<16x32xf32>
    %cst_25 = arith.constant dense<0.000000e+00> : vector<16xf32>
    %60 = vector.multi_reduction <add>, %59, %cst_25 [1] : vector<16x32xf32> to vector<16xf32>
    %61 = vector.shape_cast %60 : vector<16xf32> to vector<16x1xf32>
    %62 = tpu.reciprocal %61 {approx = true} : vector<16x1xf32> -> vector<16x1xf32>
    %63 = vector.broadcast %62 : vector<16x1xf32> to vector<16x32xf32>
    %64 = arith.mulf %59, %63 : vector<16x32xf32>
    %65 = arith.truncf %64 : vector<16x32xf32> to vector<16x32xbf16>
    %66 = arith.truncf %47 : vector<32x32xf32> to vector<32x32xbf16>
    %cst_26 = arith.constant dense<0.000000e+00> : vector<16x32xf32>
    %67 = tpu.matmul %65, %66, %cst_26 {dimension_numbers = #tpu.dot_dimension_numbers<[1], [0], [0], [1], [0, 0, 1, 1], [], []>} : vector<16x32xbf16>, vector<32x32xbf16>, vector<16x32xf32> -> vector<16x32xf32>
    %68 = vector.extract_strided_slice %12 {offsets = [0, 64], sizes = [16, 32], strides = [1, 1]} : vector<16x128xf32> to vector<16x32xf32>
    %69 = vector.extract_strided_slice %20 {offsets = [0, 64], sizes = [32, 32], strides = [1, 1]} : vector<32x128xf32> to vector<32x32xf32>
    %70 = vector.extract_strided_slice %21 {offsets = [0, 64], sizes = [32, 32], strides = [1, 1]} : vector<32x128xf32> to vector<32x32xf32>
    %71 = arith.truncf %68 : vector<16x32xf32> to vector<16x32xbf16>
    %72 = arith.truncf %69 : vector<32x32xf32> to vector<32x32xbf16>
    %cst_27 = arith.constant dense<0.000000e+00> : vector<16x32xf32>
    %73 = tpu.matmul %71, %72, %cst_27 {dimension_numbers = #tpu.dot_dimension_numbers<[1], [1], [0], [0], [0, 0, 1, 0], [], []>} : vector<16x32xbf16>, vector<32x32xbf16>, vector<16x32xf32> -> vector<16x32xf32>
    %cst_28 = arith.constant 0.176776692 : f32
    %74 = vector.broadcast %cst_28 : f32 to vector<16x32xf32>
    %75 = arith.mulf %73, %74 : vector<16x32xf32>
    %76 = vector.broadcast %5 : vector<1x32xf32> to vector<16x32xf32>
    %77 = arith.addf %75, %76 : vector<16x32xf32>
    %cst_29 = arith.constant dense<0xFF800000> : vector<16xf32>
    %78 = vector.multi_reduction <maximumf>, %77, %cst_29 [1] : vector<16x32xf32> to vector<16xf32>
    %79 = vector.shape_cast %78 : vector<16xf32> to vector<16x1xf32>
    %80 = vector.broadcast %79 : vector<16x1xf32> to vector<16x32xf32>
    %81 = arith.subf %77, %80 : vector<16x32xf32>
    %82 = math.exp %81 : vector<16x32xf32>
    %cst_30 = arith.constant dense<0.000000e+00> : vector<16xf32>
    %83 = vector.multi_reduction <add>, %82, %cst_30 [1] : vector<16x32xf32> to vector<16xf32>
    %84 = vector.shape_cast %83 : vector<16xf32> to vector<16x1xf32>
    %85 = tpu.reciprocal %84 {approx = true} : vector<16x1xf32> -> vector<16x1xf32>
    %86 = vector.broadcast %85 : vector<16x1xf32> to vector<16x32xf32>
    %87 = arith.mulf %82, %86 : vector<16x32xf32>
    %88 = arith.truncf %87 : vector<16x32xf32> to vector<16x32xbf16>
    %89 = arith.truncf %70 : vector<32x32xf32> to vector<32x32xbf16>
    %cst_31 = arith.constant dense<0.000000e+00> : vector<16x32xf32>
    %90 = tpu.matmul %88, %89, %cst_31 {dimension_numbers = #tpu.dot_dimension_numbers<[1], [0], [0], [1], [0, 0, 1, 1], [], []>} : vector<16x32xbf16>, vector<32x32xbf16>, vector<16x32xf32> -> vector<16x32xf32>
    %91 = vector.extract_strided_slice %12 {offsets = [0, 96], sizes = [16, 32], strides = [1, 1]} : vector<16x128xf32> to vector<16x32xf32>
    %92 = vector.extract_strided_slice %20 {offsets = [0, 96], sizes = [32, 32], strides = [1, 1]} : vector<32x128xf32> to vector<32x32xf32>
    %93 = vector.extract_strided_slice %21 {offsets = [0, 96], sizes = [32, 32], strides = [1, 1]} : vector<32x128xf32> to vector<32x32xf32>
    %94 = arith.truncf %91 : vector<16x32xf32> to vector<16x32xbf16>
    %95 = arith.truncf %92 : vector<32x32xf32> to vector<32x32xbf16>
    %cst_32 = arith.constant dense<0.000000e+00> : vector<16x32xf32>
    %96 = tpu.matmul %94, %95, %cst_32 {dimension_numbers = #tpu.dot_dimension_numbers<[1], [1], [0], [0], [0, 0, 1, 0], [], []>} : vector<16x32xbf16>, vector<32x32xbf16>, vector<16x32xf32> -> vector<16x32xf32>
    %cst_33 = arith.constant 0.176776692 : f32
    %97 = vector.broadcast %cst_33 : f32 to vector<16x32xf32>
    %98 = arith.mulf %96, %97 : vector<16x32xf32>
    %99 = vector.broadcast %5 : vector<1x32xf32> to vector<16x32xf32>
    %100 = arith.addf %98, %99 : vector<16x32xf32>
    %cst_34 = arith.constant dense<0xFF800000> : vector<16xf32>
    %101 = vector.multi_reduction <maximumf>, %100, %cst_34 [1] : vector<16x32xf32> to vector<16xf32>
    %102 = vector.shape_cast %101 : vector<16xf32> to vector<16x1xf32>
    %103 = vector.broadcast %102 : vector<16x1xf32> to vector<16x32xf32>
    %104 = arith.subf %100, %103 : vector<16x32xf32>
    %105 = math.exp %104 : vector<16x32xf32>
    %cst_35 = arith.constant dense<0.000000e+00> : vector<16xf32>
    %106 = vector.multi_reduction <add>, %105, %cst_35 [1] : vector<16x32xf32> to vector<16xf32>
    %107 = vector.shape_cast %106 : vector<16xf32> to vector<16x1xf32>
    %108 = tpu.reciprocal %107 {approx = true} : vector<16x1xf32> -> vector<16x1xf32>
    %109 = vector.broadcast %108 : vector<16x1xf32> to vector<16x32xf32>
    %110 = arith.mulf %105, %109 : vector<16x32xf32>
    %111 = arith.truncf %110 : vector<16x32xf32> to vector<16x32xbf16>
    %112 = arith.truncf %93 : vector<32x32xf32> to vector<32x32xbf16>
    %cst_36 = arith.constant dense<0.000000e+00> : vector<16x32xf32>
    %113 = tpu.matmul %111, %112, %cst_36 {dimension_numbers = #tpu.dot_dimension_numbers<[1], [0], [0], [1], [0, 0, 1, 1], [], []>} : vector<16x32xbf16>, vector<32x32xbf16>, vector<16x32xf32> -> vector<16x32xf32>
    %114 = tpu.concatenate %44, %67, %90, %113 in 1 : vector<16x32xf32>, vector<16x32xf32>, vector<16x32xf32>, vector<16x32xf32> -> vector<16x128xf32>
    %c0_37 = arith.constant 0 : index
    %c0_38 = arith.constant 0 : index
    %115 = vector.load %arg8[%c0_37, %c0_38] : memref<128x128xf32, #tpu.memory_space<vmem>>, vector<128x128xf32>
    %116 = arith.truncf %114 : vector<16x128xf32> to vector<16x128xbf16>
    %117 = arith.truncf %115 : vector<128x128xf32> to vector<128x128xbf16>
    %cst_39 = arith.constant dense<0.000000e+00> : vector<16x128xf32>
    %118 = tpu.matmul %116, %117, %cst_39 {dimension_numbers = #tpu.dot_dimension_numbers<[1], [0], [0], [1], [0, 0, 1, 1], [], []>} : vector<16x128xbf16>, vector<128x128xbf16>, vector<16x128xf32> -> vector<16x128xf32>
    %c0_40 = arith.constant 0 : index
    %c0_41 = arith.constant 0 : index
    %119 = vector.load %arg9[%c0_40, %c0_41] : memref<1x128xf32, #tpu.memory_space<vmem>>, vector<1x128xf32>
    %120 = vector.broadcast %119 : vector<1x128xf32> to vector<16x128xf32>
    %121 = arith.addf %118, %120 : vector<16x128xf32>
    %122 = arith.addf %1, %121 : vector<16x128xf32>
    %c0_42 = arith.constant 0 : index
    %c0_43 = arith.constant 0 : index
    %123 = vector.load %arg10[%c0_42, %c0_43] : memref<1x128xf32, #tpu.memory_space<vmem>>, vector<1x128xf32>
    %c0_44 = arith.constant 0 : index
    %c0_45 = arith.constant 0 : index
    %124 = vector.load %arg11[%c0_44, %c0_45] : memref<1x128xf32, #tpu.memory_space<vmem>>, vector<1x128xf32>
    %cst_46 = arith.constant dense<0.000000e+00> : vector<16xf32>
    %125 = vector.multi_reduction <add>, %122, %cst_46 [1] : vector<16x128xf32> to vector<16xf32>
    %126 = vector.shape_cast %125 : vector<16xf32> to vector<16x1xf32>
    %cst_47 = arith.constant 1.280000e+02 : f32
    %127 = vector.broadcast %cst_47 : f32 to vector<16x1xf32>
    %128 = arith.divf %126, %127 : vector<16x1xf32>
    %129 = vector.broadcast %128 : vector<16x1xf32> to vector<16x128xf32>
    %130 = arith.subf %122, %129 : vector<16x128xf32>
    %131 = arith.mulf %130, %130 : vector<16x128xf32>
    %cst_48 = arith.constant dense<0.000000e+00> : vector<16xf32>
    %132 = vector.multi_reduction <add>, %131, %cst_48 [1] : vector<16x128xf32> to vector<16xf32>
    %133 = vector.shape_cast %132 : vector<16xf32> to vector<16x1xf32>
    %cst_49 = arith.constant 1.280000e+02 : f32
    %134 = vector.broadcast %cst_49 : f32 to vector<16x1xf32>
    %135 = arith.divf %133, %134 : vector<16x1xf32>
    %136 = vector.broadcast %128 : vector<16x1xf32> to vector<16x128xf32>
    %137 = arith.subf %122, %136 : vector<16x128xf32>
    %cst_50 = arith.constant 9.99999974E-6 : f32
    %138 = vector.broadcast %cst_50 : f32 to vector<16x1xf32>
    %139 = arith.addf %135, %138 : vector<16x1xf32>
    %140 = math.rsqrt %139 : vector<16x1xf32>
    %141 = vector.broadcast %140 : vector<16x1xf32> to vector<16x128xf32>
    %142 = arith.mulf %137, %141 : vector<16x128xf32>
    %143 = vector.broadcast %123 : vector<1x128xf32> to vector<16x128xf32>
    %144 = arith.mulf %142, %143 : vector<16x128xf32>
    %145 = vector.broadcast %124 : vector<1x128xf32> to vector<16x128xf32>
    %146 = arith.addf %144, %145 : vector<16x128xf32>
    %c0_51 = arith.constant 0 : index
    %c0_52 = arith.constant 0 : index
    %147 = vector.load %arg12[%c0_51, %c0_52] : memref<128x256xf32, #tpu.memory_space<vmem>>, vector<128x256xf32>
    %148 = arith.truncf %146 : vector<16x128xf32> to vector<16x128xbf16>
    %149 = arith.truncf %147 : vector<128x256xf32> to vector<128x256xbf16>
    %cst_53 = arith.constant dense<0.000000e+00> : vector<16x256xf32>
    %150 = tpu.matmul %148, %149, %cst_53 {dimension_numbers = #tpu.dot_dimension_numbers<[1], [0], [0], [1], [0, 0, 1, 1], [], []>} : vector<16x128xbf16>, vector<128x256xbf16>, vector<16x256xf32> -> vector<16x256xf32>
    %c0_54 = arith.constant 0 : index
    %c0_55 = arith.constant 0 : index
    %151 = vector.load %arg13[%c0_54, %c0_55] : memref<1x256xf32, #tpu.memory_space<vmem>>, vector<1x256xf32>
    %152 = vector.broadcast %151 : vector<1x256xf32> to vector<16x256xf32>
    %153 = arith.addf %150, %152 : vector<16x256xf32>
    %cst_56 = arith.constant 0.000000e+00 : f32
    %154 = vector.broadcast %cst_56 : f32 to vector<16x256xf32>
    %155 = arith.maximumf %153, %154 : vector<16x256xf32>
    %c0_57 = arith.constant 0 : index
    %c0_58 = arith.constant 0 : index
    %156 = vector.load %arg14[%c0_57, %c0_58] : memref<256x128xf32, #tpu.memory_space<vmem>>, vector<256x128xf32>
    %157 = arith.truncf %155 : vector<16x256xf32> to vector<16x256xbf16>
    %158 = arith.truncf %156 : vector<256x128xf32> to vector<256x128xbf16>
    %cst_59 = arith.constant dense<0.000000e+00> : vector<16x128xf32>
    %159 = tpu.matmul %157, %158, %cst_59 {dimension_numbers = #tpu.dot_dimension_numbers<[1], [0], [0], [1], [0, 0, 1, 1], [], []>} : vector<16x256xbf16>, vector<256x128xbf16>, vector<16x128xf32> -> vector<16x128xf32>
    %c0_60 = arith.constant 0 : index
    %c0_61 = arith.constant 0 : index
    %160 = vector.load %arg15[%c0_60, %c0_61] : memref<1x128xf32, #tpu.memory_space<vmem>>, vector<1x128xf32>
    %161 = vector.broadcast %160 : vector<1x128xf32> to vector<16x128xf32>
    %162 = arith.addf %159, %161 : vector<16x128xf32>
    %163 = arith.addf %146, %162 : vector<16x128xf32>
    %c0_62 = arith.constant 0 : index
    %c0_63 = arith.constant 0 : index
    %164 = vector.load %arg16[%c0_62, %c0_63] : memref<1x128xf32, #tpu.memory_space<vmem>>, vector<1x128xf32>
    %c0_64 = arith.constant 0 : index
    %c0_65 = arith.constant 0 : index
    %165 = vector.load %arg17[%c0_64, %c0_65] : memref<1x128xf32, #tpu.memory_space<vmem>>, vector<1x128xf32>
    %cst_66 = arith.constant dense<0.000000e+00> : vector<16xf32>
    %166 = vector.multi_reduction <add>, %163, %cst_66 [1] : vector<16x128xf32> to vector<16xf32>
    %167 = vector.shape_cast %166 : vector<16xf32> to vector<16x1xf32>
    %cst_67 = arith.constant 1.280000e+02 : f32
    %168 = vector.broadcast %cst_67 : f32 to vector<16x1xf32>
    %169 = arith.divf %167, %168 : vector<16x1xf32>
    %170 = vector.broadcast %169 : vector<16x1xf32> to vector<16x128xf32>
    %171 = arith.subf %163, %170 : vector<16x128xf32>
    %172 = arith.mulf %171, %171 : vector<16x128xf32>
    %cst_68 = arith.constant dense<0.000000e+00> : vector<16xf32>
    %173 = vector.multi_reduction <add>, %172, %cst_68 [1] : vector<16x128xf32> to vector<16xf32>
    %174 = vector.shape_cast %173 : vector<16xf32> to vector<16x1xf32>
    %cst_69 = arith.constant 1.280000e+02 : f32
    %175 = vector.broadcast %cst_69 : f32 to vector<16x1xf32>
    %176 = arith.divf %174, %175 : vector<16x1xf32>
    %177 = vector.broadcast %169 : vector<16x1xf32> to vector<16x128xf32>
    %178 = arith.subf %163, %177 : vector<16x128xf32>
    %cst_70 = arith.constant 9.99999974E-6 : f32
    %179 = vector.broadcast %cst_70 : f32 to vector<16x1xf32>
    %180 = arith.addf %176, %179 : vector<16x1xf32>
    %181 = math.rsqrt %180 : vector<16x1xf32>
    %182 = vector.broadcast %181 : vector<16x1xf32> to vector<16x128xf32>
    %183 = arith.mulf %178, %182 : vector<16x128xf32>
    %184 = vector.broadcast %164 : vector<1x128xf32> to vector<16x128xf32>
    %185 = arith.mulf %183, %184 : vector<16x128xf32>
    %186 = vector.broadcast %165 : vector<1x128xf32> to vector<16x128xf32>
    %187 = arith.addf %185, %186 : vector<16x128xf32>
    %c0_71 = arith.constant 0 : index
    %c0_72 = arith.constant 0 : index
    %c0_73 = arith.constant 0 : index
    %188 = vector.load %arg18[%c0_71, %c0_72, %c0_73] : memref<1x16x128xf32, #tpu.memory_space<vmem>>, vector<1x16x128xf32>
    %189 = vector.shape_cast %188 : vector<1x16x128xf32> to vector<16x128xf32>
    %190 = vector.shape_cast %187 : vector<16x128xf32> to vector<1x16x128xf32>
    tpu.vector_store %arg18[%c0_71, %c0_72, %c0_73], %190 {strides = array<i32>} : memref<1x16x128xf32, #tpu.memory_space<vmem>>, vector<1x16x128xf32>,
    return
  }
  func.func @transform_0(%arg0: i32) -> (i32, i32, i32) {
    %c0_i32 = arith.constant 0 : i32
    %c0_i32_0 = arith.constant 0 : i32
    %c0_i32_1 = arith.constant 0 : i32
    return %arg0, %c0_i32, %c0_i32_0 : i32, i32, i32
  }
  func.func @transform_1(%arg0: i32) -> (i32, i32, i32) {
    %c0_i32 = arith.constant 0 : i32
    %c0_i32_0 = arith.constant 0 : i32
    %c0_i32_1 = arith.constant 0 : i32
    return %arg0, %c0_i32, %c0_i32_0 : i32, i32, i32
  }
  func.func @transform_2(%arg0: i32) -> (i32, i32, i32) {
    %c0_i32 = arith.constant 0 : i32
    %c0_i32_0 = arith.constant 0 : i32
    %c0_i32_1 = arith.constant 0 : i32
    return %arg0, %c0_i32, %c0_i32_0 : i32, i32, i32
  }
  func.func @transform_3(%arg0: i32) -> (i32, i32) {
    %c0_i32 = arith.constant 0 : i32
    %c0_i32_0 = arith.constant 0 : i32
    %c0_i32_1 = arith.constant 0 : i32
    return %c0_i32, %c0_i32_0 : i32, i32
  }
  func.func @transform_4(%arg0: i32) -> (i32, i32) {
    %c0_i32 = arith.constant 0 : i32
    %c0_i32_0 = arith.constant 0 : i32
    %c0_i32_1 = arith.constant 0 : i32
    return %c0_i32, %c0_i32_0 : i32, i32
  }
  func.func @transform_5(%arg0: i32) -> (i32, i32) {
    %c0_i32 = arith.constant 0 : i32
    %c0_i32_0 = arith.constant 0 : i32
    %c0_i32_1 = arith.constant 0 : i32
    return %c0_i32, %c0_i32_0 : i32, i32
  }
  func.func @transform_6(%arg0: i32) -> (i32, i32) {
    %c0_i32 = arith.constant 0 : i32
    %c0_i32_0 = arith.constant 0 : i32
    %c0_i32_1 = arith.constant 0 : i32
    return %c0_i32, %c0_i32_0 : i32, i32
  }
  func.func @transform_7(%arg0: i32) -> (i32, i32) {
    %c0_i32 = arith.constant 0 : i32
    %c0_i32_0 = arith.constant 0 : i32
    %c0_i32_1 = arith.constant 0 : i32
    return %c0_i32, %c0_i32_0 : i32, i32
  }
  func.func @transform_8(%arg0: i32) -> (i32, i32) {
    %c0_i32 = arith.constant 0 : i32
    %c0_i32_0 = arith.constant 0 : i32
    %c0_i32_1 = arith.constant 0 : i32
    return %c0_i32, %c0_i32_0 : i32, i32
  }
  func.func @transform_9(%arg0: i32) -> (i32, i32) {
    %c0_i32 = arith.constant 0 : i32
    %c0_i32_0 = arith.constant 0 : i32
    %c0_i32_1 = arith.constant 0 : i32
    return %c0_i32, %c0_i32_0 : i32, i32
  }
  func.func @transform_10(%arg0: i32) -> (i32, i32) {
    %c0_i32 = arith.constant 0 : i32
    %c0_i32_0 = arith.constant 0 : i32
    %c0_i32_1 = arith.constant 0 : i32
    return %c0_i32, %c0_i32_0 : i32, i32
  }
  func.func @transform_11(%arg0: i32) -> (i32, i32) {
    %c0_i32 = arith.constant 0 : i32
    %c0_i32_0 = arith.constant 0 : i32
    %c0_i32_1 = arith.constant 0 : i32
    return %c0_i32, %c0_i32_0 : i32, i32
  }
  func.func @transform_12(%arg0: i32) -> (i32, i32) {
    %c0_i32 = arith.constant 0 : i32
    %c0_i32_0 = arith.constant 0 : i32
    %c0_i32_1 = arith.constant 0 : i32
    return %c0_i32, %c0_i32_0 : i32, i32
  }
  func.func @transform_13(%arg0: i32) -> (i32, i32) {
    %c0_i32 = arith.constant 0 : i32
    %c0_i32_0 = arith.constant 0 : i32
    %c0_i32_1 = arith.constant 0 : i32
    return %c0_i32, %c0_i32_0 : i32, i32
  }
  func.func @transform_14(%arg0: i32) -> (i32, i32) {
    %c0_i32 = arith.constant 0 : i32
    %c0_i32_0 = arith.constant 0 : i32
    %c0_i32_1 = arith.constant 0 : i32
    return %c0_i32, %c0_i32_0 : i32, i32
  }
  func.func @transform_15(%arg0: i32) -> (i32, i32) {
    %c0_i32 = arith.constant 0 : i32
    %c0_i32_0 = arith.constant 0 : i32
    %c0_i32_1 = arith.constant 0 : i32
    return %c0_i32, %c0_i32_0 : i32, i32
  }
  func.func @transform_16(%arg0: i32) -> (i32, i32) {
    %c0_i32 = arith.constant 0 : i32
    %c0_i32_0 = arith.constant 0 : i32
    %c0_i32_1 = arith.constant 0 : i32
    return %c0_i32, %c0_i32_0 : i32, i32
  }
  func.func @transform_17(%arg0: i32) -> (i32, i32, i32) {
    %c0_i32 = arith.constant 0 : i32
    %c0_i32_0 = arith.constant 0 : i32
    %c0_i32_1 = arith.constant 0 : i32
    return %arg0, %c0_i32, %c0_i32_0 : i32, i32, i32
  }
}

module attributes {stable_mosaic.version = 11 : i64} {
  func.func @_sap_fc_kernel(%arg0: i32, %arg1: memref<2x16x128xf32, #tpu.memory_space<vmem>>, %arg2: memref<2x32x128xf32, #tpu.memory_space<vmem>>, %arg3: memref<2x1x16xf32, #tpu.memory_space<vmem>>, %arg4: memref<2x1x32xf32, #tpu.memory_space<vmem>>, %arg5: memref<128x64xf32, #tpu.memory_space<vmem>>, %arg6: memref<1x64xf32, #tpu.memory_space<vmem>>, %arg7: memref<1x64xf32, #tpu.memory_space<vmem>>, %arg8: memref<128x64xf32, #tpu.memory_space<vmem>>, %arg9: memref<1x64xf32, #tpu.memory_space<vmem>>, %arg10: memref<1x64xf32, #tpu.memory_space<vmem>>, %arg11: memref<256x64xf32, #tpu.memory_space<vmem>>, %arg12: memref<1x64xf32, #tpu.memory_space<vmem>>, %arg13: memref<64x1xf32, #tpu.memory_space<vmem>>, %arg14: memref<1x1xf32, #tpu.memory_space<vmem>>, %arg15: memref<2x1xf32, #tpu.memory_space<vmem>>) attributes {dimension_semantics = [#tpu.dimension_semantics<arbitrary>], iteration_bounds = array<i64: 1>, scalar_prefetch = 0 : i64, scratch_operands = 0 : i64, tpu.core_type = #tpu.core_type<tc>, window_params = [{pipeline_mode = #tpu.pipeline_mode<synchronous>, transform_indices = @transform_0, window_bounds = array<i64: 2, 16, 128>}, {pipeline_mode = #tpu.pipeline_mode<synchronous>, transform_indices = @transform_1, window_bounds = array<i64: 2, 32, 128>}, {pipeline_mode = #tpu.pipeline_mode<synchronous>, transform_indices = @transform_2, window_bounds = array<i64: 2, 1, 16>}, {pipeline_mode = #tpu.pipeline_mode<synchronous>, transform_indices = @transform_3, window_bounds = array<i64: 2, 1, 32>}, {pipeline_mode = #tpu.pipeline_mode<synchronous>, transform_indices = @transform_4, window_bounds = array<i64: 128, 64>}, {pipeline_mode = #tpu.pipeline_mode<synchronous>, transform_indices = @transform_5, window_bounds = array<i64: 1, 64>}, {pipeline_mode = #tpu.pipeline_mode<synchronous>, transform_indices = @transform_6, window_bounds = array<i64: 1, 64>}, {pipeline_mode = #tpu.pipeline_mode<synchronous>, transform_indices = @transform_7, window_bounds = array<i64: 128, 64>}, {pipeline_mode = #tpu.pipeline_mode<synchronous>, transform_indices = @transform_8, window_bounds = array<i64: 1, 64>}, {pipeline_mode = #tpu.pipeline_mode<synchronous>, transform_indices = @transform_9, window_bounds = array<i64: 1, 64>}, {pipeline_mode = #tpu.pipeline_mode<synchronous>, transform_indices = @transform_10, window_bounds = array<i64: 256, 64>}, {pipeline_mode = #tpu.pipeline_mode<synchronous>, transform_indices = @transform_11, window_bounds = array<i64: 1, 64>}, {pipeline_mode = #tpu.pipeline_mode<synchronous>, transform_indices = @transform_12, window_bounds = array<i64: 64, 1>}, {pipeline_mode = #tpu.pipeline_mode<synchronous>, transform_indices = @transform_13, window_bounds = array<i64: 1, 1>}, {pipeline_mode = #tpu.pipeline_mode<synchronous>, transform_indices = @transform_14, window_bounds = array<i64: 2, 1>}]} {
    %c0 = arith.constant 0 : index
    %c0_0 = arith.constant 0 : index
    %c0_1 = arith.constant 0 : index
    %0 = vector.load %arg1[%c0, %c0_0, %c0_1] : memref<2x16x128xf32, #tpu.memory_space<vmem>>, vector<1x16x128xf32>
    %1 = vector.shape_cast %0 : vector<1x16x128xf32> to vector<16x128xf32>
    %c0_2 = arith.constant 0 : index
    %c0_3 = arith.constant 0 : index
    %c0_4 = arith.constant 0 : index
    %2 = vector.load %arg3[%c0_2, %c0_3, %c0_4] : memref<2x1x16xf32, #tpu.memory_space<vmem>>, vector<1x1x16xf32>
    %3 = vector.shape_cast %2 : vector<1x1x16xf32> to vector<1x16xf32>
    %c0_5 = arith.constant 0 : index
    %c0_6 = arith.constant 0 : index
    %4 = vector.load %arg5[%c0_5, %c0_6] : memref<128x64xf32, #tpu.memory_space<vmem>>, vector<128x64xf32>
    %c0_7 = arith.constant 0 : index
    %c0_8 = arith.constant 0 : index
    %5 = vector.load %arg6[%c0_7, %c0_8] : memref<1x64xf32, #tpu.memory_space<vmem>>, vector<1x64xf32>
    %c0_9 = arith.constant 0 : index
    %c0_10 = arith.constant 0 : index
    %6 = vector.load %arg7[%c0_9, %c0_10] : memref<1x64xf32, #tpu.memory_space<vmem>>, vector<1x64xf32>
    %7 = arith.truncf %1 : vector<16x128xf32> to vector<16x128xbf16>
    %8 = arith.truncf %4 : vector<128x64xf32> to vector<128x64xbf16>
    %cst = arith.constant dense<0.000000e+00> : vector<16x64xf32>
    %9 = tpu.matmul %7, %8, %cst {dimension_numbers = #tpu.dot_dimension_numbers<[1], [0], [0], [1], [0, 0, 1, 1], [], []>} : vector<16x128xbf16>, vector<128x64xbf16>, vector<16x64xf32> -> vector<16x64xf32>
    %10 = vector.broadcast %5 : vector<1x64xf32> to vector<16x64xf32>
    %11 = arith.addf %9, %10 : vector<16x64xf32>
    %12 = math.tanh %11 : vector<16x64xf32>
    %cst_11 = arith.constant dense<0.000000e+00> : vector<1x16xf32>
    %13 = tpu.matmul %6, %12, %cst_11 {dimension_numbers = #tpu.dot_dimension_numbers<[1], [1], [0], [0], [0, 0, 1, 0], [], []>} : vector<1x64xf32>, vector<16x64xf32>, vector<1x16xf32> -> vector<1x16xf32>
    %14 = arith.addf %13, %3 : vector<1x16xf32>
    %cst_12 = arith.constant dense<0xFF800000> : vector<1xf32>
    %15 = vector.multi_reduction <maximumf>, %14, %cst_12 [1] : vector<1x16xf32> to vector<1xf32>
    %16 = vector.shape_cast %15 : vector<1xf32> to vector<1x1xf32>
    %17 = vector.broadcast %16 : vector<1x1xf32> to vector<1x16xf32>
    %18 = arith.subf %14, %17 : vector<1x16xf32>
    %19 = math.exp %18 : vector<1x16xf32>
    %cst_13 = arith.constant dense<0.000000e+00> : vector<1xf32>
    %20 = vector.multi_reduction <add>, %19, %cst_13 [1] : vector<1x16xf32> to vector<1xf32>
    %21 = vector.shape_cast %20 : vector<1xf32> to vector<1x1xf32>
    %22 = tpu.reciprocal %21 {approx = true} : vector<1x1xf32> -> vector<1x1xf32>
    %23 = vector.broadcast %22 : vector<1x1xf32> to vector<1x16xf32>
    %24 = arith.mulf %19, %23 : vector<1x16xf32>
    %25 = arith.truncf %24 : vector<1x16xf32> to vector<1x16xbf16>
    %26 = arith.truncf %1 : vector<16x128xf32> to vector<16x128xbf16>
    %cst_14 = arith.constant dense<0.000000e+00> : vector<1x128xf32>
    %27 = tpu.matmul %25, %26, %cst_14 {dimension_numbers = #tpu.dot_dimension_numbers<[1], [0], [0], [1], [0, 0, 1, 1], [], []>} : vector<1x16xbf16>, vector<16x128xbf16>, vector<1x128xf32> -> vector<1x128xf32>
    %c0_15 = arith.constant 0 : index
    %c0_16 = arith.constant 0 : index
    %c0_17 = arith.constant 0 : index
    %28 = vector.load %arg2[%c0_15, %c0_16, %c0_17] : memref<2x32x128xf32, #tpu.memory_space<vmem>>, vector<1x32x128xf32>
    %29 = vector.shape_cast %28 : vector<1x32x128xf32> to vector<32x128xf32>
    %c0_18 = arith.constant 0 : index
    %c0_19 = arith.constant 0 : index
    %c0_20 = arith.constant 0 : index
    %30 = vector.load %arg4[%c0_18, %c0_19, %c0_20] : memref<2x1x32xf32, #tpu.memory_space<vmem>>, vector<1x1x32xf32>
    %31 = vector.shape_cast %30 : vector<1x1x32xf32> to vector<1x32xf32>
    %c0_21 = arith.constant 0 : index
    %c0_22 = arith.constant 0 : index
    %32 = vector.load %arg8[%c0_21, %c0_22] : memref<128x64xf32, #tpu.memory_space<vmem>>, vector<128x64xf32>
    %c0_23 = arith.constant 0 : index
    %c0_24 = arith.constant 0 : index
    %33 = vector.load %arg9[%c0_23, %c0_24] : memref<1x64xf32, #tpu.memory_space<vmem>>, vector<1x64xf32>
    %c0_25 = arith.constant 0 : index
    %c0_26 = arith.constant 0 : index
    %34 = vector.load %arg10[%c0_25, %c0_26] : memref<1x64xf32, #tpu.memory_space<vmem>>, vector<1x64xf32>
    %35 = arith.truncf %29 : vector<32x128xf32> to vector<32x128xbf16>
    %36 = arith.truncf %32 : vector<128x64xf32> to vector<128x64xbf16>
    %cst_27 = arith.constant dense<0.000000e+00> : vector<32x64xf32>
    %37 = tpu.matmul %35, %36, %cst_27 {dimension_numbers = #tpu.dot_dimension_numbers<[1], [0], [0], [1], [0, 0, 1, 1], [], []>} : vector<32x128xbf16>, vector<128x64xbf16>, vector<32x64xf32> -> vector<32x64xf32>
    %38 = vector.broadcast %33 : vector<1x64xf32> to vector<32x64xf32>
    %39 = arith.addf %37, %38 : vector<32x64xf32>
    %40 = math.tanh %39 : vector<32x64xf32>
    %cst_28 = arith.constant dense<0.000000e+00> : vector<1x32xf32>
    %41 = tpu.matmul %34, %40, %cst_28 {dimension_numbers = #tpu.dot_dimension_numbers<[1], [1], [0], [0], [0, 0, 1, 0], [], []>} : vector<1x64xf32>, vector<32x64xf32>, vector<1x32xf32> -> vector<1x32xf32>
    %42 = arith.addf %41, %31 : vector<1x32xf32>
    %cst_29 = arith.constant dense<0xFF800000> : vector<1xf32>
    %43 = vector.multi_reduction <maximumf>, %42, %cst_29 [1] : vector<1x32xf32> to vector<1xf32>
    %44 = vector.shape_cast %43 : vector<1xf32> to vector<1x1xf32>
    %45 = vector.broadcast %44 : vector<1x1xf32> to vector<1x32xf32>
    %46 = arith.subf %42, %45 : vector<1x32xf32>
    %47 = math.exp %46 : vector<1x32xf32>
    %cst_30 = arith.constant dense<0.000000e+00> : vector<1xf32>
    %48 = vector.multi_reduction <add>, %47, %cst_30 [1] : vector<1x32xf32> to vector<1xf32>
    %49 = vector.shape_cast %48 : vector<1xf32> to vector<1x1xf32>
    %50 = tpu.reciprocal %49 {approx = true} : vector<1x1xf32> -> vector<1x1xf32>
    %51 = vector.broadcast %50 : vector<1x1xf32> to vector<1x32xf32>
    %52 = arith.mulf %47, %51 : vector<1x32xf32>
    %53 = arith.truncf %52 : vector<1x32xf32> to vector<1x32xbf16>
    %54 = arith.truncf %29 : vector<32x128xf32> to vector<32x128xbf16>
    %cst_31 = arith.constant dense<0.000000e+00> : vector<1x128xf32>
    %55 = tpu.matmul %53, %54, %cst_31 {dimension_numbers = #tpu.dot_dimension_numbers<[1], [0], [0], [1], [0, 0, 1, 1], [], []>} : vector<1x32xbf16>, vector<32x128xbf16>, vector<1x128xf32> -> vector<1x128xf32>
    %56 = tpu.concatenate %27, %55 in 1 : vector<1x128xf32>, vector<1x128xf32> -> vector<1x256xf32>
    %c1 = arith.constant 1 : index
    %c0_32 = arith.constant 0 : index
    %c0_33 = arith.constant 0 : index
    %57 = vector.load %arg1[%c1, %c0_32, %c0_33] : memref<2x16x128xf32, #tpu.memory_space<vmem>>, vector<1x16x128xf32>
    %58 = vector.shape_cast %57 : vector<1x16x128xf32> to vector<16x128xf32>
    %c1_34 = arith.constant 1 : index
    %c0_35 = arith.constant 0 : index
    %c0_36 = arith.constant 0 : index
    %59 = vector.load %arg3[%c1_34, %c0_35, %c0_36] : memref<2x1x16xf32, #tpu.memory_space<vmem>>, vector<1x1x16xf32>
    %60 = vector.shape_cast %59 : vector<1x1x16xf32> to vector<1x16xf32>
    %c0_37 = arith.constant 0 : index
    %c0_38 = arith.constant 0 : index
    %61 = vector.load %arg5[%c0_37, %c0_38] : memref<128x64xf32, #tpu.memory_space<vmem>>, vector<128x64xf32>
    %c0_39 = arith.constant 0 : index
    %c0_40 = arith.constant 0 : index
    %62 = vector.load %arg6[%c0_39, %c0_40] : memref<1x64xf32, #tpu.memory_space<vmem>>, vector<1x64xf32>
    %c0_41 = arith.constant 0 : index
    %c0_42 = arith.constant 0 : index
    %63 = vector.load %arg7[%c0_41, %c0_42] : memref<1x64xf32, #tpu.memory_space<vmem>>, vector<1x64xf32>
    %64 = arith.truncf %58 : vector<16x128xf32> to vector<16x128xbf16>
    %65 = arith.truncf %61 : vector<128x64xf32> to vector<128x64xbf16>
    %cst_43 = arith.constant dense<0.000000e+00> : vector<16x64xf32>
    %66 = tpu.matmul %64, %65, %cst_43 {dimension_numbers = #tpu.dot_dimension_numbers<[1], [0], [0], [1], [0, 0, 1, 1], [], []>} : vector<16x128xbf16>, vector<128x64xbf16>, vector<16x64xf32> -> vector<16x64xf32>
    %67 = vector.broadcast %62 : vector<1x64xf32> to vector<16x64xf32>
    %68 = arith.addf %66, %67 : vector<16x64xf32>
    %69 = math.tanh %68 : vector<16x64xf32>
    %cst_44 = arith.constant dense<0.000000e+00> : vector<1x16xf32>
    %70 = tpu.matmul %63, %69, %cst_44 {dimension_numbers = #tpu.dot_dimension_numbers<[1], [1], [0], [0], [0, 0, 1, 0], [], []>} : vector<1x64xf32>, vector<16x64xf32>, vector<1x16xf32> -> vector<1x16xf32>
    %71 = arith.addf %70, %60 : vector<1x16xf32>
    %cst_45 = arith.constant dense<0xFF800000> : vector<1xf32>
    %72 = vector.multi_reduction <maximumf>, %71, %cst_45 [1] : vector<1x16xf32> to vector<1xf32>
    %73 = vector.shape_cast %72 : vector<1xf32> to vector<1x1xf32>
    %74 = vector.broadcast %73 : vector<1x1xf32> to vector<1x16xf32>
    %75 = arith.subf %71, %74 : vector<1x16xf32>
    %76 = math.exp %75 : vector<1x16xf32>
    %cst_46 = arith.constant dense<0.000000e+00> : vector<1xf32>
    %77 = vector.multi_reduction <add>, %76, %cst_46 [1] : vector<1x16xf32> to vector<1xf32>
    %78 = vector.shape_cast %77 : vector<1xf32> to vector<1x1xf32>
    %79 = tpu.reciprocal %78 {approx = true} : vector<1x1xf32> -> vector<1x1xf32>
    %80 = vector.broadcast %79 : vector<1x1xf32> to vector<1x16xf32>
    %81 = arith.mulf %76, %80 : vector<1x16xf32>
    %82 = arith.truncf %81 : vector<1x16xf32> to vector<1x16xbf16>
    %83 = arith.truncf %58 : vector<16x128xf32> to vector<16x128xbf16>
    %cst_47 = arith.constant dense<0.000000e+00> : vector<1x128xf32>
    %84 = tpu.matmul %82, %83, %cst_47 {dimension_numbers = #tpu.dot_dimension_numbers<[1], [0], [0], [1], [0, 0, 1, 1], [], []>} : vector<1x16xbf16>, vector<16x128xbf16>, vector<1x128xf32> -> vector<1x128xf32>
    %c1_48 = arith.constant 1 : index
    %c0_49 = arith.constant 0 : index
    %c0_50 = arith.constant 0 : index
    %85 = vector.load %arg2[%c1_48, %c0_49, %c0_50] : memref<2x32x128xf32, #tpu.memory_space<vmem>>, vector<1x32x128xf32>
    %86 = vector.shape_cast %85 : vector<1x32x128xf32> to vector<32x128xf32>
    %c1_51 = arith.constant 1 : index
    %c0_52 = arith.constant 0 : index
    %c0_53 = arith.constant 0 : index
    %87 = vector.load %arg4[%c1_51, %c0_52, %c0_53] : memref<2x1x32xf32, #tpu.memory_space<vmem>>, vector<1x1x32xf32>
    %88 = vector.shape_cast %87 : vector<1x1x32xf32> to vector<1x32xf32>
    %c0_54 = arith.constant 0 : index
    %c0_55 = arith.constant 0 : index
    %89 = vector.load %arg8[%c0_54, %c0_55] : memref<128x64xf32, #tpu.memory_space<vmem>>, vector<128x64xf32>
    %c0_56 = arith.constant 0 : index
    %c0_57 = arith.constant 0 : index
    %90 = vector.load %arg9[%c0_56, %c0_57] : memref<1x64xf32, #tpu.memory_space<vmem>>, vector<1x64xf32>
    %c0_58 = arith.constant 0 : index
    %c0_59 = arith.constant 0 : index
    %91 = vector.load %arg10[%c0_58, %c0_59] : memref<1x64xf32, #tpu.memory_space<vmem>>, vector<1x64xf32>
    %92 = arith.truncf %86 : vector<32x128xf32> to vector<32x128xbf16>
    %93 = arith.truncf %89 : vector<128x64xf32> to vector<128x64xbf16>
    %cst_60 = arith.constant dense<0.000000e+00> : vector<32x64xf32>
    %94 = tpu.matmul %92, %93, %cst_60 {dimension_numbers = #tpu.dot_dimension_numbers<[1], [0], [0], [1], [0, 0, 1, 1], [], []>} : vector<32x128xbf16>, vector<128x64xbf16>, vector<32x64xf32> -> vector<32x64xf32>
    %95 = vector.broadcast %90 : vector<1x64xf32> to vector<32x64xf32>
    %96 = arith.addf %94, %95 : vector<32x64xf32>
    %97 = math.tanh %96 : vector<32x64xf32>
    %cst_61 = arith.constant dense<0.000000e+00> : vector<1x32xf32>
    %98 = tpu.matmul %91, %97, %cst_61 {dimension_numbers = #tpu.dot_dimension_numbers<[1], [1], [0], [0], [0, 0, 1, 0], [], []>} : vector<1x64xf32>, vector<32x64xf32>, vector<1x32xf32> -> vector<1x32xf32>
    %99 = arith.addf %98, %88 : vector<1x32xf32>
    %cst_62 = arith.constant dense<0xFF800000> : vector<1xf32>
    %100 = vector.multi_reduction <maximumf>, %99, %cst_62 [1] : vector<1x32xf32> to vector<1xf32>
    %101 = vector.shape_cast %100 : vector<1xf32> to vector<1x1xf32>
    %102 = vector.broadcast %101 : vector<1x1xf32> to vector<1x32xf32>
    %103 = arith.subf %99, %102 : vector<1x32xf32>
    %104 = math.exp %103 : vector<1x32xf32>
    %cst_63 = arith.constant dense<0.000000e+00> : vector<1xf32>
    %105 = vector.multi_reduction <add>, %104, %cst_63 [1] : vector<1x32xf32> to vector<1xf32>
    %106 = vector.shape_cast %105 : vector<1xf32> to vector<1x1xf32>
    %107 = tpu.reciprocal %106 {approx = true} : vector<1x1xf32> -> vector<1x1xf32>
    %108 = vector.broadcast %107 : vector<1x1xf32> to vector<1x32xf32>
    %109 = arith.mulf %104, %108 : vector<1x32xf32>
    %110 = arith.truncf %109 : vector<1x32xf32> to vector<1x32xbf16>
    %111 = arith.truncf %86 : vector<32x128xf32> to vector<32x128xbf16>
    %cst_64 = arith.constant dense<0.000000e+00> : vector<1x128xf32>
    %112 = tpu.matmul %110, %111, %cst_64 {dimension_numbers = #tpu.dot_dimension_numbers<[1], [0], [0], [1], [0, 0, 1, 1], [], []>} : vector<1x32xbf16>, vector<32x128xbf16>, vector<1x128xf32> -> vector<1x128xf32>
    %113 = tpu.concatenate %84, %112 in 1 : vector<1x128xf32>, vector<1x128xf32> -> vector<1x256xf32>
    %114 = tpu.concatenate %56, %113 in 0 : vector<1x256xf32>, vector<1x256xf32> -> vector<2x256xf32>
    %c0_65 = arith.constant 0 : index
    %c0_66 = arith.constant 0 : index
    %115 = vector.load %arg11[%c0_65, %c0_66] : memref<256x64xf32, #tpu.memory_space<vmem>>, vector<256x64xf32>
    %116 = arith.truncf %114 : vector<2x256xf32> to vector<2x256xbf16>
    %117 = arith.truncf %115 : vector<256x64xf32> to vector<256x64xbf16>
    %cst_67 = arith.constant dense<0.000000e+00> : vector<2x64xf32>
    %118 = tpu.matmul %116, %117, %cst_67 {dimension_numbers = #tpu.dot_dimension_numbers<[1], [0], [0], [1], [0, 0, 1, 1], [], []>} : vector<2x256xbf16>, vector<256x64xbf16>, vector<2x64xf32> -> vector<2x64xf32>
    %c0_68 = arith.constant 0 : index
    %c0_69 = arith.constant 0 : index
    %119 = vector.load %arg12[%c0_68, %c0_69] : memref<1x64xf32, #tpu.memory_space<vmem>>, vector<1x64xf32>
    %120 = vector.broadcast %119 : vector<1x64xf32> to vector<2x64xf32>
    %121 = arith.addf %118, %120 : vector<2x64xf32>
    %cst_70 = arith.constant 5.000000e-01 : f32
    %122 = vector.broadcast %cst_70 : f32 to vector<2x64xf32>
    %123 = arith.mulf %122, %121 : vector<2x64xf32>
    %cst_71 = arith.constant 4.471500e-02 : f32
    %124 = vector.broadcast %cst_71 : f32 to vector<2x64xf32>
    %125 = arith.mulf %124, %121 : vector<2x64xf32>
    %126 = arith.mulf %125, %121 : vector<2x64xf32>
    %127 = arith.mulf %126, %121 : vector<2x64xf32>
    %128 = arith.addf %121, %127 : vector<2x64xf32>
    %cst_72 = arith.constant 0.797884583 : f32
    %129 = vector.broadcast %cst_72 : f32 to vector<2x64xf32>
    %130 = arith.mulf %129, %128 : vector<2x64xf32>
    %131 = math.tanh %130 : vector<2x64xf32>
    %cst_73 = arith.constant 1.000000e+00 : f32
    %132 = vector.broadcast %cst_73 : f32 to vector<2x64xf32>
    %133 = arith.addf %132, %131 : vector<2x64xf32>
    %134 = arith.mulf %123, %133 : vector<2x64xf32>
    %c0_74 = arith.constant 0 : index
    %c0_75 = arith.constant 0 : index
    %135 = vector.load %arg13[%c0_74, %c0_75] : memref<64x1xf32, #tpu.memory_space<vmem>>, vector<64x1xf32>
    %136 = arith.truncf %134 : vector<2x64xf32> to vector<2x64xbf16>
    %137 = arith.truncf %135 : vector<64x1xf32> to vector<64x1xbf16>
    %cst_76 = arith.constant dense<0.000000e+00> : vector<2x1xf32>
    %138 = tpu.matmul %136, %137, %cst_76 {dimension_numbers = #tpu.dot_dimension_numbers<[1], [0], [0], [1], [0, 0, 1, 1], [], []>} : vector<2x64xbf16>, vector<64x1xbf16>, vector<2x1xf32> -> vector<2x1xf32>
    %c0_77 = arith.constant 0 : index
    %c0_78 = arith.constant 0 : index
    %139 = vector.load %arg14[%c0_77, %c0_78] : memref<1x1xf32, #tpu.memory_space<vmem>>, vector<1x1xf32>
    %140 = vector.broadcast %139 : vector<1x1xf32> to vector<2x1xf32>
    %141 = arith.addf %138, %140 : vector<2x1xf32>
    %c0_79 = arith.constant 0 : index
    %c0_80 = arith.constant 0 : index
    %142 = vector.load %arg15[%c0_79, %c0_80] : memref<2x1xf32, #tpu.memory_space<vmem>>, vector<2x1xf32>
    tpu.vector_store %arg15[%c0_79, %c0_80], %141 {strides = array<i32>} : memref<2x1xf32, #tpu.memory_space<vmem>>, vector<2x1xf32>,
    return
  }
  func.func @transform_0(%arg0: i32) -> (i32, i32, i32) {
    %c0_i32 = arith.constant 0 : i32
    %c0_i32_0 = arith.constant 0 : i32
    %c0_i32_1 = arith.constant 0 : i32
    %c0_i32_2 = arith.constant 0 : i32
    return %c0_i32, %c0_i32_0, %c0_i32_1 : i32, i32, i32
  }
  func.func @transform_1(%arg0: i32) -> (i32, i32, i32) {
    %c0_i32 = arith.constant 0 : i32
    %c0_i32_0 = arith.constant 0 : i32
    %c0_i32_1 = arith.constant 0 : i32
    %c0_i32_2 = arith.constant 0 : i32
    return %c0_i32, %c0_i32_0, %c0_i32_1 : i32, i32, i32
  }
  func.func @transform_2(%arg0: i32) -> (i32, i32, i32) {
    %c0_i32 = arith.constant 0 : i32
    %c0_i32_0 = arith.constant 0 : i32
    %c0_i32_1 = arith.constant 0 : i32
    %c0_i32_2 = arith.constant 0 : i32
    return %c0_i32, %c0_i32_0, %c0_i32_1 : i32, i32, i32
  }
  func.func @transform_3(%arg0: i32) -> (i32, i32, i32) {
    %c0_i32 = arith.constant 0 : i32
    %c0_i32_0 = arith.constant 0 : i32
    %c0_i32_1 = arith.constant 0 : i32
    %c0_i32_2 = arith.constant 0 : i32
    return %c0_i32, %c0_i32_0, %c0_i32_1 : i32, i32, i32
  }
  func.func @transform_4(%arg0: i32) -> (i32, i32) {
    %c0_i32 = arith.constant 0 : i32
    %c0_i32_0 = arith.constant 0 : i32
    %c0_i32_1 = arith.constant 0 : i32
    return %c0_i32, %c0_i32_0 : i32, i32
  }
  func.func @transform_5(%arg0: i32) -> (i32, i32) {
    %c0_i32 = arith.constant 0 : i32
    %c0_i32_0 = arith.constant 0 : i32
    %c0_i32_1 = arith.constant 0 : i32
    return %c0_i32, %c0_i32_0 : i32, i32
  }
  func.func @transform_6(%arg0: i32) -> (i32, i32) {
    %c0_i32 = arith.constant 0 : i32
    %c0_i32_0 = arith.constant 0 : i32
    %c0_i32_1 = arith.constant 0 : i32
    return %c0_i32, %c0_i32_0 : i32, i32
  }
  func.func @transform_7(%arg0: i32) -> (i32, i32) {
    %c0_i32 = arith.constant 0 : i32
    %c0_i32_0 = arith.constant 0 : i32
    %c0_i32_1 = arith.constant 0 : i32
    return %c0_i32, %c0_i32_0 : i32, i32
  }
  func.func @transform_8(%arg0: i32) -> (i32, i32) {
    %c0_i32 = arith.constant 0 : i32
    %c0_i32_0 = arith.constant 0 : i32
    %c0_i32_1 = arith.constant 0 : i32
    return %c0_i32, %c0_i32_0 : i32, i32
  }
  func.func @transform_9(%arg0: i32) -> (i32, i32) {
    %c0_i32 = arith.constant 0 : i32
    %c0_i32_0 = arith.constant 0 : i32
    %c0_i32_1 = arith.constant 0 : i32
    return %c0_i32, %c0_i32_0 : i32, i32
  }
  func.func @transform_10(%arg0: i32) -> (i32, i32) {
    %c0_i32 = arith.constant 0 : i32
    %c0_i32_0 = arith.constant 0 : i32
    %c0_i32_1 = arith.constant 0 : i32
    return %c0_i32, %c0_i32_0 : i32, i32
  }
  func.func @transform_11(%arg0: i32) -> (i32, i32) {
    %c0_i32 = arith.constant 0 : i32
    %c0_i32_0 = arith.constant 0 : i32
    %c0_i32_1 = arith.constant 0 : i32
    return %c0_i32, %c0_i32_0 : i32, i32
  }
  func.func @transform_12(%arg0: i32) -> (i32, i32) {
    %c0_i32 = arith.constant 0 : i32
    %c0_i32_0 = arith.constant 0 : i32
    %c0_i32_1 = arith.constant 0 : i32
    return %c0_i32, %c0_i32_0 : i32, i32
  }
  func.func @transform_13(%arg0: i32) -> (i32, i32) {
    %c0_i32 = arith.constant 0 : i32
    %c0_i32_0 = arith.constant 0 : i32
    %c0_i32_1 = arith.constant 0 : i32
    return %c0_i32, %c0_i32_0 : i32, i32
  }
  func.func @transform_14(%arg0: i32) -> (i32, i32) {
    %c0_i32 = arith.constant 0 : i32
    %c0_i32_0 = arith.constant 0 : i32
    %c0_i32_1 = arith.constant 0 : i32
    return %c0_i32, %c0_i32_0 : i32, i32
  }
}

</mosaic_0001>

<bundles_post_ra>
// kernel: forward.8
= control target key start
LH: loop header
LB: loop body
LE: loop exit
PB: predicated region body
PF: predicated region fallthrough
CT: control target
= control target key end

     0   :  { %s3859_s0 = inlined_call_operand.vmem [shape: f32[2,32,128], index: 0, kind: input, shape index: {}]   ;;  %s3860_s1 = inlined_call_operand.vmem [shape: f32[2,16,128], index: 1, kind: input, shape index: {}]   ;;  %s3861_s2 = inlined_call_operand.vmem [shape: f32[2,1,16], index: 2, kind: input, shape index: {}]   ;;  %s3862_s3 = inlined_call_operand.vmem [shape: f32[128,128], index: 3, kind: input, shape index: {}]   ;;  %s3863_s4 = inlined_call_operand.hbm [shape: f32[1,128], index: 4, kind: input, shape index: {}]   ;;  %s3864_s5 = inlined_call_operand.vmem [shape: f32[128,256], index: 5, kind: input, shape index: {}]   ;;  %s3865_s6 = inlined_call_operand.vmem [shape: f32[1,256], index: 6, kind: input, shape index: {}]   ;;  %s3866_s7 = inlined_call_operand.vmem [shape: f32[128,128], index: 7, kind: input, shape index: {}]   ;;  %s3867_s8 = inlined_call_operand.hbm [shape: f32[1,128], index: 8, kind: input, shape index: {}]   ;;  %s3868_s9 = inlined_call_operand.hbm [shape: f32[1,128], index: 9, kind: input, shape index: {}]   ;;  %s3869_s10 = inlined_call_operand.hbm [shape: f32[1,128], index: 10, kind: input, shape index: {}]   ;;  %s3870_s11 = inlined_call_operand.vmem [shape: f32[128,256], index: 11, kind: input, shape index: {}]   ;;  %s3871_s12 = inlined_call_operand.vmem [shape: f32[1,256], index: 12, kind: input, shape index: {}]   ;;  %s3872_s13 = inlined_call_operand.vmem [shape: f32[256,128], index: 13, kind: input, shape index: {}]   ;;  %s3873_s14 = inlined_call_operand.hbm [shape: f32[1,128], index: 14, kind: input, shape index: {}]   ;;  %s3874_s15 = inlined_call_operand.hbm [shape: f32[1,128], index: 15, kind: input, shape index: {}]   ;;  %s3875_s16 = inlined_call_operand.hbm [shape: f32[1,128], index: 16, kind: input, shape index: {}]   ;;  %s3876_s17 = inlined_call_operand.vmem [shape: f32[2,32,128], index: 17, kind: output, shape index: {}]  }
   0x1   :  { %3880 = sst [smem:[#allocation18_spill]] %s3859_s0 }
   0x2   :  { %3881 = sst [smem:[#allocation19_spill]] %s3860_s1 }
   0x3   :  { %3882 = sst [smem:[#allocation20_spill]] %s3871_s12 }
   0x4   :  { %3883 = sst [smem:[#allocation21_spill]] %s3876_s17 }
   0x5   :  { %22 = vsyncpa [#allocation3], 0 }
   0x6   :  { %23 = vsyncpa [#allocation5], 0 }
   0x7   :  { %24 = vsyncpa [#allocation8], 0 }
   0x8   :  { %25 = vsyncpa [#allocation11], 0  ;;  %s2975_s24 = smov 0  }
   0x9 LB: > { %3884 = sst [smem:[#allocation17_spill]] %s2872_s24  ;;  %s2874_s25 = smov [#allocation4]   ;;  %s2872_s24 = sphi %s2975_s24, %s31_s24  }
   0xa   : > { %s470_s26 = sshll.u32 %s2874_s25, 4  ;;  %s2981_s27 = sadd.s32 4294967295, %s2872_s24   ;;  %s2986_s26 = int_to_ptr.vmem [resolvable:$true] %s470_s26 }
   0xb   : > { %p2243_p0 = scmp.ge.s32.totalorder %s2872_s24, 1  ;;  %p434_p1 = scmp.lt.s32.totalorder %s2872_s24, 3 }
   0xc   : > { %p3878_p2 = scmp.eq.s32.totalorder %s2981_s27, 0  ;;  %s2875_s29 = smov [#allocation7]  }
   0xd   : > { %p2988_p3 = pnand %p2243_p0, %p434_p1  ;;  %s492_s0 = sshll.u32 %s2875_s29, 4  ;;  %s2994_s0 = int_to_ptr.vmem [resolvable:$true] %s492_s0 }
   0xe   : > { %s2876_s30 = smov [#allocation10]   ;;  %s2877_s1 = smov [#allocation2]  }
   0xf   : > { %s3885_s28 = scalar_select %p2988_p3, 1, 0 }
  0x10   : > { %p2487_p4 = pneg %p2988_p3  ;;  %s523_s18 = sshll.u32 %s2876_s30, 4  ;;  %s3002_s18 = int_to_ptr.vmem [resolvable:$true] %s523_s18 }
  0x11   : > { %s450_s20 = sshll.u32 %s2877_s1, 4  ;;  %s2654_s23 = scalar_lea.hbm %s3867_s8, 16  ;;  %s3004_s20 = int_to_ptr.vmem [resolvable:$true] %s450_s20 }
  0x12   : > { %p2998_p5 = pnand %p3878_p2, %p2487_p4  ;;  %p2655_p6 = scmp.ne.s32.totalorder %s3867_s8, %s2654_s23 }
  0x13   : > { %p2661_p10 = scmp.lt.u32.totalorder %s2654_s23, %s3867_s8 }
  0x14   : > { %p3014_p7 = pneg %p2998_p5 }
  0x16   : > { %p2657_p8 = pnand %p3014_p7, %p2655_p6 }
  0x18   : > { %p2658_p9 = pneg %p2657_p8 }
  0x1a   : > { %p2663_p11 = pnand %p2661_p10, %p2658_p9 }
  0x1c   : > { %2666 = shalt.err (!%p2663_p11)
}
  0x1d   : > { %s2667_s21 = scalar_lea.vmem %s2986_s26, 16  ;;  %s2674_s22 = scalar_lea.vmem %s2986_s26, 32 }
  0x1e   : > { %p2668_p12 = scmp.ne.s32.totalorder %s2986_s26, %s2667_s21  ;;  %p2675_p1 = scmp.lt.s32.totalorder %s2986_s26, %s2986_s26 }
  0x1f   : > { %p2676_p4 = scmp.lt.s32.totalorder %s2674_s22, %s2667_s21 }
  0x20   : > { %p2670_p13 = pnand %p2668_p12, %p3014_p7 }
  0x21   : > { %p2677_p6 = por %p2676_p4, %p2675_p1 }
  0x22   : > { %p2671_p0 = pneg %p2670_p13 }
  0x24   : > { %p2678_p8 = pnand %p2677_p6, %p2671_p0 }
  0x26   : > { %2681 = shalt.err (!%p2678_p8)
}
  0x27   : > { %2493 = dma.hbm_to_vmem [thread:$0]  (!%p2998_p5), %s3867_s8, 16, %s2986_s26, [#allocation5]  }
  0x28   : > { %s2682_s1 = scalar_lea.hbm %s3869_s10, 16 }
  0x29   : > { %p2683_p9 = scmp.ne.s32.totalorder %s3869_s10, %s2682_s1  ;;  %p2689_p12 = scmp.lt.u32.totalorder %s2682_s1, %s3869_s10 }
  0x2b   : > { %p2685_p10 = pnand %p2683_p9, %p3014_p7 }
  0x2d   : > { %p2686_p11 = pneg %p2685_p10 }
  0x2f   : > { %p2691_p13 = pnand %p2689_p12, %p2686_p11 }
  0x31   : > { %2694 = shalt.err (!%p2691_p13)
}
  0x32   : > { %s2695_s26 = scalar_lea.vmem %s2994_s0, 16  ;;  %s2702_s12 = scalar_lea.vmem %s2994_s0, 32 }
  0x33   : > { %p2696_p0 = scmp.ne.s32.totalorder %s2994_s0, %s2695_s26  ;;  %p2703_p6 = scmp.lt.s32.totalorder %s2994_s0, %s2994_s0 }
  0x34   : > { %p2704_p8 = scmp.lt.s32.totalorder %s2702_s12, %s2695_s26 }
  0x35   : > { %p2698_p1 = pnand %p2696_p0, %p3014_p7 }
  0x36   : > { %p2705_p9 = por %p2704_p8, %p2703_p6 }
  0x37   : > { %p2699_p4 = pneg %p2698_p1 }
  0x39   : > { %p2706_p10 = pnand %p2705_p9, %p2699_p4 }
  0x3b   : > { %2709 = shalt.err (!%p2706_p10)
}
  0x3c   : > { %2499 = dma.hbm_to_vmem [thread:$0]  (!%p2998_p5), %s3869_s10, 16, %s2994_s0, [#allocation8]  }
  0x3d   : > { %s2710_s29 = scalar_lea.hbm %s3874_s15, 16 }
  0x3e   : > { %p2711_p11 = scmp.ne.s32.totalorder %s3874_s15, %s2710_s29  ;;  %p2717_p0 = scmp.lt.u32.totalorder %s2710_s29, %s3874_s15 }
  0x40   : > { %p2713_p12 = pnand %p2711_p11, %p3014_p7 }
  0x42   : > { %p2714_p13 = pneg %p2713_p12 }
  0x44   : > { %p2719_p1 = pnand %p2717_p0, %p2714_p13 }
  0x46   : > { %2722 = shalt.err (!%p2719_p1)
}
  0x47   : > { %s2723_s0 = scalar_lea.vmem %s3002_s18, 16  ;;  %s2730_s12 = scalar_lea.vmem %s3002_s18, 32 }
  0x48   : > { %p2724_p4 = scmp.ne.s32.totalorder %s3002_s18, %s2723_s0  ;;  %p2731_p9 = scmp.lt.s32.totalorder %s3002_s18, %s3002_s18 }
  0x49   : > { %p2732_p10 = scmp.lt.s32.totalorder %s2730_s12, %s2723_s0 }
  0x4a   : > { %p2726_p6 = pnand %p2724_p4, %p3014_p7 }
  0x4b   : > { %p2733_p11 = por %p2732_p10, %p2731_p9 }
  0x4c   : > { %p2727_p8 = pneg %p2726_p6 }
  0x4e   : > { %p2734_p12 = pnand %p2733_p11, %p2727_p8 }
  0x50   : > { %2737 = shalt.err (!%p2734_p12)
}
  0x51   : > { %2505 = dma.hbm_to_vmem [thread:$0]  (!%p2998_p5), %s3874_s15, 16, %s3002_s18, [#allocation11]  }
  0x52   : > { %s2738_s29 = scalar_lea.hbm %s3863_s4, 16 }
  0x53   : > { %p2739_p13 = scmp.ne.s32.totalorder %s3863_s4, %s2738_s29  ;;  %p2745_p4 = scmp.lt.u32.totalorder %s2738_s29, %s3863_s4 }
  0x55   : > { %p2741_p0 = pnand %p2739_p13, %p3014_p7 }
  0x57   : > { %p2742_p1 = pneg %p2741_p0 }
  0x59   : > { %p2747_p6 = pnand %p2745_p4, %p2742_p1 }
  0x5b   : > { %2750 = shalt.err (!%p2747_p6)
}
  0x5c   : > { %s2751_s18 = scalar_lea.vmem %s3004_s20, 16  ;;  %s2758_s0 = scalar_lea.vmem %s3004_s20, 32 }
  0x5d   : > { %p2752_p8 = scmp.ne.s32.totalorder %s3004_s20, %s2751_s18  ;;  %p2759_p11 = scmp.lt.s32.totalorder %s3004_s20, %s3004_s20 }
  0x5e   : > { %p2760_p12 = scmp.lt.s32.totalorder %s2758_s0, %s2751_s18 }
  0x5f   : > { %p2754_p9 = pnand %p2752_p8, %p3014_p7 }
  0x60   : > { %p2761_p13 = por %p2760_p12, %p2759_p11 }
  0x61   : > { %p2755_p10 = pneg %p2754_p9 }
  0x63   : > { %p2762_p0 = pnand %p2761_p13, %p2755_p10 }
  0x65   : > { %2765 = shalt.err (!%p2762_p0)
}
  0x66   : > { %2490 = dma.hbm_to_vmem [thread:$0]  (!%p2998_p5), %s3863_s4, 16, %s3004_s20, [#allocation3]  }
  0x67   : > { %s2878_s24 = smov [#allocation6]   ;;  %s2879_s25 = smov [#allocation9]  }
  0x68   : > { %s481_s23 = sshll.u32 %s2878_s24, 4  ;;  %s512_s29 = sshll.u32 %s2879_s25, 4  ;;  %s482_s23 = int_to_ptr.vmem [resolvable:$true] %s481_s23  ;;  %s513_s29 = int_to_ptr.vmem [resolvable:$true] %s512_s29 }
  0x69   : > { %s2766_s22 = scalar_lea.hbm %s3868_s9, 16 }
  0x6a   : > { %p2767_p1 = scmp.ne.s32.totalorder %s3868_s9, %s2766_s22  ;;  %p2773_p8 = scmp.lt.u32.totalorder %s2766_s22, %s3868_s9 }
  0x6c   : > { %p2769_p4 = pnand %p2767_p1, %p3014_p7 }
  0x6e   : > { %p2770_p6 = pneg %p2769_p4 }
  0x70   : > { %p2775_p9 = pnand %p2773_p8, %p2770_p6 }
  0x72   : > { %2778 = shalt.err (!%p2775_p9)
}
  0x73   : > { %s2779_s20 = scalar_lea.vmem %s482_s23, 16  ;;  %s2786_s17 = scalar_lea.vmem %s482_s23, 32 }
  0x74   : > { %p2780_p10 = scmp.ne.s32.totalorder %s482_s23, %s2779_s20  ;;  %p2787_p13 = scmp.lt.s32.totalorder %s482_s23, %s482_s23 }
  0x75   : > { %p2788_p0 = scmp.lt.s32.totalorder %s2786_s17, %s2779_s20 }
  0x76   : > { %p2782_p11 = pnand %p2780_p10, %p3014_p7 }
  0x77   : > { %p2789_p2 = por %p2788_p0, %p2787_p13 }
  0x78   : > { %p2783_p12 = pneg %p2782_p11 }
  0x7a   : > { %p2790_p3 = pnand %p2789_p2, %p2783_p12 }
  0x7c   : > { %2793 = shalt.err (!%p2790_p3)
}
  0x7d   : > { %2496 = dma.hbm_to_vmem [thread:$0]  (!%p2998_p5), %s3868_s9, 16, %s482_s23, [#allocation5]  }
  0x7e   : > { %s2794_s22 = scalar_lea.hbm %s3873_s14, 16 }
  0x7f   : > { %p2795_p1 = scmp.ne.s32.totalorder %s3873_s14, %s2794_s22  ;;  %p2801_p3 = scmp.lt.u32.totalorder %s2794_s22, %s3873_s14 }
  0x81   : > { %p2797_p4 = pnand %p2795_p1, %p3014_p7 }
  0x83   : > { %p2798_p2 = pneg %p2797_p4 }
  0x85   : > { %p2803_p6 = pnand %p2801_p3, %p2798_p2 }
  0x87   : > { %2806 = shalt.err (!%p2803_p6)
}
  0x88   : > { %s2807_s20 = scalar_lea.vmem %s513_s29, 16  ;;  %s2814_s23 = scalar_lea.vmem %s513_s29, 32 }
  0x89   : > { %p2808_p8 = scmp.ne.s32.totalorder %s513_s29, %s2807_s20  ;;  %p2815_p11 = scmp.lt.s32.totalorder %s513_s29, %s513_s29 }
  0x8a   : > { %p2816_p12 = scmp.lt.s32.totalorder %s2814_s23, %s2807_s20 }
  0x8b   : > { %p2810_p9 = pnand %p2808_p8, %p3014_p7 }
  0x8c   : > { %p2817_p13 = por %p2816_p12, %p2815_p11 }
  0x8d   : > { %p2811_p10 = pneg %p2810_p9 }
  0x8f   : > { %p2818_p0 = pnand %p2817_p13, %p2811_p10 }
  0x91   : > { %2821 = shalt.err (!%p2818_p0)
}
  0x92   : > { %2502 = dma.hbm_to_vmem [thread:$0]  (!%p2998_p5), %s3873_s14, 16, %s513_s29, [#allocation8]  }
  0x93   : > { %s2880_s25 = smov [#allocation12]   ;;  %s2822_s26 = scalar_lea.hbm %s3875_s16, 16 }
  0x94   : > { %s534_s1 = sshll.u32 %s2880_s25, 4  ;;  %p2823_p1 = scmp.ne.s32.totalorder %s3875_s16, %s2822_s26  ;;  %s535_s1 = int_to_ptr.vmem [resolvable:$true] %s534_s1 }
  0x95   : > { %p2829_p3 = scmp.lt.u32.totalorder %s2822_s26, %s3875_s16 }
  0x96   : > { %p2825_p4 = pnand %p2823_p1, %p3014_p7 }
  0x98   : > { %p2826_p2 = pneg %p2825_p4 }
  0x9a   : > { %p2831_p6 = pnand %p2829_p3, %p2826_p2 }
  0x9c   : > { %2834 = shalt.err (!%p2831_p6)
}
  0x9d   : > { %s2835_s29 = scalar_lea.vmem %s535_s1, 16  ;;  %s2842_s23 = scalar_lea.vmem %s535_s1, 32 }
  0x9e   : > { %p2836_p8 = scmp.ne.s32.totalorder %s535_s1, %s2835_s29  ;;  %p2843_p11 = scmp.lt.s32.totalorder %s535_s1, %s535_s1 }
  0x9f   : > { %p2844_p12 = scmp.lt.s32.totalorder %s2842_s23, %s2835_s29 }
  0xa0   : > { %p2838_p9 = pnand %p2836_p8, %p3014_p7 }
  0xa1   : > { %p2845_p13 = por %p2844_p12, %p2843_p11 }
  0xa2   : > { %p2839_p10 = pneg %p2838_p9 }
  0xa4   : > { %p2846_p0 = pnand %p2845_p13, %p2839_p10 }
  0xa6   : > { %2849 = shalt.err (!%p2846_p0)
}
  0xa7   : > { %2508 = dma.hbm_to_vmem [thread:$0]  (!%p2998_p5), %s3875_s16, 16, %s535_s1, [#allocation11]  }
  0xa8   : > { %p3888_p1 = scmp.ne.s32.totalorder %s3885_s28, 0 }
  0xa9   : > { %p3889_p4 = scmp.eq.s32.totalorder (!%p3888_p1), %s2981_s27, 0 }
  0xaa   : > { %569 = sbr.rel (%p3888_p1) target bundleno = 3207 (0xc87), region = 88 }
  0xb1   : > { %2855 = dma.done.wait (%p3889_p4), [#allocation3], 16   ;;  %p3890_p7 = pmov %p3889_p4 }
  0xb2   : > { %p3891_p2 = pmov %p3889_p4 }
  0xb3   : > { %2857 = vsyncadd (%p3890_p7), [#allocation3], 4294967280 }
  0xb4   : > { %2859 = dma.done.wait (%p3891_p2), [#allocation5], 32   ;;  %p3892_p3 = pmov %p3891_p2 }
  0xb5   : > { %p3893_p6 = pmov %p3891_p2 }
  0xb6   : > { %2861 = vsyncadd (%p3892_p3), [#allocation5], 4294967264 }
  0xb7   : > { %2863 = dma.done.wait (%p3893_p6), [#allocation8], 32   ;;  %p3894_p5 = pmov %p3891_p2 }
  0xb8   : > { %p3895_p8 = pmov %p3891_p2 }
  0xb9   : > { %2865 = vsyncadd (%p3894_p5), [#allocation8], 4294967264 }
  0xba   : > { %2867 = dma.done.wait (%p3895_p8), [#allocation11], 32   ;;  %p3896_p9 = pmov %p3891_p2 }
  0xbb   : > { %v2881_v0 = vmov 0   ;;  %v762_v1 = vld [vmem:[%s3864_s5 + $0x8] sm:$0xff]  ;;  %v764_v2 = vld [vmem:[%s3864_s5 + $0x18] sm:$0xff]  ;;  %v761_v3 = vld [vmem:[%s3864_s5] sm:$0xff]  ;;  %p653_p10 = scmp.lt.s32.totalorder %s2981_s27, 1  ;;  %s3897_s25 = sld [smem:[#allocation18_spill]] }
  0xbc   : > { %2869 = vsyncadd (%p3896_p9), [#allocation11], 4294967264  ;;  %854 = vmatprep.mubr.bf16.mxu1 %v2881_v0  ;;  %v795_v4 = vpack.c.bf16 %v764_v2, %v762_v1  ;;  %v763_v5 = vld [vmem:[%s3864_s5 + $0x10] sm:$0xff]  ;;  %v679_v6 = vld [vmem:[%s3862_s3] sm:$0xff]  ;;  %s3898_s23 = sld [smem:[#allocation19_spill]]  ;;  %vm868_vm0 = vcmask 261120  }
  0xbd   : > { %v680_v7 = vld [vmem:[%s3862_s3 + $0x8] sm:$0xff]  ;;  %v794_v8 = vpack.c.bf16 %v763_v5, %v761_v3  ;;  %v768_v11 = vld [vmem:[%s3864_s5 + $0x38] sm:$0xff]  ;;  %v765_v12 = vld [vmem:[%s3864_s5 + $0x20] sm:$0xff]  ;;  %s3903_s27 = smov (!%p653_p10, %s2981_s27), 1  ;;  %vm941_vm1 = vcmask 130048   ;;  %s2882_s21 = smov 96  }
  0xbe   : > { %v697_v9 = vpack.c.bf16 %v680_v7, %v679_v6  ;;  %v766_v10 = vld [vmem:[%s3864_s5 + $0x28] sm:$0xff]  ;;  %822 = vmatprep.subr.bf16.mxu1 %v795_v4  ;;  %v767_v14 = vld [vmem:[%s3864_s5 + $0x30] sm:$0xff]  ;;  %v682_v16 = vld [vmem:[%s3862_s3 + $0x18] sm:$0xff]  ;;  %s2292_s18 = sshll.u32 %s3903_s27, 5  ;;  %s2293_s28 = sshll.u32 %s3903_s27, 4  ;;  %vm1628_vm2 = vcmask 523264  }
  0xbf   : > { %v797_v13 = vpack.c.bf16 %v768_v11, %v766_v10  ;;  %v681_v15 = vld [vmem:[%s3862_s3 + $0x10] sm:$0xff]  ;;  %823 = vmatpush1.bf16.msra.mxu1 %v794_v8  ;;  %v796_v17 = vpack.c.bf16 %v767_v14, %v765_v12  ;;  %v770_v19 = vld [vmem:[%s3864_s5 + $0x48] sm:$0xff]  ;;  %v772_v20 = vld [vmem:[%s3864_s5 + $0x58] sm:$0xff]  ;;  %s2883_s22 = smov 64   ;;  %s2884_s26 = smov 32   ;;  %vm1633_vm3 = vcmask 785408  }
  0xc0   : > { %2367 = vmatprep.subr.bf16.mxu0 %v697_v9  ;;  %v698_v18 = vpack.c.bf16 %v682_v16, %v681_v15  ;;  %v769_v21 = vld [vmem:[%s3864_s5 + $0x40] sm:$0xff]  ;;  %v799_v22 = vpack.c.bf16 %v772_v20, %v770_v19  ;;  %v771_v23 = vld [vmem:[%s3864_s5 + $0x50] sm:$0xff]  ;;  %v684_v25 = vld [vmem:[%s3862_s3 + $0x28] sm:$0xff]  ;;  %v812_v19 = vlaneseq  ;;  %s3900_s19 = sld [smem:[#allocation21_spill]] }
  0xc1   : > { %824 = vmatprep.subr.bf16.mxu1 %v797_v13  ;;  %2368 = vmatpush3.bf16.msra.mxu0 %v697_v9  ;;  %v683_v24 = vld [vmem:[%s3862_s3 + $0x20] sm:$0xff]  ;;  %v774_v27 = vld [vmem:[%s3864_s5 + $0x68] sm:$0xff]  ;;  %v776_v28 = vld [vmem:[%s3864_s5 + $0x78] sm:$0xff]  ;;  %v798_v31 = vpack.c.bf16 %v771_v23, %v769_v21  ;;  %s3289_s1 = scalar_lea.vmem %s3897_s25, %s2292_s18  ;;  %s665_s25 = scalar_lea.vmem %s3861_s2, %s3903_s27 }
  0xc2   : > { %2369 = vmatprep.subr.bf16.mxu0 %v698_v18  ;;  %v699_v26 = vpack.c.bf16 %v684_v25, %v683_v24  ;;  %v685_v29 = vld [vmem:[%s3862_s3 + $0x30] sm:$0xff]  ;;  %v686_v30 = vld [vmem:[%s3862_s3 + $0x38] sm:$0xff]  ;;  %v801_v32 = vpack.c.bf16 %v776_v28, %v774_v27  ;;  %v773_v33 = vld [vmem:[%s3864_s5 + $0x60] sm:$0xff]  ;;  %s662_s17 = scalar_lea.vmem %s3898_s23, %s2293_s28  ;;  %v3353_v20 = vshrl.u32 %v812_v19, 7 }
  0xc3   : > { %825 = vmatpush1.bf16.msra.mxu1 %v796_v17  ;;  %v775_v34 = vld [vmem:[%s3864_s5 + $0x70] sm:$0xff]  ;;  %v700_v35 = vpack.c.bf16 %v686_v30, %v685_v29  ;;  %v778_v36 = vld [vmem:[%s3864_s5 + $0x88] sm:$0xff]  ;;  %v780_v37 = vld [vmem:[%s3864_s5 + $0x98] sm:$0xff] }
  0xc4   : > { %826 = vmatprep.subr.bf16.mxu1 %v799_v22  ;;  %v687_v38 = vld [vmem:[%s3862_s3 + $0x40] sm:$0xff]  ;;  %v688_v39 = vld [vmem:[%s3862_s3 + $0x48] sm:$0xff]  ;;  %v800_v40 = vpack.c.bf16 %v775_v34, %v773_v33  ;;  %v803_v41 = vpack.c.bf16 %v780_v37, %v778_v36  ;;  %v779_v43 = vld [vmem:[%s3864_s5 + $0x90] sm:$0xff]  ;;  %v814_v21 = vsub.s32 0, %v3353_v20  ;;  %v818_v23 = vsub.s32 1, %v3353_v20 }
  0xc5   : > { %2370 = vmatpush3.bf16.msra.mxu0 %v698_v18  ;;  %v777_v42 = vld [vmem:[%s3864_s5 + $0x80] sm:$0xff]  ;;  %v701_v44 = vpack.c.bf16 %v688_v39, %v687_v38  ;;  %v782_v45 = vld [vmem:[%s3864_s5 + $0xa8] sm:$0xff]  ;;  %v784_v46 = vld [vmem:[%s3864_s5 + $0xb8] sm:$0xff] }
  0xc6   : > { %2371 = vmatprep.subr.bf16.mxu0 %v699_v26  ;;  %v689_v47 = vld [vmem:[%s3862_s3 + $0x50] sm:$0xff]  ;;  %v690_v48 = vld [vmem:[%s3862_s3 + $0x58] sm:$0xff]  ;;  %v802_v49 = vpack.c.bf16 %v779_v43, %v777_v42  ;;  %v781_v50 = vld [vmem:[%s3864_s5 + $0xa0] sm:$0xff]  ;;  %v805_v51 = vpack.c.bf16 %v784_v46, %v782_v45  ;;  %s670_s30 = scalar_lea.vmem %s3900_s19, %s2292_s18 }
  0xc7   : > { %827 = vmatpush1.bf16.msra.mxu1 %v798_v31  ;;  %v783_v52 = vld [vmem:[%s3864_s5 + $0xb0] sm:$0xff]  ;;  %v672_v53 = vld [vmem:[%s3289_s1] sm:$0xff]  ;;  %v673_v54 = vld [vmem:[%s3289_s1 + $0x8] sm:$0xff]  ;;  %v702_v55 = vpack.c.bf16 %v690_v48, %v689_v47 }
  0xc8   : > { %828 = vmatprep.subr.bf16.mxu1 %v801_v32  ;;  %v786_v56 = vld [vmem:[%s3864_s5 + $0xc8] sm:$0xff]  ;;  %v788_v57 = vld [vmem:[%s3864_s5 + $0xd8] sm:$0xff]  ;;  %v695_v58 = vpack.c.bf16 %v673_v54, %v672_v53  ;;  %v691_v59 = vld [vmem:[%s3862_s3 + $0x60] sm:$0xff]  ;;  %v804_v61 = vpack.c.bf16 %v783_v52, %v781_v50 }
  0xc9   : > { %2372 = vmatpush3.bf16.msra.mxu0 %v699_v26  ;;  %v692_v60 = vld [vmem:[%s3862_s3 + $0x68] sm:$0xff]  ;;  %v807_v62 = vpack.c.bf16 %v788_v57, %v786_v56  ;;  %v785_v63 = vld [vmem:[%s3864_s5 + $0xc0] sm:$0xff]  ;;  %v787_v1 = vld [vmem:[%s3864_s5 + $0xd0] sm:$0xff] }
  0xca   : > { %2373 = vmatprep.subr.bf16.mxu0 %v700_v35  ;;  %2383 = vmatprep.mubr.bf16.mxu0 %v695_v58  ;;  %v703_v2 = vpack.c.bf16 %v692_v60, %v691_v59  ;;  %v790_v3 = vld [vmem:[%s3864_s5 + $0xe8] sm:$0xff]  ;;  %v792_v4 = vld [vmem:[%s3864_s5 + $0xf8] sm:$0xff]  ;;  %v693_v5 = vld [vmem:[%s3862_s3 + $0x70] sm:$0xff]  ;;  %v806_v7 = vpack.c.bf16 %v787_v1, %v785_v63 }
  0xcb   : > { %829 = vmatpush1.bf16.msra.mxu1 %v800_v40  ;;  %v694_v6 = vld [vmem:[%s3862_s3 + $0x78] sm:$0xff]  ;;  %v809_v8 = vpack.c.bf16 %v792_v4, %v790_v3  ;;  %v789_v9 = vld [vmem:[%s3864_s5 + $0xe0] sm:$0xff]  ;;  %v791_v10 = vld [vmem:[%s3864_s5 + $0xf0] sm:$0xff] }
  0xcc   : > { %830 = vmatprep.subr.bf16.mxu1 %v803_v41  ;;  %v704_v11 = vpack.c.bf16 %v694_v6, %v693_v5  ;;  %v808_v12 = vpack.c.bf16 %v791_v10, %v789_v9  ;;  %v676_v13 = vld [vmem:[%s662_s17] sm:$0xff]  ;;  %v677_v14 = vld [vmem:[%s662_s17 + $0x8] sm:$0xff]  ;;  %v3346_v15 = vld [vmem:[%s3289_s1 + $0x10] sm:$0xff]  ;;  %s3899_s17 = sld [smem:[#allocation20_spill]] }
  0xcd   : > { %2374 = vmatpush3.bf16.msra.mxu0 %v700_v35  ;;  %v3349_v16 = vld [vmem:[%s3289_s1 + $0x18] sm:$0xff]  ;;  %v793_v17 = vpack.c.bf16 %v677_v14, %v676_v13  ;;  %v810_v22 = vld [vmem:[%s3865_s6] sm:$0x3] }
  0xce   : > { %2375 = vmatprep.subr.bf16.mxu0 %v701_v44  ;;  %v696_v18 = vpack.c.bf16 %v3349_v16, %v3346_v15  ;;  %v815_v24 = vrot.slane %v810_v22, %v814_v21  ;;  %v2266_v25 = vld [vmem:[#allocation2] ss:$0 sm:$0xff]  ;;  %v819_v27 = vrot.slane %v810_v22, %v818_v23 }
  0xcf   : > { %831 = vmatpush1.bf16.msra.mxu1 %v802_v49  ;;  %v3386_v48 = vld [vmem:[%s665_s25] ss:$0 sm:$0xff] }
  0xd0   : > { %832 = vmatprep.subr.bf16.mxu1 %v805_v51 }
  0xd1   : > { %2376 = vmatpush3.bf16.msra.mxu0 %v701_v44 }
  0xd2   : > { %2377 = vmatprep.subr.bf16.mxu0 %v702_v55 }
  0xd3   : > { %833 = vmatpush1.bf16.msra.mxu1 %v804_v61 }
  0xd4   : > { %834 = vmatprep.subr.bf16.mxu1 %v807_v62 }
  0xd5   : > { %2378 = vmatpush3.bf16.msra.mxu0 %v702_v55 }
  0xd6   : > { %2379 = vmatprep.subr.bf16.mxu0 %v703_v2 }
  0xd7   : > { %835 = vmatpush1.bf16.msra.mxu1 %v806_v7 }
  0xd8   : > { %836 = vmatprep.subr.bf16.mxu1 %v809_v8 }
  0xd9   : > { %2380 = vmatpush3.bf16.msra.mxu0 %v703_v2 }
  0xda   : > { %2381 = vmatprep.subr.bf16.mxu0 %v704_v11 }
  0xdb   : > { %837 = vmatpush1.bf16.msra.mxu1 %v808_v12 }
  0xdd   : > { %2382 = vmatpush3.bf16.msra.mxu0 %v704_v11 }
  0xde   : > { %855 = vmatmul.mubr.bf16.vlgmr.msra.gmra.mrb[0].mxu1 %v793_v17 }
  0xe0   : > { %2384 = vmatmul.mubr.bf16.vlgmr.msra.gmra.mrb[0].mxu0 %v696_v18 }
 0x1b1   : > { %v856_v26 = vpop.f32.mrb[0].mxu1 }
 0x1b2   : > { %v858_v28 = vpop.f32.mrb[1].mxu1  ;;  %v857_v33 = vadd.f32 %v856_v26, %v815_v24 }
 0x1b3   : > { %v2385_v29 = vpop.f32.mrb[0].mxu0  ;;  %v860_v30 = vpop.f32.mrb[2].mxu1  ;;  %v859_v38 = vadd.f32 %v858_v28, %v819_v27 }
 0x1b4   : > { %v755_v31 = vadd.f32 %v2385_v29, %v2266_v25  ;;  %v746_v32 = vpop.f32.mrb[1].mxu0  ;;  %v861_v34 = vadd.f32 %v860_v30, %v815_v24  ;;  %v862_v35 = vpop.f32.mrb[3].mxu1 }
 0x1b5   : > { %v747_v36 = vadd.f32 %v2266_v25, %v746_v32  ;;  %v2386_v37 = vpop.f32.mrb[2].mxu0  ;;  %v863_v39 = vadd.f32 %v862_v35, %v819_v27 }
 0x1b6   : > { %v758_v40 = vadd.f32 %v2386_v37, %v2266_v25  ;;  %v749_v41 = vpop.f32.mrb[3].mxu0  ;;  %v3364_v42 = vpack.c.bf16 %v861_v34, %v857_v33 }
 0x1b7   : > { %v750_v43 = vadd.f32 %v2266_v25, %v749_v41  ;;  %v3366_v44 = vpack.c.bf16 %v863_v39, %v859_v38 }
 0x1b8   : > { %v3368_v45 = vpack.c.bf16 %v758_v40, %v755_v31  ;;  %2455 = vmatprep.subr.msk.bf16.mxu1 %vm868_vm0, %v3364_v42  ;;  %v876_v47 = vsel %vm868_vm0, %v3364_v42, 0 }
 0x1b9   : > { %v3370_v46 = vpack.c.bf16 %v750_v43, %v747_v36  ;;  %2388 = vmatpush3.bf16.xpose.msra.mxu1 %v876_v47 }
 0x1ba   : > { %2393 = vmatprep.subr.bf16.mxu1 %v3366_v44 }
 0x1bb   : > { %2389 = vmatprep.mubr.msk.bf16.mxu1 %vm868_vm0, %v3370_v46 }
 0x1c0   : > { %2390 = vmatmul.mubr.msk.bf16.vlgmr.msra.gmra.mrb[4].mxu1 %vm868_vm0, %v3368_v45 }
 0x1c1   : > { %2394 = vmatpush3.bf16.msra.mxu1 %v3366_v44 }
 0x293   : > { %v2391_v49 = vpop.f32.mrb[4].mxu1 }
 0x294   : > { %v929_v50 = vmul.f32 0.17677669, %v2391_v49  ;;  %v912_v51 = vpop.f32.mrb[5].mxu1 }
 0x295   : > { %v927_v52 = vmul.f32 0.17677669, %v912_v51  ;;  %v2392_v53 = vpop.f32.mrb[6].mxu1 }
 0x296   : > { %v930_v54 = vmul.f32 0.17677669, %v2392_v53  ;;  %v915_v55 = vpop.f32.mrb[7].mxu1  ;;  %v939_v56 = vadd.f32 %v3386_v48, %v929_v50 }
 0x297   : > { %v928_v57 = vmul.f32 0.17677669, %v915_v55  ;;  %v937_v58 = vadd.f32 %v3386_v48, %v927_v52 }
 0x298   : > { %v948_v59 = vsel %vm941_vm1, %v939_v56, -inf  ;;  %v940_v60 = vadd.f32 %v3386_v48, %v930_v54 }
 0x299   : > { %949 = vmax.xlane.f32.xlu1 %v948_v59  ;;  %v942_v61 = vsel %vm941_vm1, %v937_v58, -inf  ;;  %v938_v62 = vadd.f32 %v3386_v48, %v928_v57 }
 0x29a   : > { %943 = vmax.xlane.f32.xlu0 %v942_v61  ;;  %v951_v63 = vsel %vm941_vm1, %v940_v60, -inf }
 0x29b   : > { %v945_v1 = vsel %vm941_vm1, %v938_v62, -inf }
 0x29d   : > { %952 = vmax.xlane.f32.xlu1 %v951_v63 }
 0x29e   : > { %946 = vmax.xlane.f32.xlu0 %v945_v1 }
 0x2ae   : > { %1046 = vrot.lane.b32.xlu1 %v3370_v46, %s2882_s21 }
 0x326   : > { %v950_v2 = vpop.xlane.xlu1 %949 }
 0x327   : > { %v956_v3 = vsub.f32 %v939_v56, %v950_v2  ;;  %v944_v4 = vpop.xlane.xlu0 %943 }
 0x328   : > { %v954_v5 = vsub.f32 %v937_v58, %v944_v4 }
 0x329   : > { %v962_v6 = vmul.f32 1.442695, %v956_v3 }
 0x32a   : > { %v958_v7 = vmul.f32 1.442695, %v954_v5  ;;  %v953_v8 = vpop.xlane.xlu1 %952 }
 0x32b   : > { %2572 = vpow2.f32 %v962_v6  ;;  %v957_v9 = vsub.f32 %v940_v60, %v953_v8  ;;  %v947_v10 = vpop.xlane.xlu0 %946 }
 0x32c   : > { %v955_v11 = vsub.f32 %v938_v62, %v947_v10  ;;  %2574 = vpow2.f32 %v958_v7 }
 0x32d   : > { %v964_v12 = vmul.f32 1.442695, %v957_v9 }
 0x32e   : > { %v960_v13 = vmul.f32 1.442695, %v955_v11  ;;  %v1047_v27 = vpop.permute.xlu1 %1046 }
 0x32f   : > { %2576 = vpow2.f32 %v964_v12 }
 0x330   : > { %2578 = vpow2.f32 %v960_v13 }
 0x335   : > { %v2573_v14 = vpop.eup %2572 }
 0x336   : > { %v972_v17 = vsel %vm941_vm1, %v2573_v14, 0.0  ;;  %v2575_v18 = vpop.eup %2574 }
 0x337   : > { %973 = vadd.xlane.f32.xlu0 %v972_v17  ;;  %v966_v24 = vsel %vm941_vm1, %v2575_v18, 0.0 }
 0x339   : > { %v2577_v19 = vpop.eup %2576 }
 0x33a   : > { %v975_v22 = vsel %vm941_vm1, %v2577_v19, 0.0  ;;  %v2579_v25 = vpop.eup %2578 }
 0x33b   : > { %976 = vadd.xlane.f32.xlu1 %v975_v22  ;;  %967 = vadd.xlane.f32.xlu0 %v966_v24  ;;  %v969_v26 = vsel %vm941_vm1, %v2579_v25, 0.0 }
 0x33f   : > { %970 = vadd.xlane.f32.xlu1 %v969_v26 }
 0x350   : > { %1048 = vrot.lane.b32.xlu1 %v3368_v45, %s2882_s21 }
 0x351   : > { %1051 = vrot.lane.b32.xlu0 %v3364_v42, %s2882_s21 }
 0x354   : > { %1228 = vrot.lane.b32.xlu1 %v3364_v42, %s2883_s22 }
 0x355   : > { %1224 = vrot.lane.b32.xlu0 %v3370_v46, %s2883_s22 }
 0x358   : > { %1226 = vrot.lane.b32.xlu1 %v3368_v45, %s2883_s22 }
 0x359   : > { %1404 = vrot.lane.b32.xlu0 %v3364_v42, %s2884_s26 }
 0x35c   : > { %1400 = vrot.lane.b32.xlu1 %v3370_v46, %s2884_s26 }
 0x35d   : > { %1402 = vrot.lane.b32.xlu0 %v3368_v45, %s2884_s26 }
 0x3c4   : > { %v974_v28 = vpop.xlane.xlu0 %973 }
 0x3c8   : > { %v977_v29 = vpop.xlane.xlu1 %976  ;;  %v968_v30 = vpop.xlane.xlu0 %967 }
 0x3c9   : > { %2580 = vrcp.f32 %v977_v29 }
 0x3ca   : > { %2582 = vrcp.f32 %v968_v30 }
 0x3cb   : > { %2584 = vrcp.f32 %v974_v28 }
 0x3cc   : > { %v971_v31 = vpop.xlane.xlu1 %970  ;;  %v1052_v32 = vpop.permute.xlu0 %1051 }
 0x3cd   : > { %2586 = vrcp.f32 %v971_v31  ;;  %2456 = vmatprep.subr.msk.bf16.mxu1 %vm868_vm0, %v1052_v32  ;;  %v1060_v52 = vsel %vm868_vm0, %v1052_v32, 0 }
 0x3d0   : > { %v1049_v33 = vpop.permute.xlu1 %1048  ;;  %v1225_v34 = vpop.permute.xlu0 %1224 }
 0x3d1   : > { %2413 = vmatprep.mubr.msk.bf16.mxu0 %vm868_vm0, %v1225_v34 }
 0x3d3   : > { %v2581_v35 = vpop.eup %2580 }
 0x3d4   : > { %v1229_v36 = vpop.permute.xlu1 %1228  ;;  %v2583_v37 = vpop.eup %2582  ;;  %v985_v42 = vmul.f32 %v2581_v35, %v2577_v19 }
 0x3d5   : > { %v1237_v38 = vsel %vm868_vm0, %v1229_v36, 0  ;;  %2457 = vmatprep.subr.msk.bf16.mxu0 %vm868_vm0, %v1229_v36  ;;  %v2585_v39 = vpop.eup %2584  ;;  %v1405_v40 = vpop.permute.xlu0 %1404  ;;  %v982_v45 = vmul.f32 %v2583_v37, %v2575_v18 }
 0x3d6   : > { %2412 = vmatpush3.bf16.xpose.msra.mxu0 %v1237_v38  ;;  %v984_v47 = vmul.f32 %v2585_v39, %v2573_v14  ;;  %v1413_v53 = vsel %vm868_vm0, %v1405_v40, 0 }
 0x3d7   : > { %v2587_v41 = vpop.eup %2586  ;;  %2458 = vmatprep.subr.msk.bf16.mxu0 %vm868_vm0, %v1405_v40 }
 0x3d8   : > { %v1227_v43 = vpop.permute.xlu1 %1226  ;;  %v983_v46 = vmul.f32 %v2587_v41, %v2579_v25  ;;  %v987_v50 = vpack.c.bf16 %v985_v42, %v984_v47 }
 0x3d9   : > { %v1403_v54 = vpop.permute.xlu0 %1402 }
 0x3da   : > { %v986_v49 = vpack.c.bf16 %v983_v46, %v982_v45 }
 0x3dc   : > { %v1401_v51 = vpop.permute.xlu1 %1400  ;;  %2395 = vmatprep.mubr.msk.bf16.mxu1 %vm941_vm1, %v986_v49 }
 0x3dd   : > { %2396 = vmatmul.mubr.msk.bf16.vlgmr.msra.gmra.mrb[8].mxu1 %vm941_vm1, %v987_v50  ;;  %2414 = vmatmul.mubr.msk.bf16.vlgmr.msra.gmra.mrb[4].mxu0 %vm868_vm0, %v1227_v43 }
 0x3de   : > { %2400 = vmatpush3.bf16.xpose.msra.mxu1 %v1060_v52  ;;  %2401 = vmatprep.mubr.msk.bf16.mxu1 %vm868_vm0, %v1047_v27 }
 0x3df   : > { %2424 = vmatpush3.bf16.xpose.msra.mxu0 %v1413_v53  ;;  %2425 = vmatprep.mubr.msk.bf16.mxu0 %vm868_vm0, %v1401_v51 }
 0x3e5   : > { %2402 = vmatmul.mubr.msk.bf16.vlgmr.msra.gmra.mrb[12].mxu1 %vm868_vm0, %v1049_v33 }
 0x3e6   : > { %2426 = vmatmul.mubr.msk.bf16.vlgmr.msra.gmra.mrb[8].mxu0 %vm868_vm0, %v1403_v54 }
 0x4b0   : > { %v3432_v55 = vpop.f32.mrb[8].mxu1  ;;  %v2415_v56 = vpop.f32.mrb[4].mxu0 }
 0x4b1   : > { %v3434_v57 = vpop.f32.mrb[9].mxu1  ;;  %v1273_v58 = vpop.f32.mrb[5].mxu0  ;;  %v1290_v18 = vmul.f32 0.17677669, %v2415_v56 }
 0x4b2   : > { %v3436_v59 = vpop.f32.mrb[10].mxu1  ;;  %v2416_v60 = vpop.f32.mrb[6].mxu0  ;;  %v1288_v4 = vmul.f32 0.17677669, %v1273_v58 }
 0x4b3   : > { %v3438_v61 = vpop.f32.mrb[11].mxu1  ;;  %v1276_v62 = vpop.f32.mrb[7].mxu0  ;;  %v1294_v30 = vadd.f32 %v3386_v48, %v1290_v18  ;;  %v1291_v31 = vmul.f32 0.17677669, %v2416_v60 }
 0x4b4   : > { %v1292_v24 = vadd.f32 %v3386_v48, %v1288_v4  ;;  %v1289_v26 = vmul.f32 0.17677669, %v1276_v62 }
 0x4b5   : > { %v1302_v35 = vsel %vm941_vm1, %v1294_v30, -inf  ;;  %v1295_v39 = vadd.f32 %v3386_v48, %v1291_v31 }
 0x4b6   : > { %v1296_v29 = vsel %vm941_vm1, %v1292_v24, -inf  ;;  %v1293_v33 = vadd.f32 %v3386_v48, %v1289_v26 }
 0x4b7   : > { %v1305_v43 = vsel %vm941_vm1, %v1295_v39, -inf }
 0x4b8   : > { %v2403_v63 = vpop.f32.mrb[12].mxu1  ;;  %v1299_v38 = vsel %vm941_vm1, %v1293_v33, -inf }
 0x4b9   : > { %v1113_v1 = vmul.f32 0.17677669, %v2403_v63  ;;  %v2427_v2 = vpop.f32.mrb[8].mxu0  ;;  %v1096_v3 = vpop.f32.mrb[13].mxu1 }
 0x4ba   : > { %v1111_v5 = vmul.f32 0.17677669, %v1096_v3  ;;  %v1449_v6 = vpop.f32.mrb[9].mxu0  ;;  %v2404_v7 = vpop.f32.mrb[14].mxu1  ;;  %v1466_v34 = vmul.f32 0.17677669, %v2427_v2 }
 0x4bb   : > { %v2428_v8 = vpop.f32.mrb[10].mxu0  ;;  %v1099_v9 = vpop.f32.mrb[15].mxu1  ;;  %v3441_v10 = vadd.f32 %v3386_v48, %v1113_v1  ;;  %v1114_v14 = vmul.f32 0.17677669, %v2404_v7  ;;  %v1464_v28 = vmul.f32 0.17677669, %v1449_v6 }
 0x4bc   : > { %v1112_v11 = vmul.f32 0.17677669, %v1099_v9  ;;  %v1452_v12 = vpop.f32.mrb[11].mxu0  ;;  %v3444_v13 = vadd.f32 %v3386_v48, %v1111_v5  ;;  %v1470_v41 = vadd.f32 %v3386_v48, %v1466_v34  ;;  %v1467_v42 = vmul.f32 0.17677669, %v2428_v8 }
 0x4bd   : > { %v1125_v17 = vsel %vm941_vm1, %v3441_v10, -inf  ;;  %v3457_v27 = vadd.f32 %v3386_v48, %v1114_v14  ;;  %v1468_v36 = vadd.f32 %v3386_v48, %v1464_v28  ;;  %v1465_v37 = vmul.f32 0.17677669, %v1452_v12 }
 0x4be   : > { %1126 = vmax.xlane.f32.xlu0 %v1125_v17  ;;  %v1119_v19 = vsel %vm941_vm1, %v3444_v13, -inf  ;;  %v3451_v22 = vadd.f32 %v3386_v48, %v1112_v11  ;;  %v1478_v46 = vsel %vm941_vm1, %v1470_v41, -inf  ;;  %v3475_v49 = vadd.f32 %v3386_v48, %v1467_v42 }
 0x4bf   : > { %1120 = vmax.xlane.f32.xlu1 %v1119_v19  ;;  %v1128_v32 = vsel %vm941_vm1, %v3457_v27, -inf  ;;  %v1472_v40 = vsel %vm941_vm1, %v1468_v36, -inf  ;;  %v1469_v45 = vadd.f32 %v3386_v48, %v1465_v37 }
 0x4c0   : > { %v1122_v25 = vsel %vm941_vm1, %v3451_v22, -inf  ;;  %v1481_v50 = vsel %vm941_vm1, %v3475_v49, -inf }
 0x4c1   : > { %v1475_v47 = vsel %vm941_vm1, %v1469_v45, -inf }
 0x4c2   : > { %1123 = vmax.xlane.f32.xlu0 %v1122_v25 }
 0x4c3   : > { %1297 = vmax.xlane.f32.xlu1 %v1296_v29 }
 0x4c6   : > { %1129 = vmax.xlane.f32.xlu0 %v1128_v32 }
 0x4c7   : > { %1303 = vmax.xlane.f32.xlu1 %v1302_v35 }
 0x4ca   : > { %1300 = vmax.xlane.f32.xlu0 %v1299_v38 }
 0x4cb   : > { %1473 = vmax.xlane.f32.xlu1 %v1472_v40 }
 0x4ce   : > { %1306 = vmax.xlane.f32.xlu0 %v1305_v43 }
 0x4cf   : > { %1479 = vmax.xlane.f32.xlu1 %v1478_v46 }
 0x4d2   : > { %1476 = vmax.xlane.f32.xlu0 %v1475_v47 }
 0x4d6   : > { %1482 = vmax.xlane.f32.xlu0 %v1481_v50 }
 0x54b   : > { %v1127_v51 = vpop.xlane.xlu0 %1126 }
 0x54c   : > { %v1121_v52 = vpop.xlane.xlu1 %1120  ;;  %v1133_v6 = vsub.f32 %v3441_v10, %v1127_v51 }
 0x54e   : > { %v1139_v19 = vmul.f32 1.442695, %v1133_v6 }
 0x54f   : > { %v1124_v53 = vpop.xlane.xlu0 %1123 }
 0x550   : > { %v1298_v54 = vpop.xlane.xlu1 %1297  ;;  %v1132_v29 = vsub.f32 %v3451_v22, %v1124_v53 }
 0x551   : > { %v1308_v56 = vsub.f32 %v1292_v24, %v1298_v54  ;;  %v1131_v24 = vsub.f32 %v3444_v13, %v1121_v52 }
 0x552   : > { %v1137_v35 = vmul.f32 1.442695, %v1132_v29 }
 0x553   : > { %v1312_v58 = vmul.f32 1.442695, %v1308_v56  ;;  %v1130_v60 = vpop.xlane.xlu0 %1129  ;;  %v1135_v32 = vmul.f32 1.442695, %v1131_v24 }
 0x554   : > { %v1304_v62 = vpop.xlane.xlu1 %1303  ;;  %v1134_v14 = vsub.f32 %v3457_v27, %v1130_v60 }
 0x555   : > { %2588 = vpow2.f32 %v1312_v58  ;;  %v1310_v63 = vsub.f32 %v1294_v30, %v1304_v62 }
 0x556   : > { %v1141_v30 = vmul.f32 1.442695, %v1134_v14 }
 0x557   : > { %v1316_v1 = vmul.f32 1.442695, %v1310_v63  ;;  %v1301_v2 = vpop.xlane.xlu0 %1300 }
 0x558   : > { %v1309_v3 = vsub.f32 %v1293_v33, %v1301_v2  ;;  %v1474_v48 = vpop.xlane.xlu1 %1473 }
 0x559   : > { %2590 = vpow2.f32 %v1316_v1  ;;  %v1484_v4 = vsub.f32 %v1468_v36, %v1474_v48 }
 0x55a   : > { %v1314_v5 = vmul.f32 1.442695, %v1309_v3 }
 0x55b   : > { %v1488_v7 = vmul.f32 1.442695, %v1484_v4  ;;  %v1307_v8 = vpop.xlane.xlu0 %1306 }
 0x55c   : > { %2592 = vpow2.f32 %v1314_v5  ;;  %v1311_v9 = vsub.f32 %v1295_v39, %v1307_v8  ;;  %v1480_v11 = vpop.xlane.xlu1 %1479 }
 0x55d   : > { %2594 = vpow2.f32 %v1488_v7  ;;  %v1486_v12 = vsub.f32 %v1470_v41, %v1480_v11 }
 0x55e   : > { %v1318_v17 = vmul.f32 1.442695, %v1311_v9 }
 0x55f   : > { %v3481_v18 = vpop.eup %2588  ;;  %v1492_v25 = vmul.f32 1.442695, %v1486_v12  ;;  %v1477_v26 = vpop.xlane.xlu0 %1476 }
 0x560   : > { %2596 = vpow2.f32 %v1318_v17  ;;  %v1485_v28 = vsub.f32 %v1469_v45, %v1477_v26  ;;  %v1320_v10 = vsel %vm941_vm1, %v3481_v18, 0.0 }
 0x561   : > { %2598 = vpow2.f32 %v1492_v25  ;;  %1321 = vadd.xlane.f32.xlu1 %v1320_v10 }
 0x562   : > { %v1490_v31 = vmul.f32 1.442695, %v1485_v28  ;;  %2600 = vpow2.f32 %v1139_v19 }
 0x563   : > { %v3487_v27 = vpop.eup %2590  ;;  %v1483_v33 = vpop.xlane.xlu0 %1482 }
 0x564   : > { %2602 = vpow2.f32 %v1490_v31  ;;  %v1326_v13 = vsel %vm941_vm1, %v3487_v27, 0.0  ;;  %v1487_v36 = vsub.f32 %v3475_v49, %v1483_v33 }
 0x565   : > { %1327 = vadd.xlane.f32.xlu1 %v1326_v13  ;;  %2604 = vpow2.f32 %v1141_v30 }
 0x566   : > { %v3491_v34 = vpop.eup %2592  ;;  %2606 = vpow2.f32 %v1135_v32  ;;  %v1494_v40 = vmul.f32 1.442695, %v1487_v36 }
 0x567   : > { %v3494_v37 = vpop.eup %2594  ;;  %v1323_v22 = vsel %vm941_vm1, %v3491_v34, 0.0  ;;  %2608 = vpow2.f32 %v1137_v35 }
 0x568   : > { %1324 = vadd.xlane.f32.xlu0 %v1323_v22  ;;  %v1496_v38 = vsel %vm941_vm1, %v3494_v37, 0.0  ;;  %2610 = vpow2.f32 %v1494_v40 }
 0x569   : > { %1497 = vadd.xlane.f32.xlu1 %v1496_v38 }
 0x56a   : > { %v3500_v39 = vpop.eup %2596 }
 0x56b   : > { %v3502_v41 = vpop.eup %2598  ;;  %v1329_v42 = vsel %vm941_vm1, %v3500_v39, 0.0 }
 0x56c   : > { %1330 = vadd.xlane.f32.xlu0 %v1329_v42  ;;  %v1502_v43 = vsel %vm941_vm1, %v3502_v41, 0.0  ;;  %v2601_v45 = vpop.eup %2600 }
 0x56d   : > { %1503 = vadd.xlane.f32.xlu1 %v1502_v43  ;;  %v1149_v50 = vsel %vm941_vm1, %v2601_v45, 0.0 }
 0x56e   : > { %v3508_v46 = vpop.eup %2602 }
 0x56f   : > { %v1499_v47 = vsel %vm941_vm1, %v3508_v46, 0.0  ;;  %v2605_v49 = vpop.eup %2604 }
 0x570   : > { %1500 = vadd.xlane.f32.xlu0 %v1499_v47  ;;  %v2607_v51 = vpop.eup %2606  ;;  %v1152_v52 = vsel %vm941_vm1, %v2605_v49, 0.0 }
 0x571   : > { %1150 = vadd.xlane.f32.xlu1 %v1149_v50  ;;  %v2609_v53 = vpop.eup %2608  ;;  %v1143_v54 = vsel %vm941_vm1, %v2607_v51, 0.0 }
 0x572   : > { %v1146_v56 = vsel %vm941_vm1, %v2609_v53, 0.0  ;;  %v3516_v58 = vpop.eup %2610 }
 0x573   : > { %v1505_v60 = vsel %vm941_vm1, %v3516_v58, 0.0 }
 0x574   : > { %1153 = vadd.xlane.f32.xlu0 %v1152_v52 }
 0x575   : > { %1144 = vadd.xlane.f32.xlu1 %v1143_v54 }
 0x578   : > { %1147 = vadd.xlane.f32.xlu0 %v1146_v56  ;;  %v1642_v56 = vld [vmem:[%s3866_s7 + $0x20] sm:$0xff] }
 0x57c   : > { %1506 = vadd.xlane.f32.xlu0 %v1505_v60 }
 0x586   : > { %1166 = vrot.lane.b32.xlu1 %v3366_v44, %s2882_s21 }
 0x58a   : > { %1518 = vrot.lane.b32.xlu1 %v3366_v44, %s2884_s26 }
 0x592   : > { %1342 = vrot.lane.b32.xlu0 %v3366_v44, %s2883_s22 }
 0x5ee   : > { %v1322_v62 = vpop.xlane.xlu1 %1321 }
 0x5ef   : > { %2612 = vrcp.f32 %v1322_v62  ;;  %v1644_v62 = vld [vmem:[%s3866_s7 + $0x30] sm:$0xff] }
 0x5f2   : > { %v1328_v63 = vpop.xlane.xlu1 %1327 }
 0x5f5   : > { %v1325_v1 = vpop.xlane.xlu0 %1324 }
 0x5f6   : > { %v1498_v2 = vpop.xlane.xlu1 %1497  ;;  %2614 = vrcp.f32 %v1325_v1 }
 0x5f9   : > { %v1331_v3 = vpop.xlane.xlu0 %1330  ;;  %v2613_v11 = vpop.eup %2612 }
 0x5fa   : > { %v1504_v48 = vpop.xlane.xlu1 %1503  ;;  %v1336_v32 = vmul.f32 %v2613_v11, %v3481_v18 }
 0x5fd   : > { %v1501_v4 = vpop.xlane.xlu0 %1500 }
 0x5fe   : > { %v1151_v5 = vpop.xlane.xlu1 %1150 }
 0x600   : > { %v2615_v12 = vpop.eup %2614 }
 0x601   : > { %v1154_v6 = vpop.xlane.xlu0 %1153  ;;  %v1337_v29 = vmul.f32 %v2615_v12, %v3491_v34  ;;  %v1650_v12 = vld [vmem:[%s3866_s7 + $0x60] sm:$0xff] }
 0x602   : > { %v1145_v7 = vpop.xlane.xlu1 %1144  ;;  %2616 = vrcp.f32 %v1154_v6  ;;  %v1648_v6 = vld [vmem:[%s3866_s7 + $0x50] sm:$0xff] }
 0x603   : > { %2618 = vrcp.f32 %v1145_v7  ;;  %v1340_v35 = vpack.c.bf16 %v1337_v29, %v1336_v32  ;;  %v1649_v7 = vld [vmem:[%s3866_s7 + $0x58] sm:$0xff] }
 0x604   : > { %2620 = vrcp.f32 %v1151_v5 }
 0x605   : > { %v1148_v8 = vpop.xlane.xlu0 %1147 }
 0x606   : > { %2622 = vrcp.f32 %v1148_v8  ;;  %v1167_v9 = vpop.permute.xlu1 %1166 }
 0x607   : > { %2405 = vmatprep.subr.bf16.mxu1 %v1167_v9  ;;  %2624 = vrcp.f32 %v1331_v3  ;;  %v1647_v3 = vld [vmem:[%s3866_s7 + $0x48] sm:$0xff] }
 0x608   : > { %2406 = vmatpush3.bf16.msra.mxu1 %v1167_v9  ;;  %2626 = vrcp.f32 %v1501_v4  ;;  %v1661_v9 = vpack.c.bf16 %v1649_v7, %v1648_v6 }
 0x609   : > { %v1507_v44 = vpop.xlane.xlu0 %1506  ;;  %2628 = vrcp.f32 %v1328_v63  ;;  %v1645_v63 = vld [vmem:[%s3866_s7 + $0x38] sm:$0xff] }
 0x60a   : > { %2630 = vrcp.f32 %v1498_v2  ;;  %v1519_v38 = vpop.permute.xlu1 %1518  ;;  %v1659_v1 = vpack.c.bf16 %v1645_v63, %v1644_v62  ;;  %v1646_v2 = vld [vmem:[%s3866_s7 + $0x40] sm:$0xff] }
 0x60b   : > { %2632 = vrcp.f32 %v1507_v44 }
 0x60c   : > { %v2617_v14 = vpop.eup %2616  ;;  %2634 = vrcp.f32 %v1504_v48  ;;  %v1660_v48 = vpack.c.bf16 %v1647_v3, %v1646_v2 }
 0x60d   : > { %v1343_v17 = vpop.permute.xlu0 %1342  ;;  %v2619_v19 = vpop.eup %2618  ;;  %v1162_v26 = vmul.f32 %v2617_v14, %v2605_v49  ;;  %v1651_v14 = vld [vmem:[%s3866_s7 + $0x68] sm:$0xff] }
 0x60e   : > { %2417 = vmatprep.subr.bf16.mxu1 %v1343_v17  ;;  %v2621_v24 = vpop.eup %2620  ;;  %v1159_v28 = vmul.f32 %v2619_v19, %v2607_v51  ;;  %v1662_v19 = vpack.c.bf16 %v1651_v14, %v1650_v12  ;;  %v2652_v14 = vld [vmem:[%s3289_s1] sm:$0xff] }
 0x60f   : > { %v1161_v30 = vmul.f32 %v2621_v24, %v2601_v45 }
 0x610   : > { %v2623_v25 = vpop.eup %2622 }
 0x611   : > { %v1160_v10 = vmul.f32 %v2623_v25, %v2609_v53  ;;  %v1164_v33 = vpack.c.bf16 %v1162_v26, %v1161_v30  ;;  %v2625_v13 = vpop.eup %2624  ;;  %v1652_v26 = vld [vmem:[%s3866_s7 + $0x70] sm:$0xff] }
 0x612   : > { %v2627_v36 = vpop.eup %2626  ;;  %v1339_v40 = vmul.f32 %v2625_v13, %v3500_v39 }
 0x613   : > { %v1163_v31 = vpack.c.bf16 %v1160_v10, %v1159_v28  ;;  %v2629_v22 = vpop.eup %2628  ;;  %v1513_v18 = vmul.f32 %v2627_v36, %v3508_v46  ;;  %v1640_v46 = vld [vmem:[%s3866_s7 + $0x10] sm:$0xff]  ;;  %v1653_v28 = vld [vmem:[%s3866_s7 + $0x78] sm:$0xff] }
 0x614   : > { %v2631_v34 = vpop.eup %2630  ;;  %v1338_v42 = vmul.f32 %v2629_v22, %v3487_v27  ;;  %v1638_v27 = vld [vmem:[%s3866_s7] sm:$0xff]  ;;  %v1663_v29 = vpack.c.bf16 %v1653_v28, %v1652_v26 }
 0x615   : > { %2407 = vmatprep.mubr.msk.bf16.mxu1 %vm941_vm1, %v1163_v31  ;;  %v1512_v43 = vmul.f32 %v2631_v34, %v3494_v37  ;;  %v2633_v47 = vpop.eup %2632  ;;  %v1639_v37 = vld [vmem:[%s3866_s7 + $0x8] sm:$0xff] }
 0x616   : > { %2408 = vmatmul.mubr.msk.bf16.vlgmr.msra.gmra.mrb[16].mxu1 %vm941_vm1, %v1164_v33  ;;  %v1341_v45 = vpack.c.bf16 %v1339_v40, %v1338_v42  ;;  %v2635_v50 = vpop.eup %2634  ;;  %v1515_v51 = vmul.f32 %v2633_v47, %v3516_v58  ;;  %v1656_v53 = vpack.c.bf16 %v1639_v37, %v1638_v27  ;;  %v1643_v58 = vld [vmem:[%s3866_s7 + $0x28] sm:$0xff] }
 0x617   : > { %2418 = vmatpush3.bf16.msra.mxu1 %v1343_v17  ;;  %2419 = vmatprep.mubr.msk.bf16.mxu1 %vm941_vm1, %v1340_v35  ;;  %v1516_v49 = vpack.c.bf16 %v1513_v18, %v1512_v43  ;;  %v1514_v39 = vmul.f32 %v2635_v50, %v3502_v41  ;;  %v1641_v41 = vld [vmem:[%s3866_s7 + $0x18] sm:$0xff]  ;;  %v1658_v60 = vpack.c.bf16 %v1643_v58, %v1642_v56 }
 0x618   : > { %2429 = vmatprep.subr.bf16.mxu1 %v1519_v38  ;;  %v1657_v54 = vpack.c.bf16 %v1641_v41, %v1640_v46  ;;  %2435 = vmatprep.subr.bf16.mxu0 %v1656_v53 }
 0x619   : > { %v1517_v52 = vpack.c.bf16 %v1515_v51, %v1514_v39  ;;  %2436 = vmatpush3.bf16.msra.mxu0 %v1656_v53 }
 0x61a   : > { %2437 = vmatprep.subr.bf16.mxu0 %v1657_v54 }
 0x61d   : > { %2438 = vmatpush3.bf16.msra.mxu0 %v1657_v54 }
 0x61e   : > { %2420 = vmatmul.mubr.msk.bf16.vlgmr.msra.gmra.mrb[20].mxu1 %vm941_vm1, %v1341_v45  ;;  %2439 = vmatprep.subr.bf16.mxu0 %v1658_v60 }
 0x61f   : > { %2430 = vmatpush3.bf16.msra.mxu1 %v1519_v38  ;;  %2431 = vmatprep.mubr.msk.bf16.mxu1 %vm941_vm1, %v1516_v49 }
 0x621   : > { %2440 = vmatpush3.bf16.msra.mxu0 %v1658_v60 }
 0x622   : > { %2441 = vmatprep.subr.bf16.mxu0 %v1659_v1 }
 0x625   : > { %2442 = vmatpush3.bf16.msra.mxu0 %v1659_v1 }
 0x626   : > { %2432 = vmatmul.mubr.msk.bf16.vlgmr.msra.gmra.mrb[24].mxu1 %vm941_vm1, %v1517_v52  ;;  %2443 = vmatprep.subr.bf16.mxu0 %v1660_v48 }
 0x627   : > { %1885 = vmatprep.mubr.bf16.mxu1 %v2881_v0 }
 0x629   : > { %2444 = vmatpush3.bf16.msra.mxu0 %v1660_v48 }
 0x62a   : > { %2445 = vmatprep.subr.bf16.mxu0 %v1661_v9 }
 0x62d   : > { %2446 = vmatpush3.bf16.msra.mxu0 %v1661_v9 }
 0x62e   : > { %2447 = vmatprep.subr.bf16.mxu0 %v1662_v19 }
 0x631   : > { %2448 = vmatpush3.bf16.msra.mxu0 %v1662_v19  ;;  %v2653_v19 = vld [vmem:[%s3289_s1 + $0x8] sm:$0xff] }
 0x632   : > { %2449 = vmatprep.subr.bf16.mxu0 %v1663_v29 }
 0x635   : > { %2450 = vmatpush3.bf16.msra.mxu0 %v1663_v29  ;;  %v1794_v29 = vld [vmem:[%s3870_s11 + $0x18] sm:$0xff] }
 0x6e9   : > { %v2409_v4 = vpop.f32.mrb[16].mxu1 }
 0x6ea   : > { %v1209_v5 = vpop.f32.mrb[17].mxu1 }
 0x6eb   : > { %v2410_v8 = vpop.f32.mrb[18].mxu1 }
 0x6ec   : > { %v2542_v44 = vpack.i.bf16 %v2410_v8, %v2409_v4  ;;  %v1212_v11 = vpop.f32.mrb[19].mxu1 }
 0x6ed   : > { %v2547_v17 = vpack.i.bf16 %v1212_v11, %v1209_v5  ;;  %v2284_v5 = vld [vmem:[#allocation4] ss:$0 sm:$0xff] }
 0x6ee   : > { %2543 = vrot.lane.b32.xlu1 %v2542_v44, %s2884_s26 }
 0x6f1   : > { %v2421_v24 = vpop.f32.mrb[20].mxu1 }
 0x6f2   : > { %2548 = vrot.lane.b32.xlu1 %v2547_v17, %s2884_s26  ;;  %v1385_v25 = vpop.f32.mrb[21].mxu1 }
 0x6f3   : > { %v2422_v10 = vpop.f32.mrb[22].mxu1 }
 0x6f4   : > { %v2552_v30 = vpack.i.bf16 %v2422_v10, %v2421_v24  ;;  %v1388_v31 = vpop.f32.mrb[23].mxu1  ;;  %v1792_v10 = vld [vmem:[%s3870_s11 + $0x8] sm:$0xff] }
 0x6f5   : > { %v2557_v32 = vpack.i.bf16 %v1388_v31, %v1385_v25  ;;  %v1826_v31 = vpack.c.bf16 %v1794_v29, %v1792_v10  ;;  %v1819_v10 = vld [vmem:[%s3870_s11 + $0xe0] sm:$0xff] }
 0x6f6   : > { %2553 = vrot.lane.b32.xlu1 %v2552_v30, %s2883_s22  ;;  %v1791_v30 = vld [vmem:[%s3870_s11] sm:$0xff] }
 0x6f7   : > { %2558 = vrot.lane.b32.xlu0 %v2557_v32, %s2883_s22  ;;  %v1798_v32 = vld [vmem:[%s3870_s11 + $0x38] sm:$0xff]  ;;  %1853 = vmatprep.subr.bf16.mxu1 %v1826_v31 }
 0x6f9   : > { %v2433_v33 = vpop.f32.mrb[24].mxu1 }
 0x6fa   : > { %v1561_v13 = vpop.f32.mrb[25].mxu1 }
 0x6fb   : > { %v2434_v35 = vpop.f32.mrb[26].mxu1 }
 0x6fc   : > { %v2567_v36 = vpack.i.bf16 %v2434_v35, %v2433_v33  ;;  %v1564_v22 = vpop.f32.mrb[27].mxu1  ;;  %v1795_v35 = vld [vmem:[%s3870_s11 + $0x20] sm:$0xff] }
 0x6fd   : > { %v2562_v38 = vpack.i.bf16 %v1564_v22, %v1561_v13 }
 0x6fe   : > { %2568 = vrot.lane.b32.xlu1 %v2567_v36, %s2882_s21  ;;  %v1797_v36 = vld [vmem:[%s3870_s11 + $0x30] sm:$0xff] }
 0x6ff   : > { %2563 = vrot.lane.b32.xlu0 %v2562_v38, %s2882_s21  ;;  %v1827_v22 = vpack.c.bf16 %v1797_v36, %v1795_v35  ;;  %v1932_v35 = vld [vmem:[%s3872_s13 + $0x90] sm:$0xff]  ;;  %v1933_v36 = vld [vmem:[%s3872_s13 + $0x98] sm:$0xff] }
 0x760   : > { %v2544_v34 = vpop.permute.xlu1 %2543 }
 0x761   : > { %v2546_v42 = vunpack.i.h.bf16 %v2544_v34  ;;  %v2545_v43 = vunpack.i.l.bf16 %v2544_v34 }
 0x763   : > { %v1627_v27 = vsel %vm868_vm0, %v3436_v59, %v2546_v42  ;;  %v1626_v37 = vsel %vm868_vm0, %v3432_v55, %v2545_v43 }
 0x764   : > { %v2549_v40 = vpop.permute.xlu1 %2548 }
 0x765   : > { %v2551_v47 = vunpack.i.h.bf16 %v2549_v40  ;;  %v2550_v49 = vunpack.i.l.bf16 %v2549_v40 }
 0x767   : > { %v1625_v53 = vsel %vm868_vm0, %v3438_v61, %v2551_v47  ;;  %v1624_v41 = vsel %vm868_vm0, %v3434_v57, %v2550_v49 }
 0x768   : > { %v2554_v18 = vpop.permute.xlu1 %2553 }
 0x769   : > { %v2559_v45 = vpop.permute.xlu0 %2558  ;;  %v2556_v50 = vunpack.i.h.bf16 %v2554_v18  ;;  %v2555_v51 = vunpack.i.l.bf16 %v2554_v18 }
 0x76a   : > { %v2561_v39 = vunpack.i.h.bf16 %v2559_v45  ;;  %v2560_v52 = vunpack.i.l.bf16 %v2559_v45 }
 0x76b   : > { %v1632_v60 = vsel %vm1628_vm2, %v1627_v27, %v2556_v50  ;;  %v1631_v62 = vsel %vm1628_vm2, %v1626_v37, %v2555_v51 }
 0x76c   : > { %v1630_v1 = vsel %vm1628_vm2, %v1625_v53, %v2561_v39  ;;  %v1629_v55 = vsel %vm1628_vm2, %v1624_v41, %v2560_v52  ;;  %v1800_v53 = vld [vmem:[%s3870_s11 + $0x48] sm:$0xff]  ;;  %v1802_v41 = vld [vmem:[%s3870_s11 + $0x58] sm:$0xff] }
 0x770   : > { %v2569_v46 = vpop.permute.xlu1 %2568 }
 0x771   : > { %v2571_v54 = vunpack.i.h.bf16 %v2569_v46  ;;  %v2570_v56 = vunpack.i.l.bf16 %v2569_v46  ;;  %v2564_v58 = vpop.permute.xlu0 %2563 }
 0x772   : > { %v2566_v63 = vunpack.i.h.bf16 %v2564_v58  ;;  %v2565_v59 = vunpack.i.l.bf16 %v2564_v58  ;;  %v1801_v58 = vld [vmem:[%s3870_s11 + $0x50] sm:$0xff] }
 0x773   : > { %v1637_v2 = vsel %vm1633_vm3, %v1632_v60, %v2571_v54  ;;  %v1636_v61 = vsel %vm1633_vm3, %v1631_v62, %v2570_v56  ;;  %v1830_v54 = vpack.c.bf16 %v1802_v41, %v1800_v53  ;;  %v1799_v56 = vld [vmem:[%s3870_s11 + $0x40] sm:$0xff]  ;;  %v1804_v62 = vld [vmem:[%s3870_s11 + $0x68] sm:$0xff]  ;;  %v1920_v41 = vld [vmem:[%s3872_s13 + $0x30] sm:$0xff] }
 0x774   : > { %v1655_v3 = vpack.c.bf16 %v1637_v2, %v1636_v61  ;;  %v1634_v57 = vsel %vm1633_vm3, %v1629_v55, %v2565_v59  ;;  %v1635_v48 = vsel %vm1633_vm3, %v1630_v1, %v2566_v63  ;;  %v1829_v60 = vpack.c.bf16 %v1801_v58, %v1799_v56  ;;  %v1806_v63 = vld [vmem:[%s3870_s11 + $0x78] sm:$0xff]  ;;  %v1803_v1 = vld [vmem:[%s3870_s11 + $0x60] sm:$0xff]  ;;  %v1805_v55 = vld [vmem:[%s3870_s11 + $0x70] sm:$0xff] }
 0x775   : > { %v1654_v4 = vpack.c.bf16 %v1635_v48, %v1634_v57  ;;  %v1832_v59 = vpack.c.bf16 %v1806_v63, %v1804_v62  ;;  %v1831_v2 = vpack.c.bf16 %v1805_v55, %v1803_v1  ;;  %v1808_v61 = vld [vmem:[%s3870_s11 + $0x88] sm:$0xff]  ;;  %v1807_v48 = vld [vmem:[%s3870_s11 + $0x80] sm:$0xff]  ;;  %v1940_v1 = vld [vmem:[%s3872_s13 + $0xd0] sm:$0xff] }
 0x776   : > { %v1938_v56 = vld [vmem:[%s3872_s13 + $0xc0] sm:$0xff]  ;;  %v1939_v58 = vld [vmem:[%s3872_s13 + $0xc8] sm:$0xff]  ;;  %v1941_v55 = vld [vmem:[%s3872_s13 + $0xd8] sm:$0xff] }
 0x777   : > { %2451 = vmatprep.mubr.bf16.mxu0 %v1654_v4  ;;  %v1809_v4 = vld [vmem:[%s3870_s11 + $0x90] sm:$0xff]  ;;  %v1962_v62 = vpack.c.bf16 %v1939_v58, %v1938_v56  ;;  %v1922_v63 = vld [vmem:[%s3872_s13 + $0x40] sm:$0xff] }
 0x778   : > { %2452 = vmatmul.mubr.bf16.vlgmr.msra.gmra.mrb[12].mxu0 %v1655_v3  ;;  %v1810_v3 = vld [vmem:[%s3870_s11 + $0x98] sm:$0xff] }
 0x779   : > { %v1834_v57 = vpack.c.bf16 %v1810_v3, %v1808_v61  ;;  %v1963_v61 = vpack.c.bf16 %v1941_v55, %v1940_v1 }
 0x84b   : > { %v2453_v6 = vpop.f32.mrb[12].mxu0 }
 0x84c   : > { %v1705_v7 = vpop.f32.mrb[13].mxu0  ;;  %v1714_v11 = vadd.f32 %v2453_v6, %v2284_v5  ;;  %v1812_v6 = vld [vmem:[%s3870_s11 + $0xa8] sm:$0xff] }
 0x84d   : > { %v1706_v8 = vadd.f32 %v2284_v5, %v1705_v7  ;;  %v2454_v9 = vpop.f32.mrb[14].mxu0  ;;  %v1814_v7 = vld [vmem:[%s3870_s11 + $0xb8] sm:$0xff] }
 0x84e   : > { %v1708_v44 = vpop.f32.mrb[15].mxu0  ;;  %v1717_v25 = vadd.f32 %v2454_v9, %v2284_v5  ;;  %v1722_v26 = vadd.f32 %v1714_v11, %v3346_v15  ;;  %v1793_v15 = vld [vmem:[%s3870_s11 + $0x10] sm:$0xff]  ;;  %v1811_v9 = vld [vmem:[%s3870_s11 + $0xa0] sm:$0xff] }
 0x84f   : > { %v1709_v12 = vadd.f32 %v2284_v5, %v1708_v44  ;;  %v1720_v17 = vadd.f32 %v2652_v14, %v1706_v8  ;;  %v1825_v33 = vpack.c.bf16 %v1793_v15, %v1791_v30  ;;  %v1833_v5 = vpack.c.bf16 %v1809_v4, %v1807_v48  ;;  %v1813_v44 = vld [vmem:[%s3870_s11 + $0xb0] sm:$0xff]  ;;  %v1818_v14 = vld [vmem:[%s3870_s11 + $0xd8] sm:$0xff]  ;;  %v1930_v15 = vld [vmem:[%s3872_s13 + $0x80] sm:$0xff] }
 0x850   : > { %v1723_v28 = vadd.f32 %v1717_v25, %v3349_v16  ;;  %v1796_v16 = vld [vmem:[%s3870_s11 + $0x28] sm:$0xff]  ;;  %v1836_v8 = vpack.c.bf16 %v1814_v7, %v1812_v6  ;;  %v1835_v11 = vpack.c.bf16 %v1813_v44, %v1811_v9  ;;  %v1821_v30 = vld [vmem:[%s3870_s11 + $0xf0] sm:$0xff] }
 0x851   : > { %1726 = vadd.xlane.f32.xlu0 %v1720_v17  ;;  %v1721_v24 = vadd.f32 %v2653_v19, %v1709_v12  ;;  %v1828_v13 = vpack.c.bf16 %v1798_v32, %v1796_v16  ;;  %1854 = vmatpush1.bf16.msra.mxu1 %v1825_v33  ;;  %v1816_v12 = vld [vmem:[%s3870_s11 + $0xc8] sm:$0xff]  ;;  %v1815_v19 = vld [vmem:[%s3870_s11 + $0xc0] sm:$0xff]  ;;  %v1839_v31 = vpack.c.bf16 %v1821_v30, %v1819_v10 }
 0x852   : > { %v1931_v16 = vld [vmem:[%s3872_s13 + $0x88] sm:$0xff]  ;;  %v1914_v32 = vld [vmem:[%s3872_s13] sm:$0xff] }
 0x853   : > { %1728 = vadd.xlane.f32.xlu1 %v1721_v24  ;;  %1855 = vmatprep.subr.bf16.mxu1 %v1828_v13  ;;  %v1958_v33 = vpack.c.bf16 %v1931_v16, %v1930_v15  ;;  %v1915_v13 = vld [vmem:[%s3872_s13 + $0x8] sm:$0xff]  ;;  %v2286_v10 = vld [vmem:[#allocation7] ss:$0 sm:$0xff] }
 0x855   : > { %1730 = vadd.xlane.f32.xlu0 %v1722_v26  ;;  %1856 = vmatpush1.bf16.msra.mxu1 %v1827_v22  ;;  %v1950_v22 = vpack.c.bf16 %v1915_v13, %v1914_v32 }
 0x856   : > { %1857 = vmatprep.subr.bf16.mxu1 %v1830_v54  ;;  %2339 = vmatprep.subr.bf16.mxu0 %v1958_v33  ;;  %v1921_v54 = vld [vmem:[%s3872_s13 + $0x38] sm:$0xff] }
 0x857   : > { %2340 = vmatpush3.bf16.msra.mxu0 %v1950_v22 }
 0x859   : > { %1732 = vadd.xlane.f32.xlu0 %v1723_v28  ;;  %1858 = vmatpush1.bf16.msra.mxu1 %v1829_v60  ;;  %v1953_v60 = vpack.c.bf16 %v1921_v54, %v1920_v41 }
 0x85a   : > { %1859 = vmatprep.subr.bf16.mxu1 %v1832_v59  ;;  %v1923_v59 = vld [vmem:[%s3872_s13 + $0x48] sm:$0xff] }
 0x85d   : > { %1860 = vmatpush1.bf16.msra.mxu1 %v1831_v2  ;;  %v1954_v2 = vpack.c.bf16 %v1923_v59, %v1922_v63 }
 0x85e   : > { %1861 = vmatprep.subr.bf16.mxu1 %v1834_v57 }
 0x861   : > { %1862 = vmatpush1.bf16.msra.mxu1 %v1833_v5 }
 0x862   : > { %1863 = vmatprep.subr.bf16.mxu1 %v1836_v8 }
 0x865   : > { %1864 = vmatpush1.bf16.msra.mxu1 %v1835_v11 }
 0x8de   : > { %v1727_v38 = vpop.xlane.xlu0 %1726 }
 0x8df   : > { %v1735_v34 = vmul.f32 0.0078125, %v1727_v38  ;;  %v1959_v38 = vpack.c.bf16 %v1933_v36, %v1932_v35 }
 0x8e0   : > { %v1729_v40 = vpop.xlane.xlu1 %1728 }
 0x8e1   : > { %v3639_v18 = vsub.f32 %v1720_v17, %v1735_v34  ;;  %v1736_v42 = vmul.f32 0.0078125, %v1729_v40  ;;  %v1838_v17 = vpack.c.bf16 %v1818_v14, %v1816_v12  ;;  %v1916_v34 = vld [vmem:[%s3872_s13 + $0x10] sm:$0xff]  ;;  %v1917_v40 = vld [vmem:[%s3872_s13 + $0x18] sm:$0xff]  ;;  %2341 = vmatprep.subr.bf16.mxu0 %v1959_v38  ;;  %v1943_v38 = vld [vmem:[%s3872_s13 + $0xe8] sm:$0xff] }
 0x8e2   : > { %v1731_v43 = vpop.xlane.xlu0 %1730 }
 0x8e3   : > { %v3641_v45 = vsub.f32 %v1721_v24, %v1736_v42  ;;  %v1737_v47 = vmul.f32 0.0078125, %v1731_v43  ;;  %v1743_v49 = vmul.f32 %v3639_v18, %v3639_v18  ;;  %v1817_v24 = vld [vmem:[%s3870_s11 + $0xd0] sm:$0xff]  ;;  %1865 = vmatprep.subr.bf16.mxu1 %v1838_v17  ;;  %v1934_v42 = vld [vmem:[%s3872_s13 + $0xa0] sm:$0xff]  ;;  %v1935_v43 = vld [vmem:[%s3872_s13 + $0xa8] sm:$0xff] }
 0x8e4   : > { %v1837_v25 = vpack.c.bf16 %v1817_v24, %v1815_v19  ;;  %v2285_v17 = vld [vmem:[#allocation6] ss:$0 sm:$0xff] }
 0x8e5   : > { %v3645_v50 = vsub.f32 %v1722_v26, %v1737_v47  ;;  %1747 = vadd.xlane.f32.xlu0 %v1743_v49  ;;  %v1744_v51 = vmul.f32 %v3641_v45, %v3641_v45  ;;  %v1820_v26 = vld [vmem:[%s3870_s11 + $0xe8] sm:$0xff]  ;;  %v1951_v47 = vpack.c.bf16 %v1917_v40, %v1916_v34  ;;  %v1960_v49 = vpack.c.bf16 %v1935_v43, %v1934_v42  ;;  %v1926_v40 = vld [vmem:[%s3872_s13 + $0x60] sm:$0xff] }
 0x8e6   : > { %v1733_v39 = vpop.xlane.xlu0 %1732  ;;  %1866 = vmatpush1.bf16.msra.mxu1 %v1837_v25  ;;  %v1927_v42 = vld [vmem:[%s3872_s13 + $0x68] sm:$0xff] }
 0x8e7   : > { %v1738_v52 = vmul.f32 0.0078125, %v1733_v39  ;;  %1749 = vadd.xlane.f32.xlu1 %v1744_v51  ;;  %v1745_v27 = vmul.f32 %v3645_v50, %v3645_v50  ;;  %v1918_v51 = vld [vmem:[%s3872_s13 + $0x20] sm:$0xff]  ;;  %v1919_v39 = vld [vmem:[%s3872_s13 + $0x28] sm:$0xff]  ;;  %2342 = vmatpush3.bf16.msra.mxu0 %v1951_v47  ;;  %v1956_v43 = vpack.c.bf16 %v1927_v42, %v1926_v40  ;;  %v1944_v47 = vld [vmem:[%s3872_s13 + $0xf0] sm:$0xff] }
 0x8e8   : > { %2343 = vmatprep.subr.bf16.mxu0 %v1960_v49  ;;  %v1945_v49 = vld [vmem:[%s3872_s13 + $0xf8] sm:$0xff] }
 0x8e9   : > { %v3651_v37 = vsub.f32 %v1723_v28, %v1738_v52  ;;  %1751 = vadd.xlane.f32.xlu0 %v1745_v27  ;;  %v1822_v28 = vld [vmem:[%s3870_s11 + $0xf8] sm:$0xff]  ;;  %v1936_v52 = vld [vmem:[%s3872_s13 + $0xb0] sm:$0xff] }
 0x8ea   : > { %v1840_v29 = vpack.c.bf16 %v1822_v28, %v1820_v26  ;;  %v1937_v27 = vld [vmem:[%s3872_s13 + $0xb8] sm:$0xff] }
 0x8eb   : > { %v1746_v46 = vmul.f32 %v3651_v37, %v3651_v37  ;;  %v1961_v53 = vpack.c.bf16 %v1937_v27, %v1936_v52  ;;  %v1929_v52 = vld [vmem:[%s3872_s13 + $0x78] sm:$0xff] }
 0x8ec   : > { %1867 = vmatprep.subr.bf16.mxu1 %v1840_v29 }
 0x8ed   : > { %1753 = vadd.xlane.f32.xlu1 %v1746_v46  ;;  %1868 = vmatpush1.bf16.msra.mxu1 %v1839_v31  ;;  %v1952_v46 = vpack.c.bf16 %v1919_v39, %v1918_v51  ;;  %v1965_v51 = vpack.c.bf16 %v1945_v49, %v1944_v47  ;;  %v1928_v39 = vld [vmem:[%s3872_s13 + $0x70] sm:$0xff] }
 0x8ee   : > { %v1957_v27 = vpack.c.bf16 %v1929_v52, %v1928_v39 }
 0x8ef   : > { %2344 = vmatpush3.bf16.msra.mxu0 %v1952_v46  ;;  %v1841_v46 = vld [vmem:[%s3899_s17] sm:$0x3] }
 0x8f0   : > { %2345 = vmatprep.subr.bf16.mxu0 %v1961_v53  ;;  %v1846_v53 = vrot.slane %v1841_v46, %v814_v21  ;;  %v1850_v41 = vrot.slane %v1841_v46, %v818_v23 }
 0x8f3   : > { %2346 = vmatpush3.bf16.msra.mxu0 %v1953_v60 }
 0x8f4   : > { %2347 = vmatprep.subr.bf16.mxu0 %v1962_v62 }
 0x8f7   : > { %2348 = vmatpush3.bf16.msra.mxu0 %v1954_v2 }
 0x8f8   : > { %2349 = vmatprep.subr.bf16.mxu0 %v1963_v61 }
 0x972   : > { %v1748_v3 = vpop.xlane.xlu0 %1747 }
 0x973   : > { %v1755_v57 = vmul.f32 0.0078125, %v1748_v3 }
 0x974   : > { %v1750_v48 = vpop.xlane.xlu1 %1749 }
 0x975   : > { %v1759_v4 = vadd.f32 1e-05, %v1755_v57  ;;  %v1756_v5 = vmul.f32 0.0078125, %v1750_v48 }
 0x976   : > { %v1752_v6 = vpop.xlane.xlu0 %1751 }
 0x977   : > { %2636 = vrsqrt.f32 %v1759_v4  ;;  %v1760_v7 = vadd.f32 1e-05, %v1756_v5  ;;  %v1757_v8 = vmul.f32 0.0078125, %v1752_v6 }
 0x979   : > { %2638 = vrsqrt.f32 %v1760_v7  ;;  %v1761_v9 = vadd.f32 1e-05, %v1757_v8 }
 0x97a   : > { %v1754_v44 = vpop.xlane.xlu1 %1753 }
 0x97b   : > { %2640 = vrsqrt.f32 %v1761_v9  ;;  %v1758_v11 = vmul.f32 0.0078125, %v1754_v44 }
 0x97d   : > { %v1762_v12 = vadd.f32 1e-05, %v1758_v11 }
 0x97f   : > { %2642 = vrsqrt.f32 %v1762_v12 }
 0x981   : > { %v2637_v14 = vpop.eup %2636 }
 0x982   : > { %v1767_v19 = vmul.f32 %v2637_v14, %v3639_v18 }
 0x983   : > { %v2639_v24 = vpop.eup %2638 }
 0x984   : > { %v1768_v25 = vmul.f32 %v2639_v24, %v3641_v45  ;;  %v1777_v26 = vmul.f32 %v2285_v17, %v1767_v19  ;;  %v2287_v24 = vld [vmem:[#allocation9] ss:$0 sm:$0xff] }
 0x985   : > { %v2641_v28 = vpop.eup %2640 }
 0x986   : > { %v1778_v29 = vmul.f32 %v2285_v17, %v1768_v25  ;;  %v3795_v30 = vadd.f32 %v2286_v10, %v1777_v26  ;;  %v1769_v15 = vmul.f32 %v2641_v28, %v3645_v50  ;;  %v1924_v50 = vld [vmem:[%s3872_s13 + $0x50] sm:$0xff] }
 0x988   : > { %v3797_v31 = vadd.f32 %v2286_v10, %v1778_v29  ;;  %v1779_v18 = vmul.f32 %v2285_v17, %v1769_v15 }
 0x989   : > { %v2643_v16 = vpop.eup %2642 }
 0x98a   : > { %v1823_v32 = vpack.c.bf16 %v3797_v31, %v3795_v30  ;;  %v1770_v33 = vmul.f32 %v2643_v16, %v3651_v37  ;;  %v3806_v35 = vadd.f32 %v2286_v10, %v1779_v18  ;;  %v1925_v37 = vld [vmem:[%s3872_s13 + $0x58] sm:$0xff] }
 0x98b   : > { %v1955_v22 = vpack.c.bf16 %v1925_v37, %v1924_v50 }
 0x98c   : > { %1886 = vmatmul.mubr.bf16.vlgmr.msra.gmra.mrb[28].mxu1 %v1823_v32  ;;  %v1780_v13 = vmul.f32 %v2285_v17, %v1770_v33 }
 0x98d   : > { %1895 = vmatprep.mubr.bf16.mxu1 %v2881_v0  ;;  %2350 = vmatpush3.bf16.msra.mxu0 %v1955_v22  ;;  %v1942_v0 = vld [vmem:[%s3872_s13 + $0xe0] sm:$0xff] }
 0x98e   : > { %v3804_v45 = vadd.f32 %v2286_v10, %v1780_v13  ;;  %v1964_v34 = vpack.c.bf16 %v1943_v38, %v1942_v0 }
 0x990   : > { %v1824_v36 = vpack.c.bf16 %v3804_v45, %v3806_v35  ;;  %2351 = vmatprep.subr.bf16.mxu0 %v1964_v34 }
 0x991   : > { %2352 = vmatpush3.bf16.msra.mxu0 %v1956_v43 }
 0x992   : > { %2353 = vmatprep.subr.bf16.mxu0 %v1965_v51 }
 0x994   : > { %1896 = vmatmul.mubr.bf16.gmra.mrb[32].mxu1 %v1824_v36 }
 0x995   : > { %2354 = vmatpush3.bf16.msra.mxu0 %v1957_v27 }
 0xa5f   : > { %v1887_v54 = vpop.f32.mrb[28].mxu1 }
 0xa60   : > { %v1888_v56 = vadd.f32 %v1887_v54, %v1846_v53  ;;  %v1889_v58 = vpop.f32.mrb[29].mxu1 }
 0xa61   : > { %v1890_v60 = vadd.f32 %v1889_v58, %v1850_v41  ;;  %v1891_v62 = vpop.f32.mrb[30].mxu1 }
 0xa62   : > { %v1892_v63 = vadd.f32 %v1891_v62, %v1846_v53  ;;  %v1893_v59 = vpop.f32.mrb[31].mxu1  ;;  %v1906_v55 = vmax.f32 %v1888_v56, 0.0 }
 0xa63   : > { %v1894_v1 = vadd.f32 %v1893_v59, %v1850_v41  ;;  %v1907_v61 = vmax.f32 %v1890_v60, 0.0 }
 0xa64   : > { %v1908_v2 = vmax.f32 %v1892_v63, 0.0 }
 0xa65   : > { %v1909_v3 = vmax.f32 %v1894_v1, 0.0 }
 0xa66   : > { %v1946_v57 = vpack.c.bf16 %v1908_v2, %v1906_v55 }
 0xa67   : > { %v1947_v48 = vpack.c.bf16 %v1909_v3, %v1907_v61  ;;  %v1897_v4 = vpop.f32.mrb[32].mxu1 }
 0xa68   : > { %v1898_v5 = vadd.f32 %v1897_v4, %v1846_v53  ;;  %v1899_v21 = vpop.f32.mrb[33].mxu1  ;;  %v2288_v4 = vld [vmem:[#allocation10] ss:$0 sm:$0xff] }
 0xa69   : > { %v1900_v6 = vadd.f32 %v1899_v21, %v1850_v41  ;;  %v1901_v20 = vpop.f32.mrb[34].mxu1  ;;  %2005 = vmatprep.mubr.bf16.mxu0 %v1947_v48 }
 0xa6a   : > { %v1902_v23 = vadd.f32 %v1901_v20, %v1846_v53  ;;  %v1903_v7 = vpop.f32.mrb[35].mxu1  ;;  %2006 = vmatmul.mubr.bf16.vlgmr.msra.gmra.mrb[16].mxu0 %v1946_v57  ;;  %v1910_v9 = vmax.f32 %v1898_v5, 0.0 }
 0xa6b   : > { %v1904_v8 = vadd.f32 %v1903_v7, %v1850_v41  ;;  %v1911_v11 = vmax.f32 %v1900_v6, 0.0  ;;  %v2289_v6 = vld [vmem:[#allocation12] ss:$0 sm:$0xff] }
 0xa6c   : > { %v1912_v44 = vmax.f32 %v1902_v23, 0.0 }
 0xa6d   : > { %v1913_v12 = vmax.f32 %v1904_v8, 0.0 }
 0xa6e   : > { %v1948_v14 = vpack.c.bf16 %v1912_v44, %v1910_v9 }
 0xa6f   : > { %v1949_v17 = vpack.c.bf16 %v1913_v12, %v1911_v11 }
 0xa71   : > { %2013 = vmatprep.mubr.bf16.mxu0 %v1949_v17 }
 0xa72   : > { %2014 = vmatmul.mubr.bf16.gmra.mrb[20].mxu0 %v1948_v14 }
 0xb3d   : > { %v2355_v19 = vpop.f32.mrb[16].mxu0 }
 0xb3e   : > { %v2356_v25 = vpop.f32.mrb[17].mxu0 }
 0xb3f   : > { %v2357_v26 = vadd.f32 %v2356_v25, %v2355_v19  ;;  %v2358_v28 = vpop.f32.mrb[18].mxu0 }
 0xb40   : > { %v2359_v10 = vpop.f32.mrb[19].mxu0 }
 0xb41   : > { %v2008_v29 = vadd.f32 %v2357_v26, %v2287_v24  ;;  %v2360_v15 = vadd.f32 %v2359_v10, %v2358_v28 }
 0xb43   : > { %v2011_v16 = vadd.f32 %v2360_v15, %v2287_v24  ;;  %v2022_v32 = vadd.f32 %v2008_v29, %v3795_v30 }
 0xb45   : > { %2028 = vadd.xlane.f32.xlu0 %v2022_v32  ;;  %v2361_v33 = vpop.f32.mrb[20].mxu0  ;;  %v2023_v18 = vadd.f32 %v2011_v16, %v3797_v31 }
 0xb46   : > { %v2362_v13 = vpop.f32.mrb[21].mxu0 }
 0xb47   : > { %v2363_v36 = vadd.f32 %v2362_v13, %v2361_v33  ;;  %2030 = vadd.xlane.f32.xlu1 %v2023_v18  ;;  %v2364_v50 = vpop.f32.mrb[22].mxu0 }
 0xb48   : > { %v2365_v37 = vpop.f32.mrb[23].mxu0 }
 0xb49   : > { %v2016_v22 = vadd.f32 %v2363_v36, %v2287_v24  ;;  %v2366_v0 = vadd.f32 %v2365_v37, %v2364_v50 }
 0xb4b   : > { %v2019_v38 = vadd.f32 %v2366_v0, %v2287_v24  ;;  %v2024_v34 = vadd.f32 %v2016_v22, %v3806_v35 }
 0xb4d   : > { %2032 = vadd.xlane.f32.xlu0 %v2024_v34  ;;  %v2025_v40 = vadd.f32 %v2019_v38, %v3804_v45 }
 0xb4f   : > { %2034 = vadd.xlane.f32.xlu1 %v2025_v40 }
 0xbd2   : > { %v2029_v42 = vpop.xlane.xlu0 %2028 }
 0xbd3   : > { %v2036_v30 = vmul.f32 0.0078125, %v2029_v42 }
 0xbd4   : > { %v2031_v43 = vpop.xlane.xlu1 %2030 }
 0xbd5   : > { %v2040_v47 = vsub.f32 %v2022_v32, %v2036_v30  ;;  %v2037_v49 = vmul.f32 0.0078125, %v2031_v43 }
 0xbd7   : > { %v2041_v31 = vsub.f32 %v2023_v18, %v2037_v49  ;;  %v2044_v51 = vmul.f32 %v2040_v47, %v2040_v47 }
 0xbd9   : > { %2048 = vadd.xlane.f32.xlu0 %v2044_v51  ;;  %v2045_v39 = vmul.f32 %v2041_v31, %v2041_v31 }
 0xbda   : > { %v2033_v52 = vpop.xlane.xlu0 %2032 }
 0xbdb   : > { %v2038_v27 = vmul.f32 0.0078125, %v2033_v52  ;;  %2050 = vadd.xlane.f32.xlu1 %v2045_v39 }
 0xbdc   : > { %v2035_v46 = vpop.xlane.xlu1 %2034 }
 0xbdd   : > { %v2042_v53 = vsub.f32 %v2024_v34, %v2038_v27  ;;  %v2039_v41 = vmul.f32 0.0078125, %v2035_v46 }
 0xbdf   : > { %v2043_v35 = vsub.f32 %v2025_v40, %v2039_v41  ;;  %v2046_v54 = vmul.f32 %v2042_v53, %v2042_v53 }
 0xbe1   : > { %2052 = vadd.xlane.f32.xlu0 %v2046_v54  ;;  %v2047_v45 = vmul.f32 %v2043_v35, %v2043_v35 }
 0xbe3   : > { %2054 = vadd.xlane.f32.xlu1 %v2047_v45 }
 0xc66   : > { %v2049_v56 = vpop.xlane.xlu0 %2048 }
 0xc67   : > { %v2056_v58 = vmul.f32 0.0078125, %v2049_v56 }
 0xc68   : > { %v2051_v60 = vpop.xlane.xlu1 %2050 }
 0xc69   : > { %v2060_v62 = vadd.f32 1e-05, %v2056_v58  ;;  %v2057_v63 = vmul.f32 0.0078125, %v2051_v60 }
 0xc6b   : > { %2644 = vrsqrt.f32 %v2060_v62  ;;  %v2061_v59 = vadd.f32 1e-05, %v2057_v63 }
 0xc6d   : > { %2646 = vrsqrt.f32 %v2061_v59 }
 0xc6e   : > { %v2053_v1 = vpop.xlane.xlu0 %2052 }
 0xc6f   : > { %v2058_v55 = vmul.f32 0.0078125, %v2053_v1 }
 0xc70   : > { %v2055_v2 = vpop.xlane.xlu1 %2054 }
 0xc71   : > { %v2062_v61 = vadd.f32 1e-05, %v2058_v55  ;;  %v2059_v3 = vmul.f32 0.0078125, %v2055_v2 }
 0xc73   : > { %2648 = vrsqrt.f32 %v2062_v61  ;;  %v2063_v57 = vadd.f32 1e-05, %v2059_v3 }
 0xc75   : > { %v2645_v48 = vpop.eup %2644  ;;  %2650 = vrsqrt.f32 %v2063_v57 }
 0xc76   : > { %v2068_v5 = vmul.f32 %v2645_v48, %v2040_v47 }
 0xc77   : > { %v2647_v21 = vpop.eup %2646 }
 0xc78   : > { %v2078_v20 = vmul.f32 %v2288_v4, %v2068_v5  ;;  %v2069_v23 = vmul.f32 %v2647_v21, %v2041_v31 }
 0xc7a   : > { %v2088_v7 = vadd.f32 %v2289_v6, %v2078_v20  ;;  %v2079_v8 = vmul.f32 %v2288_v4, %v2069_v23 }
 0xc7c   : > { %2092 = vst [vmem:[%s670_s30] sm:$0xff] %v2088_v7  ;;  %v2089_v9 = vadd.f32 %v2289_v6, %v2079_v8 }
 0xc7d   : > { %v2649_v44 = vpop.eup %2648 }
 0xc7e   : > { %2093 = vst [vmem:[%s670_s30 + $0x8] sm:$0xff] %v2089_v9  ;;  %v2070_v11 = vmul.f32 %v2649_v44, %v2042_v53 }
 0xc7f   : > { %v2651_v12 = vpop.eup %2650 }
 0xc80   : > { %v2080_v14 = vmul.f32 %v2288_v4, %v2070_v11  ;;  %v2071_v17 = vmul.f32 %v2651_v12, %v2043_v35 }
 0xc82   : > { %v2090_v19 = vadd.f32 %v2289_v6, %v2080_v14  ;;  %v2081_v24 = vmul.f32 %v2288_v4, %v2071_v17 }
 0xc84   : > { %2094 = vst [vmem:[%s670_s30 + $0x10] sm:$0xff] %v2090_v19  ;;  %v2091_v25 = vadd.f32 %v2289_v6, %v2081_v24 }
 0xc86   : > { %2095 = vst [vmem:[%s670_s30 + $0x18] sm:$0xff] %v2091_v25 }
 0xc87 PF: > { %s3901_s27 = sld [smem:[#allocation17_spill]] }
 0xc8d   : > { %s31_s24 = sadd.s32 1, %s3901_s27  }
 0xc8e   : > { %p28_p11 = scmp.ge.s32.totalorder %s31_s24, 4  }
 0xc90   :  { %30 = sbr.rel (!%p28_p11) target bundleno = 9 (0x9), region = 153 }
 0xc97   :  { %2117 = vsyncpa [#allocation3], 1 }
 0xc98   :  { %2119 = vsyncpa [#allocation3 + $0x1], 1 }
 0xc99   :  { %2120 = vsyncpa [#allocation5], 1 }
 0xc9a   :  { %2121 = vsyncpa [#allocation8], 1 }
 0xc9b   :  { %2122 = vsyncpa [#allocation11], 1 }

// kernel: forward.7
= control target key start
LH: loop header
LB: loop body
LE: loop exit
PB: predicated region body
PF: predicated region fallthrough
CT: control target
= control target key end

     0   :  { %s3439_s0 = inlined_call_operand.vmem [shape: f32[2,16,128], index: 0, kind: input, shape index: {}]   ;;  %s3440_s1 = inlined_call_operand.vmem [shape: f32[2,32,128], index: 1, kind: input, shape index: {}]   ;;  %s3441_s2 = inlined_call_operand.vmem [shape: f32[2,1,32], index: 2, kind: input, shape index: {}]   ;;  %s3442_s3 = inlined_call_operand.vmem [shape: f32[128,128], index: 3, kind: input, shape index: {}]   ;;  %s3443_s4 = inlined_call_operand.hbm [shape: f32[1,128], index: 4, kind: input, shape index: {}]   ;;  %s3444_s5 = inlined_call_operand.vmem [shape: f32[128,256], index: 5, kind: input, shape index: {}]   ;;  %s3445_s6 = inlined_call_operand.vmem [shape: f32[1,256], index: 6, kind: input, shape index: {}]   ;;  %s3446_s7 = inlined_call_operand.vmem [shape: f32[128,128], index: 7, kind: input, shape index: {}]   ;;  %s3447_s8 = inlined_call_operand.hbm [shape: f32[1,128], index: 8, kind: input, shape index: {}]   ;;  %s3448_s9 = inlined_call_operand.hbm [shape: f32[1,128], index: 9, kind: input, shape index: {}]   ;;  %s3449_s10 = inlined_call_operand.hbm [shape: f32[1,128], index: 10, kind: input, shape index: {}]   ;;  %s3450_s11 = inlined_call_operand.vmem [shape: f32[128,256], index: 11, kind: input, shape index: {}]   ;;  %s3451_s12 = inlined_call_operand.vmem [shape: f32[1,256], index: 12, kind: input, shape index: {}]   ;;  %s3452_s13 = inlined_call_operand.vmem [shape: f32[256,128], index: 13, kind: input, shape index: {}]   ;;  %s3453_s14 = inlined_call_operand.hbm [shape: f32[1,128], index: 14, kind: input, shape index: {}]   ;;  %s3454_s15 = inlined_call_operand.hbm [shape: f32[1,128], index: 15, kind: input, shape index: {}]   ;;  %s3455_s16 = inlined_call_operand.hbm [shape: f32[1,128], index: 16, kind: input, shape index: {}]   ;;  %s3456_s17 = inlined_call_operand.vmem [shape: f32[2,16,128], index: 17, kind: output, shape index: {}]  }
   0x1   :  { %3460 = sst [smem:[#allocation18_spill]] %s3439_s0 }
   0x2   :  { %3461 = sst [smem:[#allocation19_spill]] %s3440_s1 }
   0x3   :  { %3462 = sst [smem:[#allocation20_spill]] %s3451_s12 }
   0x4   :  { %3463 = sst [smem:[#allocation21_spill]] %s3456_s17 }
   0x5   :  { %22 = vsyncpa [#allocation3], 0 }
   0x6   :  { %23 = vsyncpa [#allocation5], 0 }
   0x7   :  { %24 = vsyncpa [#allocation8], 0 }
   0x8   :  { %25 = vsyncpa [#allocation11], 0  ;;  %s2624_s24 = smov 0  }
   0x9 LB: > { %3464 = sst [smem:[#allocation17_spill]] %s2519_s24  ;;  %s2521_s25 = smov [#allocation4]   ;;  %s2519_s24 = sphi %s2624_s24, %s31_s24  }
   0xa   : > { %s470_s26 = sshll.u32 %s2521_s25, 4  ;;  %s2630_s27 = sadd.s32 4294967295, %s2519_s24   ;;  %s2635_s26 = int_to_ptr.vmem [resolvable:$true] %s470_s26 }
   0xb   : > { %p1949_p0 = scmp.ge.s32.totalorder %s2519_s24, 1  ;;  %p434_p1 = scmp.lt.s32.totalorder %s2519_s24, 3 }
   0xc   : > { %p3458_p2 = scmp.eq.s32.totalorder %s2630_s27, 0  ;;  %s2522_s29 = smov [#allocation7]  }
   0xd   : > { %p2637_p3 = pnand %p1949_p0, %p434_p1  ;;  %s492_s0 = sshll.u32 %s2522_s29, 4  ;;  %s2643_s0 = int_to_ptr.vmem [resolvable:$true] %s492_s0 }
   0xe   : > { %s2523_s30 = smov [#allocation10]   ;;  %s2524_s1 = smov [#allocation2]  }
   0xf   : > { %s3465_s28 = scalar_select %p2637_p3, 1, 0 }
  0x10   : > { %p2189_p4 = pneg %p2637_p3  ;;  %s523_s18 = sshll.u32 %s2523_s30, 4  ;;  %s2651_s18 = int_to_ptr.vmem [resolvable:$true] %s523_s18 }
  0x11   : > { %s450_s20 = sshll.u32 %s2524_s1, 4  ;;  %s2301_s23 = scalar_lea.hbm %s3447_s8, 16  ;;  %s2653_s20 = int_to_ptr.vmem [resolvable:$true] %s450_s20 }
  0x12   : > { %p2647_p5 = pnand %p3458_p2, %p2189_p4  ;;  %p2302_p6 = scmp.ne.s32.totalorder %s3447_s8, %s2301_s23 }
  0x13   : > { %p2308_p10 = scmp.lt.u32.totalorder %s2301_s23, %s3447_s8 }
  0x14   : > { %p2663_p7 = pneg %p2647_p5 }
  0x16   : > { %p2304_p8 = pnand %p2663_p7, %p2302_p6 }
  0x18   : > { %p2305_p9 = pneg %p2304_p8 }
  0x1a   : > { %p2310_p11 = pnand %p2308_p10, %p2305_p9 }
  0x1c   : > { %2313 = shalt.err (!%p2310_p11)
}
  0x1d   : > { %s2314_s21 = scalar_lea.vmem %s2635_s26, 16  ;;  %s2321_s22 = scalar_lea.vmem %s2635_s26, 32 }
  0x1e   : > { %p2315_p12 = scmp.ne.s32.totalorder %s2635_s26, %s2314_s21  ;;  %p2322_p1 = scmp.lt.s32.totalorder %s2635_s26, %s2635_s26 }
  0x1f   : > { %p2323_p4 = scmp.lt.s32.totalorder %s2321_s22, %s2314_s21 }
  0x20   : > { %p2317_p13 = pnand %p2315_p12, %p2663_p7 }
  0x21   : > { %p2324_p6 = por %p2323_p4, %p2322_p1 }
  0x22   : > { %p2318_p0 = pneg %p2317_p13 }
  0x24   : > { %p2325_p8 = pnand %p2324_p6, %p2318_p0 }
  0x26   : > { %2328 = shalt.err (!%p2325_p8)
}
  0x27   : > { %2195 = dma.hbm_to_vmem [thread:$0]  (!%p2647_p5), %s3447_s8, 16, %s2635_s26, [#allocation5]  }
  0x28   : > { %s2329_s1 = scalar_lea.hbm %s3449_s10, 16 }
  0x29   : > { %p2330_p9 = scmp.ne.s32.totalorder %s3449_s10, %s2329_s1  ;;  %p2336_p12 = scmp.lt.u32.totalorder %s2329_s1, %s3449_s10 }
  0x2b   : > { %p2332_p10 = pnand %p2330_p9, %p2663_p7 }
  0x2d   : > { %p2333_p11 = pneg %p2332_p10 }
  0x2f   : > { %p2338_p13 = pnand %p2336_p12, %p2333_p11 }
  0x31   : > { %2341 = shalt.err (!%p2338_p13)
}
  0x32   : > { %s2342_s26 = scalar_lea.vmem %s2643_s0, 16  ;;  %s2349_s12 = scalar_lea.vmem %s2643_s0, 32 }
  0x33   : > { %p2343_p0 = scmp.ne.s32.totalorder %s2643_s0, %s2342_s26  ;;  %p2350_p6 = scmp.lt.s32.totalorder %s2643_s0, %s2643_s0 }
  0x34   : > { %p2351_p8 = scmp.lt.s32.totalorder %s2349_s12, %s2342_s26 }
  0x35   : > { %p2345_p1 = pnand %p2343_p0, %p2663_p7 }
  0x36   : > { %p2352_p9 = por %p2351_p8, %p2350_p6 }
  0x37   : > { %p2346_p4 = pneg %p2345_p1 }
  0x39   : > { %p2353_p10 = pnand %p2352_p9, %p2346_p4 }
  0x3b   : > { %2356 = shalt.err (!%p2353_p10)
}
  0x3c   : > { %2201 = dma.hbm_to_vmem [thread:$0]  (!%p2647_p5), %s3449_s10, 16, %s2643_s0, [#allocation8]  }
  0x3d   : > { %s2357_s29 = scalar_lea.hbm %s3454_s15, 16 }
  0x3e   : > { %p2358_p11 = scmp.ne.s32.totalorder %s3454_s15, %s2357_s29  ;;  %p2364_p0 = scmp.lt.u32.totalorder %s2357_s29, %s3454_s15 }
  0x40   : > { %p2360_p12 = pnand %p2358_p11, %p2663_p7 }
  0x42   : > { %p2361_p13 = pneg %p2360_p12 }
  0x44   : > { %p2366_p1 = pnand %p2364_p0, %p2361_p13 }
  0x46   : > { %2369 = shalt.err (!%p2366_p1)
}
  0x47   : > { %s2370_s0 = scalar_lea.vmem %s2651_s18, 16  ;;  %s2377_s12 = scalar_lea.vmem %s2651_s18, 32 }
  0x48   : > { %p2371_p4 = scmp.ne.s32.totalorder %s2651_s18, %s2370_s0  ;;  %p2378_p9 = scmp.lt.s32.totalorder %s2651_s18, %s2651_s18 }
  0x49   : > { %p2379_p10 = scmp.lt.s32.totalorder %s2377_s12, %s2370_s0 }
  0x4a   : > { %p2373_p6 = pnand %p2371_p4, %p2663_p7 }
  0x4b   : > { %p2380_p11 = por %p2379_p10, %p2378_p9 }
  0x4c   : > { %p2374_p8 = pneg %p2373_p6 }
  0x4e   : > { %p2381_p12 = pnand %p2380_p11, %p2374_p8 }
  0x50   : > { %2384 = shalt.err (!%p2381_p12)
}
  0x51   : > { %2207 = dma.hbm_to_vmem [thread:$0]  (!%p2647_p5), %s3454_s15, 16, %s2651_s18, [#allocation11]  }
  0x52   : > { %s2385_s29 = scalar_lea.hbm %s3443_s4, 16 }
  0x53   : > { %p2386_p13 = scmp.ne.s32.totalorder %s3443_s4, %s2385_s29  ;;  %p2392_p4 = scmp.lt.u32.totalorder %s2385_s29, %s3443_s4 }
  0x55   : > { %p2388_p0 = pnand %p2386_p13, %p2663_p7 }
  0x57   : > { %p2389_p1 = pneg %p2388_p0 }
  0x59   : > { %p2394_p6 = pnand %p2392_p4, %p2389_p1 }
  0x5b   : > { %2397 = shalt.err (!%p2394_p6)
}
  0x5c   : > { %s2398_s18 = scalar_lea.vmem %s2653_s20, 16  ;;  %s2405_s0 = scalar_lea.vmem %s2653_s20, 32 }
  0x5d   : > { %p2399_p8 = scmp.ne.s32.totalorder %s2653_s20, %s2398_s18  ;;  %p2406_p11 = scmp.lt.s32.totalorder %s2653_s20, %s2653_s20 }
  0x5e   : > { %p2407_p12 = scmp.lt.s32.totalorder %s2405_s0, %s2398_s18 }
  0x5f   : > { %p2401_p9 = pnand %p2399_p8, %p2663_p7 }
  0x60   : > { %p2408_p13 = por %p2407_p12, %p2406_p11 }
  0x61   : > { %p2402_p10 = pneg %p2401_p9 }
  0x63   : > { %p2409_p0 = pnand %p2408_p13, %p2402_p10 }
  0x65   : > { %2412 = shalt.err (!%p2409_p0)
}
  0x66   : > { %2192 = dma.hbm_to_vmem [thread:$0]  (!%p2647_p5), %s3443_s4, 16, %s2653_s20, [#allocation3]  }
  0x67   : > { %s2525_s24 = smov [#allocation6]   ;;  %s2526_s25 = smov [#allocation9]  }
  0x68   : > { %s481_s23 = sshll.u32 %s2525_s24, 4  ;;  %s512_s29 = sshll.u32 %s2526_s25, 4  ;;  %s482_s23 = int_to_ptr.vmem [resolvable:$true] %s481_s23  ;;  %s513_s29 = int_to_ptr.vmem [resolvable:$true] %s512_s29 }
  0x69   : > { %s2413_s22 = scalar_lea.hbm %s3448_s9, 16 }
  0x6a   : > { %p2414_p1 = scmp.ne.s32.totalorder %s3448_s9, %s2413_s22  ;;  %p2420_p8 = scmp.lt.u32.totalorder %s2413_s22, %s3448_s9 }
  0x6c   : > { %p2416_p4 = pnand %p2414_p1, %p2663_p7 }
  0x6e   : > { %p2417_p6 = pneg %p2416_p4 }
  0x70   : > { %p2422_p9 = pnand %p2420_p8, %p2417_p6 }
  0x72   : > { %2425 = shalt.err (!%p2422_p9)
}
  0x73   : > { %s2426_s20 = scalar_lea.vmem %s482_s23, 16  ;;  %s2433_s17 = scalar_lea.vmem %s482_s23, 32 }
  0x74   : > { %p2427_p10 = scmp.ne.s32.totalorder %s482_s23, %s2426_s20  ;;  %p2434_p13 = scmp.lt.s32.totalorder %s482_s23, %s482_s23 }
  0x75   : > { %p2435_p0 = scmp.lt.s32.totalorder %s2433_s17, %s2426_s20 }
  0x76   : > { %p2429_p11 = pnand %p2427_p10, %p2663_p7 }
  0x77   : > { %p2436_p2 = por %p2435_p0, %p2434_p13 }
  0x78   : > { %p2430_p12 = pneg %p2429_p11 }
  0x7a   : > { %p2437_p3 = pnand %p2436_p2, %p2430_p12 }
  0x7c   : > { %2440 = shalt.err (!%p2437_p3)
}
  0x7d   : > { %2198 = dma.hbm_to_vmem [thread:$0]  (!%p2647_p5), %s3448_s9, 16, %s482_s23, [#allocation5]  }
  0x7e   : > { %s2441_s22 = scalar_lea.hbm %s3453_s14, 16 }
  0x7f   : > { %p2442_p1 = scmp.ne.s32.totalorder %s3453_s14, %s2441_s22  ;;  %p2448_p3 = scmp.lt.u32.totalorder %s2441_s22, %s3453_s14 }
  0x81   : > { %p2444_p4 = pnand %p2442_p1, %p2663_p7 }
  0x83   : > { %p2445_p2 = pneg %p2444_p4 }
  0x85   : > { %p2450_p6 = pnand %p2448_p3, %p2445_p2 }
  0x87   : > { %2453 = shalt.err (!%p2450_p6)
}
  0x88   : > { %s2454_s20 = scalar_lea.vmem %s513_s29, 16  ;;  %s2461_s23 = scalar_lea.vmem %s513_s29, 32 }
  0x89   : > { %p2455_p8 = scmp.ne.s32.totalorder %s513_s29, %s2454_s20  ;;  %p2462_p11 = scmp.lt.s32.totalorder %s513_s29, %s513_s29 }
  0x8a   : > { %p2463_p12 = scmp.lt.s32.totalorder %s2461_s23, %s2454_s20 }
  0x8b   : > { %p2457_p9 = pnand %p2455_p8, %p2663_p7 }
  0x8c   : > { %p2464_p13 = por %p2463_p12, %p2462_p11 }
  0x8d   : > { %p2458_p10 = pneg %p2457_p9 }
  0x8f   : > { %p2465_p0 = pnand %p2464_p13, %p2458_p10 }
  0x91   : > { %2468 = shalt.err (!%p2465_p0)
}
  0x92   : > { %2204 = dma.hbm_to_vmem [thread:$0]  (!%p2647_p5), %s3453_s14, 16, %s513_s29, [#allocation8]  }
  0x93   : > { %s2527_s25 = smov [#allocation12]   ;;  %s2469_s26 = scalar_lea.hbm %s3455_s16, 16 }
  0x94   : > { %s534_s1 = sshll.u32 %s2527_s25, 4  ;;  %p2470_p1 = scmp.ne.s32.totalorder %s3455_s16, %s2469_s26  ;;  %s535_s1 = int_to_ptr.vmem [resolvable:$true] %s534_s1 }
  0x95   : > { %p2476_p3 = scmp.lt.u32.totalorder %s2469_s26, %s3455_s16 }
  0x96   : > { %p2472_p4 = pnand %p2470_p1, %p2663_p7 }
  0x98   : > { %p2473_p2 = pneg %p2472_p4 }
  0x9a   : > { %p2478_p6 = pnand %p2476_p3, %p2473_p2 }
  0x9c   : > { %2481 = shalt.err (!%p2478_p6)
}
  0x9d   : > { %s2482_s29 = scalar_lea.vmem %s535_s1, 16  ;;  %s2489_s23 = scalar_lea.vmem %s535_s1, 32 }
  0x9e   : > { %p2483_p8 = scmp.ne.s32.totalorder %s535_s1, %s2482_s29  ;;  %p2490_p11 = scmp.lt.s32.totalorder %s535_s1, %s535_s1 }
  0x9f   : > { %p2491_p12 = scmp.lt.s32.totalorder %s2489_s23, %s2482_s29 }
  0xa0   : > { %p2485_p9 = pnand %p2483_p8, %p2663_p7 }
  0xa1   : > { %p2492_p13 = por %p2491_p12, %p2490_p11 }
  0xa2   : > { %p2486_p10 = pneg %p2485_p9 }
  0xa4   : > { %p2493_p0 = pnand %p2492_p13, %p2486_p10 }
  0xa6   : > { %2496 = shalt.err (!%p2493_p0)
}
  0xa7   : > { %2210 = dma.hbm_to_vmem [thread:$0]  (!%p2647_p5), %s3455_s16, 16, %s535_s1, [#allocation11]  }
  0xa8   : > { %p3468_p1 = scmp.ne.s32.totalorder %s3465_s28, 0 }
  0xa9   : > { %p3469_p4 = scmp.eq.s32.totalorder (!%p3468_p1), %s2630_s27, 0 }
  0xaa   : > { %569 = sbr.rel (%p3468_p1) target bundleno = 4273 (0x10b1), region = 88 }
  0xb1   : > { %2502 = dma.done.wait (%p3469_p4), [#allocation3], 16   ;;  %p3470_p7 = pmov %p3469_p4 }
  0xb2   : > { %p3471_p2 = pmov %p3469_p4 }
  0xb3   : > { %2504 = vsyncadd (%p3470_p7), [#allocation3], 4294967280 }
  0xb4   : > { %2506 = dma.done.wait (%p3471_p2), [#allocation5], 32   ;;  %p3472_p3 = pmov %p3471_p2 }
  0xb5   : > { %p3473_p6 = pmov %p3471_p2 }
  0xb6   : > { %2508 = vsyncadd (%p3472_p3), [#allocation5], 4294967264 }
  0xb7   : > { %2510 = dma.done.wait (%p3473_p6), [#allocation8], 32   ;;  %p3474_p5 = pmov %p3471_p2 }
  0xb8   : > { %p3475_p8 = pmov %p3471_p2 }
  0xb9   : > { %2512 = vsyncadd (%p3474_p5), [#allocation8], 4294967264 }
  0xba   : > { %2514 = dma.done.wait (%p3475_p8), [#allocation11], 32   ;;  %p3476_p9 = pmov %p3471_p2 }
  0xbb   : > { %v2528_v0 = vmov 0.0   ;;  %v2529_v1 = vmov 0   ;;  %vm2530_vm0 = vmmov 0   ;;  %v753_v2 = vld [vmem:[%s3444_s5 + $0x8] sm:$0xff]  ;;  %v755_v3 = vld [vmem:[%s3444_s5 + $0x18] sm:$0xff]  ;;  %v752_v4 = vld [vmem:[%s3444_s5] sm:$0xff] }
  0xbc   : > { %2516 = vsyncadd (%p3476_p9), [#allocation11], 4294967264  ;;  %2057 = vmatprep.subr.bf16.mxu0 %v2528_v0  ;;  %846 = vmatprep.mubr.bf16.mxu1 %v2529_v1  ;;  %v787_v5 = vpack.c.bf16 %v755_v3, %v753_v2  ;;  %v754_v6 = vld [vmem:[%s3444_s5 + $0x10] sm:$0xff]  ;;  %v757_v7 = vld [vmem:[%s3444_s5 + $0x28] sm:$0xff]  ;;  %p653_p10 = scmp.lt.s32.totalorder %s2630_s27, 1  ;;  %s3477_s20 = sld [smem:[#allocation19_spill]] }
  0xbd   : > { %2073 = vmatprep.mubr.msk.bf16.mxu0 %vm2530_vm0, %v2528_v0  ;;  %v759_v8 = vld [vmem:[%s3444_s5 + $0x38] sm:$0xff]  ;;  %v786_v9 = vpack.c.bf16 %v754_v6, %v752_v4  ;;  %v756_v11 = vld [vmem:[%s3444_s5 + $0x20] sm:$0xff]  ;;  %v758_v12 = vld [vmem:[%s3444_s5 + $0x30] sm:$0xff]  ;;  %s3478_s18 = sld [smem:[#allocation18_spill]]  ;;  %vm870_vm1 = vcmask 261120   ;;  %s2531_s24 = smov 96  }
  0xbe   : > { %v789_v10 = vpack.c.bf16 %v759_v8, %v757_v7  ;;  %v761_v13 = vld [vmem:[%s3444_s5 + $0x48] sm:$0xff]  ;;  %814 = vmatprep.subr.bf16.mxu1 %v787_v5  ;;  %v763_v14 = vld [vmem:[%s3444_s5 + $0x58] sm:$0xff]  ;;  %v788_v15 = vpack.c.bf16 %v758_v12, %v756_v11  ;;  %v760_v16 = vld [vmem:[%s3444_s5 + $0x40] sm:$0xff]  ;;  %s3483_s27 = smov (!%p653_p10, %s2630_s27), 1  ;;  %s2532_s28 = smov 64   ;;  %vm1430_vm2 = vcmask 523264  }
  0xbf   : > { %815 = vmatpush1.bf16.msra.mxu1 %v786_v9  ;;  %v791_v17 = vpack.c.bf16 %v763_v14, %v761_v13  ;;  %v762_v18 = vld [vmem:[%s3444_s5 + $0x50] sm:$0xff]  ;;  %v679_v19 = vld [vmem:[%s3442_s3] sm:$0xff]  ;;  %v680_v20 = vld [vmem:[%s3442_s3 + $0x8] sm:$0xff]  ;;  %s1991_s1 = sshll.u32 %s3483_s27, 5  ;;  %s1990_s19 = sshll.u32 %s3483_s27, 4  ;;  %vm1433_vm3 = vcmask 785408  }
  0xc0   : > { %816 = vmatprep.subr.bf16.mxu1 %v789_v10  ;;  %v765_v21 = vld [vmem:[%s3444_s5 + $0x68] sm:$0xff]  ;;  %v767_v22 = vld [vmem:[%s3444_s5 + $0x78] sm:$0xff]  ;;  %v696_v23 = vpack.c.bf16 %v680_v20, %v679_v19  ;;  %v681_v24 = vld [vmem:[%s3442_s3 + $0x10] sm:$0xff]  ;;  %v790_v26 = vpack.c.bf16 %v762_v18, %v760_v16  ;;  %s665_s17 = scalar_lea.vmem %s3441_s2, %s3483_s27  ;;  %s2533_s30 = smov 32  }
  0xc1   : > { %v682_v25 = vld [vmem:[%s3442_s3 + $0x18] sm:$0xff]  ;;  %v764_v27 = vld [vmem:[%s3444_s5 + $0x60] sm:$0xff]  ;;  %v793_v29 = vpack.c.bf16 %v767_v22, %v765_v21  ;;  %v766_v30 = vld [vmem:[%s3444_s5 + $0x70] sm:$0xff]  ;;  %v804_v21 = vlaneseq  ;;  %s3480_s21 = sld [smem:[#allocation21_spill]] }
  0xc2   : > { %2058 = vmatpush3.bf16.msra.mxu0 %v696_v23  ;;  %v697_v28 = vpack.c.bf16 %v682_v25, %v681_v24  ;;  %v683_v31 = vld [vmem:[%s3442_s3 + $0x20] sm:$0xff]  ;;  %v684_v32 = vld [vmem:[%s3442_s3 + $0x28] sm:$0xff]  ;;  %v771_v34 = vld [vmem:[%s3444_s5 + $0x98] sm:$0xff]  ;;  %v792_v35 = vpack.c.bf16 %v766_v30, %v764_v27  ;;  %s662_s29 = scalar_lea.vmem %s3477_s20, %s1991_s1 }
  0xc3   : > { %817 = vmatpush1.bf16.msra.mxu1 %v788_v15  ;;  %2059 = vmatprep.subr.bf16.mxu0 %v2528_v0  ;;  %v769_v33 = vld [vmem:[%s3444_s5 + $0x88] sm:$0xff]  ;;  %v768_v36 = vld [vmem:[%s3444_s5 + $0x80] sm:$0xff]  ;;  %v698_v37 = vpack.c.bf16 %v684_v32, %v683_v31  ;;  %v770_v39 = vld [vmem:[%s3444_s5 + $0x90] sm:$0xff]  ;;  %s657_s0 = scalar_lea.vmem %s3478_s18, %s1990_s19  ;;  %v3013_v22 = vshrl.u32 %v804_v21, 7 }
  0xc4   : > { %818 = vmatprep.subr.bf16.mxu1 %v791_v17  ;;  %v795_v38 = vpack.c.bf16 %v771_v34, %v769_v33  ;;  %v685_v40 = vld [vmem:[%s3442_s3 + $0x30] sm:$0xff]  ;;  %v686_v41 = vld [vmem:[%s3442_s3 + $0x38] sm:$0xff]  ;;  %v773_v42 = vld [vmem:[%s3444_s5 + $0xa8] sm:$0xff]  ;;  %v794_v44 = vpack.c.bf16 %v770_v39, %v768_v36 }
  0xc5   : > { %v775_v43 = vld [vmem:[%s3444_s5 + $0xb8] sm:$0xff]  ;;  %v772_v45 = vld [vmem:[%s3444_s5 + $0xa0] sm:$0xff]  ;;  %v699_v46 = vpack.c.bf16 %v686_v41, %v685_v40  ;;  %v774_v48 = vld [vmem:[%s3444_s5 + $0xb0] sm:$0xff]  ;;  %v806_v23 = vsub.s32 0, %v3013_v22  ;;  %v810_v25 = vsub.s32 1, %v3013_v22 }
  0xc6   : > { %2060 = vmatpush3.bf16.msra.mxu0 %v697_v28  ;;  %v797_v47 = vpack.c.bf16 %v775_v43, %v773_v42  ;;  %v687_v49 = vld [vmem:[%s3442_s3 + $0x40] sm:$0xff]  ;;  %v688_v50 = vld [vmem:[%s3442_s3 + $0x48] sm:$0xff]  ;;  %v779_v52 = vld [vmem:[%s3444_s5 + $0xd8] sm:$0xff]  ;;  %v796_v53 = vpack.c.bf16 %v774_v48, %v772_v45 }
  0xc7   : > { %819 = vmatpush1.bf16.msra.mxu1 %v790_v26  ;;  %2061 = vmatprep.subr.bf16.mxu0 %v2528_v0  ;;  %v777_v51 = vld [vmem:[%s3444_s5 + $0xc8] sm:$0xff]  ;;  %v776_v54 = vld [vmem:[%s3444_s5 + $0xc0] sm:$0xff]  ;;  %v700_v55 = vpack.c.bf16 %v688_v50, %v687_v49  ;;  %v778_v57 = vld [vmem:[%s3444_s5 + $0xd0] sm:$0xff]  ;;  %s670_s22 = scalar_lea.vmem %s3480_s21, %s1990_s19 }
  0xc8   : > { %820 = vmatprep.subr.bf16.mxu1 %v793_v29  ;;  %v799_v56 = vpack.c.bf16 %v779_v52, %v777_v51  ;;  %v689_v58 = vld [vmem:[%s3442_s3 + $0x50] sm:$0xff]  ;;  %v690_v59 = vld [vmem:[%s3442_s3 + $0x58] sm:$0xff]  ;;  %v781_v60 = vld [vmem:[%s3444_s5 + $0xe8] sm:$0xff]  ;;  %v798_v62 = vpack.c.bf16 %v778_v57, %v776_v54 }
  0xc9   : > { %v783_v61 = vld [vmem:[%s3444_s5 + $0xf8] sm:$0xff]  ;;  %v780_v63 = vld [vmem:[%s3444_s5 + $0xe0] sm:$0xff]  ;;  %v701_v2 = vpack.c.bf16 %v690_v59, %v689_v58  ;;  %v782_v4 = vld [vmem:[%s3444_s5 + $0xf0] sm:$0xff] }
  0xca   : > { %2062 = vmatpush3.bf16.msra.mxu0 %v698_v37  ;;  %v801_v3 = vpack.c.bf16 %v783_v61, %v781_v60  ;;  %v691_v5 = vld [vmem:[%s3442_s3 + $0x60] sm:$0xff]  ;;  %v692_v6 = vld [vmem:[%s3442_s3 + $0x68] sm:$0xff]  ;;  %v800_v7 = vpack.c.bf16 %v782_v4, %v780_v63  ;;  %v693_v11 = vld [vmem:[%s3442_s3 + $0x70] sm:$0xff] }
  0xcb   : > { %821 = vmatpush1.bf16.msra.mxu1 %v792_v35  ;;  %2063 = vmatprep.subr.bf16.mxu0 %v2528_v0  ;;  %v674_v8 = vld [vmem:[%s662_s29] sm:$0xff]  ;;  %v675_v9 = vld [vmem:[%s662_s29 + $0x8] sm:$0xff]  ;;  %v702_v10 = vpack.c.bf16 %v692_v6, %v691_v5  ;;  %v694_v12 = vld [vmem:[%s3442_s3 + $0x78] sm:$0xff] }
  0xcc   : > { %822 = vmatprep.subr.bf16.mxu1 %v795_v38  ;;  %v784_v13 = vpack.c.bf16 %v675_v9, %v674_v8  ;;  %v703_v14 = vpack.c.bf16 %v694_v12, %v693_v11  ;;  %v2999_v15 = vld [vmem:[%s657_s0] sm:$0xff]  ;;  %v3001_v16 = vld [vmem:[%s657_s0 + $0x8] sm:$0xff]  ;;  %v676_v18 = vld [vmem:[%s662_s29 + $0x10] sm:$0xff] }
  0xcd   : > { %v695_v17 = vpack.c.bf16 %v3001_v16, %v2999_v15  ;;  %v677_v19 = vld [vmem:[%s662_s29 + $0x18] sm:$0xff]  ;;  %v802_v24 = vld [vmem:[%s3445_s6] sm:$0x3] }
  0xce   : > { %2064 = vmatpush3.bf16.msra.mxu0 %v699_v46  ;;  %v785_v20 = vpack.c.bf16 %v677_v19, %v676_v18  ;;  %v807_v26 = vrot.slane %v802_v24, %v806_v23  ;;  %v811_v28 = vrot.slane %v802_v24, %v810_v25  ;;  %v1972_v31 = vld [vmem:[#allocation2] ss:$0 sm:$0xff] }
  0xcf   : > { %823 = vmatpush1.bf16.msra.mxu1 %v794_v44  ;;  %2065 = vmatprep.subr.bf16.mxu0 %v2528_v0  ;;  %v3052_v59 = vld [vmem:[%s665_s17] ss:$0 sm:$0xff] }
  0xd0   : > { %824 = vmatprep.subr.bf16.mxu1 %v797_v47 }
  0xd2   : > { %2066 = vmatpush3.bf16.msra.mxu0 %v700_v55 }
  0xd3   : > { %825 = vmatpush1.bf16.msra.mxu1 %v796_v53  ;;  %2067 = vmatprep.subr.bf16.mxu0 %v2528_v0 }
  0xd4   : > { %826 = vmatprep.subr.bf16.mxu1 %v799_v56 }
  0xd6   : > { %2068 = vmatpush3.bf16.msra.mxu0 %v701_v2 }
  0xd7   : > { %827 = vmatpush1.bf16.msra.mxu1 %v798_v62  ;;  %2069 = vmatprep.subr.bf16.mxu0 %v2528_v0 }
  0xd8   : > { %828 = vmatprep.subr.bf16.mxu1 %v801_v3 }
  0xda   : > { %2070 = vmatpush3.bf16.msra.mxu0 %v702_v10 }
  0xdb   : > { %829 = vmatpush1.bf16.msra.mxu1 %v800_v7  ;;  %2071 = vmatprep.subr.bf16.mxu0 %v2528_v0 }
  0xdc   : > { %2101 = vmatprep.subr.bf16.mxu1 %v2528_v0 }
  0xde   : > { %847 = vmatmul.mubr.bf16.vlgmr.msra.gmra.mrb[0].mxu1 %v784_v13  ;;  %2072 = vmatpush3.bf16.msra.mxu0 %v703_v14 }
  0xdf   : > { %856 = vmatprep.mubr.bf16.mxu1 %v2529_v1  ;;  %2077 = vmatprep.subr.bf16.mxu0 %v2528_v0 }
  0xe1   : > { %2074 = vmatmul.mubr.bf16.vlgmr.msra.gmra.mrb[0].mxu0 %v695_v17 }
  0xe2   : > { %2081 = vmatprep.mubr.msk.bf16.mxu0 %vm2530_vm0, %v2528_v0 }
  0xe6   : > { %857 = vmatmul.mubr.bf16.gmra.mrb[4].mxu1 %v785_v20 }
  0xe7   : > { %2105 = vmatprep.mubr.msk.bf16.mxu1 %vm2530_vm0, %v2528_v0 }
 0x1b1   : > { %v848_v27 = vpop.f32.mrb[0].mxu1 }
 0x1b2   : > { %v850_v29 = vpop.f32.mrb[1].mxu1  ;;  %v849_v32 = vadd.f32 %v848_v27, %v807_v26 }
 0x1b3   : > { %v852_v30 = vpop.f32.mrb[2].mxu1  ;;  %v851_v35 = vadd.f32 %v850_v29, %v811_v28 }
 0x1b4   : > { %v853_v33 = vadd.f32 %v852_v30, %v807_v26  ;;  %v854_v34 = vpop.f32.mrb[3].mxu1  ;;  %v745_v37 = vpop.f32.mrb[0].mxu0 }
 0x1b5   : > { %v855_v36 = vadd.f32 %v854_v34, %v811_v28  ;;  %v746_v39 = vadd.f32 %v1972_v31, %v745_v37  ;;  %v2075_v40 = vpop.f32.mrb[1].mxu0 }
 0x1b6   : > { %v3024_v38 = vpack.c.bf16 %v853_v33, %v849_v32  ;;  %v748_v42 = vpop.f32.mrb[2].mxu0 }
 0x1b7   : > { %v3026_v41 = vpack.c.bf16 %v855_v36, %v851_v35  ;;  %v749_v44 = vadd.f32 %v1972_v31, %v748_v42  ;;  %v2076_v45 = vpop.f32.mrb[3].mxu0 }
 0x1b8   : > { %v875_v43 = vsel %vm870_vm1, %v3024_v38, 0 }
 0x1b9   : > { %v858_v46 = vpop.f32.mrb[4].mxu1  ;;  %2078 = vmatpush3.bf16.xpose.msra.mxu0 %v875_v43  ;;  %v3030_v48 = vpack.c.bf16 %v749_v44, %v746_v39 }
 0x1ba   : > { %v860_v47 = vpop.f32.mrb[5].mxu1  ;;  %2079 = vmatprep.subr.bf16.mxu0 %v2528_v0  ;;  %v859_v50 = vadd.f32 %v858_v46, %v807_v26 }
 0x1bb   : > { %v862_v49 = vpop.f32.mrb[6].mxu1  ;;  %v861_v53 = vadd.f32 %v860_v47, %v811_v28 }
 0x1bc   : > { %v863_v51 = vadd.f32 %v862_v49, %v807_v26  ;;  %v864_v52 = vpop.f32.mrb[7].mxu1 }
 0x1bd   : > { %v865_v54 = vadd.f32 %v864_v52, %v811_v28 }
 0x1be   : > { %v3033_v55 = vpack.c.bf16 %v863_v51, %v859_v50 }
 0x1bf   : > { %v3035_v56 = vpack.c.bf16 %v865_v54, %v861_v53 }
 0x1c0   : > { %v878_v57 = vsel %vm870_vm1, %v3033_v55, 0 }
 0x1c1   : > { %2080 = vmatpush3.bf16.xpose.msra.mxu0 %v878_v57 }
 0x1c2   : > { %2085 = vmatprep.subr.bf16.mxu0 %v2528_v0 }
 0x1c8   : > { %2082 = vmatmul.mubr.msk.bf16.vlgmr.msra.gmra.mrb[4].mxu0 %vm870_vm1, %v3030_v48 }
 0x1c9   : > { %2086 = vmatpush3.bf16.msra.mxu0 %v3026_v41  ;;  %2089 = vmatprep.mubr.msk.bf16.mxu0 %vm2530_vm0, %v2528_v0 }
 0x1ca   : > { %2087 = vmatprep.subr.bf16.mxu0 %v2528_v0 }
 0x1cd   : > { %2088 = vmatpush3.bf16.msra.mxu0 %v3035_v56 }
 0x1ce   : > { %2093 = vmatprep.subr.bf16.mxu0 %v2528_v0 }
 0x29b   : > { %v914_v58 = vpop.f32.mrb[4].mxu0 }
 0x29c   : > { %v921_v60 = vmul.f32 0.17677669, %v914_v58  ;;  %v2083_v61 = vpop.f32.mrb[5].mxu0 }
 0x29d   : > { %v917_v62 = vpop.f32.mrb[6].mxu0 }
 0x29e   : > { %v922_v63 = vmul.f32 0.17677669, %v917_v62  ;;  %v2084_v2 = vpop.f32.mrb[7].mxu0  ;;  %v929_v3 = vadd.f32 %v3052_v59, %v921_v60 }
 0x2a0   : > { %v931_v4 = vsel %vm870_vm1, %v929_v3, -inf  ;;  %v930_v5 = vadd.f32 %v3052_v59, %v922_v63 }
 0x2a1   : > { %932 = vmax.xlane.f32.xlu0 %v931_v4 }
 0x2a2   : > { %v934_v6 = vsel %vm870_vm1, %v930_v5, -inf }
 0x2a5   : > { %935 = vmax.xlane.f32.xlu0 %v934_v6 }
 0x2bb   : > { %1005 = vrot.lane.b32.xlu0 %v3024_v38, %s2531_s24 }
 0x32e   : > { %v933_v7 = vpop.xlane.xlu0 %932 }
 0x32f   : > { %v937_v8 = vsub.f32 %v929_v3, %v933_v7 }
 0x331   : > { %v939_v9 = vmul.f32 1.442695, %v937_v8 }
 0x332   : > { %v936_v10 = vpop.xlane.xlu0 %935 }
 0x333   : > { %2261 = vpow2.f32 %v939_v9  ;;  %v938_v11 = vsub.f32 %v930_v5, %v936_v10 }
 0x335   : > { %v941_v12 = vmul.f32 1.442695, %v938_v11 }
 0x336   : > { %v1006_v28 = vpop.permute.xlu0 %1005 }
 0x337   : > { %2263 = vpow2.f32 %v941_v12  ;;  %v1013_v30 = vsel %vm870_vm1, %v1006_v28, 0 }
 0x33d   : > { %v2262_v13 = vpop.eup %2261 }
 0x33e   : > { %v943_v14 = vsel %vm870_vm1, %v2262_v13, 0.0 }
 0x33f   : > { %944 = vadd.xlane.f32.xlu1 %v943_v14 }
 0x341   : > { %v2264_v17 = vpop.eup %2263 }
 0x342   : > { %v946_v18 = vsel %vm870_vm1, %v2264_v17, 0.0 }
 0x343   : > { %947 = vadd.xlane.f32.xlu1 %v946_v18 }
 0x354   : > { %1007 = vrot.lane.b32.xlu1 %v3033_v55, %s2531_s24 }
 0x358   : > { %1001 = vrot.lane.b32.xlu1 %v3030_v48, %s2531_s24 }
 0x3cc   : > { %v945_v19 = vpop.xlane.xlu1 %944 }
 0x3cd   : > { %2265 = vrcp.f32 %v945_v19 }
 0x3d0   : > { %v948_v20 = vpop.xlane.xlu1 %947 }
 0x3d1   : > { %2267 = vrcp.f32 %v948_v20 }
 0x3d4   : > { %v1008_v31 = vpop.permute.xlu1 %1007 }
 0x3d5   : > { %v1016_v32 = vsel %vm870_vm1, %v1008_v31, 0 }
 0x3d7   : > { %v2266_v21 = vpop.eup %2265 }
 0x3d8   : > { %v951_v26 = vmul.f32 %v2266_v21, %v2262_v13  ;;  %v1002_v33 = vpop.permute.xlu1 %1001 }
 0x3db   : > { %v2268_v24 = vpop.eup %2267 }
 0x3dc   : > { %v952_v27 = vmul.f32 %v2268_v24, %v2264_v17 }
 0x3de   : > { %v953_v29 = vpack.c.bf16 %v952_v27, %v951_v26 }
 0x3e0   : > { %2090 = vmatmul.mubr.msk.bf16.vlgmr.msra.gmra.mrb[8].mxu0 %vm870_vm1, %v953_v29 }
 0x3e1   : > { %2094 = vmatpush3.bf16.xpose.msra.mxu0 %v1013_v30  ;;  %2097 = vmatprep.mubr.msk.bf16.mxu0 %vm2530_vm0, %v2528_v0 }
 0x3e2   : > { %2095 = vmatprep.subr.bf16.mxu0 %v2528_v0 }
 0x3e9   : > { %2096 = vmatpush3.bf16.xpose.msra.mxu0 %v1016_v32 }
 0x3ea   : > { %2117 = vmatprep.subr.bf16.mxu0 %v2528_v0 }
 0x3f0   : > { %2098 = vmatmul.mubr.msk.bf16.vlgmr.msra.gmra.mrb[12].mxu0 %vm870_vm1, %v1002_v33 }
 0x3f1   : > { %2121 = vmatprep.mubr.msk.bf16.mxu0 %vm2530_vm0, %v2528_v0 }
 0x4b3   : > { %v3076_v34 = vpop.f32.mrb[8].mxu0 }
 0x4b4   : > { %v2091_v35 = vpop.f32.mrb[9].mxu0 }
 0x4b5   : > { %v3078_v36 = vpop.f32.mrb[10].mxu0 }
 0x4b6   : > { %v2092_v37 = vpop.f32.mrb[11].mxu0 }
 0x4c3   : > { %v1052_v39 = vpop.f32.mrb[12].mxu0 }
 0x4c4   : > { %v1059_v40 = vmul.f32 0.17677669, %v1052_v39  ;;  %v2099_v42 = vpop.f32.mrb[13].mxu0 }
 0x4c5   : > { %v1055_v43 = vpop.f32.mrb[14].mxu0 }
 0x4c6   : > { %v1060_v44 = vmul.f32 0.17677669, %v1055_v43  ;;  %v2100_v45 = vpop.f32.mrb[15].mxu0  ;;  %v1061_v46 = vadd.f32 %v3052_v59, %v1059_v40 }
 0x4c8   : > { %v1063_v47 = vsel %vm870_vm1, %v1061_v46, -inf  ;;  %v1062_v49 = vadd.f32 %v3052_v59, %v1060_v44 }
 0x4c9   : > { %1064 = vmax.xlane.f32.xlu1 %v1063_v47 }
 0x4ca   : > { %v1066_v50 = vsel %vm870_vm1, %v1062_v49, -inf }
 0x4cb   : > { %1067 = vmax.xlane.f32.xlu0 %v1066_v50 }
 0x4da   : > { %1088 = vrot.lane.b32.xlu1 %v3026_v41, %s2531_s24 }
 0x4de   : > { %1140 = vrot.lane.b32.xlu1 %v3024_v38, %s2532_s28 }
 0x4e2   : > { %1142 = vrot.lane.b32.xlu1 %v3033_v55, %s2532_s28 }
 0x4e6   : > { %1138 = vrot.lane.b32.xlu1 %v3030_v48, %s2532_s28 }
 0x556   : > { %v1065_v51 = vpop.xlane.xlu1 %1064 }
 0x557   : > { %v1069_v52 = vsub.f32 %v1061_v46, %v1065_v51 }
 0x558   : > { %v1068_v53 = vpop.xlane.xlu0 %1067 }
 0x559   : > { %v1071_v54 = vmul.f32 1.442695, %v1069_v52  ;;  %v1070_v57 = vsub.f32 %v1062_v49, %v1068_v53 }
 0x55a   : > { %v1089_v58 = vpop.permute.xlu1 %1088 }
 0x55b   : > { %2269 = vpow2.f32 %v1071_v54  ;;  %v1073_v60 = vmul.f32 1.442695, %v1070_v57  ;;  %2102 = vmatpush3.bf16.msra.mxu1 %v1089_v58 }
 0x55c   : > { %2103 = vmatprep.subr.bf16.mxu1 %v2528_v0 }
 0x55d   : > { %2271 = vpow2.f32 %v1073_v60 }
 0x55e   : > { %v1141_v10 = vpop.permute.xlu1 %1140 }
 0x55f   : > { %v1148_v12 = vsel %vm870_vm1, %v1141_v10, 0 }
 0x562   : > { %v1143_v13 = vpop.permute.xlu1 %1142 }
 0x563   : > { %v1151_v14 = vsel %vm870_vm1, %v1143_v13, 0 }
 0x565   : > { %v2270_v61 = vpop.eup %2269 }
 0x566   : > { %v1075_v62 = vsel %vm870_vm1, %v2270_v61, 0.0  ;;  %v1139_v17 = vpop.permute.xlu1 %1138 }
 0x567   : > { %v2272_v63 = vpop.eup %2271  ;;  %1076 = vadd.xlane.f32.xlu0 %v1075_v62 }
 0x568   : > { %v1078_v2 = vsel %vm870_vm1, %v2272_v63, 0.0 }
 0x56b   : > { %1079 = vadd.xlane.f32.xlu0 %v1078_v2 }
 0x581   : > { %1090 = vrot.lane.b32.xlu0 %v3035_v56, %s2531_s24 }
 0x5f4   : > { %v1077_v3 = vpop.xlane.xlu0 %1076 }
 0x5f5   : > { %2273 = vrcp.f32 %v1077_v3 }
 0x5f8   : > { %v1080_v4 = vpop.xlane.xlu0 %1079 }
 0x5f9   : > { %2275 = vrcp.f32 %v1080_v4 }
 0x5fc   : > { %v1091_v5 = vpop.permute.xlu0 %1090 }
 0x5fd   : > { %2104 = vmatpush3.bf16.msra.mxu1 %v1091_v5 }
 0x5fe   : > { %2109 = vmatprep.subr.bf16.mxu1 %v2528_v0 }
 0x5ff   : > { %v2274_v6 = vpop.eup %2273 }
 0x600   : > { %v1083_v8 = vmul.f32 %v2274_v6, %v2270_v61 }
 0x603   : > { %v2276_v7 = vpop.eup %2275 }
 0x604   : > { %v1084_v9 = vmul.f32 %v2276_v7, %v2272_v63 }
 0x606   : > { %v1085_v11 = vpack.c.bf16 %v1084_v9, %v1083_v8 }
 0x608   : > { %2106 = vmatmul.mubr.msk.bf16.vlgmr.msra.gmra.mrb[8].mxu1 %vm870_vm1, %v1085_v11 }
 0x609   : > { %2110 = vmatpush3.bf16.xpose.msra.mxu1 %v1148_v12  ;;  %2113 = vmatprep.mubr.msk.bf16.mxu1 %vm2530_vm0, %v2528_v0 }
 0x60a   : > { %2111 = vmatprep.subr.bf16.mxu1 %v2528_v0 }
 0x611   : > { %2112 = vmatpush3.bf16.xpose.msra.mxu1 %v1151_v14 }
 0x612   : > { %2133 = vmatprep.subr.bf16.mxu1 %v2528_v0 }
 0x618   : > { %2114 = vmatmul.mubr.msk.bf16.vlgmr.msra.gmra.mrb[12].mxu1 %vm870_vm1, %v1139_v17 }
 0x619   : > { %2137 = vmatprep.mubr.msk.bf16.mxu1 %vm2530_vm0, %v2528_v0 }
 0x6db   : > { %v3108_v18 = vpop.f32.mrb[8].mxu1 }
 0x6dc   : > { %v2107_v19 = vpop.f32.mrb[9].mxu1 }
 0x6dd   : > { %v3110_v20 = vpop.f32.mrb[10].mxu1 }
 0x6de   : > { %v2246_v21 = vpack.i.bf16 %v3110_v20, %v3108_v18  ;;  %v2108_v24 = vpop.f32.mrb[11].mxu1 }
 0x6eb   : > { %v1187_v26 = vpop.f32.mrb[12].mxu1 }
 0x6ec   : > { %v1194_v27 = vmul.f32 0.17677669, %v1187_v26  ;;  %v2115_v28 = vpop.f32.mrb[13].mxu1 }
 0x6ed   : > { %v1190_v29 = vpop.f32.mrb[14].mxu1 }
 0x6ee   : > { %v1195_v30 = vmul.f32 0.17677669, %v1190_v29  ;;  %v2116_v31 = vpop.f32.mrb[15].mxu1  ;;  %v1196_v32 = vadd.f32 %v3052_v59, %v1194_v27 }
 0x6f0   : > { %v1198_v33 = vsel %vm870_vm1, %v1196_v32, -inf  ;;  %v1197_v35 = vadd.f32 %v3052_v59, %v1195_v30 }
 0x6f1   : > { %1199 = vmax.xlane.f32.xlu0 %v1198_v33 }
 0x6f2   : > { %v1201_v37 = vsel %vm870_vm1, %v1197_v35, -inf }
 0x6f3   : > { %1202 = vmax.xlane.f32.xlu1 %v1201_v37 }
 0x704   : > { %1223 = vrot.lane.b32.xlu1 %v3035_v56, %s2532_s28 }
 0x708   : > { %1273 = vrot.lane.b32.xlu1 %v3024_v38, %s2533_s30 }
 0x70c   : > { %1275 = vrot.lane.b32.xlu1 %v3033_v55, %s2533_s30 }
 0x77e   : > { %v1200_v39 = vpop.xlane.xlu0 %1199 }
 0x77f   : > { %v1204_v40 = vsub.f32 %v1196_v32, %v1200_v39 }
 0x780   : > { %v1203_v42 = vpop.xlane.xlu1 %1202 }
 0x781   : > { %v1206_v43 = vmul.f32 1.442695, %v1204_v40  ;;  %v1205_v44 = vsub.f32 %v1197_v35, %v1203_v42 }
 0x783   : > { %2277 = vpow2.f32 %v1206_v43  ;;  %v1208_v45 = vmul.f32 1.442695, %v1205_v44  ;;  %v1437_v43 = vld [vmem:[%s3446_s7 + $0x8] sm:$0xff]  ;;  %v1438_v44 = vld [vmem:[%s3446_s7 + $0x10] sm:$0xff] }
 0x784   : > { %v1224_v52 = vpop.permute.xlu1 %1223 }
 0x785   : > { %2279 = vpow2.f32 %v1208_v45 }
 0x788   : > { %v1274_v60 = vpop.permute.xlu1 %1273 }
 0x78c   : > { %v1276_v62 = vpop.permute.xlu1 %1275 }
 0x78d   : > { %v2278_v46 = vpop.eup %2277  ;;  %v1284_v63 = vsel %vm870_vm1, %v1276_v62, 0  ;;  %v1449_v62 = vld [vmem:[%s3446_s7 + $0x68] sm:$0xff] }
 0x78e   : > { %v1210_v47 = vsel %vm870_vm1, %v2278_v46, 0.0 }
 0x78f   : > { %v2280_v49 = vpop.eup %2279  ;;  %1211 = vadd.xlane.f32.xlu0 %v1210_v47 }
 0x790   : > { %v1213_v50 = vsel %vm870_vm1, %v2280_v49, 0.0 }
 0x793   : > { %1214 = vadd.xlane.f32.xlu0 %v1213_v50  ;;  %v1441_v50 = vld [vmem:[%s3446_s7 + $0x28] sm:$0xff] }
 0x7a9   : > { %1221 = vrot.lane.b32.xlu0 %v3026_v41, %s2532_s28 }
 0x7ad   : > { %1271 = vrot.lane.b32.xlu0 %v3030_v48, %s2533_s30  ;;  %v1281_v48 = vsel %vm870_vm1, %v1274_v60, 0  ;;  %v1447_v60 = vld [vmem:[%s3446_s7 + $0x58] sm:$0xff] }
 0x81c   : > { %v1212_v38 = vpop.xlane.xlu0 %1211 }
 0x81d   : > { %2281 = vrcp.f32 %v1212_v38 }
 0x820   : > { %v1215_v55 = vpop.xlane.xlu0 %1214 }
 0x821   : > { %2283 = vrcp.f32 %v1215_v55  ;;  %v1442_v55 = vld [vmem:[%s3446_s7 + $0x30] sm:$0xff] }
 0x824   : > { %v1222_v51 = vpop.permute.xlu0 %1221 }
 0x825   : > { %2118 = vmatpush3.bf16.msra.mxu0 %v1222_v51  ;;  %v1443_v51 = vld [vmem:[%s3446_s7 + $0x38] sm:$0xff] }
 0x826   : > { %2119 = vmatprep.subr.bf16.mxu0 %v2528_v0 }
 0x827   : > { %v2282_v53 = vpop.eup %2281 }
 0x828   : > { %v1218_v57 = vmul.f32 %v2282_v53, %v2278_v46  ;;  %v1272_v2 = vpop.permute.xlu0 %1271  ;;  %v1439_v46 = vld [vmem:[%s3446_s7 + $0x18] sm:$0xff]  ;;  %v1444_v53 = vld [vmem:[%s3446_s7 + $0x40] sm:$0xff] }
 0x829   : > { %2120 = vmatpush3.bf16.msra.mxu0 %v1224_v52  ;;  %v1454_v47 = vpack.c.bf16 %v1439_v46, %v1438_v44  ;;  %v1456_v52 = vpack.c.bf16 %v1443_v51, %v1442_v55  ;;  %v1556_v51 = vld [vmem:[%s3450_s11 + $0x20] sm:$0xff] }
 0x82a   : > { %2125 = vmatprep.subr.bf16.mxu0 %v2528_v0 }
 0x82b   : > { %v2284_v54 = vpop.eup %2283 }
 0x82c   : > { %v1219_v58 = vmul.f32 %v2284_v54, %v2280_v49  ;;  %v1440_v49 = vld [vmem:[%s3446_s7 + $0x20] sm:$0xff]  ;;  %v1445_v54 = vld [vmem:[%s3446_s7 + $0x48] sm:$0xff] }
 0x82d   : > { %v1455_v38 = vpack.c.bf16 %v1441_v50, %v1440_v49 }
 0x82e   : > { %v1220_v61 = vpack.c.bf16 %v1219_v58, %v1218_v57  ;;  %v1457_v57 = vpack.c.bf16 %v1445_v54, %v1444_v53  ;;  %v1446_v58 = vld [vmem:[%s3446_s7 + $0x50] sm:$0xff]  ;;  %v1561_v54 = vld [vmem:[%s3450_s11 + $0x48] sm:$0xff] }
 0x830   : > { %2122 = vmatmul.mubr.msk.bf16.vlgmr.msra.gmra.mrb[16].mxu0 %vm870_vm1, %v1220_v61  ;;  %v1458_v61 = vpack.c.bf16 %v1447_v60, %v1446_v58  ;;  %v1560_v60 = vld [vmem:[%s3450_s11 + $0x40] sm:$0xff] }
 0x831   : > { %2129 = vmatprep.mubr.msk.bf16.mxu0 %vm2530_vm0, %v2528_v0 }
 0x832   : > { %2126 = vmatpush3.bf16.xpose.msra.mxu0 %v1281_v48  ;;  %v1448_v48 = vld [vmem:[%s3446_s7 + $0x60] sm:$0xff] }
 0x833   : > { %2127 = vmatprep.subr.bf16.mxu0 %v2528_v0 }
 0x83a   : > { %2128 = vmatpush3.bf16.xpose.msra.mxu0 %v1284_v63  ;;  %v1459_v63 = vpack.c.bf16 %v1449_v62, %v1448_v48  ;;  %v1565_v62 = vld [vmem:[%s3450_s11 + $0x68] sm:$0xff] }
 0x841   : > { %2130 = vmatmul.mubr.msk.bf16.vlgmr.msra.gmra.mrb[20].mxu0 %vm870_vm1, %v1272_v2  ;;  %v1450_v2 = vld [vmem:[%s3446_s7 + $0x70] sm:$0xff] }
 0x842   : > { %1645 = vmatprep.mubr.bf16.mxu0 %v2529_v1 }
 0x903   : > { %v1264_v3 = vpop.f32.mrb[16].mxu0 }
 0x904   : > { %v2123_v4 = vpop.f32.mrb[17].mxu0 }
 0x905   : > { %v1267_v5 = vpop.f32.mrb[18].mxu0 }
 0x906   : > { %v2251_v6 = vpack.i.bf16 %v1267_v5, %v1264_v3  ;;  %v2124_v7 = vpop.f32.mrb[19].mxu0  ;;  %v1451_v3 = vld [vmem:[%s3446_s7 + $0x78] sm:$0xff] }
 0x907   : > { %v1460_v4 = vpack.c.bf16 %v1451_v3, %v1450_v2  ;;  %v1564_v3 = vld [vmem:[%s3450_s11 + $0x60] sm:$0xff] }
 0x914   : > { %v1320_v8 = vpop.f32.mrb[20].mxu0 }
 0x915   : > { %v1327_v9 = vmul.f32 0.17677669, %v1320_v8  ;;  %v2131_v10 = vpop.f32.mrb[21].mxu0 }
 0x916   : > { %v1323_v11 = vpop.f32.mrb[22].mxu0 }
 0x917   : > { %v1328_v12 = vmul.f32 0.17677669, %v1323_v11  ;;  %v2132_v13 = vpop.f32.mrb[23].mxu0  ;;  %v1329_v14 = vadd.f32 %v3052_v59, %v1327_v9 }
 0x919   : > { %v1331_v17 = vsel %vm870_vm1, %v1329_v14, -inf  ;;  %v1330_v19 = vadd.f32 %v3052_v59, %v1328_v12 }
 0x91a   : > { %1332 = vmax.xlane.f32.xlu1 %v1331_v17 }
 0x91b   : > { %v1334_v1 = vsel %vm870_vm1, %v1330_v19, -inf }
 0x91c   : > { %1335 = vmax.xlane.f32.xlu0 %v1334_v1 }
 0x92b   : > { %1354 = vrot.lane.b32.xlu1 %v3026_v41, %s2533_s30 }
 0x92f   : > { %2247 = vrot.lane.b32.xlu1 %v2246_v21, %s2533_s30 }
 0x933   : > { %2252 = vrot.lane.b32.xlu1 %v2251_v6, %s2532_s28 }
 0x9a7   : > { %v1333_v24 = vpop.xlane.xlu1 %1332 }
 0x9a8   : > { %v1337_v26 = vsub.f32 %v1329_v14, %v1333_v24 }
 0x9a9   : > { %v1336_v27 = vpop.xlane.xlu0 %1335 }
 0x9aa   : > { %v1339_v28 = vmul.f32 1.442695, %v1337_v26  ;;  %v1338_v29 = vsub.f32 %v1330_v19, %v1336_v27 }
 0x9ab   : > { %v1355_v59 = vpop.permute.xlu1 %1354 }
 0x9ac   : > { %2285 = vpow2.f32 %v1339_v28  ;;  %v1341_v30 = vmul.f32 1.442695, %v1338_v29  ;;  %2134 = vmatpush3.bf16.msra.mxu1 %v1355_v59 }
 0x9ad   : > { %2135 = vmatprep.subr.bf16.mxu1 %v2528_v0 }
 0x9ae   : > { %2287 = vpow2.f32 %v1341_v30 }
 0x9af   : > { %v2248_v10 = vpop.permute.xlu1 %2247 }
 0x9b0   : > { %v2249_v12 = vunpack.i.l.bf16 %v2248_v10 }
 0x9b2   : > { %v1428_v1 = vsel %vm870_vm1, %v3076_v34, %v2249_v12  ;;  %v1575_v12 = vld [vmem:[%s3450_s11 + $0xb8] sm:$0xff] }
 0x9b3   : > { %v2253_v11 = vpop.permute.xlu1 %2252 }
 0x9b4   : > { %v2255_v13 = vunpack.i.h.bf16 %v2253_v11  ;;  %v2254_v14 = vunpack.i.l.bf16 %v2253_v11 }
 0x9b6   : > { %v2286_v41 = vpop.eup %2285  ;;  %v1431_v27 = vsel %vm1430_vm2, %v1428_v1, %v2254_v14  ;;  %v1572_v14 = vld [vmem:[%s3450_s11 + $0xa0] sm:$0xff]  ;;  %v1577_v1 = vld [vmem:[%s3450_s11 + $0xc8] sm:$0xff] }
 0x9b7   : > { %v1343_v31 = vsel %vm870_vm1, %v2286_v41, 0.0 }
 0x9b8   : > { %v2288_v32 = vpop.eup %2287  ;;  %1344 = vadd.xlane.f32.xlu0 %v1343_v31 }
 0x9b9   : > { %v1346_v18 = vsel %vm870_vm1, %v2288_v32, 0.0 }
 0x9bc   : > { %1347 = vadd.xlane.f32.xlu0 %v1346_v18 }
 0x9d2   : > { %1356 = vrot.lane.b32.xlu0 %v3035_v56, %s2533_s30  ;;  %v1436_v56 = vld [vmem:[%s3446_s7] sm:$0xff]  ;;  %s3479_s30 = sld [smem:[#allocation20_spill]] }
 0x9d3   : > { %v1453_v45 = vpack.c.bf16 %v1437_v43, %v1436_v56 }
 0xa45   : > { %v1345_v20 = vpop.xlane.xlu0 %1344 }
 0xa46   : > { %2289 = vrcp.f32 %v1345_v20 }
 0xa49   : > { %v1348_v21 = vpop.xlane.xlu0 %1347 }
 0xa4a   : > { %2291 = vrcp.f32 %v1348_v21 }
 0xa4d   : > { %v1357_v33 = vpop.permute.xlu0 %1356 }
 0xa4e   : > { %2136 = vmatpush3.bf16.msra.mxu1 %v1357_v33 }
 0xa4f   : > { %2141 = vmatprep.subr.bf16.mxu1 %v2528_v0 }
 0xa50   : > { %v2290_v35 = vpop.eup %2289 }
 0xa51   : > { %v1351_v39 = vmul.f32 %v2290_v35, %v2286_v41  ;;  %v1982_v41 = vld [vmem:[#allocation4] ss:$0 sm:$0xff]  ;;  %v1553_v35 = vld [vmem:[%s3450_s11 + $0x8] sm:$0xff] }
 0xa54   : > { %v2292_v37 = vpop.eup %2291 }
 0xa55   : > { %v1352_v40 = vmul.f32 %v2292_v37, %v2288_v32  ;;  %v1555_v37 = vld [vmem:[%s3450_s11 + $0x18] sm:$0xff] }
 0xa57   : > { %v1353_v42 = vpack.c.bf16 %v1352_v40, %v1351_v39  ;;  %v1552_v39 = vld [vmem:[%s3450_s11] sm:$0xff]  ;;  %v1586_v40 = vpack.c.bf16 %v1555_v37, %v1553_v35  ;;  %v1678_v35 = vld [vmem:[%s3452_s13 + $0x90] sm:$0xff]  ;;  %v1679_v37 = vld [vmem:[%s3452_s13 + $0x98] sm:$0xff] }
 0xa59   : > { %2138 = vmatmul.mubr.msk.bf16.vlgmr.msra.gmra.mrb[16].mxu1 %vm870_vm1, %v1353_v42  ;;  %v1559_v42 = vld [vmem:[%s3450_s11 + $0x38] sm:$0xff]  ;;  %1613 = vmatprep.subr.bf16.mxu0 %v1586_v40  ;;  %v1703_v40 = vpack.c.bf16 %v1679_v37, %v1678_v35 }
 0xa5a   : > { %2157 = vmatprep.mubr.msk.bf16.mxu1 %vm2530_vm0, %v2528_v0  ;;  %2142 = vmatpush3.bf16.msra.mxu1 %v1453_v45 }
 0xa5b   : > { %2143 = vmatprep.subr.bf16.mxu1 %v2528_v0 }
 0xa5e   : > { %2144 = vmatpush3.bf16.msra.mxu1 %v1454_v47 }
 0xa5f   : > { %2145 = vmatprep.subr.bf16.mxu1 %v2528_v0 }
 0xa62   : > { %2146 = vmatpush3.bf16.msra.mxu1 %v1455_v38 }
 0xa63   : > { %2147 = vmatprep.subr.bf16.mxu1 %v2528_v0 }
 0xa66   : > { %2148 = vmatpush3.bf16.msra.mxu1 %v1456_v52  ;;  %v1558_v52 = vld [vmem:[%s3450_s11 + $0x30] sm:$0xff] }
 0xa67   : > { %2149 = vmatprep.subr.bf16.mxu1 %v2528_v0  ;;  %v1587_v53 = vpack.c.bf16 %v1558_v52, %v1556_v51  ;;  %v1666_v52 = vld [vmem:[%s3452_s13 + $0x30] sm:$0xff] }
 0xa6a   : > { %2150 = vmatpush3.bf16.msra.mxu1 %v1457_v57  ;;  %v1563_v57 = vld [vmem:[%s3450_s11 + $0x58] sm:$0xff] }
 0xa6b   : > { %2151 = vmatprep.subr.bf16.mxu1 %v2528_v0  ;;  %v1590_v58 = vpack.c.bf16 %v1563_v57, %v1561_v54  ;;  %v1684_v54 = vld [vmem:[%s3452_s13 + $0xc0] sm:$0xff]  ;;  %v1685_v57 = vld [vmem:[%s3452_s13 + $0xc8] sm:$0xff] }
 0xa6e   : > { %2152 = vmatpush3.bf16.msra.mxu1 %v1458_v61  ;;  %v1562_v61 = vld [vmem:[%s3450_s11 + $0x50] sm:$0xff] }
 0xa6f   : > { %2153 = vmatprep.subr.bf16.mxu1 %v2528_v0  ;;  %v1589_v48 = vpack.c.bf16 %v1562_v61, %v1560_v60  ;;  %v1706_v60 = vpack.c.bf16 %v1685_v57, %v1684_v54  ;;  %v1668_v61 = vld [vmem:[%s3452_s13 + $0x40] sm:$0xff] }
 0xa72   : > { %2154 = vmatpush3.bf16.msra.mxu1 %v1459_v63  ;;  %v1567_v63 = vld [vmem:[%s3450_s11 + $0x78] sm:$0xff] }
 0xa73   : > { %2155 = vmatprep.subr.bf16.mxu1 %v2528_v0  ;;  %v2250_v0 = vunpack.i.h.bf16 %v2248_v10  ;;  %v1592_v2 = vpack.c.bf16 %v1567_v63, %v1565_v62  ;;  %v1570_v10 = vld [vmem:[%s3450_s11 + $0x90] sm:$0xff]  ;;  %v1687_v63 = vld [vmem:[%s3452_s13 + $0xd8] sm:$0xff] }
 0xa74   : > { %v1686_v62 = vld [vmem:[%s3452_s13 + $0xd0] sm:$0xff] }
 0xa75   : > { %v1429_v19 = vsel %vm870_vm1, %v3078_v36, %v2250_v0  ;;  %v1573_v0 = vld [vmem:[%s3450_s11 + $0xa8] sm:$0xff] }
 0xa76   : > { %2156 = vmatpush3.bf16.msra.mxu1 %v1460_v4  ;;  %v1432_v28 = vsel %vm1430_vm2, %v1429_v19, %v2255_v13  ;;  %v1566_v4 = vld [vmem:[%s3450_s11 + $0x70] sm:$0xff]  ;;  %v1596_v13 = vpack.c.bf16 %v1575_v12, %v1573_v0  ;;  %v1983_v0 = vld [vmem:[#allocation6] ss:$0 sm:$0xff] }
 0xb2c   : > { %v1397_v5 = vpop.f32.mrb[16].mxu1 }
 0xb2d   : > { %v2139_v6 = vpop.f32.mrb[17].mxu1 }
 0xb2e   : > { %v1400_v7 = vpop.f32.mrb[18].mxu1  ;;  %v1569_v6 = vld [vmem:[%s3450_s11 + $0x88] sm:$0xff] }
 0xb2f   : > { %v2256_v8 = vpack.i.bf16 %v1400_v7, %v1397_v5  ;;  %v2140_v9 = vpop.f32.mrb[19].mxu1  ;;  %v1591_v5 = vpack.c.bf16 %v1566_v4, %v1564_v3  ;;  %v1571_v7 = vld [vmem:[%s3450_s11 + $0x98] sm:$0xff]  ;;  %v1707_v3 = vpack.c.bf16 %v1687_v63, %v1686_v62 }
 0xb30   : > { %v1568_v9 = vld [vmem:[%s3450_s11 + $0x80] sm:$0xff] }
 0xb31   : > { %2257 = vrot.lane.b32.xlu1 %v2256_v8, %s2531_s24  ;;  %v1594_v8 = vpack.c.bf16 %v1571_v7, %v1569_v6  ;;  %v1593_v11 = vpack.c.bf16 %v1570_v10, %v1568_v9 }
 0xba3   : > { %v2258_v17 = vpop.permute.xlu1 %2257 }
 0xba4   : > { %v2260_v24 = vunpack.i.h.bf16 %v2258_v17  ;;  %v2259_v26 = vunpack.i.l.bf16 %v2258_v17  ;;  %v1574_v17 = vld [vmem:[%s3450_s11 + $0xb0] sm:$0xff] }
 0xba5   : > { %v1595_v19 = vpack.c.bf16 %v1574_v17, %v1572_v14  ;;  %v1984_v17 = vld [vmem:[#allocation7] ss:$0 sm:$0xff] }
 0xba6   : > { %v1435_v29 = vsel %vm1433_vm3, %v1432_v28, %v2260_v24  ;;  %v1434_v59 = vsel %vm1433_vm3, %v1431_v27, %v2259_v26  ;;  %v1579_v24 = vld [vmem:[%s3450_s11 + $0xd8] sm:$0xff]  ;;  %v1576_v27 = vld [vmem:[%s3450_s11 + $0xc0] sm:$0xff]  ;;  %v1578_v28 = vld [vmem:[%s3450_s11 + $0xd0] sm:$0xff] }
 0xba7   : > { %v1452_v30 = vpack.c.bf16 %v1435_v29, %v1434_v59  ;;  %v1598_v26 = vpack.c.bf16 %v1579_v24, %v1577_v1  ;;  %v1597_v29 = vpack.c.bf16 %v1578_v28, %v1576_v27  ;;  %v1581_v59 = vld [vmem:[%s3450_s11 + $0xe8] sm:$0xff]  ;;  %v1670_v27 = vld [vmem:[%s3452_s13 + $0x50] sm:$0xff]  ;;  %v1671_v28 = vld [vmem:[%s3452_s13 + $0x58] sm:$0xff] }
 0xba9   : > { %2158 = vmatmul.mubr.bf16.vlgmr.msra.gmra.mrb[20].mxu1 %v1452_v30  ;;  %v1583_v30 = vld [vmem:[%s3450_s11 + $0xf8] sm:$0xff] }
 0xc7c   : > { %v1502_v31 = vpop.f32.mrb[20].mxu1 }
 0xc7d   : > { %v1503_v32 = vadd.f32 %v1982_v41, %v1502_v31  ;;  %v2159_v18 = vpop.f32.mrb[21].mxu1  ;;  %v1600_v31 = vpack.c.bf16 %v1583_v30, %v1581_v59  ;;  %v1672_v30 = vld [vmem:[%s3452_s13 + $0x60] sm:$0xff] }
 0xc7e   : > { %v1505_v20 = vpop.f32.mrb[22].mxu1 }
 0xc7f   : > { %v1506_v21 = vadd.f32 %v1982_v41, %v1505_v20  ;;  %v2160_v33 = vpop.f32.mrb[23].mxu1  ;;  %v1509_v36 = vadd.f32 %v1503_v32, %v2999_v15  ;;  %v1554_v15 = vld [vmem:[%s3450_s11 + $0x10] sm:$0xff]  ;;  %v1580_v41 = vld [vmem:[%s3450_s11 + $0xe0] sm:$0xff] }
 0xc80   : > { %v1585_v56 = vpack.c.bf16 %v1554_v15, %v1552_v39  ;;  %v1582_v32 = vld [vmem:[%s3450_s11 + $0xf0] sm:$0xff]  ;;  %v1676_v20 = vld [vmem:[%s3452_s13 + $0x80] sm:$0xff] }
 0xc81   : > { %1513 = vadd.xlane.f32.xlu0 %v1509_v36  ;;  %v1510_v34 = vadd.f32 %v1506_v21, %v3001_v16  ;;  %v1557_v16 = vld [vmem:[%s3450_s11 + $0x28] sm:$0xff]  ;;  %v1599_v18 = vpack.c.bf16 %v1582_v32, %v1580_v41  ;;  %v1660_v33 = vld [vmem:[%s3452_s13] sm:$0xff]  ;;  %v1662_v15 = vld [vmem:[%s3452_s13 + $0x10] sm:$0xff] }
 0xc82   : > { %v1588_v43 = vpack.c.bf16 %v1559_v42, %v1557_v16  ;;  %1614 = vmatpush1.bf16.msra.mxu0 %v1585_v56  ;;  %v1677_v21 = vld [vmem:[%s3452_s13 + $0x88] sm:$0xff]  ;;  %v1663_v16 = vld [vmem:[%s3452_s13 + $0x18] sm:$0xff]  ;;  %v1680_v42 = vld [vmem:[%s3452_s13 + $0xa0] sm:$0xff] }
 0xc83   : > { %1515 = vadd.xlane.f32.xlu1 %v1510_v34  ;;  %v1681_v56 = vld [vmem:[%s3452_s13 + $0xa8] sm:$0xff]  ;;  %v1690_v32 = vld [vmem:[%s3452_s13 + $0xf0] sm:$0xff] }
 0xc84   : > { %1615 = vmatprep.subr.bf16.mxu0 %v1588_v43  ;;  %v1695_v43 = vpack.c.bf16 %v1663_v16, %v1662_v15  ;;  %v1673_v41 = vld [vmem:[%s3452_s13 + $0x68] sm:$0xff] }
 0xc86   : > { %1616 = vmatpush1.bf16.msra.mxu0 %v1587_v53  ;;  %v1667_v53 = vld [vmem:[%s3452_s13 + $0x38] sm:$0xff] }
 0xc87   : > { %1617 = vmatprep.subr.bf16.mxu0 %v1590_v58  ;;  %v1697_v58 = vpack.c.bf16 %v1667_v53, %v1666_v52  ;;  %v1985_v52 = vld [vmem:[#allocation9] ss:$0 sm:$0xff] }
 0xc8a   : > { %1618 = vmatpush1.bf16.msra.mxu0 %v1589_v48  ;;  %v1669_v48 = vld [vmem:[%s3452_s13 + $0x48] sm:$0xff] }
 0xc8b   : > { %1619 = vmatprep.subr.bf16.mxu0 %v1592_v2  ;;  %v1698_v2 = vpack.c.bf16 %v1669_v48, %v1668_v61 }
 0xc8e   : > { %1620 = vmatpush1.bf16.msra.mxu0 %v1591_v5 }
 0xc8f   : > { %1621 = vmatprep.subr.bf16.mxu0 %v1594_v8 }
 0xc92   : > { %1622 = vmatpush1.bf16.msra.mxu0 %v1593_v11 }
 0xc93   : > { %1623 = vmatprep.subr.bf16.mxu0 %v1596_v13 }
 0xc96   : > { %1624 = vmatpush1.bf16.msra.mxu0 %v1595_v19 }
 0xc97   : > { %1625 = vmatprep.subr.bf16.mxu0 %v1598_v26 }
 0xc9a   : > { %1626 = vmatpush1.bf16.msra.mxu0 %v1597_v29  ;;  %v1689_v29 = vld [vmem:[%s3452_s13 + $0xe8] sm:$0xff] }
 0xc9b   : > { %1627 = vmatprep.subr.bf16.mxu0 %v1600_v31  ;;  %v1700_v31 = vpack.c.bf16 %v1673_v41, %v1672_v30 }
 0xc9e   : > { %1628 = vmatpush1.bf16.msra.mxu0 %v1599_v18  ;;  %v1691_v18 = vld [vmem:[%s3452_s13 + $0xf8] sm:$0xff] }
 0xd0e   : > { %v1514_v44 = vpop.xlane.xlu0 %1513 }
 0xd0f   : > { %v1518_v45 = vmul.f32 0.0078125, %v1514_v44  ;;  %v1704_v44 = vpack.c.bf16 %v1681_v56, %v1680_v42 }
 0xd10   : > { %v1516_v46 = vpop.xlane.xlu1 %1515 }
 0xd11   : > { %v3240_v47 = vsub.f32 %v1509_v36, %v1518_v45  ;;  %v1519_v49 = vmul.f32 0.0078125, %v1516_v46  ;;  %v1702_v36 = vpack.c.bf16 %v1677_v21, %v1676_v20  ;;  %v1664_v45 = vld [vmem:[%s3452_s13 + $0x20] sm:$0xff]  ;;  %v1665_v46 = vld [vmem:[%s3452_s13 + $0x28] sm:$0xff]  ;;  %v1709_v20 = vpack.c.bf16 %v1691_v18, %v1690_v32  ;;  %v1674_v21 = vld [vmem:[%s3452_s13 + $0x70] sm:$0xff] }
 0xd13   : > { %v3242_v50 = vsub.f32 %v1510_v34, %v1519_v49  ;;  %v1522_v38 = vmul.f32 %v3240_v47, %v3240_v47  ;;  %v1661_v34 = vld [vmem:[%s3452_s13 + $0x8] sm:$0xff]  ;;  %2035 = vmatprep.subr.bf16.mxu1 %v1702_v36  ;;  %v1682_v49 = vld [vmem:[%s3452_s13 + $0xb0] sm:$0xff] }
 0xd14   : > { %v1694_v39 = vpack.c.bf16 %v1661_v34, %v1660_v33  ;;  %v1675_v33 = vld [vmem:[%s3452_s13 + $0x78] sm:$0xff]  ;;  %v1601_v34 = vld [vmem:[%s3479_s30] sm:$0x3] }
 0xd15   : > { %1524 = vadd.xlane.f32.xlu0 %v1522_v38  ;;  %v1523_v55 = vmul.f32 %v3242_v50, %v3242_v50  ;;  %v1683_v38 = vld [vmem:[%s3452_s13 + $0xb8] sm:$0xff]  ;;  %v1701_v36 = vpack.c.bf16 %v1675_v33, %v1674_v21  ;;  %v1606_v35 = vrot.slane %v1601_v34, %v806_v23  ;;  %v1610_v37 = vrot.slane %v1601_v34, %v810_v25 }
 0xd16   : > { %2036 = vmatpush3.bf16.msra.mxu1 %v1694_v39  ;;  %v1705_v51 = vpack.c.bf16 %v1683_v38, %v1682_v49 }
 0xd17   : > { %2037 = vmatprep.subr.bf16.mxu1 %v1703_v40 }
 0xd19   : > { %1526 = vadd.xlane.f32.xlu0 %v1523_v55  ;;  %v1696_v55 = vpack.c.bf16 %v1665_v46, %v1664_v45 }
 0xd1a   : > { %2038 = vmatpush3.bf16.msra.mxu1 %v1695_v43 }
 0xd1b   : > { %2039 = vmatprep.subr.bf16.mxu1 %v1704_v44 }
 0xd1e   : > { %2040 = vmatpush3.bf16.msra.mxu1 %v1696_v55 }
 0xd1f   : > { %2041 = vmatprep.subr.bf16.mxu1 %v1705_v51 }
 0xd22   : > { %2042 = vmatpush3.bf16.msra.mxu1 %v1697_v58 }
 0xd23   : > { %2043 = vmatprep.subr.bf16.mxu1 %v1706_v60 }
 0xd26   : > { %2044 = vmatpush3.bf16.msra.mxu1 %v1698_v2 }
 0xd27   : > { %2045 = vmatprep.subr.bf16.mxu1 %v1707_v3 }
 0xda2   : > { %v1525_v4 = vpop.xlane.xlu0 %1524 }
 0xda3   : > { %v1528_v5 = vmul.f32 0.0078125, %v1525_v4 }
 0xda5   : > { %v1530_v6 = vadd.f32 1e-05, %v1528_v5 }
 0xda6   : > { %v1527_v7 = vpop.xlane.xlu0 %1526 }
 0xda7   : > { %2293 = vrsqrt.f32 %v1530_v6  ;;  %v1529_v8 = vmul.f32 0.0078125, %v1527_v7 }
 0xda9   : > { %v1531_v9 = vadd.f32 1e-05, %v1529_v8 }
 0xdab   : > { %2295 = vrsqrt.f32 %v1531_v9 }
 0xdb1   : > { %v2294_v10 = vpop.eup %2293 }
 0xdb2   : > { %v1534_v11 = vmul.f32 %v2294_v10, %v3240_v47  ;;  %v1699_v47 = vpack.c.bf16 %v1671_v28, %v1670_v27 }
 0xdb4   : > { %v1542_v14 = vmul.f32 %v1983_v0, %v1534_v11  ;;  %2046 = vmatpush3.bf16.msra.mxu1 %v1699_v47 }
 0xdb5   : > { %v2296_v12 = vpop.eup %2295 }
 0xdb6   : > { %v1535_v13 = vmul.f32 %v2296_v12, %v3242_v50  ;;  %v1550_v1 = vadd.f32 %v1984_v17, %v1542_v14  ;;  %v1688_v50 = vld [vmem:[%s3452_s13 + $0xe0] sm:$0xff]  ;;  %v1986_v14 = vld [vmem:[#allocation10] ss:$0 sm:$0xff] }
 0xdb7   : > { %v1708_v59 = vpack.c.bf16 %v1689_v29, %v1688_v50 }
 0xdb8   : > { %v1543_v19 = vmul.f32 %v1983_v0, %v1535_v13 }
 0xdb9   : > { %2047 = vmatprep.subr.bf16.mxu1 %v1708_v59 }
 0xdba   : > { %v1551_v24 = vadd.f32 %v1984_v17, %v1543_v19  ;;  %2048 = vmatpush3.bf16.msra.mxu1 %v1700_v31 }
 0xdbb   : > { %2049 = vmatprep.subr.bf16.mxu1 %v1709_v20 }
 0xdbc   : > { %v1584_v26 = vpack.c.bf16 %v1551_v24, %v1550_v1 }
 0xdbe   : > { %1646 = vmatmul.mubr.bf16.vlgmr.msra.gmra.mrb[24].mxu0 %v1584_v26  ;;  %2050 = vmatpush3.bf16.msra.mxu1 %v1701_v36 }
 0xe91   : > { %v1647_v39 = vpop.f32.mrb[24].mxu0 }
 0xe92   : > { %v1648_v40 = vadd.f32 %v1647_v39, %v1606_v35  ;;  %v1649_v15 = vpop.f32.mrb[25].mxu0 }
 0xe93   : > { %v1650_v16 = vadd.f32 %v1649_v15, %v1610_v37  ;;  %v1651_v42 = vpop.f32.mrb[26].mxu0 }
 0xe94   : > { %v1652_v56 = vadd.f32 %v1651_v42, %v1606_v35  ;;  %v1653_v43 = vpop.f32.mrb[27].mxu0  ;;  %v1656_v45 = vmax.f32 %v1648_v40, 0.0 }
 0xe95   : > { %v1654_v44 = vadd.f32 %v1653_v43, %v1610_v37  ;;  %v1657_v49 = vmax.f32 %v1650_v16, 0.0 }
 0xe96   : > { %v1658_v46 = vmax.f32 %v1652_v56, 0.0 }
 0xe97   : > { %v1659_v38 = vmax.f32 %v1654_v44, 0.0 }
 0xe98   : > { %v1692_v55 = vpack.c.bf16 %v1658_v46, %v1656_v45 }
 0xe99   : > { %v1693_v51 = vpack.c.bf16 %v1659_v38, %v1657_v49 }
 0xe9b   : > { %1749 = vmatprep.mubr.bf16.mxu1 %v1693_v51 }
 0xe9c   : > { %1750 = vmatmul.mubr.bf16.vlgmr.msra.gmra.mrb[24].mxu1 %v1692_v55 }
 0xf6f   : > { %v2051_v23 = vpop.f32.mrb[24].mxu1 }
 0xf70   : > { %v2052_v22 = vpop.f32.mrb[25].mxu1 }
 0xf71   : > { %v2053_v25 = vadd.f32 %v2052_v22, %v2051_v23  ;;  %v2054_v53 = vpop.f32.mrb[26].mxu1 }
 0xf72   : > { %v2055_v54 = vpop.f32.mrb[27].mxu1 }
 0xf73   : > { %v1752_v57 = vadd.f32 %v2053_v25, %v1985_v52  ;;  %v2056_v58 = vadd.f32 %v2055_v54, %v2054_v53 }
 0xf75   : > { %v1755_v60 = vadd.f32 %v2056_v58, %v1985_v52  ;;  %v1758_v61 = vadd.f32 %v1752_v57, %v1550_v1  ;;  %v1987_v1 = vld [vmem:[#allocation12] ss:$0 sm:$0xff] }
 0xf77   : > { %1762 = vadd.xlane.f32.xlu0 %v1758_v61  ;;  %v1759_v48 = vadd.f32 %v1755_v60, %v1551_v24 }
 0xf79   : > { %1764 = vadd.xlane.f32.xlu1 %v1759_v48 }
0x1004   : > { %v1763_v62 = vpop.xlane.xlu0 %1762 }
0x1005   : > { %v1766_v63 = vmul.f32 0.0078125, %v1763_v62 }
0x1006   : > { %v1765_v2 = vpop.xlane.xlu1 %1764 }
0x1007   : > { %v1768_v3 = vsub.f32 %v1758_v61, %v1766_v63  ;;  %v1767_v4 = vmul.f32 0.0078125, %v1765_v2 }
0x1009   : > { %v1769_v5 = vsub.f32 %v1759_v48, %v1767_v4  ;;  %v1770_v6 = vmul.f32 %v1768_v3, %v1768_v3 }
0x100b   : > { %1772 = vadd.xlane.f32.xlu0 %v1770_v6  ;;  %v1771_v7 = vmul.f32 %v1769_v5, %v1769_v5 }
0x100d   : > { %1774 = vadd.xlane.f32.xlu1 %v1771_v7 }
0x1098   : > { %v1773_v8 = vpop.xlane.xlu0 %1772 }
0x1099   : > { %v1776_v9 = vmul.f32 0.0078125, %v1773_v8 }
0x109a   : > { %v1775_v10 = vpop.xlane.xlu1 %1774 }
0x109b   : > { %v1778_v11 = vadd.f32 1e-05, %v1776_v9  ;;  %v1777_v0 = vmul.f32 0.0078125, %v1775_v10 }
0x109d   : > { %2297 = vrsqrt.f32 %v1778_v11  ;;  %v1779_v12 = vadd.f32 1e-05, %v1777_v0 }
0x109f   : > { %2299 = vrsqrt.f32 %v1779_v12 }
0x10a7   : > { %v2298_v13 = vpop.eup %2297 }
0x10a8   : > { %v1782_v17 = vmul.f32 %v2298_v13, %v1768_v3 }
0x10a9   : > { %v2300_v19 = vpop.eup %2299 }
0x10aa   : > { %v1790_v24 = vmul.f32 %v1986_v14, %v1782_v17  ;;  %v1783_v26 = vmul.f32 %v2300_v19, %v1769_v5 }
0x10ac   : > { %v1798_v27 = vadd.f32 %v1987_v1, %v1790_v24  ;;  %v1791_v28 = vmul.f32 %v1986_v14, %v1783_v26 }
0x10ae   : > { %1800 = vst [vmem:[%s670_s22] sm:$0xff] %v1798_v27  ;;  %v1799_v47 = vadd.f32 %v1987_v1, %v1791_v28 }
0x10b0   : > { %1801 = vst [vmem:[%s670_s22 + $0x8] sm:$0xff] %v1799_v47 }
0x10b1 PF: > { %s3481_s24 = sld [smem:[#allocation17_spill]] }
0x10b7   : > { %s31_s24 = sadd.s32 1, %s3481_s24  }
0x10b8   : > { %p28_p11 = scmp.ge.s32.totalorder %s31_s24, 4  }
0x10ba   :  { %30 = sbr.rel (!%p28_p11) target bundleno = 9 (0x9), region = 153 }
0x10c1   :  { %1823 = vsyncpa [#allocation3], 1 }
0x10c2   :  { %1825 = vsyncpa [#allocation3 + $0x1], 1 }
0x10c3   :  { %1826 = vsyncpa [#allocation5], 1 }
0x10c4   :  { %1827 = vsyncpa [#allocation8], 1 }
0x10c5   :  { %1828 = vsyncpa [#allocation11], 1 }

// kernel: forward.5
= control target key start
LH: loop header
LB: loop body
LE: loop exit
PB: predicated region body
PF: predicated region fallthrough
CT: control target
= control target key end

     0   :  { %12 = vsyncpa [#allocation3], 0  ;;  %s2500_s24 = smov 0   ;;  %s3602_s0 = inlined_call_operand.vmem [shape: f32[2,32,384], index: 0, kind: input, shape index: {}]   ;;  %s3603_s1 = inlined_call_operand.vmem [shape: f32[3,384,256], index: 1, kind: input, shape index: {}]   ;;  %s3604_s2 = inlined_call_operand.vmem [shape: f32[1,256], index: 2, kind: input, shape index: {}]   ;;  %s3605_s3 = inlined_call_operand.hbm [shape: f32[3,256,128], index: 3, kind: input, shape index: {}]   ;;  %s3606_s4 = inlined_call_operand.vmem [shape: f32[1,128], index: 4, kind: input, shape index: {}]   ;;  %s3607_s5 = inlined_call_operand.vmem [shape: f32[1,128], index: 5, kind: input, shape index: {}]   ;;  %s3608_s6 = inlined_call_operand.vmem [shape: f32[1,128], index: 6, kind: input, shape index: {}]   ;;  %s3609_s7 = inlined_call_operand.vmem [shape: f32[2,32,128], index: 7, kind: output, shape index: {}]  }
   0x1 LB: > { %s2506_s25 = sadd.s32 4294967295, %s2453_s24   ;;  %p1957_p0 = scmp.ge.s32.totalorder %s2453_s24, 1  ;;  %s2453_s24 = sphi %s2500_s24, %s18_s24  }
   0x2   : > { %p201_p1 = scmp.lt.s32.totalorder %s2453_s24, 3  ;;  %s2455_s26 = smov [#allocation2]  }
   0x3   : > { %s219_s27 = sshll.u32 %s2455_s26, 4  ;;  %p3610_p3 = scmp.eq.s32.totalorder %s2506_s25, 0  ;;  %s220_s27 = int_to_ptr.vmem [resolvable:$true] %s219_s27 }
   0x4   : > { %p2510_p2 = pnand %p1957_p0, %p201_p1  ;;  %s2415_s9 = scalar_lea.hbm %s3605_s3, 12288 }
   0x5   : > { %p2416_p6 = scmp.ne.s32.totalorder %s3605_s3, %s2415_s9  ;;  %p2422_p10 = scmp.lt.u32.totalorder %s2415_s9, %s3605_s3 }
   0x6   : > { %s3612_s28 = scalar_select %p2510_p2, 1, 0 }
   0x7   : > { %p2388_p4 = pneg %p2510_p2 }
   0x9   : > { %p2519_p5 = pnand %p3610_p3, %p2388_p4 }
   0xb   : > { %p2417_p7 = pneg %p2519_p5 }
   0xd   : > { %p2418_p8 = pnand %p2417_p7, %p2416_p6 }
   0xf   : > { %p2419_p9 = pneg %p2418_p8 }
  0x11   : > { %p2424_p11 = pnand %p2422_p10, %p2419_p9 }
  0x13   : > { %2427 = shalt.err (!%p2424_p11)
}
  0x14   : > { %s2428_s14 = scalar_lea.vmem %s220_s27, 12288  ;;  %p2436_p1 = scmp.lt.s32.totalorder %s220_s27, %s220_s27 }
  0x15   : > { %p2429_p12 = scmp.ne.s32.totalorder %s220_s27, %s2428_s14  ;;  %p2437_p4 = scmp.lt.s32.totalorder %s2428_s14, %s2428_s14 }
  0x17   : > { %p2431_p13 = pnand %p2429_p12, %p2417_p7  ;;  %p2438_p3 = por %p2437_p4, %p2436_p1 }
  0x19   : > { %p2432_p0 = pneg %p2431_p13 }
  0x1b   : > { %p2439_p2 = pnand %p2438_p3, %p2432_p0 }
  0x1d   : > { %2442 = shalt.err (!%p2439_p2)
}
  0x1e   : > { %s2456_s15 = smov 128   ;;  %s2457_s16 = smov 8  }
  0x1f   : > { %2391 = dma.hbm_to_vmem [thread:$0]  (!%p2519_p5), %s3605_s3, 12288, %s220_s27, [#allocation3], %s2456_s15, %s2456_s15, %s2457_s16  }
  0x20   : > { %p3614_p6 = scmp.ne.s32.totalorder %s3612_s28, 0 }
  0x21   : > { %p3615_p8 = scmp.eq.s32.totalorder (!%p3614_p6), %s2506_s25, 0 }
  0x22   : > { %252 = sbr.rel (%p3614_p6) target bundleno = 1466 (0x5ba), region = 48 }
  0x29   : > { %2448 = dma.done.wait (%p3615_p8), [#allocation3], 12288   ;;  %p3616_p7 = pmov %p3615_p8 }
  0x2a   : > { %v347_v0 = vld [vmem:[%s3603_s1 + $0x8] sm:$0xff]  ;;  %v349_v1 = vld [vmem:[%s3603_s1 + $0x18] sm:$0xff]  ;;  %v346_v2 = vld [vmem:[%s3603_s1] sm:$0xff]  ;;  %p284_p2 = scmp.lt.s32.totalorder %s2506_s25, 1  ;;  %vm1104_vm1 = vcmask 261120  }
  0x2b   : > { %2450 = vsyncadd (%p3616_p7), [#allocation3], 4294955008  ;;  %v449_v3 = vpack.c.bf16 %v349_v1, %v347_v0  ;;  %v348_v4 = vld [vmem:[%s3603_s1 + $0x10] sm:$0xff]  ;;  %v351_v5 = vld [vmem:[%s3603_s1 + $0x28] sm:$0xff] }
  0x2c   : > { %v353_v6 = vld [vmem:[%s3603_s1 + $0x38] sm:$0xff]  ;;  %v448_v7 = vpack.c.bf16 %v348_v4, %v346_v2  ;;  %v350_v9 = vld [vmem:[%s3603_s1 + $0x20] sm:$0xff]  ;;  %v352_v10 = vld [vmem:[%s3603_s1 + $0x30] sm:$0xff]  ;;  %s3618_s25 = smov (!%p284_p2, %s2506_s25), 1 }
  0x2d   : > { %v451_v8 = vpack.c.bf16 %v353_v6, %v351_v5  ;;  %v355_v11 = vld [vmem:[%s3603_s1 + $0x48] sm:$0xff]  ;;  %496 = vmatprep.subr.bf16.mxu0 %v449_v3  ;;  %v357_v12 = vld [vmem:[%s3603_s1 + $0x58] sm:$0xff]  ;;  %v450_v13 = vpack.c.bf16 %v352_v10, %v350_v9  ;;  %v354_v15 = vld [vmem:[%s3603_s1 + $0x40] sm:$0xff]  ;;  %s2383_s21 = smul.u32 96, %s3618_s25  ;;  %s2190_s29 = sshll.u32 %s3618_s25, 5 }
  0x2e   : > { %497 = vmatpush1.bf16.msra.mxu0 %v448_v7  ;;  %v453_v14 = vpack.c.bf16 %v357_v12, %v355_v11  ;;  %v356_v16 = vld [vmem:[%s3603_s1 + $0x50] sm:$0xff]  ;;  %v359_v17 = vld [vmem:[%s3603_s1 + $0x68] sm:$0xff]  ;;  %v361_v18 = vld [vmem:[%s3603_s1 + $0x78] sm:$0xff]  ;;  %s293_s12 = scalar_lea.vmem %s3609_s7, %s2190_s29 }
  0x2f   : > { %498 = vmatprep.subr.bf16.mxu0 %v451_v8  ;;  %v452_v19 = vpack.c.bf16 %v356_v16, %v354_v15  ;;  %v455_v20 = vpack.c.bf16 %v361_v18, %v359_v17  ;;  %v358_v21 = vld [vmem:[%s3603_s1 + $0x60] sm:$0xff]  ;;  %v360_v22 = vld [vmem:[%s3603_s1 + $0x70] sm:$0xff]  ;;  %v363_v23 = vld [vmem:[%s3603_s1 + $0x88] sm:$0xff]  ;;  %s2631_s11 = scalar_lea.vmem %s3602_s0, %s2383_s21 }
  0x30   : > { %v365_v24 = vld [vmem:[%s3603_s1 + $0x98] sm:$0xff]  ;;  %v454_v25 = vpack.c.bf16 %v360_v22, %v358_v21  ;;  %v362_v27 = vld [vmem:[%s3603_s1 + $0x80] sm:$0xff]  ;;  %v364_v28 = vld [vmem:[%s3603_s1 + $0x90] sm:$0xff] }
  0x31   : > { %v457_v26 = vpack.c.bf16 %v365_v24, %v363_v23  ;;  %v367_v29 = vld [vmem:[%s3603_s1 + $0xa8] sm:$0xff]  ;;  %v369_v30 = vld [vmem:[%s3603_s1 + $0xb8] sm:$0xff]  ;;  %v456_v31 = vpack.c.bf16 %v364_v28, %v362_v27  ;;  %v366_v33 = vld [vmem:[%s3603_s1 + $0xa0] sm:$0xff] }
  0x32   : > { %499 = vmatpush1.bf16.msra.mxu0 %v450_v13  ;;  %v459_v32 = vpack.c.bf16 %v369_v30, %v367_v29  ;;  %v368_v34 = vld [vmem:[%s3603_s1 + $0xb0] sm:$0xff]  ;;  %v371_v35 = vld [vmem:[%s3603_s1 + $0xc8] sm:$0xff]  ;;  %v373_v36 = vld [vmem:[%s3603_s1 + $0xd8] sm:$0xff] }
  0x33   : > { %500 = vmatprep.subr.bf16.mxu0 %v453_v14  ;;  %v458_v37 = vpack.c.bf16 %v368_v34, %v366_v33  ;;  %v370_v38 = vld [vmem:[%s3603_s1 + $0xc0] sm:$0xff]  ;;  %v461_v39 = vpack.c.bf16 %v373_v36, %v371_v35  ;;  %v372_v40 = vld [vmem:[%s3603_s1 + $0xd0] sm:$0xff]  ;;  %v296_v41 = vld [vmem:[%s2631_s11 + $0x8] sm:$0xff] }
  0x34   : > { %v299_v42 = vld [vmem:[%s2631_s11 + $0x20] sm:$0xff]  ;;  %v375_v43 = vld [vmem:[%s3603_s1 + $0xe8] sm:$0xff]  ;;  %v377_v44 = vld [vmem:[%s3603_s1 + $0xf8] sm:$0xff]  ;;  %v460_v46 = vpack.c.bf16 %v372_v40, %v370_v38 }
  0x35   : > { %v2647_v45 = vpack.c.bf16 %v299_v42, %v296_v41  ;;  %v463_v47 = vpack.c.bf16 %v377_v44, %v375_v43  ;;  %v374_v48 = vld [vmem:[%s3603_s1 + $0xe0] sm:$0xff]  ;;  %v376_v49 = vld [vmem:[%s3603_s1 + $0xf0] sm:$0xff]  ;;  %v379_v50 = vld [vmem:[%s3603_s1 + $0x108] sm:$0xff] }
  0x36   : > { %501 = vmatpush1.bf16.msra.mxu0 %v452_v19  ;;  %v381_v51 = vld [vmem:[%s3603_s1 + $0x118] sm:$0xff]  ;;  %v462_v52 = vpack.c.bf16 %v376_v49, %v374_v48  ;;  %v378_v54 = vld [vmem:[%s3603_s1 + $0x100] sm:$0xff]  ;;  %v380_v55 = vld [vmem:[%s3603_s1 + $0x110] sm:$0xff] }
  0x37   : > { %502 = vmatprep.subr.bf16.mxu0 %v455_v20  ;;  %528 = vmatprep.mubr.bf16.mxu0 %v2647_v45  ;;  %v465_v53 = vpack.c.bf16 %v381_v51, %v379_v50  ;;  %v383_v56 = vld [vmem:[%s3603_s1 + $0x128] sm:$0xff]  ;;  %v385_v57 = vld [vmem:[%s3603_s1 + $0x138] sm:$0xff]  ;;  %v464_v58 = vpack.c.bf16 %v380_v55, %v378_v54  ;;  %v382_v60 = vld [vmem:[%s3603_s1 + $0x120] sm:$0xff] }
  0x38   : > { %779 = vmatprep.mubr.bf16.mxu1 %v2647_v45  ;;  %v467_v59 = vpack.c.bf16 %v385_v57, %v383_v56  ;;  %v384_v61 = vld [vmem:[%s3603_s1 + $0x130] sm:$0xff]  ;;  %v387_v62 = vld [vmem:[%s3603_s1 + $0x148] sm:$0xff]  ;;  %v389_v63 = vld [vmem:[%s3603_s1 + $0x158] sm:$0xff] }
  0x39   : > { %v466_v0 = vpack.c.bf16 %v384_v61, %v382_v60  ;;  %v469_v1 = vpack.c.bf16 %v389_v63, %v387_v62  ;;  %v386_v2 = vld [vmem:[%s3603_s1 + $0x140] sm:$0xff]  ;;  %v388_v3 = vld [vmem:[%s3603_s1 + $0x150] sm:$0xff]  ;;  %v391_v4 = vld [vmem:[%s3603_s1 + $0x168] sm:$0xff] }
  0x3a   : > { %503 = vmatpush1.bf16.msra.mxu0 %v454_v25  ;;  %v393_v5 = vld [vmem:[%s3603_s1 + $0x178] sm:$0xff]  ;;  %v468_v6 = vpack.c.bf16 %v388_v3, %v386_v2  ;;  %v390_v8 = vld [vmem:[%s3603_s1 + $0x160] sm:$0xff]  ;;  %v392_v9 = vld [vmem:[%s3603_s1 + $0x170] sm:$0xff] }
  0x3b   : > { %504 = vmatprep.subr.bf16.mxu0 %v457_v26  ;;  %v471_v7 = vpack.c.bf16 %v393_v5, %v391_v4  ;;  %v395_v10 = vld [vmem:[%s3603_s1 + $0x188] sm:$0xff]  ;;  %v397_v11 = vld [vmem:[%s3603_s1 + $0x198] sm:$0xff]  ;;  %v470_v12 = vpack.c.bf16 %v392_v9, %v390_v8  ;;  %v394_v14 = vld [vmem:[%s3603_s1 + $0x180] sm:$0xff] }
  0x3c   : > { %v473_v13 = vpack.c.bf16 %v397_v11, %v395_v10  ;;  %v396_v15 = vld [vmem:[%s3603_s1 + $0x190] sm:$0xff]  ;;  %v399_v16 = vld [vmem:[%s3603_s1 + $0x1a8] sm:$0xff]  ;;  %v401_v17 = vld [vmem:[%s3603_s1 + $0x1b8] sm:$0xff] }
  0x3d   : > { %v472_v18 = vpack.c.bf16 %v396_v15, %v394_v14  ;;  %v475_v19 = vpack.c.bf16 %v401_v17, %v399_v16  ;;  %v398_v20 = vld [vmem:[%s3603_s1 + $0x1a0] sm:$0xff]  ;;  %v400_v21 = vld [vmem:[%s3603_s1 + $0x1b0] sm:$0xff]  ;;  %v403_v22 = vld [vmem:[%s3603_s1 + $0x1c8] sm:$0xff] }
  0x3e   : > { %505 = vmatpush1.bf16.msra.mxu0 %v456_v31  ;;  %v405_v23 = vld [vmem:[%s3603_s1 + $0x1d8] sm:$0xff]  ;;  %v474_v24 = vpack.c.bf16 %v400_v21, %v398_v20  ;;  %v402_v26 = vld [vmem:[%s3603_s1 + $0x1c0] sm:$0xff]  ;;  %v404_v27 = vld [vmem:[%s3603_s1 + $0x1d0] sm:$0xff] }
  0x3f   : > { %506 = vmatprep.subr.bf16.mxu0 %v459_v32  ;;  %v477_v25 = vpack.c.bf16 %v405_v23, %v403_v22  ;;  %v407_v28 = vld [vmem:[%s3603_s1 + $0x1e8] sm:$0xff]  ;;  %v409_v29 = vld [vmem:[%s3603_s1 + $0x1f8] sm:$0xff]  ;;  %v476_v30 = vpack.c.bf16 %v404_v27, %v402_v26  ;;  %v406_v32 = vld [vmem:[%s3603_s1 + $0x1e0] sm:$0xff] }
  0x40   : > { %v479_v31 = vpack.c.bf16 %v409_v29, %v407_v28  ;;  %v408_v33 = vld [vmem:[%s3603_s1 + $0x1f0] sm:$0xff]  ;;  %v411_v34 = vld [vmem:[%s3603_s1 + $0x208] sm:$0xff]  ;;  %v413_v35 = vld [vmem:[%s3603_s1 + $0x218] sm:$0xff] }
  0x41   : > { %v478_v36 = vpack.c.bf16 %v408_v33, %v406_v32  ;;  %v298_v38 = vld [vmem:[%s2631_s11 + $0x18] sm:$0xff]  ;;  %v481_v40 = vpack.c.bf16 %v413_v35, %v411_v34  ;;  %v412_v41 = vld [vmem:[%s3603_s1 + $0x210] sm:$0xff]  ;;  %v415_v44 = vld [vmem:[%s3603_s1 + $0x228] sm:$0xff] }
  0x42   : > { %507 = vmatpush1.bf16.msra.mxu0 %v458_v37  ;;  %v295_v37 = vld [vmem:[%s2631_s11] sm:$0xff]  ;;  %v302_v42 = vld [vmem:[%s2631_s11 + $0x38] sm:$0xff]  ;;  %v305_v43 = vld [vmem:[%s2631_s11 + $0x50] sm:$0xff] }
  0x43   : > { %508 = vmatprep.subr.bf16.mxu0 %v461_v39  ;;  %v410_v39 = vld [vmem:[%s3603_s1 + $0x200] sm:$0xff]  ;;  %v2777_v49 = vpack.c.bf16 %v305_v43, %v302_v42  ;;  %v421_v54 = vld [vmem:[%s3603_s1 + $0x258] sm:$0xff]  ;;  %v301_v56 = vld [vmem:[%s2631_s11 + $0x30] sm:$0xff] }
  0x44   : > { %v480_v48 = vpack.c.bf16 %v412_v41, %v410_v39  ;;  %v414_v51 = vld [vmem:[%s3603_s1 + $0x220] sm:$0xff]  ;;  %v304_v57 = vld [vmem:[%s2631_s11 + $0x48] sm:$0xff]  ;;  %v420_v60 = vld [vmem:[%s3603_s1 + $0x250] sm:$0xff] }
  0x45   : > { %v423_v61 = vld [vmem:[%s3603_s1 + $0x268] sm:$0xff]  ;;  %v425_v62 = vld [vmem:[%s3603_s1 + $0x278] sm:$0xff]  ;;  %v2807_v63 = vpack.c.bf16 %v304_v57, %v301_v56  ;;  %v422_v2 = vld [vmem:[%s3603_s1 + $0x260] sm:$0xff] }
  0x46   : > { %509 = vmatpush1.bf16.msra.mxu0 %v460_v46  ;;  %v417_v46 = vld [vmem:[%s3603_s1 + $0x238] sm:$0xff]  ;;  %v424_v3 = vld [vmem:[%s3603_s1 + $0x270] sm:$0xff]  ;;  %v427_v4 = vld [vmem:[%s3603_s1 + $0x288] sm:$0xff] }
  0x47   : > { %510 = vmatprep.subr.bf16.mxu0 %v463_v47  ;;  %v2775_v47 = vpack.c.bf16 %v298_v38, %v295_v37  ;;  %v483_v50 = vpack.c.bf16 %v417_v46, %v415_v44  ;;  %v429_v5 = vld [vmem:[%s3603_s1 + $0x298] sm:$0xff]  ;;  %v1978_v8 = vld [vmem:[%s3603_s1 + $0x308] sm:$0xff]  ;;  %v1977_v10 = vld [vmem:[%s3603_s1 + $0x300] sm:$0xff]  ;;  %v486_v11 = vpack.c.bf16 %v424_v3, %v422_v2 }
  0x48   : > { %v1980_v9 = vld [vmem:[%s3603_s1 + $0x318] sm:$0xff]  ;;  %v1979_v14 = vld [vmem:[%s3603_s1 + $0x310] sm:$0xff]  ;;  %v1982_v15 = vld [vmem:[%s3603_s1 + $0x328] sm:$0xff]  ;;  %v489_v17 = vpack.c.bf16 %v429_v5, %v427_v4 }
  0x49   : > { %v1984_v16 = vld [vmem:[%s3603_s1 + $0x338] sm:$0xff]  ;;  %v1981_v20 = vld [vmem:[%s3603_s1 + $0x320] sm:$0xff]  ;;  %v1983_v21 = vld [vmem:[%s3603_s1 + $0x330] sm:$0xff] }
  0x4a   : > { %511 = vmatpush1.bf16.msra.mxu0 %v462_v52  ;;  %v416_v52 = vld [vmem:[%s3603_s1 + $0x230] sm:$0xff]  ;;  %v1986_v22 = vld [vmem:[%s3603_s1 + $0x348] sm:$0xff]  ;;  %v701_v26 = vpack.c.bf16 %v1983_v21, %v1981_v20  ;;  %v430_v28 = vld [vmem:[%s3603_s1 + $0x2a0] sm:$0xff] }
  0x4b   : > { %512 = vmatprep.subr.bf16.mxu0 %v465_v53  ;;  %v419_v53 = vld [vmem:[%s3603_s1 + $0x248] sm:$0xff]  ;;  %v482_v55 = vpack.c.bf16 %v416_v52, %v414_v51  ;;  %v432_v33 = vld [vmem:[%s3603_s1 + $0x2b0] sm:$0xff]  ;;  %v1992_v35 = vld [vmem:[%s3603_s1 + $0x378] sm:$0xff] }
  0x4c   : > { %v431_v23 = vld [vmem:[%s3603_s1 + $0x2a8] sm:$0xff]  ;;  %v437_v37 = vld [vmem:[%s3603_s1 + $0x2d8] sm:$0xff]  ;;  %v490_v39 = vpack.c.bf16 %v432_v33, %v430_v28  ;;  %v1989_v42 = vld [vmem:[%s3603_s1 + $0x360] sm:$0xff] }
  0x4d   : > { %v1990_v34 = vld [vmem:[%s3603_s1 + $0x368] sm:$0xff]  ;;  %v1991_v43 = vld [vmem:[%s3603_s1 + $0x370] sm:$0xff]  ;;  %v441_v52 = vld [vmem:[%s3603_s1 + $0x2f8] sm:$0xff] }
  0x4e   : > { %513 = vmatpush1.bf16.msra.mxu0 %v464_v58  ;;  %v485_v58 = vpack.c.bf16 %v421_v54, %v419_v53  ;;  %v706_v41 = vpack.c.bf16 %v1992_v35, %v1990_v34  ;;  %v436_v46 = vld [vmem:[%s3603_s1 + $0x2d0] sm:$0xff]  ;;  %v439_v51 = vld [vmem:[%s3603_s1 + $0x2e8] sm:$0xff]  ;;  %v705_v53 = vpack.c.bf16 %v1991_v43, %v1989_v42  ;;  %v1993_v57 = vld [vmem:[%s3603_s1 + $0x380] sm:$0xff] }
  0x4f   : > { %514 = vmatprep.subr.bf16.mxu0 %v467_v59  ;;  %v418_v59 = vld [vmem:[%s3603_s1 + $0x240] sm:$0xff]  ;;  %v297_v2 = vld [vmem:[%s2631_s11 + $0x10] sm:$0xff]  ;;  %v300_v5 = vld [vmem:[%s2631_s11 + $0x28] sm:$0xff] }
  0x50   : > { %v2077_v20 = vld [vmem:[%s3603_s1 + $0x620] sm:$0xff]  ;;  %v2082_v28 = vld [vmem:[%s3603_s1 + $0x648] sm:$0xff]  ;;  %v306_v33 = vld [vmem:[%s2631_s11 + $0x58] sm:$0xff] }
  0x51   : > { %v2001_v21 = vld [vmem:[%s3603_s1 + $0x3c0] sm:$0xff]  ;;  %v2010_v42 = vld [vmem:[%s3603_s1 + $0x408] sm:$0xff]  ;;  %v2012_v43 = vld [vmem:[%s3603_s1 + $0x418] sm:$0xff] }
  0x52   : > { %515 = vmatpush1.bf16.msra.mxu0 %v466_v0  ;;  %v484_v0 = vpack.c.bf16 %v420_v60, %v418_v59  ;;  %v495_v59 = vpack.c.bf16 %v441_v52, %v439_v51  ;;  %v440_v60 = vld [vmem:[%s3603_s1 + $0x2f0] sm:$0xff]  ;;  %v2005_v35 = vld [vmem:[%s3603_s1 + $0x3e0] sm:$0xff] }
  0x53   : > { %516 = vmatprep.subr.bf16.mxu0 %v469_v1  ;;  %v487_v1 = vpack.c.bf16 %v425_v62, %v423_v61  ;;  %v1998_v61 = vld [vmem:[%s3603_s1 + $0x3a8] sm:$0xff]  ;;  %v2000_v62 = vld [vmem:[%s3603_s1 + $0x3b8] sm:$0xff]  ;;  %v2009_v51 = vld [vmem:[%s3603_s1 + $0x400] sm:$0xff] }
  0x54   : > { %v2011_v52 = vld [vmem:[%s3603_s1 + $0x410] sm:$0xff] }
  0x56   : > { %517 = vmatpush1.bf16.msra.mxu0 %v468_v6  ;;  %v426_v6 = vld [vmem:[%s3603_s1 + $0x280] sm:$0xff] }
  0x57   : > { %518 = vmatprep.subr.bf16.mxu0 %v471_v7  ;;  %v428_v7 = vld [vmem:[%s3603_s1 + $0x290] sm:$0xff] }
  0x58   : > { %v488_v27 = vpack.c.bf16 %v428_v7, %v426_v6  ;;  %v710_v6 = vpack.c.bf16 %v2000_v62, %v1998_v61  ;;  %v1997_v7 = vld [vmem:[%s3603_s1 + $0x3a0] sm:$0xff] }
  0x59   : > { %v2089_v62 = vld [vmem:[%s3603_s1 + $0x680] sm:$0xff] }
  0x5a   : > { %519 = vmatpush1.bf16.msra.mxu0 %v470_v12  ;;  %v2458_v12 = vmov 0  }
  0x5b   : > { %520 = vmatprep.subr.bf16.mxu0 %v473_v13  ;;  %v700_v13 = vpack.c.bf16 %v1980_v9, %v1978_v8  ;;  %v1999_v8 = vld [vmem:[%s3603_s1 + $0x3b0] sm:$0xff] }
  0x5d   : > { %747 = vmatprep.subr.bf16.mxu1 %v700_v13  ;;  %v2078_v13 = vld [vmem:[%s3603_s1 + $0x628] sm:$0xff] }
  0x5e   : > { %521 = vmatpush1.bf16.msra.mxu0 %v472_v18  ;;  %v699_v18 = vpack.c.bf16 %v1979_v14, %v1977_v10  ;;  %v2073_v10 = vld [vmem:[%s3603_s1 + $0x600] sm:$0xff]  ;;  %v2080_v14 = vld [vmem:[%s3603_s1 + $0x638] sm:$0xff] }
  0x5f   : > { %522 = vmatprep.subr.bf16.mxu0 %v475_v19  ;;  %v702_v19 = vpack.c.bf16 %v1984_v16, %v1982_v15  ;;  %v2002_v15 = vld [vmem:[%s3603_s1 + $0x3c8] sm:$0xff]  ;;  %v2004_v16 = vld [vmem:[%s3603_s1 + $0x3d8] sm:$0xff] }
  0x60   : > { %748 = vmatpush1.bf16.msra.mxu1 %v699_v18  ;;  %v709_v18 = vpack.c.bf16 %v1999_v8, %v1997_v7  ;;  %v2096_v7 = vld [vmem:[%s3603_s1 + $0x6b8] sm:$0xff] }
  0x61   : > { %749 = vmatprep.subr.bf16.mxu1 %v702_v19 }
  0x62   : > { %523 = vmatpush1.bf16.msra.mxu0 %v474_v24  ;;  %v433_v24 = vld [vmem:[%s3603_s1 + $0x2b8] sm:$0xff] }
  0x63   : > { %524 = vmatprep.subr.bf16.mxu0 %v477_v25  ;;  %v1988_v25 = vld [vmem:[%s3603_s1 + $0x358] sm:$0xff]  ;;  %v491_v32 = vpack.c.bf16 %v433_v24, %v431_v23  ;;  %v953_v23 = vpack.c.bf16 %v2080_v14, %v2078_v13  ;;  %v2079_v24 = vld [vmem:[%s3603_s1 + $0x630] sm:$0xff]  ;;  %v2017_v13 = vld [vmem:[%s3603_s1 + $0x440] sm:$0xff] }
  0x64   : > { %v704_v29 = vpack.c.bf16 %v1988_v25, %v1986_v22  ;;  %750 = vmatpush1.bf16.msra.mxu1 %v701_v26  ;;  %v2003_v22 = vld [vmem:[%s3603_s1 + $0x3d0] sm:$0xff]  ;;  %v712_v25 = vpack.c.bf16 %v2004_v16, %v2002_v15  ;;  %v2006_v26 = vld [vmem:[%s3603_s1 + $0x3e8] sm:$0xff] }
  0x65   : > { %v2019_v14 = vld [vmem:[%s3603_s1 + $0x450] sm:$0xff] }
  0x66   : > { %525 = vmatpush1.bf16.msra.mxu0 %v476_v30  ;;  %v1985_v30 = vld [vmem:[%s3603_s1 + $0x340] sm:$0xff]  ;;  %751 = vmatprep.subr.bf16.mxu1 %v704_v29  ;;  %v2084_v29 = vld [vmem:[%s3603_s1 + $0x658] sm:$0xff]  ;;  %v2095_v16 = vld [vmem:[%s3603_s1 + $0x6b0] sm:$0xff] }
  0x67   : > { %526 = vmatprep.subr.bf16.mxu0 %v479_v31  ;;  %v1987_v31 = vld [vmem:[%s3603_s1 + $0x350] sm:$0xff] }
  0x68   : > { %v703_v38 = vpack.c.bf16 %v1987_v31, %v1985_v30  ;;  %v303_v30 = vld [vmem:[%s2631_s11 + $0x40] sm:$0xff]  ;;  %v711_v31 = vpack.c.bf16 %v2003_v22, %v2001_v21  ;;  %v2100_v21 = vld [vmem:[%s3603_s1 + $0x6d8] sm:$0xff]  ;;  %v719_v22 = vpack.c.bf16 %v2019_v14, %v2017_v13 }
  0x69   : > { %v2113_v13 = vld [vmem:[%s3603_s1 + $0x740] sm:$0xff] }
  0x6a   : > { %527 = vmatpush1.bf16.msra.mxu0 %v478_v36  ;;  %v435_v36 = vld [vmem:[%s3603_s1 + $0x2c8] sm:$0xff]  ;;  %752 = vmatpush1.bf16.msra.mxu1 %v703_v38  ;;  %v2081_v38 = vld [vmem:[%s3603_s1 + $0x640] sm:$0xff] }
  0x6b   : > { %549 = vmatprep.subr.bf16.mxu0 %v481_v40  ;;  %v434_v40 = vld [vmem:[%s3603_s1 + $0x2c0] sm:$0xff]  ;;  %v493_v44 = vpack.c.bf16 %v437_v37, %v435_v36  ;;  %753 = vmatprep.subr.bf16.mxu1 %v706_v41  ;;  %v2007_v36 = vld [vmem:[%s3603_s1 + $0x3f0] sm:$0xff]  ;;  %v955_v37 = vpack.c.bf16 %v2084_v29, %v2082_v28  ;;  %v2088_v41 = vld [vmem:[%s3603_s1 + $0x678] sm:$0xff] }
  0x6c   : > { %v492_v54 = vpack.c.bf16 %v436_v46, %v434_v40  ;;  %v2086_v40 = vld [vmem:[%s3603_s1 + $0x668] sm:$0xff]  ;;  %v713_v46 = vpack.c.bf16 %v2007_v36, %v2005_v35  ;;  %v2099_v29 = vld [vmem:[%s3603_s1 + $0x6d0] sm:$0xff]  ;;  %v2101_v36 = vld [vmem:[%s3603_s1 + $0x6e0] sm:$0xff] }
  0x6d   : > { %529 = vmatmul.mubr.bf16.vlgmr.msra.gmra.mrb[0].mxu0 %v2775_v47 }
  0x6e   : > { %550 = vmatpush1.bf16.msra.mxu0 %v480_v48  ;;  %538 = vmatprep.mubr.bf16.mxu0 %v2777_v49  ;;  %v1994_v48 = vld [vmem:[%s3603_s1 + $0x388] sm:$0xff] }
  0x6f   : > { %551 = vmatprep.subr.bf16.mxu0 %v483_v50  ;;  %v1996_v50 = vld [vmem:[%s3603_s1 + $0x398] sm:$0xff]  ;;  %754 = vmatpush1.bf16.msra.mxu1 %v705_v53  ;;  %v957_v53 = vpack.c.bf16 %v2088_v41, %v2086_v40  ;;  %v2103_v41 = vld [vmem:[%s3603_s1 + $0x6f0] sm:$0xff] }
  0x70   : > { %v708_v56 = vpack.c.bf16 %v1996_v50, %v1994_v48  ;;  %v2085_v50 = vld [vmem:[%s3603_s1 + $0x660] sm:$0xff] }
  0x72   : > { %552 = vmatpush1.bf16.msra.mxu0 %v482_v55  ;;  %v438_v55 = vld [vmem:[%s3603_s1 + $0x2e0] sm:$0xff]  ;;  %755 = vmatprep.subr.bf16.mxu1 %v708_v56  ;;  %v2014_v56 = vld [vmem:[%s3603_s1 + $0x428] sm:$0xff] }
  0x73   : > { %553 = vmatprep.subr.bf16.mxu0 %v485_v58  ;;  %v1995_v58 = vld [vmem:[%s3603_s1 + $0x390] sm:$0xff]  ;;  %v494_v4 = vpack.c.bf16 %v440_v60, %v438_v55  ;;  %v716_v55 = vpack.c.bf16 %v2012_v43, %v2010_v42  ;;  %v715_v60 = vpack.c.bf16 %v2011_v52, %v2009_v51  ;;  %v2030_v42 = vld [vmem:[%s3603_s1 + $0x4a8] sm:$0xff]  ;;  %v2032_v43 = vld [vmem:[%s3603_s1 + $0x4b8] sm:$0xff]  ;;  %v964_v51 = vpack.c.bf16 %v2103_v41, %v2101_v36 }
  0x74   : > { %v707_v3 = vpack.c.bf16 %v1995_v58, %v1993_v57  ;;  %v2016_v57 = vld [vmem:[%s3603_s1 + $0x438] sm:$0xff]  ;;  %v2090_v58 = vld [vmem:[%s3603_s1 + $0x688] sm:$0xff]  ;;  %v2105_v52 = vld [vmem:[%s3603_s1 + $0x700] sm:$0xff] }
  0x75   : > { %539 = vmatmul.mubr.bf16.gmra.mrb[4].mxu0 %v2807_v63  ;;  %v2047_v41 = vld [vmem:[%s3603_s1 + $0x530] sm:$0xff] }
  0x76   : > { %554 = vmatpush1.bf16.msra.mxu0 %v484_v0  ;;  %581 = vmatprep.mubr.bf16.mxu0 %v2458_v12  ;;  %v2074_v0 = vld [vmem:[%s3603_s1 + $0x608] sm:$0xff] }
  0x77   : > { %555 = vmatprep.subr.bf16.mxu0 %v487_v1  ;;  %v2076_v1 = vld [vmem:[%s3603_s1 + $0x618] sm:$0xff]  ;;  %756 = vmatpush1.bf16.msra.mxu1 %v707_v3 }
  0x78   : > { %v951_v9 = vpack.c.bf16 %v2076_v1, %v2074_v0  ;;  %757 = vmatprep.subr.bf16.mxu1 %v710_v6  ;;  %v718_v0 = vpack.c.bf16 %v2016_v57, %v2014_v56  ;;  %v2013_v1 = vld [vmem:[%s3603_s1 + $0x420] sm:$0xff]  ;;  %v2094_v6 = vld [vmem:[%s3603_s1 + $0x6a8] sm:$0xff]  ;;  %v2107_v57 = vld [vmem:[%s3603_s1 + $0x710] sm:$0xff] }
  0x79   : > { %v961_v15 = vpack.c.bf16 %v2096_v7, %v2094_v6  ;;  %v2038_v6 = vld [vmem:[%s3603_s1 + $0x4e8] sm:$0xff]  ;;  %v2040_v7 = vld [vmem:[%s3603_s1 + $0x4f8] sm:$0xff] }
  0x7a   : > { %556 = vmatpush1.bf16.msra.mxu0 %v486_v11  ;;  %v2075_v11 = vld [vmem:[%s3603_s1 + $0x610] sm:$0xff]  ;;  %v730_v14 = vpack.c.bf16 %v2040_v7, %v2038_v6 }
  0x7b   : > { %557 = vmatprep.subr.bf16.mxu0 %v489_v17  ;;  %v2963_v17 = vpack.c.bf16 %v300_v5, %v297_v2  ;;  %v950_v19 = vpack.c.bf16 %v2075_v11, %v2073_v10  ;;  %758 = vmatpush1.bf16.msra.mxu1 %v709_v18  ;;  %v2015_v2 = vld [vmem:[%s3603_s1 + $0x430] sm:$0xff]  ;;  %v2020_v5 = vld [vmem:[%s3603_s1 + $0x458] sm:$0xff]  ;;  %v2093_v10 = vld [vmem:[%s3603_s1 + $0x6a0] sm:$0xff] }
  0x7c   : > { %759 = vmatprep.subr.bf16.mxu1 %v712_v25  ;;  %v717_v8 = vpack.c.bf16 %v2015_v2, %v2013_v1  ;;  %v2022_v18 = vld [vmem:[%s3603_s1 + $0x468] sm:$0xff]  ;;  %v2109_v1 = vld [vmem:[%s3603_s1 + $0x720] sm:$0xff]  ;;  %v2131_v7 = vld [vmem:[%s3603_s1 + $0x7d0] sm:$0xff] }
  0x7e   : > { %558 = vmatpush1.bf16.msra.mxu0 %v488_v27  ;;  %v2008_v27 = vld [vmem:[%s3603_s1 + $0x3f8] sm:$0xff] }
  0x7f   : > { %559 = vmatprep.subr.bf16.mxu0 %v491_v32  ;;  %v952_v32 = vpack.c.bf16 %v2079_v24, %v2077_v20  ;;  %v714_v34 = vpack.c.bf16 %v2008_v27, %v2006_v26  ;;  %760 = vmatpush1.bf16.msra.mxu1 %v711_v31  ;;  %v2098_v20 = vld [vmem:[%s3603_s1 + $0x6c8] sm:$0xff]  ;;  %v2097_v24 = vld [vmem:[%s3603_s1 + $0x6c0] sm:$0xff]  ;;  %v2023_v27 = vld [vmem:[%s3603_s1 + $0x470] sm:$0xff] }
  0x80   : > { %v2021_v26 = vld [vmem:[%s3603_s1 + $0x460] sm:$0xff]  ;;  %v963_v28 = vpack.c.bf16 %v2100_v21, %v2098_v20  ;;  %v2028_v31 = vld [vmem:[%s3603_s1 + $0x498] sm:$0xff]  ;;  %v962_v35 = vpack.c.bf16 %v2099_v29, %v2097_v24  ;;  %v2042_v20 = vld [vmem:[%s3603_s1 + $0x508] sm:$0xff] }
  0x81   : > { %761 = vmatprep.subr.bf16.mxu1 %v714_v34  ;;  %v721_v34 = vpack.c.bf16 %v2023_v27, %v2021_v26  ;;  %v2044_v21 = vld [vmem:[%s3603_s1 + $0x518] sm:$0xff]  ;;  %v2117_v26 = vld [vmem:[%s3603_s1 + $0x760] sm:$0xff]  ;;  %v2043_v29 = vld [vmem:[%s3603_s1 + $0x510] sm:$0xff] }
  0x82   : > { %560 = vmatpush1.bf16.msra.mxu0 %v490_v39  ;;  %v2083_v39 = vld [vmem:[%s3603_s1 + $0x650] sm:$0xff]  ;;  %v732_v27 = vpack.c.bf16 %v2044_v21, %v2042_v20 }
  0x83   : > { %561 = vmatprep.subr.bf16.mxu0 %v493_v44  ;;  %v3017_v44 = vpack.c.bf16 %v306_v33, %v303_v30  ;;  %v954_v48 = vpack.c.bf16 %v2083_v39, %v2081_v38  ;;  %762 = vmatpush1.bf16.msra.mxu1 %v713_v46  ;;  %v2026_v30 = vld [vmem:[%s3603_s1 + $0x488] sm:$0xff]  ;;  %v2104_v33 = vld [vmem:[%s3603_s1 + $0x6f8] sm:$0xff]  ;;  %v2025_v38 = vld [vmem:[%s3603_s1 + $0x480] sm:$0xff] }
  0x84   : > { %763 = vmatprep.subr.bf16.mxu1 %v716_v55  ;;  %v2027_v39 = vld [vmem:[%s3603_s1 + $0x490] sm:$0xff]  ;;  %v2106_v46 = vld [vmem:[%s3603_s1 + $0x708] sm:$0xff] }
  0x85   : > { %v2031_v55 = vld [vmem:[%s3603_s1 + $0x4b0] sm:$0xff] }
  0x86   : > { %562 = vmatpush1.bf16.msra.mxu0 %v492_v54  ;;  %v2087_v54 = vld [vmem:[%s3603_s1 + $0x670] sm:$0xff] }
  0x87   : > { %563 = vmatprep.subr.bf16.mxu0 %v495_v59  ;;  %v2092_v59 = vld [vmem:[%s3603_s1 + $0x698] sm:$0xff]  ;;  %v956_v61 = vpack.c.bf16 %v2087_v54, %v2085_v50  ;;  %764 = vmatpush1.bf16.msra.mxu1 %v715_v60  ;;  %v723_v50 = vpack.c.bf16 %v2027_v39, %v2025_v38  ;;  %v2029_v54 = vld [vmem:[%s3603_s1 + $0x4a0] sm:$0xff]  ;;  %v2110_v60 = vld [vmem:[%s3603_s1 + $0x728] sm:$0xff] }
  0x88   : > { %v959_v3 = vpack.c.bf16 %v2092_v59, %v2090_v58  ;;  %765 = vmatprep.subr.bf16.mxu1 %v718_v0  ;;  %v2034_v58 = vld [vmem:[%s3603_s1 + $0x4c8] sm:$0xff]  ;;  %v2036_v59 = vld [vmem:[%s3603_s1 + $0x4d8] sm:$0xff]  ;;  %v966_v0 = vpack.c.bf16 %v2107_v57, %v2105_v52  ;;  %v2121_v38 = vld [vmem:[%s3603_s1 + $0x780] sm:$0xff] }
  0x89   : > { %v728_v2 = vpack.c.bf16 %v2036_v59, %v2034_v58  ;;  %v2051_v57 = vld [vmem:[%s3603_s1 + $0x550] sm:$0xff] }
  0x8a   : > { %564 = vmatpush1.bf16.msra.mxu0 %v494_v4  ;;  %v2091_v4 = vld [vmem:[%s3603_s1 + $0x690] sm:$0xff] }
  0x8b   : > { %998 = vmatprep.subr.bf16.mxu0 %v951_v9  ;;  %v958_v9 = vpack.c.bf16 %v2091_v4, %v2089_v62  ;;  %766 = vmatpush1.bf16.msra.mxu1 %v717_v8  ;;  %v725_v62 = vpack.c.bf16 %v2031_v55, %v2029_v54  ;;  %v2035_v4 = vld [vmem:[%s3603_s1 + $0x4d0] sm:$0xff]  ;;  %v2114_v8 = vld [vmem:[%s3603_s1 + $0x748] sm:$0xff]  ;;  %v2125_v54 = vld [vmem:[%s3603_s1 + $0x7a0] sm:$0xff] }
  0x8c   : > { %v2127_v59 = vld [vmem:[%s3603_s1 + $0x7b0] sm:$0xff] }
  0x8d   : > { %582 = vmatmul.mubr.bf16.vlgmr.msra.gmra.mrb[0].mxu0 %v2963_v17  ;;  %v2135_v21 = vld [vmem:[%s3603_s1 + $0x7f0] sm:$0xff] }
  0x8e   : > { %999 = vmatpush1.bf16.msra.mxu0 %v950_v19  ;;  %591 = vmatprep.mubr.bf16.mxu0 %v2458_v12  ;;  %v2024_v19 = vld [vmem:[%s3603_s1 + $0x478] sm:$0xff] }
  0x8f   : > { %1000 = vmatprep.subr.bf16.mxu0 %v953_v23  ;;  %v960_v23 = vpack.c.bf16 %v2095_v16, %v2093_v10  ;;  %v722_v25 = vpack.c.bf16 %v2024_v19, %v2022_v18  ;;  %v2039_v16 = vld [vmem:[%s3603_s1 + $0x4f0] sm:$0xff] }
  0x90   : > { %v2115_v19 = vld [vmem:[%s3603_s1 + $0x750] sm:$0xff] }
  0x92   : > { %1001 = vmatpush1.bf16.msra.mxu0 %v952_v32  ;;  %v2102_v32 = vld [vmem:[%s3603_s1 + $0x6e8] sm:$0xff] }
  0x93   : > { %1002 = vmatprep.subr.bf16.mxu0 %v955_v37  ;;  %v724_v37 = vpack.c.bf16 %v2028_v31, %v2026_v30  ;;  %v965_v40 = vpack.c.bf16 %v2104_v33, %v2102_v32  ;;  %v2119_v31 = vld [vmem:[%s3603_s1 + $0x770] sm:$0xff]  ;;  %v2046_v32 = vld [vmem:[%s3603_s1 + $0x528] sm:$0xff]  ;;  %v2048_v33 = vld [vmem:[%s3603_s1 + $0x538] sm:$0xff] }
  0x94   : > { %v734_v39 = vpack.c.bf16 %v2048_v33, %v2046_v32  ;;  %v2137_v32 = vld [vmem:[%s3603_s1 + $0x800] sm:$0xff]  ;;  %v2139_v33 = vld [vmem:[%s3603_s1 + $0x810] sm:$0xff] }
  0x95   : > { %592 = vmatmul.mubr.bf16.gmra.mrb[4].mxu0 %v3017_v44 }
  0x96   : > { %1003 = vmatpush1.bf16.msra.mxu0 %v954_v48  ;;  %1030 = vmatprep.mubr.bf16.mxu0 %v2647_v45  ;;  %v2018_v45 = vld [vmem:[%s3603_s1 + $0x448] sm:$0xff]  ;;  %v2108_v48 = vld [vmem:[%s3603_s1 + $0x718] sm:$0xff] }
  0x97   : > { %1004 = vmatprep.subr.bf16.mxu0 %v957_v53  ;;  %v720_v11 = vpack.c.bf16 %v2020_v5, %v2018_v45  ;;  %v726_v53 = vpack.c.bf16 %v2032_v43, %v2030_v42  ;;  %v967_v56 = vpack.c.bf16 %v2108_v48, %v2106_v46  ;;  %v2111_v5 = vld [vmem:[%s3603_s1 + $0x730] sm:$0xff]  ;;  %v2050_v46 = vld [vmem:[%s3603_s1 + $0x548] sm:$0xff]  ;;  %v2052_v48 = vld [vmem:[%s3603_s1 + $0x558] sm:$0xff] }
  0x98   : > { %v2123_v43 = vld [vmem:[%s3603_s1 + $0x790] sm:$0xff]  ;;  %v736_v55 = vpack.c.bf16 %v2052_v48, %v2050_v46 }
  0x99   : > { %767 = vmatprep.subr.bf16.mxu1 %v720_v11  ;;  %v968_v11 = vpack.c.bf16 %v2111_v5, %v2109_v1  ;;  %v2055_v5 = vld [vmem:[%s3603_s1 + $0x570] sm:$0xff] }
  0x9a   : > { %1005 = vmatpush1.bf16.msra.mxu0 %v956_v61  ;;  %768 = vmatpush1.bf16.msra.mxu1 %v719_v22  ;;  %v2112_v61 = vld [vmem:[%s3603_s1 + $0x738] sm:$0xff]  ;;  %v2118_v22 = vld [vmem:[%s3603_s1 + $0x768] sm:$0xff]  ;;  %v2143_v46 = vld [vmem:[%s3603_s1 + $0x830] sm:$0xff] }
  0x9b   : > { %1006 = vmatprep.subr.bf16.mxu0 %v959_v3  ;;  %769 = vmatprep.subr.bf16.mxu1 %v722_v25  ;;  %v2033_v3 = vld [vmem:[%s3603_s1 + $0x4c0] sm:$0xff]  ;;  %v969_v45 = vpack.c.bf16 %v2112_v61, %v2110_v60  ;;  %v970_v25 = vpack.c.bf16 %v2115_v19, %v2113_v13  ;;  %v2054_v60 = vld [vmem:[%s3603_s1 + $0x568] sm:$0xff]  ;;  %v2056_v61 = vld [vmem:[%s3603_s1 + $0x578] sm:$0xff] }
  0x9c   : > { %v727_v10 = vpack.c.bf16 %v2035_v4, %v2033_v3  ;;  %v2129_v3 = vld [vmem:[%s3603_s1 + $0x7c0] sm:$0xff]  ;;  %v738_v4 = vpack.c.bf16 %v2056_v61, %v2054_v60  ;;  %v2059_v19 = vld [vmem:[%s3603_s1 + $0x590] sm:$0xff]  ;;  %v2154_v61 = vld [vmem:[%s3603_s1 + $0x888] sm:$0xff] }
  0x9d   : > { %v2151_v60 = vld [vmem:[%s3603_s1 + $0x870] sm:$0xff] }
  0x9e   : > { %1007 = vmatpush1.bf16.msra.mxu0 %v958_v9  ;;  %770 = vmatpush1.bf16.msra.mxu1 %v721_v34  ;;  %v2116_v9 = vld [vmem:[%s3603_s1 + $0x758] sm:$0xff]  ;;  %v2122_v34 = vld [vmem:[%s3603_s1 + $0x788] sm:$0xff] }
  0x9f   : > { %1008 = vmatprep.subr.bf16.mxu0 %v961_v15  ;;  %771 = vmatprep.subr.bf16.mxu1 %v724_v37  ;;  %v2037_v15 = vld [vmem:[%s3603_s1 + $0x4e0] sm:$0xff]  ;;  %v971_v18 = vpack.c.bf16 %v2116_v9, %v2114_v8  ;;  %v972_v37 = vpack.c.bf16 %v2119_v31, %v2117_v26  ;;  %v2058_v8 = vld [vmem:[%s3603_s1 + $0x588] sm:$0xff]  ;;  %v2060_v9 = vld [vmem:[%s3603_s1 + $0x598] sm:$0xff] }
  0xa0   : > { %v729_v24 = vpack.c.bf16 %v2039_v16, %v2037_v15  ;;  %v2133_v15 = vld [vmem:[%s3603_s1 + $0x7e0] sm:$0xff]  ;;  %v740_v16 = vpack.c.bf16 %v2060_v9, %v2058_v8  ;;  %v2162_v8 = vld [vmem:[%s3603_s1 + $0x8c8] sm:$0xff]  ;;  %v2164_v9 = vld [vmem:[%s3603_s1 + $0x8d8] sm:$0xff] }
  0xa2   : > { %1009 = vmatpush1.bf16.msra.mxu0 %v960_v23  ;;  %772 = vmatpush1.bf16.msra.mxu1 %v723_v50  ;;  %v2120_v23 = vld [vmem:[%s3603_s1 + $0x778] sm:$0xff]  ;;  %v2126_v50 = vld [vmem:[%s3603_s1 + $0x7a8] sm:$0xff] }
  0xa3   : > { %1010 = vmatprep.subr.bf16.mxu0 %v963_v28  ;;  %773 = vmatprep.subr.bf16.mxu1 %v726_v53  ;;  %v2041_v28 = vld [vmem:[%s3603_s1 + $0x500] sm:$0xff]  ;;  %v973_v30 = vpack.c.bf16 %v2120_v23, %v2118_v22  ;;  %v974_v53 = vpack.c.bf16 %v2123_v43, %v2121_v38  ;;  %v2062_v22 = vld [vmem:[%s3603_s1 + $0x5a8] sm:$0xff]  ;;  %v2064_v23 = vld [vmem:[%s3603_s1 + $0x5b8] sm:$0xff] }
  0xa4   : > { %v731_v36 = vpack.c.bf16 %v2043_v29, %v2041_v28  ;;  %v742_v28 = vpack.c.bf16 %v2064_v23, %v2062_v22  ;;  %v2061_v29 = vld [vmem:[%s3603_s1 + $0x5a0] sm:$0xff]  ;;  %v2071_v22 = vld [vmem:[%s3603_s1 + $0x5f0] sm:$0xff] }
  0xa5   : > { %v2141_v43 = vld [vmem:[%s3603_s1 + $0x820] sm:$0xff] }
  0xa6   : > { %1011 = vmatpush1.bf16.msra.mxu0 %v962_v35  ;;  %774 = vmatpush1.bf16.msra.mxu1 %v725_v62  ;;  %v2124_v35 = vld [vmem:[%s3603_s1 + $0x798] sm:$0xff]  ;;  %v2130_v62 = vld [vmem:[%s3603_s1 + $0x7c8] sm:$0xff] }
  0xa7   : > { %1012 = vmatprep.subr.bf16.mxu0 %v965_v40  ;;  %775 = vmatprep.subr.bf16.mxu1 %v728_v2  ;;  %v2045_v40 = vld [vmem:[%s3603_s1 + $0x520] sm:$0xff]  ;;  %v975_v42 = vpack.c.bf16 %v2124_v35, %v2122_v34  ;;  %v976_v2 = vpack.c.bf16 %v2127_v59, %v2125_v54  ;;  %v2142_v34 = vld [vmem:[%s3603_s1 + $0x828] sm:$0xff]  ;;  %v2144_v35 = vld [vmem:[%s3603_s1 + $0x838] sm:$0xff] }
  0xa8   : > { %v733_v52 = vpack.c.bf16 %v2047_v41, %v2045_v40  ;;  %v2065_v40 = vld [vmem:[%s3603_s1 + $0x5c0] sm:$0xff]  ;;  %v2067_v41 = vld [vmem:[%s3603_s1 + $0x5d0] sm:$0xff] }
  0xa9   : > { %v2149_v59 = vld [vmem:[%s3603_s1 + $0x860] sm:$0xff] }
  0xaa   : > { %1013 = vmatpush1.bf16.msra.mxu0 %v964_v51  ;;  %776 = vmatpush1.bf16.msra.mxu1 %v727_v10  ;;  %v2128_v51 = vld [vmem:[%s3603_s1 + $0x7b8] sm:$0xff]  ;;  %v2134_v10 = vld [vmem:[%s3603_s1 + $0x7e8] sm:$0xff] }
  0xab   : > { %1014 = vmatprep.subr.bf16.mxu0 %v967_v56  ;;  %777 = vmatprep.subr.bf16.mxu1 %v730_v14  ;;  %v2049_v56 = vld [vmem:[%s3603_s1 + $0x540] sm:$0xff]  ;;  %v977_v58 = vpack.c.bf16 %v2128_v51, %v2126_v50  ;;  %v978_v14 = vpack.c.bf16 %v2131_v7, %v2129_v3  ;;  %v2146_v50 = vld [vmem:[%s3603_s1 + $0x848] sm:$0xff]  ;;  %v2148_v51 = vld [vmem:[%s3603_s1 + $0x858] sm:$0xff] }
  0xac   : > { %v735_v1 = vpack.c.bf16 %v2051_v57, %v2049_v56  ;;  %v987_v54 = vpack.c.bf16 %v2148_v51, %v2146_v50  ;;  %v2147_v56 = vld [vmem:[%s3603_s1 + $0x850] sm:$0xff]  ;;  %v2152_v57 = vld [vmem:[%s3603_s1 + $0x878] sm:$0xff] }
  0xad   : > { %v2155_v3 = vld [vmem:[%s3603_s1 + $0x890] sm:$0xff] }
  0xae   : > { %1015 = vmatpush1.bf16.msra.mxu0 %v966_v0  ;;  %778 = vmatpush1.bf16.msra.mxu1 %v729_v24  ;;  %v2132_v0 = vld [vmem:[%s3603_s1 + $0x7d8] sm:$0xff]  ;;  %v2138_v24 = vld [vmem:[%s3603_s1 + $0x808] sm:$0xff]  ;;  %v2159_v7 = vld [vmem:[%s3603_s1 + $0x8b0] sm:$0xff] }
  0xaf   : > { %1016 = vmatprep.subr.bf16.mxu0 %v969_v45  ;;  %800 = vmatprep.subr.bf16.mxu1 %v732_v27  ;;  %v2053_v45 = vld [vmem:[%s3603_s1 + $0x560] sm:$0xff]  ;;  %v979_v6 = vpack.c.bf16 %v2132_v0, %v2130_v62  ;;  %v980_v27 = vpack.c.bf16 %v2135_v21, %v2133_v15  ;;  %v2156_v62 = vld [vmem:[%s3603_s1 + $0x898] sm:$0xff]  ;;  %v988_v0 = vpack.c.bf16 %v2151_v60, %v2149_v59  ;;  %v2166_v15 = vld [vmem:[%s3603_s1 + $0x8e8] sm:$0xff] }
  0xb0   : > { %v737_v13 = vpack.c.bf16 %v2055_v5, %v2053_v45  ;;  %v2069_v21 = vld [vmem:[%s3603_s1 + $0x5e0] sm:$0xff] }
  0xb1   : > { %780 = vmatmul.mubr.bf16.vlgmr.msra.gmra.mrb[0].mxu1 %v2775_v47  ;;  %v745_v23 = vpack.c.bf16 %v2071_v22, %v2069_v21  ;;  %v1336_v22 = vld [vmem:[#allocation2 + $0x8] sm:$0xff] }
  0xb2   : > { %1017 = vmatpush1.bf16.msra.mxu0 %v968_v11  ;;  %801 = vmatpush1.bf16.msra.mxu1 %v731_v36  ;;  %v2136_v11 = vld [vmem:[%s3603_s1 + $0x7f8] sm:$0xff]  ;;  %v2066_v36 = vld [vmem:[%s3603_s1 + $0x5c8] sm:$0xff] }
  0xb3   : > { %1018 = vmatprep.subr.bf16.mxu0 %v971_v18  ;;  %789 = vmatprep.mubr.bf16.mxu1 %v2777_v49  ;;  %v2057_v18 = vld [vmem:[%s3603_s1 + $0x580] sm:$0xff]  ;;  %v981_v20 = vpack.c.bf16 %v2136_v11, %v2134_v10 }
  0xb4   : > { %802 = vmatprep.subr.bf16.mxu1 %v734_v39  ;;  %v739_v26 = vpack.c.bf16 %v2059_v19, %v2057_v18  ;;  %v982_v39 = vpack.c.bf16 %v2139_v33, %v2137_v32  ;;  %v2161_v11 = vld [vmem:[%s3603_s1 + $0x8c0] sm:$0xff]  ;;  %v2072_v18 = vld [vmem:[%s3603_s1 + $0x5f8] sm:$0xff] }
  0xb5   : > { %v2168_v19 = vld [vmem:[%s3603_s1 + $0x8f8] sm:$0xff] }
  0xb6   : > { %1019 = vmatpush1.bf16.msra.mxu0 %v970_v25  ;;  %803 = vmatpush1.bf16.msra.mxu1 %v733_v52  ;;  %v2140_v25 = vld [vmem:[%s3603_s1 + $0x818] sm:$0xff]  ;;  %v743_v52 = vpack.c.bf16 %v2067_v41, %v2065_v40 }
  0xb7   : > { %1020 = vmatprep.subr.bf16.mxu0 %v973_v30  ;;  %804 = vmatprep.subr.bf16.mxu1 %v736_v55  ;;  %v2063_v30 = vld [vmem:[%s3603_s1 + $0x5b0] sm:$0xff]  ;;  %v983_v31 = vpack.c.bf16 %v2140_v25, %v2138_v24  ;;  %v2145_v55 = vld [vmem:[%s3603_s1 + $0x840] sm:$0xff]  ;;  %v997_v25 = vpack.c.bf16 %v2168_v19, %v2166_v15 }
  0xb8   : > { %v741_v38 = vpack.c.bf16 %v2063_v30, %v2061_v29  ;;  %v2459_v29 = vmov 0.0   ;;  %v1335_v19 = vld [vmem:[#allocation2] sm:$0xff] }
  0xb9   : > { %790 = vmatmul.mubr.bf16.gmra.mrb[4].mxu1 %v2807_v63 }
  0xba   : > { %1021 = vmatpush1.bf16.msra.mxu0 %v972_v37  ;;  %805 = vmatpush1.bf16.msra.mxu1 %v735_v1  ;;  %v2068_v37 = vld [vmem:[%s3603_s1 + $0x5d8] sm:$0xff]  ;;  %v991_v1 = vpack.c.bf16 %v2156_v62, %v2154_v61 }
  0xbb   : > { %1022 = vmatprep.subr.bf16.mxu0 %v975_v42  ;;  %832 = vmatprep.mubr.bf16.mxu1 %v2458_v12  ;;  %v985_v42 = vpack.c.bf16 %v2144_v35, %v2142_v34  ;;  %v744_v48 = vpack.c.bf16 %v2068_v37, %v2066_v36 }
  0xbc   : > { %806 = vmatprep.subr.bf16.mxu1 %v738_v4  ;;  %v2158_v4 = vld [vmem:[%s3603_s1 + $0x8a8] sm:$0xff] }
  0xbe   : > { %1023 = vmatpush1.bf16.msra.mxu0 %v974_v53  ;;  %807 = vmatpush1.bf16.msra.mxu1 %v737_v13  ;;  %v984_v53 = vpack.c.bf16 %v2143_v46, %v2141_v43  ;;  %v2163_v13 = vld [vmem:[%s3603_s1 + $0x8d0] sm:$0xff] }
  0xbf   : > { %1024 = vmatprep.subr.bf16.mxu0 %v977_v58  ;;  %808 = vmatprep.subr.bf16.mxu1 %v740_v16  ;;  %v2070_v16 = vld [vmem:[%s3603_s1 + $0x5e8] sm:$0xff]  ;;  %v994_v24 = vpack.c.bf16 %v2163_v13, %v2161_v11 }
  0xc2   : > { %1025 = vmatpush1.bf16.msra.mxu0 %v976_v2  ;;  %809 = vmatpush1.bf16.msra.mxu1 %v739_v26  ;;  %v2153_v2 = vld [vmem:[%s3603_s1 + $0x880] sm:$0xff] }
  0xc3   : > { %1026 = vmatprep.subr.bf16.mxu0 %v979_v6  ;;  %810 = vmatprep.subr.bf16.mxu1 %v742_v28  ;;  %v990_v45 = vpack.c.bf16 %v2155_v3, %v2153_v2  ;;  %v2157_v6 = vld [vmem:[%s3603_s1 + $0x8a0] sm:$0xff] }
  0xc4   : > { %v992_v10 = vpack.c.bf16 %v2159_v7, %v2157_v6  ;;  %v2165_v26 = vld [vmem:[%s3603_s1 + $0x8e0] sm:$0xff] }
  0xc6   : > { %1027 = vmatpush1.bf16.msra.mxu0 %v978_v14  ;;  %811 = vmatpush1.bf16.msra.mxu1 %v741_v38  ;;  %v995_v14 = vpack.c.bf16 %v2164_v9, %v2162_v8 }
  0xc7   : > { %1028 = vmatprep.subr.bf16.mxu0 %v981_v20  ;;  %812 = vmatprep.subr.bf16.mxu1 %v744_v48  ;;  %v746_v20 = vpack.c.bf16 %v2072_v18, %v2070_v16  ;;  %v1351_v16 = vld [vmem:[#allocation2 + $0x80] sm:$0xff]  ;;  %v1352_v18 = vld [vmem:[#allocation2 + $0x88] sm:$0xff] }
  0xc8   : > { %v1379_v21 = vpack.c.bf16 %v1352_v18, %v1351_v16  ;;  %v1542_v16 = vld [vmem:[#allocation2 + $0x238] sm:$0xff]  ;;  %v1360_v18 = vld [vmem:[#allocation2 + $0xc8] sm:$0xff] }
  0xca   : > { %1029 = vmatpush1.bf16.msra.mxu0 %v980_v27  ;;  %813 = vmatpush1.bf16.msra.mxu1 %v743_v52  ;;  %v2167_v27 = vld [vmem:[%s3603_s1 + $0x8f0] sm:$0xff] }
  0xcb   : > { %1051 = vmatprep.subr.bf16.mxu0 %v983_v31  ;;  %814 = vmatprep.subr.bf16.mxu1 %v746_v20  ;;  %v996_v28 = vpack.c.bf16 %v2167_v27, %v2165_v26  ;;  %v307_v31 = vlaneseq  ;;  %v1535_v27 = vld [vmem:[#allocation2 + $0x200] sm:$0xff] }
  0xcd   : > { %1031 = vmatmul.mubr.bf16.vlgmr.msra.gmra.mrb[8].mxu0 %v2775_v47  ;;  %v2150_v47 = vld [vmem:[%s3603_s1 + $0x868] sm:$0xff]  ;;  %v3468_v37 = vshrl.u32 %v307_v31, 7 }
  0xce   : > { %1052 = vmatpush1.bf16.msra.mxu0 %v982_v39  ;;  %1040 = vmatprep.mubr.bf16.mxu0 %v2777_v49  ;;  %v986_v49 = vpack.c.bf16 %v2147_v56, %v2145_v55  ;;  %v989_v58 = vpack.c.bf16 %v2152_v57, %v2150_v47 }
  0xcf   : > { %1053 = vmatprep.subr.bf16.mxu0 %v985_v42  ;;  %815 = vmatpush1.bf16.msra.mxu1 %v745_v23  ;;  %v1965_v38 = vadd.s32 4294967295, %v3468_v37  ;;  %v309_v39 = vadd.s32 8, %v3468_v37  ;;  %v310_v48 = vadd.s32 16, %v3468_v37  ;;  %v311_v52 = vadd.s32 24, %v3468_v37  ;;  %v1551_v23 = vld [vmem:[#allocation2 + $0x280] sm:$0xff] }
  0xd1   : > { %v1966_v46 = vadd.s32 4294967295, %v309_v39  ;;  %v1967_v51 = vadd.s32 4294967295, %v310_v48  ;;  %v331_v11 = vadd.s32 1, %v309_v39  ;;  %v333_v20 = vadd.s32 1, %v311_v52  ;;  %v1554_v39 = vld [vmem:[#allocation2 + $0x298] sm:$0xff] }
  0xd2   : > { %1054 = vmatpush1.bf16.msra.mxu0 %v984_v53  ;;  %833 = vmatmul.mubr.bf16.vlgmr.msra.gmra.mrb[0].mxu1 %v2963_v17 }
  0xd3   : > { %1055 = vmatprep.subr.bf16.mxu0 %v987_v54  ;;  %842 = vmatprep.mubr.bf16.mxu1 %v2458_v12  ;;  %v1968_v54 = vadd.s32 4294967295, %v311_v52  ;;  %v1340_v52 = vld [vmem:[#allocation2 + $0x28] sm:$0xff] }
  0xd5   : > { %1041 = vmatmul.mubr.bf16.gmra.mrb[12].mxu0 %v2807_v63  ;;  %v2160_v63 = vld [vmem:[%s3603_s1 + $0x8b8] sm:$0xff] }
  0xd6   : > { %1056 = vmatpush1.bf16.msra.mxu0 %v986_v49  ;;  %1083 = vmatprep.mubr.bf16.mxu0 %v2458_v12  ;;  %v993_v5 = vpack.c.bf16 %v2160_v63, %v2158_v4 }
  0xd7   : > { %1057 = vmatprep.subr.bf16.mxu0 %v989_v58 }
  0xda   : > { %1058 = vmatpush1.bf16.msra.mxu0 %v988_v0  ;;  %843 = vmatmul.mubr.bf16.gmra.mrb[4].mxu1 %v3017_v44 }
  0xdb   : > { %1059 = vmatprep.subr.bf16.mxu0 %v991_v1  ;;  %1181 = vmatprep.mubr.f32.mxu1 %v2459_v29 }
  0xde   : > { %1060 = vmatpush1.bf16.msra.mxu0 %v990_v45 }
  0xdf   : > { %1061 = vmatprep.subr.bf16.mxu0 %v993_v5  ;;  %v330_v5 = vadd.s32 1, %v3468_v37 }
  0xe2   : > { %1062 = vmatpush1.bf16.msra.mxu0 %v992_v10 }
  0xe3   : > { %1063 = vmatprep.subr.bf16.mxu0 %v995_v14  ;;  %v332_v14 = vadd.s32 1, %v310_v48 }
  0xe6   : > { %1064 = vmatpush1.bf16.msra.mxu0 %v994_v24  ;;  %v1552_v24 = vld [vmem:[#allocation2 + $0x288] sm:$0xff] }
  0xe7   : > { %1065 = vmatprep.subr.bf16.mxu0 %v997_v25  ;;  %v1371_v25 = vpack.c.bf16 %v1336_v22, %v1335_v19  ;;  %v1575_v26 = vpack.c.bf16 %v1552_v24, %v1551_v23  ;;  %v1343_v23 = vld [vmem:[#allocation2 + $0x40] sm:$0xff]  ;;  %v1344_v24 = vld [vmem:[#allocation2 + $0x48] sm:$0xff] }
  0xea   : > { %1066 = vmatpush1.bf16.msra.mxu0 %v996_v28  ;;  %v1536_v28 = vld [vmem:[#allocation2 + $0x208] sm:$0xff] }
  0xeb   : > { %2247 = vmatprep.subr.bf16.mxu0 %v1575_v26 }
  0xed   : > { %1084 = vmatmul.mubr.bf16.vlgmr.msra.gmra.mrb[8].mxu0 %v2963_v17 }
  0xee   : > { %1093 = vmatprep.mubr.bf16.mxu0 %v2458_v12  ;;  %v3470_v12 = vand.u32 127, %v307_v31  ;;  %v1567_v31 = vpack.c.bf16 %v1536_v28, %v1535_v27  ;;  %v1543_v27 = vld [vmem:[#allocation2 + $0x240] sm:$0xff]  ;;  %v1544_v28 = vld [vmem:[#allocation2 + $0x248] sm:$0xff] }
  0xf0   : > { %vm318_vm0 = vcmp.eq.s32.totalorder %v3470_v12, %v1965_v38  ;;  %vm319_vm2 = vcmp.eq.s32.totalorder %v3470_v12, %v1966_v46  ;;  %vm320_vm3 = vcmp.eq.s32.totalorder %v3470_v12, %v1967_v51  ;;  %vm321_vm4 = vcmp.eq.s32.totalorder %v3470_v12, %v1968_v54  ;;  %v1553_v38 = vld [vmem:[#allocation2 + $0x290] sm:$0xff]  ;;  %2248 = vmatpush3.bf16.msra.mxu0 %v1567_v31  ;;  %v1339_v51 = vld [vmem:[#allocation2 + $0x20] sm:$0xff] }
  0xf1   : > { %v3477_v50 = vsel %vm318_vm0, 1.0, %v2459_v29  ;;  %v3485_v53 = vsel %vm319_vm2, 1.0, %v2459_v29  ;;  %v3492_v55 = vsel %vm320_vm3, 1.0, %v2459_v29  ;;  %v3499_v56 = vsel %vm321_vm4, 1.0, %v2459_v29  ;;  %v1555_v54 = vld [vmem:[#allocation2 + $0x2a0] sm:$0xff] }
  0xf2   : > { %vm334_vm5 = vcmp.eq.s32.totalorder %v3470_v12, %v330_v5  ;;  %vm335_vm6 = vcmp.eq.s32.totalorder %v3470_v12, %v331_v11  ;;  %vm336_vm7 = vcmp.eq.s32.totalorder %v3470_v12, %v332_v14  ;;  %vm337_vm8 = vcmp.eq.s32.totalorder %v3470_v12, %v333_v20  ;;  %v1358_v5 = vld [vmem:[#allocation2 + $0xb8] sm:$0xff]  ;;  %v1359_v14 = vld [vmem:[#allocation2 + $0xc0] sm:$0xff]  ;;  %v1541_v12 = vld [vmem:[#allocation2 + $0x230] sm:$0xff] }
  0xf3   : > { %v3523_v13 = vsel %vm334_vm5, 1.0, %v2459_v29  ;;  %v3530_v15 = vsel %vm335_vm6, 1.0, %v2459_v29  ;;  %v1559_v20 = vld [vmem:[#allocation2 + $0x2c0] sm:$0xff]  ;;  %v1383_v22 = vpack.c.bf16 %v1360_v18, %v1359_v14  ;;  %v1571_v31 = vpack.c.bf16 %v1544_v28, %v1543_v27 }
  0xf5   : > { %1094 = vmatmul.mubr.bf16.gmra.mrb[12].mxu0 %v3017_v44 }
 0x160   : > { %v583_v30 = vpop.f32.mrb[0].mxu0 }
 0x161   : > { %v585_v32 = vpop.f32.mrb[1].mxu0 }
 0x162   : > { %v587_v33 = vpop.f32.mrb[2].mxu0 }
 0x163   : > { %v2321_v34 = vpack.c.bf16 %v587_v33, %v583_v30  ;;  %v589_v35 = vpop.f32.mrb[3].mxu0  ;;  %v1353_v30 = vld [vmem:[#allocation2 + $0x90] sm:$0xff] }
 0x164   : > { %v2319_v36 = vpack.c.bf16 %v589_v35, %v585_v32  ;;  %v1354_v32 = vld [vmem:[#allocation2 + $0x98] sm:$0xff]  ;;  %v1337_v33 = vld [vmem:[#allocation2 + $0x10] sm:$0xff]  ;;  %v3539_v35 = vsel %vm336_vm7, 1.0, %v2459_v29 }
 0x166   : > { %2320 = vmatprep.subr.bf16.mxu1 %v2319_v36  ;;  %v1380_v36 = vpack.c.bf16 %v1354_v32, %v1353_v30  ;;  %v1375_v30 = vpack.c.bf16 %v1344_v24, %v1343_v23  ;;  %v1361_v32 = vld [vmem:[#allocation2 + $0xd0] sm:$0xff] }
 0x167   : > { %2322 = vmatpush1.bf16.msra.mxu1 %v2321_v34  ;;  %v1338_v34 = vld [vmem:[#allocation2 + $0x18] sm:$0xff] }
 0x168   : > { %v593_v17 = vpop.f32.mrb[4].mxu0 }
 0x169   : > { %v595_v40 = vpop.f32.mrb[5].mxu0 }
 0x16a   : > { %v597_v44 = vpop.f32.mrb[6].mxu0 }
 0x16b   : > { %v2325_v41 = vpack.c.bf16 %v597_v44, %v593_v17  ;;  %v599_v42 = vpop.f32.mrb[7].mxu0  ;;  %v1372_v17 = vpack.c.bf16 %v1338_v34, %v1337_v33  ;;  %v1576_v44 = vpack.c.bf16 %v1554_v39, %v1553_v38  ;;  %v1362_v33 = vld [vmem:[#allocation2 + $0xd8] sm:$0xff]  ;;  %v1561_v38 = vld [vmem:[#allocation2 + $0x2d0] sm:$0xff] }
 0x16c   : > { %v2323_v43 = vpack.c.bf16 %v599_v42, %v595_v40  ;;  %v1537_v40 = vld [vmem:[#allocation2 + $0x210] sm:$0xff]  ;;  %v1355_v42 = vld [vmem:[#allocation2 + $0xa0] sm:$0xff]  ;;  %v1384_v34 = vpack.c.bf16 %v1362_v33, %v1361_v32 }
 0x16d   : > { %2249 = vmatprep.subr.bf16.mxu0 %v1576_v44  ;;  %v1545_v44 = vld [vmem:[#allocation2 + $0x250] sm:$0xff] }
 0x16e   : > { %2324 = vmatprep.subr.bf16.mxu1 %v2323_v43  ;;  %v1356_v43 = vld [vmem:[#allocation2 + $0xa8] sm:$0xff] }
 0x16f   : > { %2326 = vmatpush1.bf16.msra.mxu1 %v2325_v41  ;;  %v1538_v41 = vld [vmem:[#allocation2 + $0x218] sm:$0xff]  ;;  %v1381_v48 = vpack.c.bf16 %v1356_v43, %v1355_v42 }
 0x170   : > { %v1568_v46 = vpack.c.bf16 %v1538_v41, %v1537_v40  ;;  %v1562_v40 = vld [vmem:[#allocation2 + $0x2d8] sm:$0xff] }
 0x171   : > { %v1546_v41 = vld [vmem:[#allocation2 + $0x258] sm:$0xff]  ;;  %v1580_v42 = vpack.c.bf16 %v1562_v40, %v1561_v38 }
 0x172   : > { %2169 = vmatmul.mubr.msk.f32.vlgmr.msra.gmra.mrb[8].mxu1 %vm1104_vm1, %v3477_v50  ;;  %2250 = vmatpush3.bf16.msra.mxu0 %v1568_v46  ;;  %v1572_v43 = vpack.c.bf16 %v1546_v41, %v1545_v44  ;;  %v1363_v46 = vld [vmem:[#allocation2 + $0xe0] sm:$0xff] }
 0x173   : > { %1187 = vmatprep.mubr.f32.mxu1 %v2459_v29 }
 0x176   : > { %2170 = vmatmul.mubr.msk.f32.gmra.mrb[10].mxu1 %vm1104_vm1, %v3485_v53 }
 0x177   : > { %1193 = vmatprep.mubr.f32.mxu1 %v2459_v29 }
 0x17a   : > { %2171 = vmatmul.mubr.msk.f32.gmra.mrb[12].mxu1 %vm1104_vm1, %v3492_v55 }
 0x17b   : > { %1199 = vmatprep.mubr.f32.mxu1 %v2459_v29 }
 0x17e   : > { %2172 = vmatmul.mubr.msk.f32.gmra.mrb[14].mxu1 %vm1104_vm1, %v3499_v56 }
 0x17f   : > { %1282 = vmatprep.mubr.f32.mxu1 %v2459_v29 }
 0x1a5   : > { %v3504_v47 = vpop.f32.mrb[0].mxu1 }
 0x1a6   : > { %v3506_v57 = vpop.f32.mrb[1].mxu1 }
 0x1a7   : > { %v3508_v49 = vpop.f32.mrb[2].mxu1 }
 0x1a8   : > { %v3510_v58 = vpop.f32.mrb[3].mxu1 }
 0x1ad   : > { %v3512_v61 = vpop.f32.mrb[4].mxu1 }
 0x1ae   : > { %v3514_v0 = vpop.f32.mrb[5].mxu1 }
 0x1af   : > { %v3516_v3 = vpop.f32.mrb[6].mxu1 }
 0x1b0   : > { %v3518_v63 = vpop.f32.mrb[7].mxu1 }
 0x1c0   : > { %v1085_v59 = vpop.f32.mrb[8].mxu0 }
 0x1c1   : > { %v1087_v60 = vpop.f32.mrb[9].mxu0 }
 0x1c2   : > { %v1089_v62 = vpop.f32.mrb[10].mxu0 }
 0x1c3   : > { %v2329_v1 = vpack.c.bf16 %v1089_v62, %v1085_v59  ;;  %v1091_v2 = vpop.f32.mrb[11].mxu0  ;;  %v1556_v59 = vld [vmem:[#allocation2 + $0x2a8] sm:$0xff] }
 0x1c4   : > { %v2327_v4 = vpack.c.bf16 %v1091_v2, %v1087_v60  ;;  %v1539_v60 = vld [vmem:[#allocation2 + $0x220] sm:$0xff]  ;;  %v1540_v62 = vld [vmem:[#allocation2 + $0x228] sm:$0xff]  ;;  %v1373_v2 = vpack.c.bf16 %v1340_v52, %v1339_v51 }
 0x1c5   : > { %v1569_v11 = vpack.c.bf16 %v1540_v62, %v1539_v60  ;;  %v1347_v52 = vld [vmem:[#allocation2 + $0x60] sm:$0xff]  ;;  %v1564_v62 = vld [vmem:[#allocation2 + $0x2e8] sm:$0xff] }
 0x1c6   : > { %2328 = vmatprep.subr.bf16.mxu1 %v2327_v4  ;;  %v1577_v4 = vpack.c.bf16 %v1556_v59, %v1555_v54  ;;  %v1348_v54 = vld [vmem:[#allocation2 + $0x68] sm:$0xff]  ;;  %v1563_v59 = vld [vmem:[#allocation2 + $0x2e0] sm:$0xff] }
 0x1c7   : > { %2330 = vmatpush1.bf16.msra.mxu1 %v2329_v1  ;;  %v3548_v1 = vsel %vm337_vm8, 1.0, %v2459_v29  ;;  %v1377_v60 = vpack.c.bf16 %v1348_v54, %v1347_v52  ;;  %v1437_v52 = vld [vmem:[#allocation2 + $0x100] sm:$0xff]  ;;  %v1438_v54 = vld [vmem:[#allocation2 + $0x108] sm:$0xff] }
 0x1c8   : > { %v1095_v45 = vpop.f32.mrb[12].mxu0  ;;  %2251 = vmatprep.subr.bf16.mxu0 %v1577_v4  ;;  %v1548_v4 = vld [vmem:[#allocation2 + $0x268] sm:$0xff] }
 0x1c9   : > { %v1097_v6 = vpop.f32.mrb[13].mxu0  ;;  %2252 = vmatpush3.bf16.msra.mxu0 %v1569_v11  ;;  %v1565_v11 = vld [vmem:[#allocation2 + $0x2f0] sm:$0xff] }
 0x1ca   : > { %v1099_v7 = vpop.f32.mrb[14].mxu0 }
 0x1cb   : > { %v2333_v8 = vpack.c.bf16 %v1099_v7, %v1095_v45  ;;  %v1101_v9 = vpop.f32.mrb[15].mxu0  ;;  %v1357_v45 = vld [vmem:[#allocation2 + $0xb0] sm:$0xff] }
 0x1cc   : > { %v2331_v10 = vpack.c.bf16 %v1101_v9, %v1097_v6  ;;  %v1341_v6 = vld [vmem:[#allocation2 + $0x30] sm:$0xff]  ;;  %v1382_v7 = vpack.c.bf16 %v1358_v5, %v1357_v45  ;;  %v1581_v45 = vpack.c.bf16 %v1564_v62, %v1563_v59 }
 0x1cd   : > { %v1557_v9 = vld [vmem:[#allocation2 + $0x2b0] sm:$0xff] }
 0x1ce   : > { %2332 = vmatprep.subr.bf16.mxu1 %v2331_v10  ;;  %v1558_v10 = vld [vmem:[#allocation2 + $0x2b8] sm:$0xff] }
 0x1cf   : > { %2334 = vmatpush1.bf16.msra.mxu1 %v2333_v8  ;;  %v1342_v8 = vld [vmem:[#allocation2 + $0x38] sm:$0xff] }
 0x1d0   : > { %2191 = vmatprep.subr.bf16.mxu1 %v1379_v21  ;;  %v1374_v19 = vpack.c.bf16 %v1342_v8, %v1341_v6  ;;  %v1560_v21 = vld [vmem:[#allocation2 + $0x2c8] sm:$0xff]  ;;  %v1365_v6 = vld [vmem:[#allocation2 + $0xf0] sm:$0xff] }
 0x1d1   : > { %v1579_v26 = vpack.c.bf16 %v1560_v21, %v1559_v20  ;;  %v1453_v20 = vld [vmem:[#allocation2 + $0x180] sm:$0xff]  ;;  %v1454_v21 = vld [vmem:[#allocation2 + $0x188] sm:$0xff] }
 0x1d2   : > { %2173 = vmatmul.mubr.msk.f32.vlgmr.msra.gmra.mrb[16].mxu1 %vm1104_vm1, %v3523_v13 }
 0x1d3   : > { %1288 = vmatprep.mubr.f32.mxu1 %v2459_v29  ;;  %2192 = vmatpush3.bf16.msra.mxu1 %v1371_v25  ;;  %v1570_v25 = vpack.c.bf16 %v1542_v16, %v1541_v12  ;;  %v1549_v12 = vld [vmem:[#allocation2 + $0x270] sm:$0xff]  ;;  %v1550_v16 = vld [vmem:[#allocation2 + $0x278] sm:$0xff] }
 0x1d4   : > { %2193 = vmatprep.subr.bf16.mxu1 %v1380_v36  ;;  %v1345_v36 = vld [vmem:[#allocation2 + $0x50] sm:$0xff] }
 0x1d6   : > { %2174 = vmatmul.mubr.msk.f32.gmra.mrb[18].mxu1 %vm1104_vm1, %v3530_v15 }
 0x1d7   : > { %1294 = vmatprep.mubr.f32.mxu1 %v2459_v29  ;;  %2194 = vmatpush3.bf16.msra.mxu1 %v1372_v17  ;;  %v1346_v17 = vld [vmem:[#allocation2 + $0x58] sm:$0xff] }
 0x1d8   : > { %2195 = vmatprep.subr.bf16.mxu1 %v1381_v48  ;;  %v1376_v39 = vpack.c.bf16 %v1346_v17, %v1345_v36  ;;  %v1364_v48 = vld [vmem:[#allocation2 + $0xe8] sm:$0xff] }
 0x1d9   : > { %v1385_v51 = vpack.c.bf16 %v1364_v48, %v1363_v46 }
 0x1da   : > { %2175 = vmatmul.mubr.msk.f32.gmra.mrb[20].mxu1 %vm1104_vm1, %v3539_v35 }
 0x1db   : > { %1300 = vmatprep.mubr.f32.mxu1 %v2459_v29  ;;  %v1578_v29 = vpack.c.bf16 %v1558_v10, %v1557_v9  ;;  %2196 = vmatpush3.bf16.msra.mxu1 %v1373_v2  ;;  %v1547_v2 = vld [vmem:[#allocation2 + $0x260] sm:$0xff]  ;;  %v1349_v9 = vld [vmem:[#allocation2 + $0x70] sm:$0xff]  ;;  %v1350_v10 = vld [vmem:[#allocation2 + $0x78] sm:$0xff] }
 0x1dc   : > { %2197 = vmatprep.subr.bf16.mxu1 %v1382_v7  ;;  %v1573_v5 = vpack.c.bf16 %v1548_v4, %v1547_v2  ;;  %v1366_v7 = vld [vmem:[#allocation2 + $0xf8] sm:$0xff]  ;;  %v1378_v14 = vpack.c.bf16 %v1350_v10, %v1349_v9  ;;  %v1455_v2 = vld [vmem:[#allocation2 + $0x190] sm:$0xff] }
 0x1dd   : > { %2253 = vmatprep.subr.bf16.mxu0 %v1578_v29  ;;  %v1386_v8 = vpack.c.bf16 %v1366_v7, %v1365_v6  ;;  %v1566_v29 = vld [vmem:[#allocation2 + $0x2f8] sm:$0xff]  ;;  %v1439_v10 = vld [vmem:[#allocation2 + $0x110] sm:$0xff] }
 0x1de   : > { %2176 = vmatmul.mubr.msk.f32.gmra.mrb[22].mxu1 %vm1104_vm1, %v3548_v1  ;;  %2254 = vmatpush3.bf16.msra.mxu0 %v1570_v25  ;;  %v1582_v18 = vpack.c.bf16 %v1566_v29, %v1565_v11  ;;  %v1456_v4 = vld [vmem:[#allocation2 + $0x198] sm:$0xff]  ;;  %v1457_v29 = vld [vmem:[#allocation2 + $0x1a0] sm:$0xff] }
 0x1df   : > { %2198 = vmatpush3.bf16.msra.mxu1 %v1374_v19  ;;  %2255 = vmatprep.subr.bf16.mxu0 %v1579_v26  ;;  %v1574_v19 = vpack.c.bf16 %v1550_v16, %v1549_v12  ;;  %v1478_v9 = vpack.c.bf16 %v1456_v4, %v1455_v2  ;;  %v1440_v11 = vld [vmem:[#allocation2 + $0x118] sm:$0xff]  ;;  %v1458_v12 = vld [vmem:[#allocation2 + $0x1a8] sm:$0xff] }
 0x1e0   : > { %2199 = vmatprep.subr.bf16.mxu1 %v1383_v22  ;;  %v1477_v22 = vpack.c.bf16 %v1454_v21, %v1453_v20  ;;  %v1470_v20 = vpack.c.bf16 %v1440_v11, %v1439_v10  ;;  %v1452_v2 = vld [vmem:[#allocation2 + $0x178] sm:$0xff] }
 0x1e2   : > { %2256 = vmatpush3.bf16.msra.mxu0 %v1571_v31 }
 0x1e3   : > { %2200 = vmatpush3.bf16.msra.mxu1 %v1375_v30  ;;  %2257 = vmatprep.subr.bf16.mxu0 %v1580_v42 }
 0x1e4   : > { %2201 = vmatprep.subr.bf16.mxu1 %v1384_v34 }
 0x1e6   : > { %2258 = vmatpush3.bf16.msra.mxu0 %v1572_v43 }
 0x1e7   : > { %2202 = vmatpush3.bf16.msra.mxu1 %v1376_v39  ;;  %2259 = vmatprep.subr.bf16.mxu0 %v1581_v45 }
 0x1e8   : > { %2203 = vmatprep.subr.bf16.mxu1 %v1385_v51 }
 0x1ea   : > { %2260 = vmatpush3.bf16.msra.mxu0 %v1573_v5 }
 0x1eb   : > { %2204 = vmatpush3.bf16.msra.mxu1 %v1377_v60  ;;  %2261 = vmatprep.subr.bf16.mxu0 %v1582_v18 }
 0x1ec   : > { %2205 = vmatprep.subr.bf16.mxu1 %v1386_v8  ;;  %v1469_v8 = vpack.c.bf16 %v1438_v54, %v1437_v52  ;;  %v1467_v52 = vld [vmem:[#allocation2 + $0x1f0] sm:$0xff]  ;;  %v1468_v54 = vld [vmem:[#allocation2 + $0x1f8] sm:$0xff] }
 0x1ee   : > { %2262 = vmatpush3.bf16.msra.mxu0 %v1574_v19 }
 0x1ef   : > { %2206 = vmatpush3.bf16.msra.mxu1 %v1378_v14 }
 0x1f0   : > { %2219 = vmatprep.subr.bf16.mxu1 %v1477_v22 }
 0x245   : > { %v1183_v23 = vpop.f32.mrb[8].mxu1 }
 0x246   : > { %v1184_v24 = vadd.f32 %v1183_v23, %v3504_v47  ;;  %v1185_v25 = vpop.f32.mrb[9].mxu1  ;;  %v1479_v23 = vpack.c.bf16 %v1458_v12, %v1457_v29 }
 0x247   : > { %v1186_v26 = vadd.f32 %v1185_v25, %v3506_v57  ;;  %v1319_v57 = vsub.s32 0, %v3468_v37  ;;  %v1442_v25 = vld [vmem:[#allocation2 + $0x128] sm:$0xff] }
 0x249   : > { %v1189_v27 = vpop.f32.mrb[10].mxu1 }
 0x24a   : > { %v1190_v28 = vadd.f32 %v1189_v27, %v3508_v49  ;;  %v1191_v30 = vpop.f32.mrb[11].mxu1  ;;  %v1315_v49 = vld [vmem:[%s3604_s2] sm:$0x3] }
 0x24b   : > { %v1192_v31 = vadd.f32 %v1191_v30, %v3510_v58  ;;  %v1323_v58 = vsub.s32 1, %v3468_v37  ;;  %v1320_v42 = vrot.slane %v1315_v49, %v1319_v57  ;;  %v1460_v30 = vld [vmem:[#allocation2 + $0x1b8] sm:$0xff] }
 0x24d   : > { %v1195_v32 = vpop.f32.mrb[12].mxu1 }
 0x24e   : > { %v1196_v33 = vadd.f32 %v1195_v32, %v3512_v61  ;;  %v1197_v34 = vpop.f32.mrb[13].mxu1 }
 0x24f   : > { %v1198_v36 = vadd.f32 %v1197_v34, %v3514_v0  ;;  %v1324_v0 = vrot.slane %v1315_v49, %v1323_v58  ;;  %v1446_v49 = vld [vmem:[#allocation2 + $0x148] sm:$0xff]  ;;  %v1463_v58 = vld [vmem:[#allocation2 + $0x1d0] sm:$0xff] }
 0x251   : > { %v1201_v17 = vpop.f32.mrb[14].mxu1 }
 0x252   : > { %v1202_v38 = vadd.f32 %v1201_v17, %v3516_v3  ;;  %v1203_v39 = vpop.f32.mrb[15].mxu1  ;;  %v1444_v17 = vld [vmem:[#allocation2 + $0x138] sm:$0xff] }
 0x253   : > { %v1204_v47 = vadd.f32 %v1203_v39, %v3518_v63  ;;  %v1462_v39 = vld [vmem:[#allocation2 + $0x1c8] sm:$0xff] }
 0x2a5   : > { %v1284_v40 = vpop.f32.mrb[16].mxu1 }
 0x2a6   : > { %v1307_v44 = vadd.f32 %v1284_v40, %v1184_v24  ;;  %v1286_v61 = vpop.f32.mrb[17].mxu1  ;;  %v1441_v24 = vld [vmem:[#allocation2 + $0x120] sm:$0xff] }
 0x2a7   : > { %v1308_v41 = vadd.f32 %v1286_v61, %v1186_v26  ;;  %v1445_v40 = vld [vmem:[#allocation2 + $0x140] sm:$0xff] }
 0x2a8   : > { %v1327_v51 = vadd.f32 %v1320_v42, %v1307_v44  ;;  %v1464_v44 = vld [vmem:[#allocation2 + $0x1d8] sm:$0xff]  ;;  %v1473_v61 = vpack.c.bf16 %v1446_v49, %v1445_v40 }
 0x2a9   : > { %v1290_v43 = vpop.f32.mrb[18].mxu1  ;;  %v1328_v59 = vadd.f32 %v1324_v0, %v1308_v41  ;;  %v1482_v41 = vpack.c.bf16 %v1464_v44, %v1463_v58 }
 0x2aa   : > { %v1309_v46 = vadd.f32 %v1290_v43, %v1190_v28  ;;  %v1292_v3 = vpop.f32.mrb[19].mxu1  ;;  %v1459_v28 = vld [vmem:[#allocation2 + $0x1b0] sm:$0xff]  ;;  %v1465_v43 = vld [vmem:[#allocation2 + $0x1e0] sm:$0xff] }
 0x2ab   : > { %v1310_v48 = vadd.f32 %v1292_v3, %v1192_v31  ;;  %v1480_v34 = vpack.c.bf16 %v1460_v30, %v1459_v28 }
 0x2ac   : > { %v1329_v63 = vadd.f32 %v1320_v42, %v1309_v46  ;;  %v1466_v46 = vld [vmem:[#allocation2 + $0x1e8] sm:$0xff] }
 0x2ad   : > { %v1330_v60 = vadd.f32 %v1324_v0, %v1310_v48  ;;  %v1296_v62 = vpop.f32.mrb[20].mxu1  ;;  %v1483_v48 = vpack.c.bf16 %v1466_v46, %v1465_v43 }
 0x2ae   : > { %v3565_v45 = vpack.c.bf16 %v1329_v63, %v1327_v51  ;;  %v1311_v37 = vadd.f32 %v1296_v62, %v1196_v33  ;;  %v1298_v5 = vpop.f32.mrb[21].mxu1  ;;  %v1471_v33 = vpack.c.bf16 %v1442_v25, %v1441_v24  ;;  %v1449_v51 = vld [vmem:[#allocation2 + $0x160] sm:$0xff]  ;;  %v1450_v63 = vld [vmem:[#allocation2 + $0x168] sm:$0xff]  ;;  %v1451_v62 = vld [vmem:[#allocation2 + $0x170] sm:$0xff] }
 0x2af   : > { %v1312_v6 = vadd.f32 %v1298_v5, %v1198_v36  ;;  %v1368_v7 = vpack.c.bf16 %v1330_v60, %v1328_v59  ;;  %v1443_v36 = vld [vmem:[#allocation2 + $0x130] sm:$0xff]  ;;  %v1475_v59 = vpack.c.bf16 %v1450_v63, %v1449_v51  ;;  %v1484_v60 = vpack.c.bf16 %v1468_v54, %v1467_v52 }
 0x2b0   : > { %v1331_v21 = vadd.f32 %v1320_v42, %v1311_v37  ;;  %v1476_v4 = vpack.c.bf16 %v1452_v2, %v1451_v62 }
 0x2b1   : > { %v1302_v14 = vpop.f32.mrb[22].mxu1  ;;  %1419 = vmatprep.mubr.bf16.mxu1 %v1368_v7  ;;  %1615 = vmatprep.mubr.bf16.mxu0 %v1368_v7  ;;  %v1332_v26 = vadd.f32 %v1324_v0, %v1312_v6 }
 0x2b2   : > { %v1313_v16 = vadd.f32 %v1302_v14, %v1202_v38  ;;  %v1304_v18 = vpop.f32.mrb[23].mxu1  ;;  %1420 = vmatmul.mubr.bf16.vlgmr.msra.gmra.mrb[24].mxu1 %v3565_v45  ;;  %1616 = vmatmul.mubr.bf16.vlgmr.msra.gmra.mrb[16].mxu0 %v3565_v45  ;;  %v1461_v38 = vld [vmem:[#allocation2 + $0x1c0] sm:$0xff] }
 0x2b3   : > { %v1314_v19 = vadd.f32 %v1304_v18, %v1204_v47  ;;  %2220 = vmatpush3.bf16.msra.mxu1 %v1469_v8  ;;  %v1472_v47 = vpack.c.bf16 %v1444_v17, %v1443_v36  ;;  %v1481_v57 = vpack.c.bf16 %v1462_v39, %v1461_v38 }
 0x2b4   : > { %v1333_v22 = vadd.f32 %v1320_v42, %v1313_v16  ;;  %2221 = vmatprep.subr.bf16.mxu1 %v1478_v9  ;;  %v1447_v42 = vld [vmem:[#allocation2 + $0x150] sm:$0xff] }
 0x2b5   : > { %v1334_v27 = vadd.f32 %v1324_v0, %v1314_v19  ;;  %v1448_v0 = vld [vmem:[#allocation2 + $0x158] sm:$0xff] }
 0x2b6   : > { %v1369_v31 = vpack.c.bf16 %v1333_v22, %v1331_v21  ;;  %v1474_v3 = vpack.c.bf16 %v1448_v0, %v1447_v42 }
 0x2b7   : > { %2222 = vmatpush3.bf16.msra.mxu1 %v1470_v20  ;;  %v1370_v32 = vpack.c.bf16 %v1334_v27, %v1332_v26 }
 0x2b8   : > { %2223 = vmatprep.subr.bf16.mxu1 %v1479_v23 }
 0x2b9   : > { %1427 = vmatprep.mubr.bf16.mxu1 %v1370_v32  ;;  %1623 = vmatprep.mubr.bf16.mxu0 %v1370_v32 }
 0x2ba   : > { %1428 = vmatmul.mubr.bf16.gmra.mrb[28].mxu1 %v1369_v31  ;;  %1624 = vmatmul.mubr.bf16.gmra.mrb[20].mxu0 %v1369_v31 }
 0x2bb   : > { %2224 = vmatpush3.bf16.msra.mxu1 %v1471_v33  ;;  %1517 = vmatprep.mubr.bf16.mxu1 %v1368_v7 }
 0x2bc   : > { %2225 = vmatprep.subr.bf16.mxu1 %v1480_v34 }
 0x2bf   : > { %2226 = vmatpush3.bf16.msra.mxu1 %v1472_v47 }
 0x2c0   : > { %2227 = vmatprep.subr.bf16.mxu1 %v1481_v57 }
 0x2c3   : > { %2228 = vmatpush3.bf16.msra.mxu1 %v1473_v61 }
 0x2c4   : > { %2229 = vmatprep.subr.bf16.mxu1 %v1482_v41 }
 0x2c7   : > { %2230 = vmatpush3.bf16.msra.mxu1 %v1474_v3 }
 0x2c8   : > { %2231 = vmatprep.subr.bf16.mxu1 %v1483_v48 }
 0x2cb   : > { %2232 = vmatpush3.bf16.msra.mxu1 %v1475_v59 }
 0x2cc   : > { %2233 = vmatprep.subr.bf16.mxu1 %v1484_v60 }
 0x2cf   : > { %2234 = vmatpush3.bf16.msra.mxu1 %v1476_v4 }
 0x2d2   : > { %1518 = vmatmul.mubr.bf16.vlgmr.msra.gmra.mrb[32].mxu1 %v3565_v45 }
 0x2d3   : > { %1525 = vmatprep.mubr.bf16.mxu1 %v1370_v32 }
 0x2da   : > { %1526 = vmatmul.mubr.bf16.gmra.mrb[36].mxu1 %v1369_v31 }
 0x2db   : > { %2299 = vmatprep.mubr.msk.f32.mxu1 %vm1104_vm1, %v3477_v50 }
 0x385   : > { %v2207_v37 = vpop.f32.mrb[24].mxu1  ;;  %v2263_v5 = vpop.f32.mrb[16].mxu0 }
 0x386   : > { %v2208_v6 = vpop.f32.mrb[25].mxu1  ;;  %v2264_v7 = vpop.f32.mrb[17].mxu0 }
 0x387   : > { %v2209_v8 = vadd.f32 %v2208_v6, %v2207_v37  ;;  %v2265_v9 = vadd.f32 %v2264_v7, %v2263_v5  ;;  %v2210_v10 = vpop.f32.mrb[26].mxu1  ;;  %v2266_v11 = vpop.f32.mrb[18].mxu0 }
 0x388   : > { %v2211_v14 = vpop.f32.mrb[27].mxu1  ;;  %v2267_v29 = vpop.f32.mrb[19].mxu0 }
 0x389   : > { %v2212_v12 = vadd.f32 %v2211_v14, %v2210_v10  ;;  %v2268_v16 = vadd.f32 %v2267_v29, %v2266_v11 }
 0x38b   : > { %v2335_v18 = vpack.c.bf16 %v2212_v12, %v2209_v8  ;;  %v2343_v19 = vpack.c.bf16 %v2268_v16, %v2265_v9 }
 0x38d   : > { %v2213_v45 = vpop.f32.mrb[28].mxu1  ;;  %v2269_v20 = vpop.f32.mrb[20].mxu0  ;;  %2336 = vmatprep.subr.bf16.mxu1 %v2335_v18 }
 0x38e   : > { %v2214_v21 = vpop.f32.mrb[29].mxu1  ;;  %v2270_v22 = vpop.f32.mrb[21].mxu0  ;;  %2338 = vmatpush3.bf16.msra.mxu1 %v2335_v18 }
 0x38f   : > { %v2215_v50 = vadd.f32 %v2214_v21, %v2213_v45  ;;  %v2271_v23 = vadd.f32 %v2270_v22, %v2269_v20  ;;  %v2216_v24 = vpop.f32.mrb[30].mxu1  ;;  %v2272_v25 = vpop.f32.mrb[22].mxu0 }
 0x390   : > { %v2217_v26 = vpop.f32.mrb[31].mxu1  ;;  %v2273_v27 = vpop.f32.mrb[23].mxu0 }
 0x391   : > { %v2218_v28 = vadd.f32 %v2217_v26, %v2216_v24  ;;  %v2274_v30 = vadd.f32 %v2273_v27, %v2272_v25  ;;  %v2187_v24 = vld [vmem:[%s3608_s6] ss:$0 sm:$0xff] }
 0x393   : > { %v2339_v31 = vpack.c.bf16 %v2218_v28, %v2215_v50  ;;  %v2347_v32 = vpack.c.bf16 %v2274_v30, %v2271_v23  ;;  %v2186_v50 = vld [vmem:[%s3607_s5] ss:$0 sm:$0xff] }
 0x395   : > { %2340 = vmatprep.subr.bf16.mxu1 %v2339_v31 }
 0x396   : > { %2342 = vmatpush3.bf16.msra.mxu1 %v2339_v31 }
 0x397   : > { %2344 = vmatprep.subr.bf16.mxu1 %v2343_v19 }
 0x399   : > { %2300 = vmatmul.mubr.msk.f32.vlgmr.msra.gmra.mrb[40].mxu1 %vm1104_vm1, %v3485_v53 }
 0x39a   : > { %2346 = vmatpush3.bf16.msra.mxu1 %v2343_v19  ;;  %2302 = vmatprep.mubr.msk.f32.mxu1 %vm1104_vm1, %v3492_v55 }
 0x39b   : > { %2348 = vmatprep.subr.bf16.mxu1 %v2347_v32 }
 0x39d   : > { %2303 = vmatmul.mubr.msk.f32.gmra.mrb[42].mxu1 %vm1104_vm1, %v3499_v56 }
 0x39e   : > { %2350 = vmatpush3.bf16.msra.mxu1 %v2347_v32  ;;  %2313 = vmatprep.mubr.msk.f32.mxu1 %vm1104_vm1, %v3523_v13 }
 0x3a1   : > { %2314 = vmatmul.mubr.msk.f32.vlgmr.msra.gmra.mrb[40].mxu1 %vm1104_vm1, %v3530_v15 }
 0x3a2   : > { %2316 = vmatprep.mubr.msk.f32.mxu1 %vm1104_vm1, %v3539_v35  ;;  %v2185_v35 = vld [vmem:[%s3606_s4] ss:$0 sm:$0xff] }
 0x3a5   : > { %v2235_v33 = vpop.f32.mrb[32].mxu1  ;;  %2317 = vmatmul.mubr.msk.f32.gmra.mrb[42].mxu1 %vm1104_vm1, %v3548_v1 }
 0x3a6   : > { %v2236_v53 = vpop.f32.mrb[33].mxu1 }
 0x3a7   : > { %v2237_v55 = vadd.f32 %v2236_v53, %v2235_v33  ;;  %v2238_v34 = vpop.f32.mrb[34].mxu1 }
 0x3a8   : > { %v2239_v36 = vpop.f32.mrb[35].mxu1 }
 0x3a9   : > { %v2240_v17 = vadd.f32 %v2239_v36, %v2238_v34 }
 0x3ad   : > { %v2241_v56 = vpop.f32.mrb[36].mxu1 }
 0x3ae   : > { %v2242_v38 = vpop.f32.mrb[37].mxu1 }
 0x3af   : > { %v2243_v39 = vadd.f32 %v2242_v38, %v2241_v56  ;;  %v2244_v47 = vpop.f32.mrb[38].mxu1 }
 0x3b0   : > { %v2245_v13 = vpop.f32.mrb[39].mxu1 }
 0x3b1   : > { %v2246_v57 = vadd.f32 %v2245_v13, %v2244_v47 }
 0x474   : > { %v2315_v40 = vpop.f32.mrb[40].mxu1 }
 0x475   : > { %v2351_v15 = vadd.f32 %v2315_v40, %v2240_v17  ;;  %v1783_v49 = vpop.f32.mrb[41].mxu1 }
 0x476   : > { %v2352_v58 = vadd.f32 %v2237_v55, %v1783_v49 }
 0x477   : > { %v1814_v0 = vadd.f32 %v2351_v15, %v2185_v35 }
 0x478   : > { %v2318_v1 = vpop.f32.mrb[42].mxu1  ;;  %v1813_v44 = vadd.f32 %v2352_v58, %v2185_v35 }
 0x479   : > { %v2353_v61 = vadd.f32 %v2318_v1, %v2246_v57  ;;  %v1793_v41 = vpop.f32.mrb[43].mxu1 }
 0x47a   : > { %v2354_v42 = vadd.f32 %v2243_v39, %v1793_v41  ;;  %1819 = vadd.xlane.f32.xlu0 %v1813_v44 }
 0x47b   : > { %v1816_v46 = vadd.f32 %v2353_v61, %v2185_v35 }
 0x47c   : > { %v1815_v43 = vadd.f32 %v2354_v42, %v2185_v35 }
 0x47e   : > { %1821 = vadd.xlane.f32.xlu0 %v1814_v0  ;;  %1823 = vadd.xlane.f32.xlu1 %v1815_v43 }
 0x482   : > { %1825 = vadd.xlane.f32.xlu1 %v1816_v46 }
 0x507   : > { %v1820_v3 = vpop.xlane.xlu0 %1819 }
 0x508   : > { %v1828_v48 = vmul.f32 0.0078125, %v1820_v3 }
 0x50a   : > { %v1832_v51 = vsub.f32 %v1813_v44, %v1828_v48 }
 0x50b   : > { %v1822_v63 = vpop.xlane.xlu0 %1821  ;;  %v1824_v52 = vpop.xlane.xlu1 %1823 }
 0x50c   : > { %v1829_v54 = vmul.f32 0.0078125, %v1822_v63  ;;  %v1830_v59 = vmul.f32 0.0078125, %v1824_v52  ;;  %v1836_v60 = vmul.f32 %v1832_v51, %v1832_v51 }
 0x50e   : > { %v1833_v62 = vsub.f32 %v1814_v0, %v1829_v54  ;;  %v1834_v2 = vsub.f32 %v1815_v43, %v1830_v59  ;;  %1840 = vadd.xlane.f32.xlu0 %v1836_v60 }
 0x50f   : > { %v1826_v4 = vpop.xlane.xlu1 %1825 }
 0x510   : > { %v1831_v37 = vmul.f32 0.0078125, %v1826_v4  ;;  %v1837_v5 = vmul.f32 %v1833_v62, %v1833_v62  ;;  %v1838_v6 = vmul.f32 %v1834_v2, %v1834_v2 }
 0x512   : > { %v1835_v7 = vsub.f32 %v1816_v46, %v1831_v37  ;;  %1842 = vadd.xlane.f32.xlu1 %v1837_v5  ;;  %1844 = vadd.xlane.f32.xlu0 %v1838_v6 }
 0x514   : > { %v1839_v8 = vmul.f32 %v1835_v7, %v1835_v7 }
 0x516   : > { %1846 = vadd.xlane.f32.xlu1 %v1839_v8 }
 0x59b   : > { %v1841_v9 = vpop.xlane.xlu0 %1840 }
 0x59c   : > { %v1848_v10 = vmul.f32 0.0078125, %v1841_v9 }
 0x59e   : > { %v1852_v11 = vadd.f32 1e-05, %v1848_v10 }
 0x59f   : > { %v1845_v14 = vpop.xlane.xlu0 %1844  ;;  %v1843_v29 = vpop.xlane.xlu1 %1842 }
 0x5a0   : > { %2407 = vrsqrt.f32 %v1852_v11  ;;  %v1850_v12 = vmul.f32 0.0078125, %v1845_v14  ;;  %v1849_v16 = vmul.f32 0.0078125, %v1843_v29 }
 0x5a2   : > { %v1854_v18 = vadd.f32 1e-05, %v1850_v12  ;;  %v1853_v19 = vadd.f32 1e-05, %v1849_v16 }
 0x5a3   : > { %v1847_v45 = vpop.xlane.xlu1 %1846 }
 0x5a4   : > { %2409 = vrsqrt.f32 %v1854_v18  ;;  %v1851_v20 = vmul.f32 0.0078125, %v1847_v45 }
 0x5a5   : > { %2411 = vrsqrt.f32 %v1853_v19 }
 0x5a6   : > { %v1855_v21 = vadd.f32 1e-05, %v1851_v20 }
 0x5a8   : > { %2413 = vrsqrt.f32 %v1855_v21 }
 0x5aa   : > { %v2408_v22 = vpop.eup %2407 }
 0x5ab   : > { %v1860_v23 = vmul.f32 %v2408_v22, %v1832_v51 }
 0x5ad   : > { %v1870_v25 = vmul.f32 %v2186_v50, %v1860_v23 }
 0x5ae   : > { %v2410_v26 = vpop.eup %2409 }
 0x5af   : > { %v2412_v27 = vpop.eup %2411  ;;  %v1880_v28 = vadd.f32 %v2187_v24, %v1870_v25  ;;  %v1862_v30 = vmul.f32 %v2410_v26, %v1834_v2 }
 0x5b0   : > { %v1861_v31 = vmul.f32 %v2412_v27, %v1833_v62 }
 0x5b1   : > { %1884 = vst [vmem:[%s293_s12] sm:$0xff] %v1880_v28  ;;  %v1872_v32 = vmul.f32 %v2186_v50, %v1862_v30 }
 0x5b2   : > { %v2414_v33 = vpop.eup %2413  ;;  %v1871_v53 = vmul.f32 %v2186_v50, %v1861_v31 }
 0x5b3   : > { %v1882_v55 = vadd.f32 %v2187_v24, %v1872_v32  ;;  %v1863_v34 = vmul.f32 %v2414_v33, %v1835_v7 }
 0x5b4   : > { %v1881_v36 = vadd.f32 %v2187_v24, %v1871_v53 }
 0x5b5   : > { %1886 = vst [vmem:[%s293_s12 + $0x10] sm:$0xff] %v1882_v55  ;;  %v1873_v17 = vmul.f32 %v2186_v50, %v1863_v34 }
 0x5b6   : > { %1885 = vst [vmem:[%s293_s12 + $0x8] sm:$0xff] %v1881_v36 }
 0x5b7   : > { %v1883_v56 = vadd.f32 %v2187_v24, %v1873_v17 }
 0x5b9   : > { %1887 = vst [vmem:[%s293_s12 + $0x18] sm:$0xff] %v1883_v56 }
 0x5ba PF: > { %s18_s24 = sadd.s32 1, %s2453_s24  }
 0x5bb   : > { %p15_p3 = scmp.ge.s32.totalorder %s18_s24, 4  }
 0x5bd   :  { %17 = sbr.rel (!%p15_p3) target bundleno = 1 (0x1), region = 87 }
 0x5c4   :  { %1909 = vsyncpa [#allocation3], 1 }
 0x5c5   :  { %1911 = vsyncpa [#allocation3 + $0x1], 1 }

// kernel: forward.6
= control target key start
LH: loop header
LB: loop body
LE: loop exit
PB: predicated region body
PF: predicated region fallthrough
CT: control target
= control target key end

     0   :  { %s3845_s17 = smov 0   ;;  %s4592_s0 = inlined_call_operand.vmem [shape: f32[2,16,32], index: 0, kind: input, shape index: {}]   ;;  %s4593_s1 = inlined_call_operand.vmem [shape: f32[2,16,16], index: 1, kind: input, shape index: {}]   ;;  %s4594_s2 = inlined_call_operand.vmem [shape: f32[2,16,1], index: 2, kind: input, shape index: {}]   ;;  %s4595_s3 = inlined_call_operand.vmem [shape: f32[32,128], index: 3, kind: input, shape index: {}]   ;;  %s4596_s4 = inlined_call_operand.vmem [shape: f32[1,128], index: 4, kind: input, shape index: {}]   ;;  %s4597_s5 = inlined_call_operand.vmem [shape: f32[1,128], index: 5, kind: input, shape index: {}]   ;;  %s4598_s6 = inlined_call_operand.vmem [shape: f32[1,128], index: 6, kind: input, shape index: {}]   ;;  %s4599_s7 = inlined_call_operand.vmem [shape: f32[3,128,128], index: 7, kind: input, shape index: {}]   ;;  %s4600_s8 = inlined_call_operand.vmem [shape: f32[3,128], index: 8, kind: input, shape index: {}]   ;;  %s4601_s9 = inlined_call_operand.vmem [shape: f32[3,128], index: 9, kind: input, shape index: {}]   ;;  %s4602_s10 = inlined_call_operand.vmem [shape: f32[3,128], index: 10, kind: input, shape index: {}]   ;;  %s4603_s11 = inlined_call_operand.vmem [shape: f32[2,16,128], index: 11, kind: output, shape index: {}]  }
   0x1 LB: > { %s3117_s18 = sadd.s32 4294967295, %s3776_s17   ;;  %p3121_p0 = scmp.ge.s32.totalorder %s3776_s17, 1  ;;  %s3776_s17 = sphi %s3845_s17, %s21_s17  }
   0x2   : > { %p357_p1 = scmp.lt.s32.totalorder %s3776_s17, 3 }
   0x4   : > { %p358_p2 = pnand %p3121_p0, %p357_p1 }
   0x5   : > { %v430_v0 = vld [vmem:[%s4595_s3] sm:$0xff] (!%p358_p2)  ;;  %v431_v1 = vld [vmem:[%s4595_s3 + $0x8] sm:$0xff] (!%p358_p2)  ;;  %v432_v2 = vld [vmem:[%s4595_s3 + $0x10] sm:$0xff] (!%p358_p2)  ;;  %p407_p3 = scmp.lt.s32.totalorder (!%p358_p2), %s3117_s18, 1  ;;  %v3778_v3 = vmov (!%p358_p2), 0.0   ;;  %vm3779_vm0 = vmmov (!%p358_p2), 0  }
   0x6   : > { %361 = sbr.rel (%p358_p2) target bundleno = 7216 (0x1c30), region = 64  ;;  %3322 = vmatprep.subr.bf16.mxu0 (!%p358_p2), %v3778_v3  ;;  %v435_v4 = vpack.c.bf16 (!%p358_p2), %v431_v1, %v430_v0  ;;  %v433_v5 = vld [vmem:[%s4595_s3 + $0x18] sm:$0xff] (!%p358_p2)  ;;  %3326 = vmatprep.mubr.msk.bf16.mxu0 (!%p358_p2), %vm3779_vm0, %v3778_v3  ;;  %vm444_vm1 = vcmask (!%p358_p2), 261120   ;;  %v3130_v10 = vld [vmem:[%s4596_s4] ss:$0 sm:$0xff] (!%p358_p2)  ;;  %v535_v18 = vld [vmem:[%s4599_s7 + $0x8] sm:$0xff] (!%p358_p2) }
   0x7   : > { %3330 = vmatprep.subr.bf16.mxu1 (!%p358_p2), %v3778_v3  ;;  %3346 = vmatprep.mubr.msk.bf16.mxu1 (!%p358_p2), %vm3779_vm0, %v3778_v3  ;;  %v436_v6 = vpack.c.bf16 (!%p358_p2), %v433_v5, %v432_v2  ;;  %v534_v17 = vld [vmem:[%s4599_s7] sm:$0xff] (!%p358_p2)  ;;  %v536_v28 = vld [vmem:[%s4599_s7 + $0x10] sm:$0xff] (!%p358_p2)  ;;  %v537_v29 = vld [vmem:[%s4599_s7 + $0x18] sm:$0xff] (!%p358_p2)  ;;  %v3780_v2 = vmov (!%p358_p2), 0.0|0.0   ;;  %vm712_vm5 = vcmask (!%p358_p2), 130048   ;;  %s3781_s26 = smov (!%p358_p2), 96  }
   0x8   : > { %3323 = vmatpush3.bf16.msra.mxu0 (!%p358_p2), %v435_v4  ;;  %v551_v19 = vpack.c.bf16 (!%p358_p2), %v535_v18, %v534_v17  ;;  %v552_v30 = vpack.c.bf16 (!%p358_p2), %v537_v29, %v536_v28  ;;  %v538_v31 = vld [vmem:[%s4599_s7 + $0x20] sm:$0xff] (!%p358_p2)  ;;  %v539_v32 = vld [vmem:[%s4599_s7 + $0x28] sm:$0xff] (!%p358_p2)  ;;  %v540_v34 = vld [vmem:[%s4599_s7 + $0x30] sm:$0xff] (!%p358_p2)  ;;  %s3782_s28 = smov (!%p358_p2), 64   ;;  %s3783_s29 = smov (!%p358_p2), 32   ;;  %vm1344_vm12 = vcmask (!%p358_p2), 523264  }
   0x9   : > { %3324 = vmatprep.subr.bf16.mxu0 (!%p358_p2), %v3778_v3  ;;  %v553_v33 = vpack.c.bf16 (!%p358_p2), %v539_v32, %v538_v31  ;;  %v541_v35 = vld [vmem:[%s4599_s7 + $0x38] sm:$0xff] (!%p358_p2)  ;;  %v542_v37 = vld [vmem:[%s4599_s7 + $0x40] sm:$0xff] (!%p358_p2)  ;;  %v543_v38 = vld [vmem:[%s4599_s7 + $0x48] sm:$0xff] (!%p358_p2)  ;;  %vm1347_vm13 = vcmask (!%p358_p2), 785408  }
   0xa   : > { %3331 = vmatpush3.bf16.msra.mxu1 (!%p358_p2), %v551_v19  ;;  %v554_v36 = vpack.c.bf16 (!%p358_p2), %v541_v35, %v540_v34  ;;  %v555_v39 = vpack.c.bf16 (!%p358_p2), %v543_v38, %v542_v37  ;;  %v544_v40 = vld [vmem:[%s4599_s7 + $0x50] sm:$0xff] (!%p358_p2)  ;;  %v545_v41 = vld [vmem:[%s4599_s7 + $0x58] sm:$0xff] (!%p358_p2)  ;;  %v546_v43 = vld [vmem:[%s4599_s7 + $0x60] sm:$0xff] (!%p358_p2) }
   0xb   : > { %3332 = vmatprep.subr.bf16.mxu1 (!%p358_p2), %v3778_v3  ;;  %v556_v42 = vpack.c.bf16 (!%p358_p2), %v545_v41, %v544_v40  ;;  %v547_v44 = vld [vmem:[%s4599_s7 + $0x68] sm:$0xff] (!%p358_p2)  ;;  %v548_v46 = vld [vmem:[%s4599_s7 + $0x70] sm:$0xff] (!%p358_p2)  ;;  %v549_v47 = vld [vmem:[%s4599_s7 + $0x78] sm:$0xff] (!%p358_p2) }
   0xc   : > { %3325 = vmatpush3.bf16.msra.mxu0 (!%p358_p2), %v436_v6  ;;  %v557_v45 = vpack.c.bf16 (!%p358_p2), %v547_v44, %v546_v43  ;;  %v558_v48 = vpack.c.bf16 (!%p358_p2), %v549_v47, %v548_v46  ;;  %v3132_v57 = vld [vmem:[%s4597_s5] ss:$0 sm:$0xff] (!%p358_p2)  ;;  %vm3965_vm2 = vmpackc.low (!%p358_p2), %vm444_vm1, %vm444_vm1 }
   0xd   : > { %s4607_s18 = smov (!%p407_p3, %s3117_s18), 1  ;;  %v3133_v61 = vld [vmem:[%s4598_s6] ss:$0 sm:$0xff]  ;;  %3546 = vmatprep.subr.bf16.mxu0 %v3780_v2 }
   0xe   : > { %s3872_s27 = sshll.u32 %s4607_s18, 4  ;;  %3333 = vmatpush3.bf16.msra.mxu1 %v552_v30  ;;  %v3134_v4 = vld [vmem:[%s4600_s8] ss:$0 sm:$0xff] }
   0xf   : > { %s411_s30 = scalar_lea.vmem %s4592_s0, %s3872_s27  ;;  %3334 = vmatprep.subr.bf16.mxu1 %v3778_v3  ;;  %v3135_v6 = vld [vmem:[%s4601_s9] ss:$0 sm:$0xff]  ;;  %s4000_s25 = scalar_lea.vmem %s4593_s1, %s3872_s27 }
  0x10   : > { %v428_v7 = vld [vmem:[%s411_s30] sm:$0xff]  ;;  %v429_v8 = vld [vmem:[%s411_s30 + $0x8] sm:$0xff]  ;;  %s421_s30 = scalar_lea.vmem %s4594_s2, %s3872_s27 }
  0x11   : > { %v434_v9 = vpack.c.bf16 %v429_v8, %v428_v7  ;;  %v3986_v19 = vld [vmem:[%s4602_s10] sm:$0x1]  ;;  %v4007_v31 = vld [vmem:[%s4000_s25 + $0x8] sm:$0xff] }
  0x12   : > { %3335 = vmatpush3.bf16.msra.mxu1 %v553_v33  ;;  %v4004_v30 = vld [vmem:[%s4000_s25] sm:$0xff] }
  0x13   : > { %3327 = vmatmul.mubr.msk.bf16.vlgmr.msra.gmra.mrb[0].mxu0 %vm444_vm1, %v434_v9  ;;  %3336 = vmatprep.subr.bf16.mxu1 %v3778_v3 }
  0x14   : > { %3354 = vmatprep.mubr.msk.f32.mxu0 %vm3779_vm0, %v3778_v3 }
  0x16   : > { %3337 = vmatpush3.bf16.msra.mxu1 %v554_v36 }
  0x17   : > { %3338 = vmatprep.subr.bf16.mxu1 %v3778_v3 }
  0x1a   : > { %3339 = vmatpush3.bf16.msra.mxu1 %v555_v39 }
  0x1b   : > { %3340 = vmatprep.subr.bf16.mxu1 %v3778_v3 }
  0x1e   : > { %3341 = vmatpush3.bf16.msra.mxu1 %v556_v42 }
  0x1f   : > { %3342 = vmatprep.subr.bf16.mxu1 %v3778_v3 }
  0x22   : > { %3343 = vmatpush3.bf16.msra.mxu1 %v557_v45 }
  0x23   : > { %3344 = vmatprep.subr.bf16.mxu1 %v3778_v3 }
  0x26   : > { %3345 = vmatpush3.bf16.msra.mxu1 %v558_v48 }
  0x27   : > { %3383 = vmatprep.subr.bf16.mxu1 %v3778_v3 }
  0xe6   : > { %v482_v11 = vpop.f32.mrb[0].mxu0 }
  0xe7   : > { %v483_v12 = vadd.f32 %v3130_v10, %v482_v11  ;;  %v3328_v13 = vpop.f32.mrb[1].mxu0 }
  0xe8   : > { %v485_v14 = vpop.f32.mrb[2].mxu0 }
  0xe9   : > { %491 = vadd.xlane.f32.xlu0 %v483_v12  ;;  %v3329_v15 = vpop.f32.mrb[3].mxu0  ;;  %v486_v16 = vadd.f32 %v3130_v10, %v485_v14 }
  0xed   : > { %493 = vadd.xlane.f32.xlu0 %v486_v16 }
 0x176   : > { %v492_v20 = vpop.xlane.xlu0 %491 }
 0x177   : > { %v496_v21 = vmul.f32 0.0078125, %v492_v20  ;;  %v698_v20 = vlaneseq }
 0x179   : > { %v498_v22 = vsub.f32 %v483_v12, %v496_v21  ;;  %v699_v21 = vshrl.u32 %v698_v20, 7 }
 0x17a   : > { %v494_v23 = vpop.xlane.xlu0 %493 }
 0x17b   : > { %v497_v24 = vmul.f32 0.0078125, %v494_v23  ;;  %v500_v25 = vmul.f32 %v498_v22, %v498_v22 }
 0x17d   : > { %502 = vadd.xlane.f32.xlu1 %v500_v25  ;;  %v499_v26 = vsub.f32 %v486_v16, %v497_v24 }
 0x17f   : > { %v501_v27 = vmul.f32 %v499_v26, %v499_v26 }
 0x181   : > { %504 = vadd.xlane.f32.xlu1 %v501_v27 }
 0x20a   : > { %v503_v49 = vpop.xlane.xlu1 %502 }
 0x20b   : > { %v506_v50 = vmul.f32 0.0078125, %v503_v49 }
 0x20d   : > { %v508_v51 = vadd.f32 1e-05, %v506_v50 }
 0x20e   : > { %v505_v52 = vpop.xlane.xlu1 %504 }
 0x20f   : > { %3656 = vrsqrt.f32 %v508_v51  ;;  %v507_v53 = vmul.f32 0.0078125, %v505_v52 }
 0x211   : > { %v509_v54 = vadd.f32 1e-05, %v507_v53 }
 0x213   : > { %3658 = vrsqrt.f32 %v509_v54 }
 0x219   : > { %v3657_v55 = vpop.eup %3656 }
 0x21a   : > { %v512_v56 = vmul.f32 %v3657_v55, %v498_v22  ;;  %v3994_v22 = vsub.s32 0, %v699_v21 }
 0x21c   : > { %v520_v60 = vmul.f32 %v3132_v57, %v512_v56 }
 0x21d   : > { %v3659_v58 = vpop.eup %3658 }
 0x21e   : > { %v513_v59 = vmul.f32 %v3659_v58, %v499_v26  ;;  %v3946_v63 = vadd.f32 %v3133_v61, %v520_v60 }
 0x220   : > { %v521_v62 = vmul.f32 %v3132_v57, %v513_v59 }
 0x222   : > { %v3948_v0 = vadd.f32 %v3133_v61, %v521_v62 }
 0x224   : > { %v550_v1 = vpack.c.bf16 %v3948_v0, %v3946_v63 }
 0x226   : > { %3347 = vmatmul.mubr.bf16.vlgmr.msra.gmra.mrb[0].mxu1 %v550_v1 }
 0x227   : > { %3385 = vmatprep.mubr.msk.bf16.mxu1 %vm3779_vm0, %v3778_v3 }
 0x2f9   : > { %v598_v5 = vpop.f32.mrb[0].mxu1 }
 0x2fa   : > { %v599_v7 = vadd.f32 %v3134_v4, %v598_v5  ;;  %v3348_v8 = vpop.f32.mrb[1].mxu1 }
 0x2fb   : > { %v601_v9 = vpop.f32.mrb[2].mxu1 }
 0x2fc   : > { %v602_v10 = vadd.f32 %v3134_v4, %v601_v9  ;;  %v3349_v11 = vpop.f32.mrb[3].mxu1  ;;  %v3961_v12 = vmul.f32 %v3135_v6, %v599_v7 }
 0x2fe   : > { %v613_v14 = vsel %vm444_vm1, %v3961_v12, 0.0  ;;  %v3971_v15 = vpack.c.bf16 %v602_v10, %v599_v7  ;;  %v3973_v16 = vmul.f32 %v3135_v6, %v602_v10  ;;  %v3975_v17 = vpack.i.bf16 %v602_v10, %v599_v7 }
 0x2ff   : > { %614 = vadd.xlane.f32.xlu0 %v613_v14 }
 0x300   : > { %3549 = vmatpush3.bf16.xpose.msk.msra.mxu0 %vm3965_vm2, %v3971_v15  ;;  %v616_v18 = vsel %vm444_vm1, %v3973_v16, 0.0 }
 0x301   : > { %617 = vadd.xlane.f32.xlu1 %v616_v18  ;;  %3357 = vmatprep.subr.bf16.mxu0 %v3778_v3 }
 0x307   : > { %3355 = vmatmul.mubr.msk.f32.vlgmr.msra.gmra.mrb[4].mxu0 %vm444_vm1, %v3986_v19 }
 0x308   : > { %3358 = vmatpush3.bf16.msra.mxu0 %v3971_v15  ;;  %3359 = vmatprep.mubr.msk.bf16.mxu0 %vm3779_vm0, %v3778_v3 }
 0x309   : > { %3550 = vmatprep.subr.bf16.mxu0 %v3780_v2 }
 0x38c   : > { %v615_v26 = vpop.xlane.xlu0 %614 }
 0x38e   : > { %v618_v27 = vpop.xlane.xlu1 %617 }
 0x3da   : > { %v694_v23 = vpop.f32.mrb[4].mxu0 }
 0x3db   : > { %v701_v24 = vrot.slane %v694_v23, %v3994_v22  ;;  %v3356_v25 = vpop.f32.mrb[5].mxu0 }
 0x3dd   : > { %v702_v28 = vadd.f32 %v701_v24, %v615_v26  ;;  %v703_v29 = vadd.f32 %v701_v24, %v618_v27 }
 0x3df   : > { %v706_v32 = vmul.f32 0.2, %v702_v28  ;;  %v707_v33 = vmul.f32 0.2, %v703_v29  ;;  %vm705_vm3 = vcmp.gt.f32.partialorder %v703_v29, 0.0  ;;  %vm704_vm4 = vcmp.gt.f32.partialorder %v702_v28, 0.0 }
 0x3e1   : > { %v709_v34 = vsel %vm705_vm3, %v703_v29, %v707_v33  ;;  %v708_v35 = vsel %vm704_vm4, %v702_v28, %v706_v32 }
 0x3e2   : > { %v711_v36 = vadd.f32 %v709_v34, %v4007_v31  ;;  %v710_v37 = vadd.f32 %v708_v35, %v4004_v30 }
 0x3e4   : > { %v716_v38 = vsel %vm712_vm5, %v711_v36, -inf  ;;  %v713_v39 = vsel %vm712_vm5, %v710_v37, -inf }
 0x3e5   : > { %717 = vmax.xlane.f32.xlu1 %v716_v38  ;;  %714 = vmax.xlane.f32.xlu0 %v713_v39 }
 0x472   : > { %v718_v40 = vpop.xlane.xlu1 %717  ;;  %v715_v41 = vpop.xlane.xlu0 %714 }
 0x473   : > { %v720_v42 = vsub.f32 %v711_v36, %v718_v40  ;;  %v719_v43 = vsub.f32 %v710_v37, %v715_v41 }
 0x475   : > { %v723_v44 = vmul.f32 1.442695, %v720_v42  ;;  %v721_v45 = vmul.f32 1.442695, %v719_v43 }
 0x477   : > { %3660 = vpow2.f32 %v723_v44 }
 0x478   : > { %3662 = vpow2.f32 %v721_v45 }
 0x481   : > { %v3661_v46 = vpop.eup %3660 }
 0x482   : > { %v3663_v47 = vpop.eup %3662  ;;  %v728_v48 = vsel %vm712_vm5, %v3661_v46, 0.0 }
 0x483   : > { %729 = vadd.xlane.f32.xlu1 %v728_v48  ;;  %v725_v49 = vsel %vm712_vm5, %v3663_v47, 0.0 }
 0x484   : > { %726 = vadd.xlane.f32.xlu0 %v725_v49 }
 0x494   : > { %795 = vrot.lane.b32.xlu1 %v3986_v19, %s3781_s26 }
 0x498   : > { %783 = vrot.lane.b32.xlu1 %v3961_v12, %s3781_s26 }
 0x49a   : > { %3610 = vrot.lane.b32.xlu0 %v3975_v17, %s3781_s26 }
 0x49c   : > { %785 = vrot.lane.b32.xlu1 %v3973_v16, %s3781_s26 }
 0x510   : > { %v730_v50 = vpop.xlane.xlu1 %729 }
 0x511   : > { %3664 = vrcp.f32 %v730_v50  ;;  %v727_v51 = vpop.xlane.xlu0 %726 }
 0x512   : > { %3666 = vrcp.f32 %v727_v51 }
 0x514   : > { %v796_v52 = vpop.permute.xlu1 %795 }
 0x515   : > { %v3611_v54 = vpop.permute.xlu0 %3610 }
 0x516   : > { %v3613_v59 = vunpack.i.h.bf16 %v3611_v54  ;;  %v3612_v60 = vunpack.i.l.bf16 %v3611_v54 }
 0x518   : > { %v784_v53 = vpop.permute.xlu1 %783  ;;  %v3551_v5 = vpack.c.bf16 %v3613_v59, %v3612_v60 }
 0x519   : > { %v789_v55 = vsel %vm444_vm1, %v784_v53, 0.0 }
 0x51a   : > { %790 = vadd.xlane.f32.xlu0 %v789_v55 }
 0x51b   : > { %v3665_v56 = vpop.eup %3664 }
 0x51c   : > { %v3667_v57 = vpop.eup %3666  ;;  %v734_v58 = vmul.f32 %v3665_v56, %v3661_v46  ;;  %v786_v61 = vpop.permute.xlu1 %785 }
 0x51d   : > { %v733_v62 = vmul.f32 %v3667_v57, %v3663_v47  ;;  %v792_v1 = vsel %vm444_vm1, %v786_v61, 0.0 }
 0x51e   : > { %793 = vadd.xlane.f32.xlu1 %v792_v1 }
 0x51f   : > { %v735_v4 = vpack.c.bf16 %v734_v58, %v733_v62 }
 0x521   : > { %3360 = vmatmul.mubr.msk.bf16.vlgmr.msra.gmra.mrb[8].mxu0 %vm712_vm5, %v735_v4 }
 0x522   : > { %3553 = vmatpush3.bf16.xpose.msk.msra.mxu0 %vm3965_vm2, %v3551_v5  ;;  %3367 = vmatprep.mubr.msk.f32.mxu0 %vm3779_vm0, %v3778_v3 }
 0x523   : > { %3370 = vmatprep.subr.bf16.mxu0 %v3778_v3 }
 0x529   : > { %3368 = vmatmul.mubr.msk.f32.vlgmr.msra.gmra.mrb[6].mxu0 %vm444_vm1, %v796_v52 }
 0x52a   : > { %3372 = vmatprep.mubr.msk.bf16.mxu0 %vm3779_vm0, %v3778_v3 }
 0x52f   : > { %3615 = vrot.lane.b32.xlu1 %v3975_v17, %s3782_s28 }
 0x5a7   : > { %v791_v18 = vpop.xlane.xlu0 %790 }
 0x5ab   : > { %v794_v20 = vpop.xlane.xlu1 %793 }
 0x5f4   : > { %v4036_v6 = vpop.f32.mrb[8].mxu0 }
 0x5f5   : > { %v3361_v7 = vpop.f32.mrb[9].mxu0 }
 0x5f6   : > { %v4038_v8 = vpop.f32.mrb[10].mxu0 }
 0x5f7   : > { %v3362_v9 = vpop.f32.mrb[11].mxu0 }
 0x5fc   : > { %v873_v10 = vpop.f32.mrb[6].mxu0 }
 0x5fd   : > { %v880_v11 = vrot.slane %v873_v10, %v3994_v22  ;;  %v3369_v14 = vpop.f32.mrb[7].mxu0 }
 0x5ff   : > { %v881_v21 = vadd.f32 %v880_v11, %v791_v18  ;;  %v882_v23 = vadd.f32 %v880_v11, %v794_v20 }
 0x601   : > { %v885_v24 = vmul.f32 0.2, %v881_v21  ;;  %v886_v25 = vmul.f32 0.2, %v882_v23  ;;  %vm883_vm6 = vcmp.gt.f32.partialorder %v881_v21, 0.0  ;;  %vm884_vm7 = vcmp.gt.f32.partialorder %v882_v23, 0.0 }
 0x603   : > { %v887_v26 = vsel %vm883_vm6, %v881_v21, %v885_v24  ;;  %v888_v27 = vsel %vm884_vm7, %v882_v23, %v886_v25 }
 0x604   : > { %v889_v28 = vadd.f32 %v887_v26, %v4004_v30  ;;  %v890_v32 = vadd.f32 %v888_v27, %v4007_v31 }
 0x606   : > { %v891_v29 = vsel %vm712_vm5, %v889_v28, -inf  ;;  %v894_v33 = vsel %vm712_vm5, %v890_v32, -inf }
 0x607   : > { %892 = vmax.xlane.f32.xlu0 %v891_v29 }
 0x60b   : > { %895 = vmax.xlane.f32.xlu0 %v894_v33 }
 0x694   : > { %v893_v34 = vpop.xlane.xlu0 %892 }
 0x695   : > { %v897_v35 = vsub.f32 %v889_v28, %v893_v34 }
 0x697   : > { %v899_v36 = vmul.f32 1.442695, %v897_v35 }
 0x698   : > { %v896_v37 = vpop.xlane.xlu0 %895 }
 0x699   : > { %3668 = vpow2.f32 %v899_v36  ;;  %v898_v38 = vsub.f32 %v890_v32, %v896_v37 }
 0x69b   : > { %v901_v39 = vmul.f32 1.442695, %v898_v38 }
 0x69d   : > { %3670 = vpow2.f32 %v901_v39 }
 0x6a3   : > { %v3669_v40 = vpop.eup %3668 }
 0x6a4   : > { %v903_v41 = vsel %vm712_vm5, %v3669_v40, 0.0 }
 0x6a5   : > { %904 = vadd.xlane.f32.xlu0 %v903_v41 }
 0x6a7   : > { %v3671_v42 = vpop.eup %3670 }
 0x6a8   : > { %v906_v43 = vsel %vm712_vm5, %v3671_v42, 0.0 }
 0x6a9   : > { %907 = vadd.xlane.f32.xlu1 %v906_v43 }
 0x6ba   : > { %3620 = vrot.lane.b32.xlu1 %v3975_v17, %s3783_s29  ;;  %v3616_v17 = vpop.permute.xlu1 %3615 }
 0x6bb   : > { %915 = vrot.lane.b32.xlu0 %v3971_v15, %s3781_s26  ;;  %v3618_v52 = vunpack.i.h.bf16 %v3616_v17 }
 0x6be   : > { %974 = vrot.lane.b32.xlu1 %v3986_v19, %s3782_s28 }
 0x6bf   : > { %1152 = vrot.lane.b32.xlu0 %v3986_v19, %s3783_s29 }
 0x6c2   : > { %962 = vrot.lane.b32.xlu1 %v3961_v12, %s3782_s28 }
 0x6c3   : > { %964 = vrot.lane.b32.xlu0 %v3973_v16, %s3782_s28 }
 0x6c6   : > { %1140 = vrot.lane.b32.xlu1 %v3961_v12, %s3783_s29 }
 0x6c7   : > { %1142 = vrot.lane.b32.xlu0 %v3973_v16, %s3783_s29  ;;  %v3617_v16 = vunpack.i.l.bf16 %v3616_v17 }
 0x6c9   : > { %v3555_v58 = vpack.c.bf16 %v3618_v52, %v3617_v16 }
 0x732   : > { %v905_v44 = vpop.xlane.xlu0 %904 }
 0x733   : > { %3672 = vrcp.f32 %v905_v44 }
 0x736   : > { %v908_v45 = vpop.xlane.xlu1 %907  ;;  %v916_v46 = vpop.permute.xlu0 %915 }
 0x737   : > { %3674 = vrcp.f32 %v908_v45  ;;  %3371 = vmatpush3.bf16.msra.mxu0 %v916_v46 }
 0x738   : > { %3554 = vmatprep.subr.bf16.mxu0 %v3780_v2 }
 0x73a   : > { %v3621_v19 = vpop.permute.xlu1 %3620  ;;  %v1153_v47 = vpop.permute.xlu0 %1152 }
 0x73b   : > { %v3623_v62 = vunpack.i.h.bf16 %v3621_v19  ;;  %v3622_v1 = vunpack.i.l.bf16 %v3621_v19 }
 0x73d   : > { %v3673_v50 = vpop.eup %3672  ;;  %v3559_v5 = vpack.c.bf16 %v3623_v62, %v3622_v1 }
 0x73e   : > { %v975_v48 = vpop.permute.xlu1 %974  ;;  %v965_v49 = vpop.permute.xlu0 %964  ;;  %v911_v53 = vmul.f32 %v3673_v50, %v3669_v40 }
 0x73f   : > { %v971_v51 = vsel %vm444_vm1, %v965_v49, 0.0 }
 0x740   : > { %972 = vadd.xlane.f32.xlu0 %v971_v51 }
 0x741   : > { %v3675_v12 = vpop.eup %3674 }
 0x742   : > { %v912_v54 = vmul.f32 %v3675_v12, %v3671_v42  ;;  %v963_v55 = vpop.permute.xlu1 %962  ;;  %v1143_v61 = vpop.permute.xlu0 %1142 }
 0x743   : > { %v968_v56 = vsel %vm444_vm1, %v963_v55, 0.0  ;;  %v1149_v4 = vsel %vm444_vm1, %v1143_v61, 0.0 }
 0x744   : > { %969 = vadd.xlane.f32.xlu1 %v968_v56  ;;  %v913_v57 = vpack.c.bf16 %v912_v54, %v911_v53 }
 0x746   : > { %v1141_v59 = vpop.permute.xlu1 %1140  ;;  %3373 = vmatmul.mubr.msk.bf16.vlgmr.msra.gmra.mrb[12].mxu0 %vm712_vm5, %v913_v57 }
 0x747   : > { %3557 = vmatpush3.bf16.xpose.msk.msra.mxu0 %vm3965_vm2, %v3555_v58  ;;  %v1146_v60 = vsel %vm444_vm1, %v1141_v59, 0.0  ;;  %3380 = vmatprep.mubr.msk.f32.mxu0 %vm3779_vm0, %v3778_v3 }
 0x748   : > { %1147 = vadd.xlane.f32.xlu0 %v1146_v60  ;;  %3558 = vmatprep.subr.bf16.mxu0 %v3780_v2 }
 0x74c   : > { %1150 = vadd.xlane.f32.xlu0 %v1149_v4 }
 0x74e   : > { %3381 = vmatmul.mubr.msk.f32.vlgmr.msra.gmra.mrb[16].mxu0 %vm444_vm1, %v975_v48 }
 0x74f   : > { %3561 = vmatpush3.bf16.xpose.msk.msra.mxu0 %vm3965_vm2, %v3559_v5  ;;  %3393 = vmatprep.mubr.msk.f32.mxu0 %vm3779_vm0, %v3778_v3 }
 0x750   : > { %3402 = vmatprep.subr.bf16.mxu0 %v3778_v3 }
 0x756   : > { %3394 = vmatmul.mubr.msk.f32.vlgmr.msra.gmra.mrb[18].mxu0 %vm444_vm1, %v1153_v47 }
 0x757   : > { %3418 = vmatprep.mubr.msk.bf16.mxu0 %vm3779_vm0, %v3778_v3 }
 0x7cd   : > { %v973_v14 = vpop.xlane.xlu0 %972 }
 0x7d1   : > { %v970_v23 = vpop.xlane.xlu1 %969 }
 0x7d5   : > { %v1148_v26 = vpop.xlane.xlu0 %1147 }
 0x7d9   : > { %v1151_v38 = vpop.xlane.xlu0 %1150 }
 0x819   : > { %v4083_v7 = vpop.f32.mrb[12].mxu0 }
 0x81a   : > { %v3374_v9 = vpop.f32.mrb[13].mxu0 }
 0x81b   : > { %v4085_v10 = vpop.f32.mrb[14].mxu0 }
 0x81c   : > { %v3375_v11 = vpop.f32.mrb[15].mxu0 }
 0x821   : > { %v1052_v18 = vpop.f32.mrb[16].mxu0 }
 0x822   : > { %v1059_v20 = vrot.slane %v1052_v18, %v3994_v22  ;;  %v3382_v21 = vpop.f32.mrb[17].mxu0 }
 0x824   : > { %v1060_v24 = vadd.f32 %v1059_v20, %v970_v23  ;;  %v1061_v25 = vadd.f32 %v1059_v20, %v973_v14 }
 0x826   : > { %v1064_v27 = vmul.f32 0.2, %v1060_v24  ;;  %v1065_v28 = vmul.f32 0.2, %v1061_v25  ;;  %vm1063_vm8 = vcmp.gt.f32.partialorder %v1061_v25, 0.0  ;;  %vm1062_vm9 = vcmp.gt.f32.partialorder %v1060_v24, 0.0 }
 0x828   : > { %v1067_v29 = vsel %vm1063_vm8, %v1061_v25, %v1065_v28  ;;  %v1066_v32 = vsel %vm1062_vm9, %v1060_v24, %v1064_v27 }
 0x829   : > { %v1230_v33 = vpop.f32.mrb[18].mxu0  ;;  %v1069_v34 = vadd.f32 %v1067_v29, %v4007_v31  ;;  %v1068_v35 = vadd.f32 %v1066_v32, %v4004_v30 }
 0x82a   : > { %v1237_v36 = vrot.slane %v1230_v33, %v3994_v22  ;;  %v3395_v37 = vpop.f32.mrb[19].mxu0  ;;  %v3784_v33 = vmov 0  }
 0x82b   : > { %v1073_v39 = vsel %vm712_vm5, %v1069_v34, -inf  ;;  %v1070_v40 = vsel %vm712_vm5, %v1068_v35, -inf  ;;  %3624 = vset.pattern.permute.xlu1 %v3784_v33  ;;  %3625 = vset.pattern.permute.xlu0 %v3784_v33  ;;  %v3156_v37 = vld [vmem:[%s4599_s7 + $0x90] sm:$0xff] }
 0x82c   : > { %v1238_v41 = vadd.f32 %v1237_v36, %v1148_v26  ;;  %v1239_v42 = vadd.f32 %v1237_v36, %v1151_v38  ;;  %1074 = vmax.xlane.f32.xlu0 %v1073_v39  ;;  %1071 = vmax.xlane.f32.xlu1 %v1070_v40  ;;  %v3157_v38 = vld [vmem:[%s4599_s7 + $0x98] sm:$0xff]  ;;  %v3158_v40 = vld [vmem:[%s4599_s7 + $0xa0] sm:$0xff] }
 0x82d   : > { %v1395_v39 = vpack.c.bf16 %v3157_v38, %v3156_v37 }
 0x82e   : > { %v1242_v43 = vmul.f32 0.2, %v1238_v41  ;;  %v1243_v17 = vmul.f32 0.2, %v1239_v42  ;;  %vm1241_vm10 = vcmp.gt.f32.partialorder %v1239_v42, 0.0  ;;  %vm1240_vm11 = vcmp.gt.f32.partialorder %v1238_v41, 0.0 }
 0x830   : > { %v1245_v44 = vsel %vm1241_vm10, %v1239_v42, %v1243_v17  ;;  %v1244_v45 = vsel %vm1240_vm11, %v1238_v41, %v1242_v43  ;;  %v3159_v41 = vld [vmem:[%s4599_s7 + $0xa8] sm:$0xff] }
 0x831   : > { %v1247_v46 = vadd.f32 %v1245_v44, %v4007_v31  ;;  %v1246_v19 = vadd.f32 %v1244_v45, %v4004_v30  ;;  %v1396_v42 = vpack.c.bf16 %v3159_v41, %v3158_v40  ;;  %v3160_v45 = vld [vmem:[%s4599_s7 + $0xb0] sm:$0xff]  ;;  %v3171_v41 = vld [vmem:[%s4601_s9 + $0x1] ss:$0 sm:$0xff] }
 0x833   : > { %v1251_v47 = vsel %vm712_vm5, %v1247_v46, -inf  ;;  %v1248_v48 = vsel %vm712_vm5, %v1246_v19, -inf }
 0x834   : > { %1252 = vmax.xlane.f32.xlu0 %v1251_v47  ;;  %1249 = vmax.xlane.f32.xlu1 %v1248_v48  ;;  %v3162_v48 = vld [vmem:[%s4599_s7 + $0xc0] sm:$0xff] }
 0x8b9   : > { %v1075_v49 = vpop.xlane.xlu0 %1074  ;;  %v1072_v50 = vpop.xlane.xlu1 %1071 }
 0x8ba   : > { %v1077_v51 = vsub.f32 %v1069_v34, %v1075_v49  ;;  %v1076_v12 = vsub.f32 %v1068_v35, %v1072_v50  ;;  %v3154_v34 = vld [vmem:[%s4599_s7 + $0x80] sm:$0xff]  ;;  %v3155_v35 = vld [vmem:[%s4599_s7 + $0x88] sm:$0xff] }
 0x8bb   : > { %v1394_v36 = vpack.c.bf16 %v3155_v35, %v3154_v34  ;;  %v3163_v49 = vld [vmem:[%s4599_s7 + $0xc8] sm:$0xff] }
 0x8bc   : > { %v1080_v52 = vmul.f32 1.442695, %v1077_v51  ;;  %v1078_v16 = vmul.f32 1.442695, %v1076_v12  ;;  %v1398_v50 = vpack.c.bf16 %v3163_v49, %v3162_v48  ;;  %v3164_v51 = vld [vmem:[%s4599_s7 + $0xd0] sm:$0xff]  ;;  %v3165_v12 = vld [vmem:[%s4599_s7 + $0xd8] sm:$0xff] }
 0x8bd   : > { %3403 = vmatpush3.bf16.msra.mxu0 %v1394_v36 }
 0x8be   : > { %3676 = vpow2.f32 %v1080_v52  ;;  %3404 = vmatprep.subr.bf16.mxu0 %v3778_v3 }
 0x8bf   : > { %3678 = vpow2.f32 %v1078_v16 }
 0x8c1   : > { %v1253_v53 = vpop.xlane.xlu0 %1252  ;;  %v1250_v54 = vpop.xlane.xlu1 %1249  ;;  %3405 = vmatpush3.bf16.msra.mxu0 %v1395_v39  ;;  %v3170_v39 = vld [vmem:[%s4600_s8 + $0x1] ss:$0 sm:$0xff] }
 0x8c2   : > { %v1255_v55 = vsub.f32 %v1247_v46, %v1253_v53  ;;  %v1254_v56 = vsub.f32 %v1246_v19, %v1250_v54  ;;  %3406 = vmatprep.subr.bf16.mxu0 %v3778_v3  ;;  %v3161_v46 = vld [vmem:[%s4599_s7 + $0xb8] sm:$0xff]  ;;  %v1399_v53 = vpack.c.bf16 %v3165_v12, %v3164_v51  ;;  %v4230_v51 = vld [vmem:[%s4602_s10 + $0x1] sm:$0x1] }
 0x8c3   : > { %v1397_v47 = vpack.c.bf16 %v3161_v46, %v3160_v45 }
 0x8c4   : > { %v1258_v57 = vmul.f32 1.442695, %v1255_v55  ;;  %v1256_v58 = vmul.f32 1.442695, %v1254_v56  ;;  %v532_v55 = vld [vmem:[%s421_s30] sm:$0xff] }
 0x8c5   : > { %3407 = vmatpush3.bf16.msra.mxu0 %v1396_v42  ;;  %v3166_v56 = vld [vmem:[%s4599_s7 + $0xe0] sm:$0xff] }
 0x8c6   : > { %3680 = vpow2.f32 %v1258_v57  ;;  %3408 = vmatprep.subr.bf16.mxu0 %v3778_v3  ;;  %v3167_v57 = vld [vmem:[%s4599_s7 + $0xe8] sm:$0xff] }
 0x8c7   : > { %3682 = vpow2.f32 %v1256_v58 }
 0x8c8   : > { %v3677_v59 = vpop.eup %3676 }
 0x8c9   : > { %v3679_v60 = vpop.eup %3678  ;;  %v1085_v61 = vsel %vm712_vm5, %v3677_v59, 0.0  ;;  %3409 = vmatpush3.bf16.msra.mxu0 %v1397_v47 }
 0x8ca   : > { %1086 = vadd.xlane.f32.xlu0 %v1085_v61  ;;  %v1082_v62 = vsel %vm712_vm5, %v3679_v60, 0.0  ;;  %3410 = vmatprep.subr.bf16.mxu0 %v3778_v3  ;;  %v3168_v61 = vld [vmem:[%s4599_s7 + $0xf0] sm:$0xff] }
 0x8cb   : > { %1083 = vadd.xlane.f32.xlu1 %v1082_v62  ;;  %v3169_v62 = vld [vmem:[%s4599_s7 + $0xf8] sm:$0xff] }
 0x8cd   : > { %3411 = vmatpush3.bf16.msra.mxu0 %v1398_v50 }
 0x8ce   : > { %3412 = vmatprep.subr.bf16.mxu0 %v3778_v3 }
 0x8d0   : > { %v3681_v1 = vpop.eup %3680 }
 0x8d1   : > { %v3683_v4 = vpop.eup %3682  ;;  %v1263_v5 = vsel %vm712_vm5, %v3681_v1, 0.0  ;;  %3413 = vmatpush3.bf16.msra.mxu0 %v1399_v53 }
 0x8d2   : > { %1264 = vadd.xlane.f32.xlu0 %v1263_v5  ;;  %v1260_v9 = vsel %vm712_vm5, %v3683_v4, 0.0  ;;  %3414 = vmatprep.subr.bf16.mxu0 %v3778_v3 }
 0x8d3   : > { %1261 = vadd.xlane.f32.xlu1 %v1260_v9 }
 0x8e4   : > { %1093 = vrot.lane.b32.xlu1 %v3971_v15, %s3782_s28 }
 0x8e8   : > { %1320 = vrot.lane.b32.xlu1 %v4083_v7, %s3783_s29  ;;  %1271 = vrot.lane.b32.xlu0 %v3971_v15, %s3783_s29 }
 0x8ec   : > { %1322 = vrot.lane.b32.xlu1 %v4085_v10, %s3783_s29 }
 0x957   : > { %v1087_v11 = vpop.xlane.xlu0 %1086 }
 0x958   : > { %3684 = vrcp.f32 %v1087_v11  ;;  %v1084_v14 = vpop.xlane.xlu1 %1083 }
 0x959   : > { %3686 = vrcp.f32 %v1084_v14 }
 0x95f   : > { %v1265_v18 = vpop.xlane.xlu0 %1264 }
 0x960   : > { %3688 = vrcp.f32 %v1265_v18  ;;  %v1262_v20 = vpop.xlane.xlu1 %1261 }
 0x961   : > { %3690 = vrcp.f32 %v1262_v20 }
 0x962   : > { %v3685_v21 = vpop.eup %3684 }
 0x963   : > { %v3687_v23 = vpop.eup %3686  ;;  %v1091_v24 = vmul.f32 %v3685_v21, %v3677_v59  ;;  %v1272_v7 = vpop.permute.xlu0 %1271  ;;  %v533_v59 = vld [vmem:[%s421_s30 + $0x8] sm:$0xff] }
 0x964   : > { %v1090_v25 = vmul.f32 %v3687_v23, %v3679_v60  ;;  %v1094_v26 = vpop.permute.xlu1 %1093  ;;  %v1400_v60 = vpack.c.bf16 %v3167_v57, %v3166_v56 }
 0x965   : > { %3384 = vmatpush3.bf16.msra.mxu1 %v1094_v26 }
 0x966   : > { %3396 = vmatprep.subr.bf16.mxu1 %v3778_v3  ;;  %v1092_v15 = vpack.c.bf16 %v1091_v24, %v1090_v25  ;;  %3415 = vmatpush3.bf16.msra.mxu0 %v1400_v60 }
 0x967   : > { %3416 = vmatprep.subr.bf16.mxu0 %v3778_v3 }
 0x968   : > { %3386 = vmatmul.mubr.msk.bf16.vlgmr.msra.gmra.mrb[4].mxu1 %vm712_vm5, %v1092_v15 }
 0x969   : > { %3397 = vmatpush3.bf16.msra.mxu1 %v1272_v7  ;;  %3398 = vmatprep.mubr.msk.bf16.mxu1 %vm3779_vm0, %v3778_v3 }
 0x96a   : > { %v3689_v10 = vpop.eup %3688  ;;  %3562 = vmatprep.subr.bf16.mxu1 %v3780_v2 }
 0x96b   : > { %v3691_v27 = vpop.eup %3690  ;;  %v1269_v28 = vmul.f32 %v3689_v10, %v3681_v1  ;;  %v1401_v1 = vpack.c.bf16 %v3169_v62, %v3168_v61 }
 0x96c   : > { %v1268_v29 = vmul.f32 %v3691_v27, %v3683_v4  ;;  %v1321_v4 = vpop.permute.xlu1 %1320 }
 0x96d   : > { %3417 = vmatpush3.bf16.msra.mxu0 %v1401_v1  ;;  %v1342_v14 = vsel %vm444_vm1, %v4036_v6, %v1321_v4 }
 0x96e   : > { %v1270_v32 = vpack.c.bf16 %v1269_v28, %v1268_v29  ;;  %3574 = vmatprep.subr.bf16.mxu0 %v3780_v2 }
 0x970   : > { %3399 = vmatmul.mubr.msk.bf16.vlgmr.msra.gmra.mrb[8].mxu1 %vm712_vm5, %v1270_v32  ;;  %v1323_v5 = vpop.permute.xlu1 %1322 }
 0x971   : > { %3426 = vmatprep.mubr.msk.f32.mxu1 %vm3779_vm0, %v3778_v3  ;;  %v1343_v21 = vsel %vm444_vm1, %v4038_v8, %v1323_v5 }
 0xa3b   : > { %v1133_v43 = vpop.f32.mrb[4].mxu1 }
 0xa3c   : > { %1328 = vrot.lane.b32.xlu1 %v1133_v43, %s3782_s28  ;;  %v3387_v17 = vpop.f32.mrb[5].mxu1 }
 0xa3d   : > { %v1136_v44 = vpop.f32.mrb[6].mxu1 }
 0xa3e   : > { %1330 = vrot.lane.b32.xlu0 %v1136_v44, %s3782_s28  ;;  %v3388_v19 = vpop.f32.mrb[7].mxu1 }
 0xa43   : > { %v1311_v52 = vpop.f32.mrb[8].mxu1 }
 0xa44   : > { %1336 = vrot.lane.b32.xlu1 %v1311_v52, %s3781_s26  ;;  %v3400_v16 = vpop.f32.mrb[9].mxu1 }
 0xa45   : > { %v1314_v54 = vpop.f32.mrb[10].mxu1 }
 0xa46   : > { %1338 = vrot.lane.b32.xlu0 %v1314_v54, %s3781_s26  ;;  %v3401_v58 = vpop.f32.mrb[11].mxu1 }
 0xa48   : > { %1366 = vperm.xlu1 %3624, %v532_v55  }
 0xa4a   : > { %1371 = vperm.xlu0 %3625, %v533_v59  }
 0xaae   : > { %v1329_v9 = vpop.permute.xlu1 %1328 }
 0xaaf   : > { %v1345_v18 = vsel %vm1344_vm12, %v1342_v14, %v1329_v9 }
 0xab0   : > { %v1331_v11 = vpop.permute.xlu0 %1330 }
 0xab1   : > { %v1346_v24 = vsel %vm1344_vm12, %v1343_v21, %v1331_v11 }
 0xab6   : > { %v1337_v20 = vpop.permute.xlu1 %1336 }
 0xab7   : > { %v1348_v23 = vsel %vm1347_vm13, %v1345_v18, %v1337_v20 }
 0xab8   : > { %v1350_v25 = vadd.f32 %v1348_v23, %v3946_v63  ;;  %v1339_v26 = vpop.permute.xlu0 %1338 }
 0xab9   : > { %v1349_v15 = vsel %vm1347_vm13, %v1346_v24, %v1339_v26 }
 0xaba   : > { %v1354_v7 = vmin.f32 %v1350_v25, 0.0  ;;  %v1351_v10 = vadd.f32 %v1349_v15, %v3948_v0  ;;  %vm1352_vm14 = vcmp.gt.f32.partialorder %v1350_v25, 0.0 }
 0xabc   : > { %v1356_v27 = vmul.f32 1.442695, %v1354_v7  ;;  %v1355_v6 = vmin.f32 %v1351_v10, 0.0  ;;  %vm1353_vm15 = vcmp.gt.f32.partialorder %v1351_v10, 0.0 }
 0xabe   : > { %3692 = vpow2.f32 %v1356_v27  ;;  %v1358_v28 = vmul.f32 1.442695, %v1355_v6 }
 0xac0   : > { %3694 = vpow2.f32 %v1358_v28 }
 0xac7   : > { %v4191_v34 = vpop.permute.xlu1 %1366 }
 0xac8   : > { %v3693_v29 = vpop.eup %3692 }
 0xac9   : > { %v3152_v32 = vadd.f32 -1.0, %v3693_v29  ;;  %v4193_v35 = vpop.permute.xlu0 %1371 }
 0xaca   : > { %v3695_v8 = vpop.eup %3694 }
 0xacb   : > { %v1362_v33 = vsel %vm1352_vm14, %v1350_v25, %v3152_v32  ;;  %v3153_v63 = vadd.f32 -1.0, %v3695_v8 }
 0xacc   : > { %v4196_v37 = vmul.f32 %v4191_v34, %v1362_v33 }
 0xacd   : > { %v1363_v36 = vsel %vm1353_vm15, %v1351_v10, %v3153_v63 }
 0xace   : > { %v4199_v0 = vmul.f32 %v4193_v35, %v1363_v36 }
 0xad0   : > { %v1393_v38 = vpack.c.bf16 %v4199_v0, %v4196_v37 }
 0xad2   : > { %3419 = vmatmul.mubr.bf16.vlgmr.msra.gmra.mrb[20].mxu0 %v1393_v38 }
 0xad3   : > { %3465 = vmatprep.mubr.msk.f32.mxu0 %vm3779_vm0, %v3778_v3 }
 0xba5   : > { %v1441_v40 = vpop.f32.mrb[20].mxu0 }
 0xba6   : > { %v1442_v42 = vadd.f32 %v3170_v39, %v1441_v40  ;;  %v3420_v43 = vpop.f32.mrb[21].mxu0 }
 0xba7   : > { %v1444_v17 = vpop.f32.mrb[22].mxu0 }
 0xba8   : > { %v1445_v44 = vadd.f32 %v3170_v39, %v1444_v17  ;;  %v3421_v45 = vpop.f32.mrb[23].mxu0  ;;  %v4211_v46 = vmul.f32 %v3171_v41, %v1442_v42 }
 0xbaa   : > { %v1456_v19 = vsel %vm444_vm1, %v4211_v46, 0.0  ;;  %v4215_v47 = vpack.c.bf16 %v1445_v44, %v1442_v42  ;;  %v4217_v48 = vmul.f32 %v3171_v41, %v1445_v44  ;;  %v4219_v49 = vpack.i.bf16 %v1445_v44, %v1442_v42 }
 0xbab   : > { %1457 = vadd.xlane.f32.xlu1 %v1456_v19 }
 0xbac   : > { %3565 = vmatpush3.bf16.xpose.msk.msra.mxu1 %vm3965_vm2, %v4215_v47  ;;  %v1459_v50 = vsel %vm444_vm1, %v4217_v48, 0.0 }
 0xbad   : > { %1460 = vadd.xlane.f32.xlu0 %v1459_v50  ;;  %3429 = vmatprep.subr.bf16.mxu1 %v3778_v3 }
 0xbb3   : > { %3427 = vmatmul.mubr.msk.f32.vlgmr.msra.gmra.mrb[12].mxu1 %vm444_vm1, %v4230_v51 }
 0xbb4   : > { %3430 = vmatpush3.bf16.msra.mxu1 %v4215_v47  ;;  %3431 = vmatprep.mubr.msk.bf16.mxu1 %vm3779_vm0, %v3778_v3 }
 0xbb5   : > { %3566 = vmatprep.subr.bf16.mxu1 %v3780_v2 }
 0xc38   : > { %v1458_v53 = vpop.xlane.xlu1 %1457 }
 0xc3a   : > { %v1461_v54 = vpop.xlane.xlu0 %1460 }
 0xc86   : > { %v1537_v12 = vpop.f32.mrb[12].mxu1 }
 0xc87   : > { %v1544_v52 = vrot.slane %v1537_v12, %v3994_v22  ;;  %v3428_v16 = vpop.f32.mrb[13].mxu1 }
 0xc89   : > { %v1545_v55 = vadd.f32 %v1544_v52, %v1458_v53  ;;  %v1546_v56 = vadd.f32 %v1544_v52, %v1461_v54 }
 0xc8b   : > { %v1549_v57 = vmul.f32 0.2, %v1545_v55  ;;  %v1550_v58 = vmul.f32 0.2, %v1546_v56  ;;  %vm1547_vm3 = vcmp.gt.f32.partialorder %v1545_v55, 0.0  ;;  %vm1548_vm4 = vcmp.gt.f32.partialorder %v1546_v56, 0.0 }
 0xc8d   : > { %v1551_v59 = vsel %vm1547_vm3, %v1545_v55, %v1549_v57  ;;  %v1552_v60 = vsel %vm1548_vm4, %v1546_v56, %v1550_v58 }
 0xc8e   : > { %v1553_v61 = vadd.f32 %v1551_v59, %v4004_v30  ;;  %v1554_v62 = vadd.f32 %v1552_v60, %v4007_v31 }
 0xc90   : > { %v1555_v1 = vsel %vm712_vm5, %v1553_v61, -inf  ;;  %v1558_v4 = vsel %vm712_vm5, %v1554_v62, -inf }
 0xc91   : > { %1556 = vmax.xlane.f32.xlu0 %v1555_v1  ;;  %1559 = vmax.xlane.f32.xlu1 %v1558_v4 }
 0xd1e   : > { %v1560_v5 = vpop.xlane.xlu1 %1559  ;;  %v1557_v9 = vpop.xlane.xlu0 %1556 }
 0xd1f   : > { %v1562_v11 = vsub.f32 %v1554_v62, %v1560_v5  ;;  %v1561_v14 = vsub.f32 %v1553_v61, %v1557_v9 }
 0xd21   : > { %v1565_v18 = vmul.f32 1.442695, %v1562_v11  ;;  %v1563_v20 = vmul.f32 1.442695, %v1561_v14 }
 0xd23   : > { %3696 = vpow2.f32 %v1565_v18 }
 0xd24   : > { %3698 = vpow2.f32 %v1563_v20 }
 0xd2d   : > { %v3697_v21 = vpop.eup %3696 }
 0xd2e   : > { %v3699_v23 = vpop.eup %3698  ;;  %v1570_v24 = vsel %vm712_vm5, %v3697_v21, 0.0 }
 0xd2f   : > { %1571 = vadd.xlane.f32.xlu1 %v1570_v24  ;;  %v1567_v25 = vsel %vm712_vm5, %v3699_v23, 0.0 }
 0xd30   : > { %1568 = vadd.xlane.f32.xlu0 %v1567_v25 }
 0xd40   : > { %1637 = vrot.lane.b32.xlu1 %v4230_v51, %s3781_s26 }
 0xd44   : > { %1625 = vrot.lane.b32.xlu1 %v4211_v46, %s3781_s26 }
 0xd46   : > { %3627 = vrot.lane.b32.xlu0 %v4219_v49, %s3781_s26 }
 0xd48   : > { %1627 = vrot.lane.b32.xlu1 %v4217_v48, %s3781_s26 }
 0xdbc   : > { %v1572_v26 = vpop.xlane.xlu1 %1571 }
 0xdbd   : > { %3700 = vrcp.f32 %v1572_v26  ;;  %v1569_v15 = vpop.xlane.xlu0 %1568 }
 0xdbe   : > { %3702 = vrcp.f32 %v1569_v15 }
 0xdc0   : > { %v1638_v7 = vpop.permute.xlu1 %1637 }
 0xdc1   : > { %v3628_v27 = vpop.permute.xlu0 %3627 }
 0xdc2   : > { %v3630_v8 = vunpack.i.h.bf16 %v3628_v27  ;;  %v3629_v33 = vunpack.i.l.bf16 %v3628_v27 }
 0xdc4   : > { %v1626_v10 = vpop.permute.xlu1 %1625  ;;  %v3567_v40 = vpack.c.bf16 %v3630_v8, %v3629_v33 }
 0xdc5   : > { %v1631_v6 = vsel %vm444_vm1, %v1626_v10, 0.0 }
 0xdc6   : > { %1632 = vadd.xlane.f32.xlu0 %v1631_v6 }
 0xdc7   : > { %v3701_v28 = vpop.eup %3700 }
 0xdc8   : > { %v3703_v29 = vpop.eup %3702  ;;  %v1576_v32 = vmul.f32 %v3701_v28, %v3697_v21  ;;  %v1628_v63 = vpop.permute.xlu1 %1627 }
 0xdc9   : > { %v1575_v36 = vmul.f32 %v3703_v29, %v3699_v23  ;;  %v1634_v38 = vsel %vm444_vm1, %v1628_v63, 0.0 }
 0xdca   : > { %1635 = vadd.xlane.f32.xlu1 %v1634_v38 }
 0xdcb   : > { %v1577_v39 = vpack.c.bf16 %v1576_v32, %v1575_v36 }
 0xdcd   : > { %3432 = vmatmul.mubr.msk.bf16.vlgmr.msra.gmra.mrb[16].mxu1 %vm712_vm5, %v1577_v39 }
 0xdce   : > { %3569 = vmatpush3.bf16.xpose.msk.msra.mxu1 %vm3965_vm2, %v3567_v40  ;;  %3439 = vmatprep.mubr.msk.f32.mxu1 %vm3779_vm0, %v3778_v3 }
 0xdcf   : > { %3442 = vmatprep.subr.bf16.mxu1 %v3778_v3 }
 0xdd5   : > { %3440 = vmatmul.mubr.msk.f32.vlgmr.msra.gmra.mrb[14].mxu1 %vm444_vm1, %v1638_v7 }
 0xdd6   : > { %3444 = vmatprep.mubr.msk.bf16.mxu1 %vm3779_vm0, %v3778_v3 }
 0xddb   : > { %3632 = vrot.lane.b32.xlu1 %v4219_v49, %s3782_s28 }
 0xe53   : > { %v1633_v50 = vpop.xlane.xlu0 %1632 }
 0xe57   : > { %v1636_v12 = vpop.xlane.xlu1 %1635 }
 0xea0   : > { %v4266_v41 = vpop.f32.mrb[16].mxu1 }
 0xea1   : > { %v3433_v42 = vpop.f32.mrb[17].mxu1 }
 0xea2   : > { %v4268_v43 = vpop.f32.mrb[18].mxu1 }
 0xea3   : > { %v3434_v17 = vpop.f32.mrb[19].mxu1 }
 0xea8   : > { %v1715_v44 = vpop.f32.mrb[14].mxu1 }
 0xea9   : > { %v1722_v45 = vrot.slane %v1715_v44, %v3994_v22  ;;  %v3441_v19 = vpop.f32.mrb[15].mxu1 }
 0xeab   : > { %v1723_v52 = vadd.f32 %v1722_v45, %v1633_v50  ;;  %v1724_v16 = vadd.f32 %v1722_v45, %v1636_v12 }
 0xead   : > { %v1727_v53 = vmul.f32 0.2, %v1723_v52  ;;  %v1728_v54 = vmul.f32 0.2, %v1724_v16  ;;  %vm1725_vm6 = vcmp.gt.f32.partialorder %v1723_v52, 0.0  ;;  %vm1726_vm7 = vcmp.gt.f32.partialorder %v1724_v16, 0.0 }
 0xeaf   : > { %v1729_v55 = vsel %vm1725_vm6, %v1723_v52, %v1727_v53  ;;  %v1730_v56 = vsel %vm1726_vm7, %v1724_v16, %v1728_v54 }
 0xeb0   : > { %v1731_v57 = vadd.f32 %v1729_v55, %v4004_v30  ;;  %v1732_v59 = vadd.f32 %v1730_v56, %v4007_v31  ;;  %v3633_v31 = vpop.permute.xlu1 %3632 }
 0xeb1   : > { %v3635_v27 = vunpack.i.h.bf16 %v3633_v31  ;;  %v3634_v6 = vunpack.i.l.bf16 %v3633_v31 }
 0xeb2   : > { %v1733_v58 = vsel %vm712_vm5, %v1731_v57, -inf  ;;  %v1736_v60 = vsel %vm712_vm5, %v1732_v59, -inf }
 0xeb3   : > { %1734 = vmax.xlane.f32.xlu0 %v1733_v58  ;;  %v3571_v63 = vpack.c.bf16 %v3635_v27, %v3634_v6 }
 0xeb7   : > { %1737 = vmax.xlane.f32.xlu0 %v1736_v60 }
 0xf40   : > { %v1735_v61 = vpop.xlane.xlu0 %1734 }
 0xf41   : > { %v1739_v62 = vsub.f32 %v1731_v57, %v1735_v61 }
 0xf43   : > { %v1741_v1 = vmul.f32 1.442695, %v1739_v62 }
 0xf44   : > { %v1738_v4 = vpop.xlane.xlu0 %1737 }
 0xf45   : > { %3704 = vpow2.f32 %v1741_v1  ;;  %v1740_v5 = vsub.f32 %v1732_v59, %v1738_v4 }
 0xf47   : > { %v1743_v9 = vmul.f32 1.442695, %v1740_v5 }
 0xf49   : > { %3706 = vpow2.f32 %v1743_v9 }
 0xf4f   : > { %v3705_v11 = vpop.eup %3704 }
 0xf50   : > { %v1745_v14 = vsel %vm712_vm5, %v3705_v11, 0.0 }
 0xf51   : > { %1746 = vadd.xlane.f32.xlu0 %v1745_v14 }
 0xf53   : > { %v3707_v30 = vpop.eup %3706 }
 0xf54   : > { %v1748_v18 = vsel %vm712_vm5, %v3707_v30, 0.0 }
 0xf55   : > { %1749 = vadd.xlane.f32.xlu1 %v1748_v18  ;;  %v4320_v18 = vld [vmem:[%s4000_s25 + $0x8] sm:$0xff] }
 0xf66   : > { %3637 = vrot.lane.b32.xlu1 %v4219_v49, %s3783_s29 }
 0xf67   : > { %1757 = vrot.lane.b32.xlu0 %v4215_v47, %s3781_s26 }
 0xf6a   : > { %1816 = vrot.lane.b32.xlu1 %v4230_v51, %s3782_s28 }
 0xf6b   : > { %1994 = vrot.lane.b32.xlu0 %v4230_v51, %s3783_s29 }
 0xf6e   : > { %1804 = vrot.lane.b32.xlu1 %v4211_v46, %s3782_s28 }
 0xf6f   : > { %1806 = vrot.lane.b32.xlu0 %v4217_v48, %s3782_s28 }
 0xf72   : > { %1982 = vrot.lane.b32.xlu1 %v4211_v46, %s3783_s29 }
 0xf73   : > { %1984 = vrot.lane.b32.xlu0 %v4217_v48, %s3783_s29 }
 0xfde   : > { %v1747_v49 = vpop.xlane.xlu0 %1746 }
 0xfdf   : > { %3708 = vrcp.f32 %v1747_v49  ;;  %v4324_v49 = vld [vmem:[%s4000_s25] sm:$0xff] }
 0xfe2   : > { %v1750_v20 = vpop.xlane.xlu1 %1749  ;;  %v1758_v21 = vpop.permute.xlu0 %1757 }
 0xfe3   : > { %3710 = vrcp.f32 %v1750_v20  ;;  %3443 = vmatpush3.bf16.msra.mxu1 %v1758_v21 }
 0xfe4   : > { %3570 = vmatprep.subr.bf16.mxu1 %v3780_v2 }
 0xfe6   : > { %v3638_v51 = vpop.permute.xlu1 %3637  ;;  %v1995_v23 = vpop.permute.xlu0 %1994 }
 0xfe7   : > { %v3640_v24 = vunpack.i.h.bf16 %v3638_v51  ;;  %v3639_v25 = vunpack.i.l.bf16 %v3638_v51 }
 0xfe9   : > { %v3575_v26 = vpack.c.bf16 %v3640_v24, %v3639_v25  ;;  %v3709_v46 = vpop.eup %3708 }
 0xfea   : > { %v1817_v15 = vpop.permute.xlu1 %1816  ;;  %v1807_v7 = vpop.permute.xlu0 %1806  ;;  %v1753_v28 = vmul.f32 %v3709_v46, %v3705_v11 }
 0xfeb   : > { %3577 = vmatpush3.bf16.xpose.msk.msra.mxu0 %vm3965_vm2, %v3575_v26  ;;  %v1813_v48 = vsel %vm444_vm1, %v1807_v7, 0.0 }
 0xfec   : > { %1814 = vadd.xlane.f32.xlu0 %v1813_v48  ;;  %3468 = vmatprep.subr.bf16.mxu0 %v3778_v3 }
 0xfed   : > { %v3711_v10 = vpop.eup %3710 }
 0xfee   : > { %v1754_v29 = vmul.f32 %v3711_v10, %v3707_v30  ;;  %v1805_v32 = vpop.permute.xlu1 %1804  ;;  %v1985_v39 = vpop.permute.xlu0 %1984 }
 0xfef   : > { %v1810_v8 = vsel %vm444_vm1, %v1805_v32, 0.0  ;;  %v1991_v40 = vsel %vm444_vm1, %v1985_v39, 0.0 }
 0xff0   : > { %1811 = vadd.xlane.f32.xlu1 %v1810_v8  ;;  %v1755_v33 = vpack.c.bf16 %v1754_v29, %v1753_v28 }
 0xff2   : > { %v1983_v36 = vpop.permute.xlu1 %1982  ;;  %3445 = vmatmul.mubr.msk.bf16.vlgmr.msra.gmra.mrb[20].mxu1 %vm712_vm5, %v1755_v33  ;;  %3466 = vmatmul.mubr.msk.f32.vlgmr.msra.gmra.mrb[24].mxu0 %vm444_vm1, %v1995_v23 }
 0xff3   : > { %3573 = vmatpush3.bf16.xpose.msk.msra.mxu1 %vm3965_vm2, %v3571_v63  ;;  %v1988_v38 = vsel %vm444_vm1, %v1983_v36, 0.0  ;;  %3452 = vmatprep.mubr.msk.f32.mxu1 %vm3779_vm0, %v3778_v3 }
 0xff4   : > { %1989 = vadd.xlane.f32.xlu0 %v1988_v38  ;;  %3455 = vmatprep.subr.bf16.mxu1 %v3778_v3 }
 0xff5   : > { %3470 = vmatprep.mubr.msk.bf16.mxu0 %vm3779_vm0, %v3778_v3 }
 0xff8   : > { %1992 = vadd.xlane.f32.xlu0 %v1991_v40 }
 0xffa   : > { %3453 = vmatmul.mubr.msk.f32.vlgmr.msra.gmra.mrb[24].mxu1 %vm444_vm1, %v1817_v15 }
 0xffb   : > { %3457 = vmatprep.mubr.msk.bf16.mxu1 %vm3779_vm0, %v3778_v3 }
0x1079   : > { %v1815_v42 = vpop.xlane.xlu0 %1814 }
0x107d   : > { %v1812_v59 = vpop.xlane.xlu1 %1811 }
0x1081   : > { %v1990_v17 = vpop.xlane.xlu0 %1989 }
0x1085   : > { %v1993_v53 = vpop.xlane.xlu0 %1992 }
0x10c5   : > { %v4313_v44 = vpop.f32.mrb[20].mxu1  ;;  %v2072_v45 = vpop.f32.mrb[24].mxu0 }
0x10c6   : > { %v3446_v19 = vpop.f32.mrb[21].mxu1  ;;  %v3467_v50 = vpop.f32.mrb[25].mxu0  ;;  %v2079_v52 = vrot.slane %v2072_v45, %v3994_v22 }
0x10c7   : > { %v4315_v12 = vpop.f32.mrb[22].mxu1 }
0x10c8   : > { %v3447_v16 = vpop.f32.mrb[23].mxu1  ;;  %v2080_v54 = vadd.f32 %v2079_v52, %v1990_v17  ;;  %v2081_v55 = vadd.f32 %v2079_v52, %v1993_v53 }
0x10ca   : > { %v2084_v60 = vmul.f32 0.2, %v2080_v54  ;;  %v2085_v61 = vmul.f32 0.2, %v2081_v55  ;;  %vm2083_vm8 = vcmp.gt.f32.partialorder %v2081_v55, 0.0  ;;  %vm2082_vm9 = vcmp.gt.f32.partialorder %v2080_v54, 0.0 }
0x10cc   : > { %v2087_v14 = vsel %vm2083_vm8, %v2081_v55, %v2085_v61  ;;  %v2086_v30 = vsel %vm2082_vm9, %v2080_v54, %v2084_v60 }
0x10cd   : > { %v1894_v56 = vpop.f32.mrb[24].mxu1  ;;  %v2089_v23 = vadd.f32 %v4320_v18, %v2087_v14  ;;  %v2088_v24 = vadd.f32 %v4324_v49, %v2086_v30  ;;  %v3194_v14 = vld [vmem:[%s4599_s7 + $0x120] sm:$0xff]  ;;  %v3195_v30 = vld [vmem:[%s4599_s7 + $0x128] sm:$0xff] }
0x10ce   : > { %v1901_v57 = vrot.slane %v1894_v56, %v3994_v22  ;;  %v3454_v58 = vpop.f32.mrb[25].mxu1 }
0x10cf   : > { %v2093_v25 = vsel %vm712_vm5, %v2089_v23, -inf  ;;  %v2090_v26 = vsel %vm712_vm5, %v2088_v24, -inf }
0x10d0   : > { %v1902_v62 = vadd.f32 %v1901_v57, %v1812_v59  ;;  %v1903_v1 = vadd.f32 %v1901_v57, %v1815_v42 }
0x10d2   : > { %v1906_v4 = vmul.f32 0.2, %v1902_v62  ;;  %v1907_v5 = vmul.f32 0.2, %v1903_v1  ;;  %vm1905_vm10 = vcmp.gt.f32.partialorder %v1903_v1, 0.0  ;;  %vm1904_vm11 = vcmp.gt.f32.partialorder %v1902_v62, 0.0 }
0x10d4   : > { %v1909_v9 = vsel %vm1905_vm10, %v1903_v1, %v1907_v5  ;;  %v1908_v11 = vsel %vm1904_vm11, %v1902_v62, %v1906_v4  ;;  %v3190_v62 = vld [vmem:[%s4599_s7 + $0x100] sm:$0xff]  ;;  %v3191_v1 = vld [vmem:[%s4599_s7 + $0x108] sm:$0xff]  ;;  %v3192_v5 = vld [vmem:[%s4599_s7 + $0x110] sm:$0xff] }
0x10d5   : > { %v1911_v31 = vadd.f32 %v4320_v18, %v1909_v9  ;;  %v1910_v20 = vadd.f32 %v4324_v49, %v1908_v11  ;;  %v2224_v4 = vpack.c.bf16 %v3191_v1, %v3190_v62  ;;  %v3193_v9 = vld [vmem:[%s4599_s7 + $0x118] sm:$0xff] }
0x10d6   : > { %v2225_v11 = vpack.c.bf16 %v3193_v9, %v3192_v5  ;;  %v3206_v5 = vld [vmem:[%s4600_s8 + $0x2] ss:$0 sm:$0xff] }
0x10d7   : > { %v1915_v21 = vsel %vm712_vm5, %v1911_v31, -inf  ;;  %v1912_v51 = vsel %vm712_vm5, %v1910_v20, -inf }
0x10d8   : > { %1916 = vmax.xlane.f32.xlu0 %v1915_v21  ;;  %1913 = vmax.xlane.f32.xlu1 %v1912_v51  ;;  %v3196_v51 = vld [vmem:[%s4599_s7 + $0x130] sm:$0xff] }
0x10dc   : > { %2094 = vmax.xlane.f32.xlu0 %v2093_v25  ;;  %2091 = vmax.xlane.f32.xlu1 %v2090_v26 }
0x1165   : > { %v1917_v15 = vpop.xlane.xlu0 %1916  ;;  %v1914_v7 = vpop.xlane.xlu1 %1913 }
0x1166   : > { %v1919_v46 = vsub.f32 %v1911_v31, %v1917_v15  ;;  %v1918_v48 = vsub.f32 %v1910_v20, %v1914_v7  ;;  %v2226_v31 = vpack.c.bf16 %v3195_v30, %v3194_v14 }
0x1168   : > { %v1922_v29 = vmul.f32 1.442695, %v1919_v46  ;;  %v1920_v33 = vmul.f32 1.442695, %v1918_v48  ;;  %v3198_v46 = vld [vmem:[%s4599_s7 + $0x140] sm:$0xff]  ;;  %v3199_v48 = vld [vmem:[%s4599_s7 + $0x148] sm:$0xff] }
0x1169   : > { %v2095_v10 = vpop.xlane.xlu0 %2094  ;;  %v2092_v27 = vpop.xlane.xlu1 %2091 }
0x116a   : > { %v2097_v6 = vsub.f32 %v2089_v23, %v2095_v10  ;;  %v2096_v28 = vsub.f32 %v2088_v24, %v2092_v27  ;;  %v3197_v23 = vld [vmem:[%s4599_s7 + $0x138] sm:$0xff]  ;;  %v2228_v27 = vpack.c.bf16 %v3199_v48, %v3198_v46 }
0x116b   : > { %v2227_v25 = vpack.c.bf16 %v3197_v23, %v3196_v51 }
0x116c   : > { %v2100_v32 = vmul.f32 1.442695, %v2097_v6  ;;  %v2098_v8 = vmul.f32 1.442695, %v2096_v28  ;;  %v3200_v28 = vld [vmem:[%s4599_s7 + $0x150] sm:$0xff] }
0x116e   : > { %3712 = vpow2.f32 %v2100_v32 }
0x116f   : > { %3714 = vpow2.f32 %v2098_v8  ;;  %v3202_v8 = vld [vmem:[%s4599_s7 + $0x160] sm:$0xff] }
0x1170   : > { %3716 = vpow2.f32 %v1922_v29  ;;  %v3201_v29 = vld [vmem:[%s4599_s7 + $0x158] sm:$0xff] }
0x1171   : > { %3718 = vpow2.f32 %v1920_v33  ;;  %v2229_v32 = vpack.c.bf16 %v3201_v29, %v3200_v28  ;;  %v3203_v33 = vld [vmem:[%s4599_s7 + $0x168] sm:$0xff] }
0x1178   : > { %v3713_v63 = vpop.eup %3712 }
0x1179   : > { %v3715_v36 = vpop.eup %3714  ;;  %v2105_v38 = vsel %vm712_vm5, %v3713_v63, 0.0 }
0x117a   : > { %v3717_v39 = vpop.eup %3716  ;;  %2106 = vadd.xlane.f32.xlu0 %v2105_v38  ;;  %v2102_v40 = vsel %vm712_vm5, %v3715_v36, 0.0  ;;  %v3205_v38 = vld [vmem:[%s4599_s7 + $0x178] sm:$0xff] }
0x117b   : > { %v3719_v42 = vpop.eup %3718  ;;  %2103 = vadd.xlane.f32.xlu1 %v2102_v40  ;;  %v1927_v17 = vsel %vm712_vm5, %v3717_v39, 0.0 }
0x117c   : > { %v1924_v45 = vsel %vm712_vm5, %v3719_v42, 0.0 }
0x117e   : > { %1928 = vadd.xlane.f32.xlu0 %v1927_v17 }
0x117f   : > { %1925 = vadd.xlane.f32.xlu1 %v1924_v45 }
0x1190   : > { %1935 = vrot.lane.b32.xlu1 %v4215_v47, %s3782_s28 }
0x1194   : > { %2162 = vrot.lane.b32.xlu1 %v4313_v44, %s3783_s29  ;;  %2113 = vrot.lane.b32.xlu0 %v4215_v47, %s3783_s29 }
0x1198   : > { %2164 = vrot.lane.b32.xlu1 %v4315_v12, %s3783_s29 }
0x1207   : > { %v2107_v19 = vpop.xlane.xlu0 %2106 }
0x1208   : > { %3720 = vrcp.f32 %v2107_v19  ;;  %v2104_v50 = vpop.xlane.xlu1 %2103 }
0x1209   : > { %3722 = vrcp.f32 %v2104_v50 }
0x120b   : > { %v1929_v52 = vpop.xlane.xlu0 %1928 }
0x120c   : > { %3724 = vrcp.f32 %v1929_v52  ;;  %v1926_v16 = vpop.xlane.xlu1 %1925 }
0x120d   : > { %3726 = vrcp.f32 %v1926_v16 }
0x120f   : > { %v2114_v53 = vpop.permute.xlu0 %2113 }
0x1210   : > { %v1936_v54 = vpop.permute.xlu1 %1935  ;;  %3469 = vmatpush3.bf16.msra.mxu0 %v2114_v53 }
0x1211   : > { %3456 = vmatpush3.bf16.msra.mxu1 %v1936_v54  ;;  %3578 = vmatprep.subr.bf16.mxu0 %v3780_v2 }
0x1212   : > { %v3721_v44 = vpop.eup %3720  ;;  %3474 = vmatprep.subr.bf16.mxu1 %v3778_v3 }
0x1213   : > { %v3723_v47 = vpop.eup %3722  ;;  %v2111_v55 = vmul.f32 %v3721_v44, %v3713_v63  ;;  %v2230_v63 = vpack.c.bf16 %v3203_v33, %v3202_v8 }
0x1214   : > { %v2110_v12 = vmul.f32 %v3723_v47, %v3715_v36  ;;  %v3204_v36 = vld [vmem:[%s4599_s7 + $0x170] sm:$0xff]  ;;  %v2163_v40 = vpop.permute.xlu1 %2162 }
0x1215   : > { %v2184_v19 = vsel %vm444_vm1, %v4266_v41, %v2163_v40 }
0x1216   : > { %v3725_v56 = vpop.eup %3724  ;;  %v2112_v57 = vpack.c.bf16 %v2111_v55, %v2110_v12 }
0x1217   : > { %v3727_v58 = vpop.eup %3726  ;;  %v1933_v59 = vmul.f32 %v3725_v56, %v3717_v39  ;;  %v2231_v39 = vpack.c.bf16 %v3205_v38, %v3204_v36 }
0x1218   : > { %v1932_v60 = vmul.f32 %v3727_v58, %v3719_v42  ;;  %3471 = vmatmul.mubr.msk.bf16.vlgmr.msra.gmra.mrb[28].mxu0 %vm712_vm5, %v2112_v57  ;;  %v2165_v42 = vpop.permute.xlu1 %2164 }
0x1219   : > { %3498 = vmatprep.mubr.msk.f32.mxu0 %vm3779_vm0, %v3778_v3  ;;  %v2185_v16 = vsel %vm444_vm1, %v4268_v43, %v2165_v42 }
0x121a   : > { %v1934_v61 = vpack.c.bf16 %v1933_v59, %v1932_v60 }
0x121c   : > { %3458 = vmatmul.mubr.msk.bf16.vlgmr.msra.gmra.mrb[28].mxu1 %vm712_vm5, %v1934_v61 }
0x121d   : > { %3490 = vmatprep.mubr.msk.bf16.mxu1 %vm3779_vm0, %v3778_v3  ;;  %3475 = vmatpush3.bf16.msra.mxu1 %v2224_v4 }
0x121e   : > { %3476 = vmatprep.subr.bf16.mxu1 %v3778_v3 }
0x1221   : > { %3477 = vmatpush3.bf16.msra.mxu1 %v2225_v11  ;;  %v3207_v11 = vld [vmem:[%s4601_s9 + $0x2] ss:$0 sm:$0xff] }
0x1222   : > { %3478 = vmatprep.subr.bf16.mxu1 %v3778_v3 }
0x1225   : > { %3479 = vmatpush3.bf16.msra.mxu1 %v2226_v31 }
0x1226   : > { %3480 = vmatprep.subr.bf16.mxu1 %v3778_v3 }
0x1229   : > { %3481 = vmatpush3.bf16.msra.mxu1 %v2227_v25 }
0x122a   : > { %3482 = vmatprep.subr.bf16.mxu1 %v3778_v3 }
0x122d   : > { %3483 = vmatpush3.bf16.msra.mxu1 %v2228_v27 }
0x122e   : > { %3484 = vmatprep.subr.bf16.mxu1 %v3778_v3 }
0x1231   : > { %3485 = vmatpush3.bf16.msra.mxu1 %v2229_v32 }
0x1232   : > { %3486 = vmatprep.subr.bf16.mxu1 %v3778_v3 }
0x1235   : > { %3487 = vmatpush3.bf16.msra.mxu1 %v2230_v63 }
0x1236   : > { %3488 = vmatprep.subr.bf16.mxu1 %v3778_v3 }
0x1239   : > { %3489 = vmatpush3.bf16.msra.mxu1 %v2231_v39 }
0x123a   : > { %3527 = vmatprep.subr.bf16.mxu1 %v3778_v3 }
0x12eb   : > { %v2153_v20 = vpop.f32.mrb[28].mxu0 }
0x12ec   : > { %v3472_v21 = vpop.f32.mrb[29].mxu0 }
0x12ed   : > { %v2156_v24 = vpop.f32.mrb[30].mxu0 }
0x12ee   : > { %v3473_v26 = vpop.f32.mrb[31].mxu0 }
0x12ef   : > { %v1975_v15 = vpop.f32.mrb[28].mxu1 }
0x12f0   : > { %2170 = vrot.lane.b32.xlu1 %v1975_v15, %s3782_s28  ;;  %v3459_v7 = vpop.f32.mrb[29].mxu1 }
0x12f1   : > { %v1978_v10 = vpop.f32.mrb[30].mxu1  ;;  %v4458_v7 = vld [vmem:[%s4602_s10 + $0x2] sm:$0x1] }
0x12f2   : > { %2172 = vrot.lane.b32.xlu0 %v1978_v10, %s3782_s28  ;;  %v3460_v6 = vpop.f32.mrb[31].mxu1 }
0x12f4   : > { %2178 = vrot.lane.b32.xlu1 %v2153_v20, %s3781_s26 }
0x12f6   : > { %2180 = vrot.lane.b32.xlu0 %v2156_v24, %s3781_s26 }
0x1362   : > { %v2171_v17 = vpop.permute.xlu1 %2170 }
0x1363   : > { %v2186_v50 = vsel %vm1344_vm12, %v2184_v19, %v2171_v17 }
0x1364   : > { %v2173_v45 = vpop.permute.xlu0 %2172 }
0x1365   : > { %v2187_v54 = vsel %vm1344_vm12, %v2185_v16, %v2173_v45 }
0x1366   : > { %v2179_v52 = vpop.permute.xlu1 %2178 }
0x1367   : > { %v2188_v53 = vsel %vm1347_vm13, %v2186_v50, %v2179_v52 }
0x1368   : > { %v2190_v44 = vadd.f32 %v2188_v53, %v4196_v37  ;;  %v2181_v47 = vpop.permute.xlu0 %2180 }
0x1369   : > { %v2189_v55 = vsel %vm1347_vm13, %v2187_v54, %v2181_v47 }
0x136a   : > { %v2194_v12 = vmin.f32 %v2190_v44, 0.0  ;;  %v2191_v56 = vadd.f32 %v2189_v55, %v4199_v0  ;;  %vm2192_vm14 = vcmp.gt.f32.partialorder %v2190_v44, 0.0 }
0x136c   : > { %v2196_v57 = vmul.f32 1.442695, %v2194_v12  ;;  %v2195_v41 = vmin.f32 %v2191_v56, 0.0  ;;  %vm2193_vm15 = vcmp.gt.f32.partialorder %v2191_v56, 0.0 }
0x136e   : > { %3728 = vpow2.f32 %v2196_v57  ;;  %v2198_v58 = vmul.f32 1.442695, %v2195_v41 }
0x1370   : > { %3730 = vpow2.f32 %v2198_v58 }
0x1378   : > { %v3729_v59 = vpop.eup %3728 }
0x1379   : > { %v3188_v60 = vadd.f32 -1.0, %v3729_v59 }
0x137a   : > { %v3731_v43 = vpop.eup %3730 }
0x137b   : > { %v2202_v61 = vsel %vm2192_vm14, %v2190_v44, %v3188_v60  ;;  %v3189_v62 = vadd.f32 -1.0, %v3731_v43 }
0x137c   : > { %v4424_v37 = vmul.f32 %v2202_v61, %v4191_v34 }
0x137d   : > { %v2203_v1 = vsel %vm2193_vm15, %v2191_v56, %v3189_v62 }
0x137e   : > { %v4427_v4 = vmul.f32 %v2203_v1, %v4193_v35 }
0x1380   : > { %v2223_v0 = vpack.c.bf16 %v4427_v4, %v4424_v37 }
0x1382   : > { %3491 = vmatmul.mubr.bf16.vlgmr.msra.gmra.mrb[32].mxu1 %v2223_v0 }
0x1383   : > { %3529 = vmatprep.mubr.msk.bf16.mxu1 %vm3779_vm0, %v3778_v3 }
0x1455   : > { %v2271_v9 = vpop.f32.mrb[32].mxu1 }
0x1456   : > { %v2272_v14 = vadd.f32 %v3206_v5, %v2271_v9  ;;  %v3492_v30 = vpop.f32.mrb[33].mxu1 }
0x1457   : > { %v2274_v31 = vpop.f32.mrb[34].mxu1 }
0x1458   : > { %v2275_v20 = vadd.f32 %v3206_v5, %v2274_v31  ;;  %v3493_v21 = vpop.f32.mrb[35].mxu1  ;;  %v4439_v51 = vmul.f32 %v3207_v11, %v2272_v14 }
0x145a   : > { %v2286_v23 = vsel %vm444_vm1, %v4439_v51, 0.0  ;;  %v4443_v24 = vpack.c.bf16 %v2275_v20, %v2272_v14  ;;  %v4445_v25 = vmul.f32 %v3207_v11, %v2275_v20  ;;  %v4447_v26 = vpack.i.bf16 %v2275_v20, %v2272_v14 }
0x145b   : > { %2287 = vadd.xlane.f32.xlu1 %v2286_v23 }
0x145c   : > { %3581 = vmatpush3.bf16.xpose.msk.msra.mxu0 %vm3965_vm2, %v4443_v24  ;;  %v2289_v15 = vsel %vm444_vm1, %v4445_v25, 0.0 }
0x145d   : > { %2290 = vadd.xlane.f32.xlu0 %v2289_v15  ;;  %3501 = vmatprep.subr.bf16.mxu0 %v3778_v3 }
0x1463   : > { %3499 = vmatmul.mubr.msk.f32.vlgmr.msra.gmra.mrb[26].mxu0 %vm444_vm1, %v4458_v7 }
0x1464   : > { %3502 = vmatpush3.bf16.msra.mxu0 %v4443_v24  ;;  %3503 = vmatprep.mubr.msk.bf16.mxu0 %vm3779_vm0, %v3778_v3 }
0x1465   : > { %3582 = vmatprep.subr.bf16.mxu0 %v3780_v2 }
0x14e8   : > { %v2288_v27 = vpop.xlane.xlu1 %2287 }
0x14ea   : > { %v2291_v6 = vpop.xlane.xlu0 %2290 }
0x1536   : > { %v2367_v46 = vpop.f32.mrb[26].mxu0 }
0x1537   : > { %v2374_v48 = vrot.slane %v2367_v46, %v3994_v22  ;;  %v3500_v10 = vpop.f32.mrb[27].mxu0 }
0x1539   : > { %v2375_v28 = vadd.f32 %v2374_v48, %v2288_v27  ;;  %v2376_v29 = vadd.f32 %v2374_v48, %v2291_v6 }
0x153b   : > { %v2379_v32 = vmul.f32 0.2, %v2375_v28  ;;  %v2380_v8 = vmul.f32 0.2, %v2376_v29  ;;  %vm2377_vm3 = vcmp.gt.f32.partialorder %v2375_v28, 0.0  ;;  %vm2378_vm4 = vcmp.gt.f32.partialorder %v2376_v29, 0.0 }
0x153d   : > { %v2381_v33 = vsel %vm2377_vm3, %v2375_v28, %v2379_v32  ;;  %v2382_v63 = vsel %vm2378_vm4, %v2376_v29, %v2380_v8 }
0x153e   : > { %v2383_v36 = vadd.f32 %v4324_v49, %v2381_v33  ;;  %v2384_v39 = vadd.f32 %v4320_v18, %v2382_v63 }
0x1540   : > { %v2385_v38 = vsel %vm712_vm5, %v2383_v36, -inf  ;;  %v2388_v40 = vsel %vm712_vm5, %v2384_v39, -inf }
0x1541   : > { %2386 = vmax.xlane.f32.xlu0 %v2385_v38 }
0x1545   : > { %2389 = vmax.xlane.f32.xlu0 %v2388_v40 }
0x15ce   : > { %v2387_v42 = vpop.xlane.xlu0 %2386 }
0x15cf   : > { %v2391_v17 = vsub.f32 %v2383_v36, %v2387_v42 }
0x15d1   : > { %v2393_v45 = vmul.f32 1.442695, %v2391_v17 }
0x15d2   : > { %v2390_v19 = vpop.xlane.xlu0 %2389 }
0x15d3   : > { %3732 = vpow2.f32 %v2393_v45  ;;  %v2392_v50 = vsub.f32 %v2384_v39, %v2390_v19 }
0x15d5   : > { %v2395_v52 = vmul.f32 1.442695, %v2392_v50 }
0x15d7   : > { %3734 = vpow2.f32 %v2395_v52 }
0x15dd   : > { %v3733_v16 = vpop.eup %3732 }
0x15de   : > { %v2397_v53 = vsel %vm712_vm5, %v3733_v16, 0.0 }
0x15df   : > { %2398 = vadd.xlane.f32.xlu1 %v2397_v53 }
0x15e1   : > { %v3735_v54 = vpop.eup %3734 }
0x15e2   : > { %v2400_v44 = vsel %vm712_vm5, %v3735_v54, 0.0 }
0x15e3   : > { %2401 = vadd.xlane.f32.xlu0 %v2400_v44 }
0x15f0   : > { %3642 = vrot.lane.b32.xlu1 %v4447_v26, %s3781_s26 }
0x15f4   : > { %2455 = vrot.lane.b32.xlu1 %v4439_v51, %s3781_s26 }
0x15f8   : > { %2457 = vrot.lane.b32.xlu1 %v4445_v25, %s3781_s26 }
0x15f9   : > { %2467 = vrot.lane.b32.xlu0 %v4458_v7, %s3781_s26 }
0x166c   : > { %v2399_v47 = vpop.xlane.xlu1 %2398 }
0x166d   : > { %3736 = vrcp.f32 %v2399_v47 }
0x1670   : > { %v3643_v55 = vpop.permute.xlu1 %3642  ;;  %v2402_v12 = vpop.xlane.xlu0 %2401 }
0x1671   : > { %3738 = vrcp.f32 %v2402_v12  ;;  %v3645_v43 = vunpack.i.h.bf16 %v3643_v55  ;;  %v3644_v61 = vunpack.i.l.bf16 %v3643_v55 }
0x1673   : > { %v3583_v5 = vpack.c.bf16 %v3645_v43, %v3644_v61 }
0x1674   : > { %v2456_v56 = vpop.permute.xlu1 %2455  ;;  %v2468_v9 = vpop.permute.xlu0 %2467 }
0x1675   : > { %v2461_v57 = vsel %vm444_vm1, %v2456_v56, 0.0 }
0x1676   : > { %2462 = vadd.xlane.f32.xlu1 %v2461_v57 }
0x1677   : > { %v3737_v58 = vpop.eup %3736 }
0x1678   : > { %v2458_v41 = vpop.permute.xlu1 %2457  ;;  %v2405_v62 = vmul.f32 %v3737_v58, %v3733_v16 }
0x1679   : > { %v2464_v59 = vsel %vm444_vm1, %v2458_v41, 0.0 }
0x167a   : > { %2465 = vadd.xlane.f32.xlu0 %v2464_v59 }
0x167b   : > { %v3739_v60 = vpop.eup %3738 }
0x167c   : > { %v2406_v1 = vmul.f32 %v3739_v60, %v3735_v54 }
0x167e   : > { %v2407_v0 = vpack.c.bf16 %v2406_v1, %v2405_v62 }
0x1680   : > { %3504 = vmatmul.mubr.msk.bf16.vlgmr.msra.gmra.mrb[32].mxu0 %vm712_vm5, %v2407_v0 }
0x1681   : > { %3585 = vmatpush3.bf16.xpose.msk.msra.mxu0 %vm3965_vm2, %v3583_v5  ;;  %3511 = vmatprep.mubr.msk.f32.mxu0 %vm3779_vm0, %v3778_v3 }
0x1682   : > { %3514 = vmatprep.subr.bf16.mxu0 %v3778_v3 }
0x1687   : > { %2587 = vrot.lane.b32.xlu1 %v4443_v24, %s3781_s26 }
0x1688   : > { %3512 = vmatmul.mubr.msk.f32.vlgmr.msra.gmra.mrb[36].mxu0 %vm444_vm1, %v2468_v9 }
0x1689   : > { %3516 = vmatprep.mubr.msk.bf16.mxu0 %vm3779_vm0, %v3778_v3 }
0x1703   : > { %v2463_v11 = vpop.xlane.xlu1 %2462 }
0x1707   : > { %v2588_v14 = vpop.permute.xlu1 %2587  ;;  %v2466_v48 = vpop.xlane.xlu0 %2465 }
0x1708   : > { %3515 = vmatpush3.bf16.msra.mxu0 %v2588_v14 }
0x1709   : > { %3586 = vmatprep.subr.bf16.mxu0 %v3780_v2 }
0x1753   : > { %v4495_v30 = vpop.f32.mrb[32].mxu0 }
0x1754   : > { %v3505_v31 = vpop.f32.mrb[33].mxu0 }
0x1755   : > { %v4497_v20 = vpop.f32.mrb[34].mxu0 }
0x1756   : > { %v3506_v21 = vpop.f32.mrb[35].mxu0 }
0x175b   : > { %v2545_v23 = vpop.f32.mrb[36].mxu0 }
0x175c   : > { %v2552_v15 = vrot.slane %v2545_v23, %v3994_v22  ;;  %v3513_v46 = vpop.f32.mrb[37].mxu0 }
0x175e   : > { %v2553_v10 = vadd.f32 %v2552_v15, %v2463_v11  ;;  %v2554_v27 = vadd.f32 %v2552_v15, %v2466_v48 }
0x1760   : > { %v2557_v6 = vmul.f32 0.2, %v2553_v10  ;;  %v2558_v28 = vmul.f32 0.2, %v2554_v27  ;;  %vm2555_vm6 = vcmp.gt.f32.partialorder %v2553_v10, 0.0  ;;  %vm2556_vm7 = vcmp.gt.f32.partialorder %v2554_v27, 0.0 }
0x1762   : > { %v2559_v29 = vsel %vm2555_vm6, %v2553_v10, %v2557_v6  ;;  %v2560_v32 = vsel %vm2556_vm7, %v2554_v27, %v2558_v28 }
0x1763   : > { %v2561_v8 = vadd.f32 %v4324_v49, %v2559_v29  ;;  %v2562_v63 = vadd.f32 %v4320_v18, %v2560_v32 }
0x1765   : > { %v2563_v33 = vsel %vm712_vm5, %v2561_v8, -inf  ;;  %v2566_v36 = vsel %vm712_vm5, %v2562_v63, -inf }
0x1766   : > { %2564 = vmax.xlane.f32.xlu0 %v2563_v33 }
0x176a   : > { %2567 = vmax.xlane.f32.xlu0 %v2566_v36 }
0x17f3   : > { %v2565_v38 = vpop.xlane.xlu0 %2564 }
0x17f4   : > { %v2569_v39 = vsub.f32 %v2561_v8, %v2565_v38 }
0x17f6   : > { %v2571_v40 = vmul.f32 1.442695, %v2569_v39 }
0x17f7   : > { %v2568_v42 = vpop.xlane.xlu0 %2567 }
0x17f8   : > { %3740 = vpow2.f32 %v2571_v40  ;;  %v2570_v17 = vsub.f32 %v2562_v63, %v2568_v42 }
0x17fa   : > { %v2573_v45 = vmul.f32 1.442695, %v2570_v17 }
0x17fc   : > { %3742 = vpow2.f32 %v2573_v45 }
0x1802   : > { %v3741_v19 = vpop.eup %3740 }
0x1803   : > { %v2575_v50 = vsel %vm712_vm5, %v3741_v19, 0.0 }
0x1804   : > { %2576 = vadd.xlane.f32.xlu1 %v2575_v50 }
0x1806   : > { %v3743_v52 = vpop.eup %3742 }
0x1807   : > { %v2578_v16 = vsel %vm712_vm5, %v3743_v52, 0.0 }
0x1808   : > { %2579 = vadd.xlane.f32.xlu0 %v2578_v16 }
0x1815   : > { %3652 = vrot.lane.b32.xlu1 %v4447_v26, %s3783_s29 }
0x1819   : > { %2646 = vrot.lane.b32.xlu1 %v4458_v7, %s3782_s28 }
0x181d   : > { %2824 = vrot.lane.b32.xlu1 %v4458_v7, %s3783_s29 }
0x181e   : > { %3647 = vrot.lane.b32.xlu0 %v4447_v26, %s3782_s28 }
0x1821   : > { %2636 = vrot.lane.b32.xlu1 %v4445_v25, %s3782_s28 }
0x1822   : > { %2634 = vrot.lane.b32.xlu0 %v4439_v51, %s3782_s28 }
0x1825   : > { %2814 = vrot.lane.b32.xlu1 %v4445_v25, %s3783_s29 }
0x1826   : > { %2812 = vrot.lane.b32.xlu0 %v4439_v51, %s3783_s29 }
0x1891   : > { %v2577_v53 = vpop.xlane.xlu1 %2576 }
0x1892   : > { %3744 = vrcp.f32 %v2577_v53 }
0x1895   : > { %v3653_v54 = vpop.permute.xlu1 %3652  ;;  %v2580_v44 = vpop.xlane.xlu0 %2579 }
0x1896   : > { %3746 = vrcp.f32 %v2580_v44  ;;  %v3655_v9 = vunpack.i.h.bf16 %v3653_v54  ;;  %v3654_v11 = vunpack.i.l.bf16 %v3653_v54 }
0x1898   : > { %v3591_v14 = vpack.c.bf16 %v3655_v9, %v3654_v11 }
0x1899   : > { %v2647_v7 = vpop.permute.xlu1 %2646  ;;  %v3648_v47 = vpop.permute.xlu0 %3647 }
0x189a   : > { %v3650_v41 = vunpack.i.h.bf16 %v3648_v47  ;;  %v3649_v58 = vunpack.i.l.bf16 %v3648_v47 }
0x189c   : > { %v3745_v12 = vpop.eup %3744  ;;  %v3587_v1 = vpack.c.bf16 %v3650_v41, %v3649_v58 }
0x189d   : > { %v2825_v26 = vpop.permute.xlu1 %2824  ;;  %v2635_v55 = vpop.permute.xlu0 %2634  ;;  %v2583_v25 = vmul.f32 %v3745_v12, %v3741_v19 }
0x189e   : > { %v2640_v56 = vsel %vm444_vm1, %v2635_v55, 0.0 }
0x189f   : > { %2641 = vadd.xlane.f32.xlu0 %v2640_v56 }
0x18a0   : > { %v3747_v57 = vpop.eup %3746 }
0x18a1   : > { %v2584_v59 = vmul.f32 %v3747_v57, %v3743_v52  ;;  %v2637_v60 = vpop.permute.xlu1 %2636  ;;  %v2813_v51 = vpop.permute.xlu0 %2812 }
0x18a2   : > { %v2643_v43 = vsel %vm444_vm1, %v2637_v60, 0.0  ;;  %v2818_v61 = vsel %vm444_vm1, %v2813_v51, 0.0 }
0x18a3   : > { %2644 = vadd.xlane.f32.xlu1 %v2643_v43  ;;  %2819 = vadd.xlane.f32.xlu0 %v2818_v61  ;;  %v2585_v62 = vpack.c.bf16 %v2584_v59, %v2583_v25 }
0x18a5   : > { %v2815_v0 = vpop.permute.xlu1 %2814  ;;  %3517 = vmatmul.mubr.msk.bf16.vlgmr.msra.gmra.mrb[40].mxu0 %vm712_vm5, %v2585_v62 }
0x18a6   : > { %v2821_v5 = vsel %vm444_vm1, %v2815_v0, 0.0  ;;  %3589 = vmatpush3.bf16.xpose.msk.msra.mxu0 %vm3965_vm2, %v3587_v1  ;;  %3524 = vmatprep.mubr.msk.f32.mxu0 %vm3779_vm0, %v3778_v3 }
0x18a7   : > { %2822 = vadd.xlane.f32.xlu0 %v2821_v5  ;;  %3590 = vmatprep.subr.bf16.mxu0 %v3780_v2 }
0x18ad   : > { %3525 = vmatmul.mubr.msk.f32.vlgmr.msra.gmra.mrb[38].mxu0 %vm444_vm1, %v2647_v7 }
0x18ae   : > { %3593 = vmatpush3.bf16.xpose.msk.msra.mxu0 %vm3965_vm2, %v3591_v14  ;;  %3537 = vmatprep.mubr.msk.f32.mxu0 %vm3779_vm0, %v3778_v3 }
0x18b5   : > { %3538 = vmatmul.mubr.msk.f32.vlgmr.msra.gmra.mrb[44].mxu0 %vm444_vm1, %v2825_v26 }
0x192c   : > { %v2642_v2 = vpop.xlane.xlu0 %2641 }
0x1930   : > { %v2645_v27 = vpop.xlane.xlu1 %2644  ;;  %v2820_v28 = vpop.xlane.xlu0 %2819 }
0x1934   : > { %v2823_v42 = vpop.xlane.xlu0 %2822 }
0x1978   : > { %v4538_v31 = vpop.f32.mrb[40].mxu0 }
0x1979   : > { %v3518_v21 = vpop.f32.mrb[41].mxu0 }
0x197a   : > { %v4540_v23 = vpop.f32.mrb[42].mxu0 }
0x197b   : > { %v3519_v15 = vpop.f32.mrb[43].mxu0 }
0x1980   : > { %v2724_v46 = vpop.f32.mrb[38].mxu0 }
0x1981   : > { %v2731_v48 = vrot.slane %v2724_v46, %v3994_v22  ;;  %v3526_v10 = vpop.f32.mrb[39].mxu0 }
0x1983   : > { %v2732_v6 = vadd.f32 %v2731_v48, %v2642_v2  ;;  %v2733_v13 = vadd.f32 %v2731_v48, %v2645_v27 }
0x1985   : > { %v2736_v29 = vmul.f32 0.2, %v2732_v6  ;;  %v2737_v32 = vmul.f32 0.2, %v2733_v13  ;;  %vm2735_vm2 = vcmp.gt.f32.partialorder %v2733_v13, 0.0  ;;  %vm2734_vm8 = vcmp.gt.f32.partialorder %v2732_v6, 0.0 }
0x1987   : > { %v2739_v8 = vsel %vm2735_vm2, %v2733_v13, %v2737_v32  ;;  %v2738_v33 = vsel %vm2734_vm8, %v2732_v6, %v2736_v29 }
0x1988   : > { %v2902_v63 = vpop.f32.mrb[44].mxu0  ;;  %v2741_v36 = vadd.f32 %v4320_v18, %v2739_v8  ;;  %v2740_v38 = vadd.f32 %v4324_v49, %v2738_v33 }
0x1989   : > { %v2909_v39 = vrot.slane %v2902_v63, %v3994_v22  ;;  %v3539_v40 = vpop.f32.mrb[45].mxu0 }
0x198a   : > { %v2745_v17 = vsel %vm712_vm5, %v2741_v36, -inf  ;;  %v2742_v45 = vsel %vm712_vm5, %v2740_v38, -inf }
0x198b   : > { %v2910_v19 = vadd.f32 %v2909_v39, %v2820_v28  ;;  %v2911_v50 = vadd.f32 %v2909_v39, %v2823_v42  ;;  %2746 = vmax.xlane.f32.xlu1 %v2745_v17  ;;  %2743 = vmax.xlane.f32.xlu0 %v2742_v45 }
0x198d   : > { %v2914_v52 = vmul.f32 0.2, %v2910_v19  ;;  %v2915_v16 = vmul.f32 0.2, %v2911_v50  ;;  %vm2913_vm9 = vcmp.gt.f32.partialorder %v2911_v50, 0.0  ;;  %vm2912_vm10 = vcmp.gt.f32.partialorder %v2910_v19, 0.0 }
0x198f   : > { %v2917_v53 = vsel %vm2913_vm9, %v2911_v50, %v2915_v16  ;;  %v2916_v54 = vsel %vm2912_vm10, %v2910_v19, %v2914_v52 }
0x1990   : > { %v2919_v44 = vadd.f32 %v4320_v18, %v2917_v53  ;;  %v2918_v22 = vadd.f32 %v4324_v49, %v2916_v54 }
0x1992   : > { %v2923_v7 = vsel %vm712_vm5, %v2919_v44, -inf  ;;  %v2920_v47 = vsel %vm712_vm5, %v2918_v22, -inf }
0x1993   : > { %2924 = vmax.xlane.f32.xlu1 %v2923_v7  ;;  %2921 = vmax.xlane.f32.xlu0 %v2920_v47 }
0x1a18   : > { %v2747_v26 = vpop.xlane.xlu1 %2746  ;;  %v2744_v55 = vpop.xlane.xlu0 %2743 }
0x1a19   : > { %v2749_v12 = vsub.f32 %v2741_v36, %v2747_v26  ;;  %v2748_v56 = vsub.f32 %v2740_v38, %v2744_v55 }
0x1a1b   : > { %v2752_v57 = vmul.f32 1.442695, %v2749_v12  ;;  %v2750_v41 = vmul.f32 1.442695, %v2748_v56 }
0x1a1d   : > { %3748 = vpow2.f32 %v2752_v57 }
0x1a1e   : > { %3750 = vpow2.f32 %v2750_v41 }
0x1a20   : > { %v2925_v58 = vpop.xlane.xlu1 %2924  ;;  %v2922_v25 = vpop.xlane.xlu0 %2921 }
0x1a21   : > { %v2927_v59 = vsub.f32 %v2919_v44, %v2925_v58  ;;  %v2926_v18 = vsub.f32 %v2918_v22, %v2922_v25 }
0x1a23   : > { %v2930_v60 = vmul.f32 1.442695, %v2927_v59  ;;  %v2928_v49 = vmul.f32 1.442695, %v2926_v18 }
0x1a25   : > { %3752 = vpow2.f32 %v2930_v60 }
0x1a26   : > { %3754 = vpow2.f32 %v2928_v49 }
0x1a27   : > { %v3749_v51 = vpop.eup %3748 }
0x1a28   : > { %v3751_v43 = vpop.eup %3750  ;;  %v2757_v61 = vsel %vm712_vm5, %v3749_v51, 0.0 }
0x1a29   : > { %2758 = vadd.xlane.f32.xlu1 %v2757_v61  ;;  %v2754_v62 = vsel %vm712_vm5, %v3751_v43, 0.0 }
0x1a2a   : > { %2755 = vadd.xlane.f32.xlu0 %v2754_v62 }
0x1a2f   : > { %v3753_v1 = vpop.eup %3752 }
0x1a30   : > { %v3755_v0 = vpop.eup %3754  ;;  %v2935_v5 = vsel %vm712_vm5, %v3753_v1, 0.0 }
0x1a31   : > { %2936 = vadd.xlane.f32.xlu1 %v2935_v5  ;;  %v2932_v9 = vsel %vm712_vm5, %v3755_v0, 0.0 }
0x1a32   : > { %2933 = vadd.xlane.f32.xlu0 %v2932_v9 }
0x1a42   : > { %2943 = vrot.lane.b32.xlu1 %v4443_v24, %s3783_s29 }
0x1a46   : > { %2992 = vrot.lane.b32.xlu1 %v4538_v31, %s3783_s29 }
0x1a48   : > { %2765 = vrot.lane.b32.xlu0 %v4443_v24, %s3782_s28 }
0x1a4a   : > { %2994 = vrot.lane.b32.xlu1 %v4540_v23, %s3783_s29  ;;  %s426_s29 = scalar_lea.vmem %s4603_s11, %s3872_s27 }
0x1ab6   : > { %v2759_v11 = vpop.xlane.xlu1 %2758 }
0x1ab7   : > { %3756 = vrcp.f32 %v2759_v11  ;;  %v2756_v14 = vpop.xlane.xlu0 %2755 }
0x1ab8   : > { %3758 = vrcp.f32 %v2756_v14 }
0x1abe   : > { %v2937_v21 = vpop.xlane.xlu1 %2936 }
0x1abf   : > { %3760 = vrcp.f32 %v2937_v21  ;;  %v2934_v15 = vpop.xlane.xlu0 %2933 }
0x1ac0   : > { %3762 = vrcp.f32 %v2934_v15 }
0x1ac1   : > { %v3757_v2 = vpop.eup %3756 }
0x1ac2   : > { %v3759_v46 = vpop.eup %3758  ;;  %v2763_v48 = vmul.f32 %v3757_v2, %v3749_v51  ;;  %v2944_v31 = vpop.permute.xlu1 %2943 }
0x1ac3   : > { %v2762_v10 = vmul.f32 %v3759_v46, %v3751_v43  ;;  %v2766_v27 = vpop.permute.xlu0 %2765 }
0x1ac4   : > { %3528 = vmatpush3.bf16.msra.mxu1 %v2766_v27 }
0x1ac5   : > { %3540 = vmatprep.subr.bf16.mxu1 %v3778_v3  ;;  %v2764_v24 = vpack.c.bf16 %v2763_v48, %v2762_v10 }
0x1ac6   : > { %v2993_v40 = vpop.permute.xlu1 %2992 }
0x1ac7   : > { %3530 = vmatmul.mubr.msk.bf16.vlgmr.msra.gmra.mrb[36].mxu1 %vm712_vm5, %v2764_v24  ;;  %v3014_v19 = vsel %vm444_vm1, %v4495_v30, %v2993_v40 }
0x1ac8   : > { %3541 = vmatpush3.bf16.msra.mxu1 %v2944_v31  ;;  %3542 = vmatprep.mubr.msk.bf16.mxu1 %vm3779_vm0, %v3778_v3 }
0x1ac9   : > { %v3761_v23 = vpop.eup %3760 }
0x1aca   : > { %v3763_v6 = vpop.eup %3762  ;;  %v2941_v13 = vmul.f32 %v3761_v23, %v3753_v1  ;;  %v2995_v42 = vpop.permute.xlu1 %2994 }
0x1acb   : > { %v2940_v28 = vmul.f32 %v3763_v6, %v3755_v0  ;;  %v3015_v16 = vsel %vm444_vm1, %v4497_v20, %v2995_v42 }
0x1acd   : > { %v2942_v29 = vpack.c.bf16 %v2941_v13, %v2940_v28 }
0x1acf   : > { %3543 = vmatmul.mubr.msk.bf16.vlgmr.msra.gmra.mrb[40].mxu1 %vm712_vm5, %v2942_v29 }
0x1b9a   : > { %v2805_v32 = vpop.f32.mrb[36].mxu1 }
0x1b9b   : > { %3000 = vrot.lane.b32.xlu0 %v2805_v32, %s3782_s28  ;;  %v3531_v8 = vpop.f32.mrb[37].mxu1 }
0x1b9c   : > { %v2808_v33 = vpop.f32.mrb[38].mxu1 }
0x1b9d   : > { %3002 = vrot.lane.b32.xlu1 %v2808_v33, %s3782_s28  ;;  %v3532_v63 = vpop.f32.mrb[39].mxu1 }
0x1ba2   : > { %v2983_v36 = vpop.f32.mrb[40].mxu1 }
0x1ba3   : > { %3008 = vrot.lane.b32.xlu0 %v2983_v36, %s3781_s26  ;;  %v3544_v38 = vpop.f32.mrb[41].mxu1 }
0x1ba4   : > { %v2986_v3 = vpop.f32.mrb[42].mxu1 }
0x1ba5   : > { %3010 = vrot.lane.b32.xlu1 %v2986_v3, %s3781_s26  ;;  %v3545_v39 = vpop.f32.mrb[43].mxu1 }
0x1c0d   : > { %v3001_v17 = vpop.permute.xlu0 %3000 }
0x1c0e   : > { %v3016_v50 = vsel %vm1344_vm12, %v3014_v19, %v3001_v17 }
0x1c0f   : > { %v3003_v45 = vpop.permute.xlu1 %3002 }
0x1c10   : > { %v3017_v54 = vsel %vm1344_vm12, %v3015_v16, %v3003_v45 }
0x1c15   : > { %v3009_v52 = vpop.permute.xlu0 %3008 }
0x1c16   : > { %v3018_v53 = vsel %vm1347_vm13, %v3016_v50, %v3009_v52 }
0x1c17   : > { %v3020_v44 = vadd.f32 %v3018_v53, %v4424_v37  ;;  %v3011_v22 = vpop.permute.xlu1 %3010 }
0x1c18   : > { %v3019_v7 = vsel %vm1347_vm13, %v3017_v54, %v3011_v22 }
0x1c19   : > { %v3024_v47 = vmin.f32 %v3020_v44, 0.0  ;;  %v3021_v26 = vadd.f32 %v3019_v7, %v4427_v4  ;;  %vm3022_vm0 = vcmp.gt.f32.partialorder %v3020_v44, 0.0 }
0x1c1b   : > { %v3026_v30 = vmul.f32 1.442695, %v3024_v47  ;;  %v3025_v55 = vmin.f32 %v3021_v26, 0.0  ;;  %vm3023_vm1 = vcmp.gt.f32.partialorder %v3021_v26, 0.0 }
0x1c1d   : > { %3764 = vpow2.f32 %v3026_v30  ;;  %v3028_v12 = vmul.f32 1.442695, %v3025_v55 }
0x1c1f   : > { %3766 = vpow2.f32 %v3028_v12 }
0x1c27   : > { %v3765_v56 = vpop.eup %3764 }
0x1c28   : > { %v3224_v20 = vadd.f32 -1.0, %v3765_v56 }
0x1c29   : > { %v3767_v57 = vpop.eup %3766 }
0x1c2a   : > { %v3032_v37 = vsel %vm3022_vm0, %v3020_v44, %v3224_v20  ;;  %v3225_v41 = vadd.f32 -1.0, %v3767_v57 }
0x1c2b   : > { %v3034_v58 = vmul.f32 %v3032_v37, %v4191_v34 }
0x1c2c   : > { %v3033_v25 = vsel %vm3023_vm1, %v3021_v26, %v3225_v41 }
0x1c2d   : > { %3036 = vst [vmem:[%s426_s29] sm:$0xff] %v3034_v58  ;;  %v3035_v4 = vmul.f32 %v3033_v25, %v4193_v35 }
0x1c2f   : > { %3037 = vst [vmem:[%s426_s29 + $0x8] sm:$0xff] %v3035_v4 }
0x1c30 PF: > { %s21_s17 = sadd.s32 1, %s3776_s17  }
0x1c31   : > { %p18_p4 = scmp.ge.s32.totalorder %s21_s17, 4  }
0x1c33   :  { %20 = sbr.rel (!%p18_p4) target bundleno = 1 (0x1), region = 102 }

// kernel: forward.9
= control target key start
LH: loop header
LB: loop body
LE: loop exit
PB: predicated region body
PF: predicated region fallthrough
CT: control target
= control target key end

     0   :  { %v1412_v0 = vmov 0.0   ;;  %vm1413_vm0 = vmmov 0   ;;  %v1414_v28 = vmov 0.0|0.0   ;;  %vm129_vm1 = vcmask 523264   ;;  %s1980_s4 = inlined_call_operand.vmem [shape: f32[128,64], index: 4, kind: input, shape index: {}]   ;;  %s1981_s0 = inlined_call_operand.vmem [shape: f32[2,16,128], index: 0, kind: input, shape index: {}]   ;;  %s1982_s5 = inlined_call_operand.vmem [shape: f32[1,64], index: 5, kind: input, shape index: {}]   ;;  %s1983_s6 = inlined_call_operand.vmem [shape: f32[1,64], index: 6, kind: input, shape index: {}]   ;;  %s1984_s2 = inlined_call_operand.vmem [shape: f32[2,1,16], index: 2, kind: input, shape index: {}]   ;;  %s1985_s7 = inlined_call_operand.vmem [shape: f32[128,64], index: 7, kind: input, shape index: {}]   ;;  %s1986_s1 = inlined_call_operand.vmem [shape: f32[2,32,128], index: 1, kind: input, shape index: {}]   ;;  %s1987_s8 = inlined_call_operand.vmem [shape: f32[1,64], index: 8, kind: input, shape index: {}]   ;;  %s1988_s9 = inlined_call_operand.vmem [shape: f32[1,64], index: 9, kind: input, shape index: {}]   ;;  %s1989_s3 = inlined_call_operand.vmem [shape: f32[2,1,32], index: 3, kind: input, shape index: {}]   ;;  %s1990_s10 = inlined_call_operand.vmem [shape: f32[256,64], index: 10, kind: input, shape index: {}]   ;;  %s1991_s12 = inlined_call_operand.vmem [shape: f32[64,1], index: 12, kind: input, shape index: {}]   ;;  %s1992_s13 = inlined_call_operand.<no memory space> [shape: f32[1,1], index: 13, kind: input, shape index: {}]   ;;  %s1993_s11 = inlined_call_operand.vmem [shape: f32[1,64], index: 11, kind: input, shape index: {}]   ;;  %s1994_s14 = inlined_call_operand.vmem [shape: f32[2,1], index: 14, kind: output, shape index: {}]  }
   0x1   :  { %1187 = vmatprep.subr.bf16.mxu0 %v1412_v0  ;;  %v53_v1 = vld [vmem:[%s1980_s4] sm:$0xff]  ;;  %v54_v2 = vld [vmem:[%s1980_s4 + $0x8] sm:$0xff]  ;;  %v55_v3 = vld [vmem:[%s1980_s4 + $0x10] sm:$0xff]  ;;  %1203 = vmatprep.mubr.msk.bf16.mxu0 %vm1413_vm0, %v1412_v0  ;;  %vm209_vm3 = vcmask 122880   ;;  %vm222_vm4 = vcmask 130048   ;;  %vm443_vm5 = vcmask 253952  }
   0x2   :  { %v1502_v4 = vpack.c.bf16 %v54_v2, %v53_v1  ;;  %v56_v5 = vld [vmem:[%s1980_s4 + $0x18] sm:$0xff]  ;;  %1211 = vmatprep.mubr.msk.f32.mxu1 %vm1413_vm0, %v1412_v0  ;;  %v57_v7 = vld [vmem:[%s1980_s4 + $0x20] sm:$0xff]  ;;  %v58_v8 = vld [vmem:[%s1980_s4 + $0x28] sm:$0xff]  ;;  %1343 = vmatprep.subr.bf16.mxu1 %v1414_v28  ;;  %vm456_vm6 = vcmask 261120   ;;  %vm885_vm7 = vcmask 1040384   ;;  %vm1057_vm8 = vcmask 1024  }
   0x3   :  { %v1510_v6 = vpack.c.bf16 %v56_v5, %v55_v3  ;;  %v1520_v9 = vpack.c.bf16 %v58_v8, %v57_v7  ;;  %v59_v10 = vld [vmem:[%s1980_s4 + $0x30] sm:$0xff]  ;;  %v60_v11 = vld [vmem:[%s1980_s4 + $0x38] sm:$0xff]  ;;  %v61_v13 = vld [vmem:[%s1980_s4 + $0x40] sm:$0xff] }
   0x4   :  { %1188 = vmatpush3.bf16.msra.mxu0 %v1502_v4  ;;  %v1530_v12 = vpack.c.bf16 %v60_v11, %v59_v10  ;;  %v62_v14 = vld [vmem:[%s1980_s4 + $0x48] sm:$0xff]  ;;  %v63_v16 = vld [vmem:[%s1980_s4 + $0x50] sm:$0xff]  ;;  %v64_v17 = vld [vmem:[%s1980_s4 + $0x58] sm:$0xff] }
   0x5   :  { %1189 = vmatprep.subr.bf16.mxu0 %v1412_v0  ;;  %v1540_v15 = vpack.c.bf16 %v62_v14, %v61_v13  ;;  %v1550_v18 = vpack.c.bf16 %v64_v17, %v63_v16  ;;  %v65_v19 = vld [vmem:[%s1980_s4 + $0x60] sm:$0xff]  ;;  %v66_v20 = vld [vmem:[%s1980_s4 + $0x68] sm:$0xff]  ;;  %v67_v22 = vld [vmem:[%s1980_s4 + $0x70] sm:$0xff] }
   0x6   :  { %v1560_v21 = vpack.c.bf16 %v66_v20, %v65_v19  ;;  %v68_v23 = vld [vmem:[%s1980_s4 + $0x78] sm:$0xff]  ;;  %v50_v25 = vld [vmem:[%s1981_s0] sm:$0xff]  ;;  %v51_v26 = vld [vmem:[%s1981_s0 + $0x8] sm:$0xff] }
   0x7   :  { %v1570_v24 = vpack.c.bf16 %v68_v23, %v67_v22  ;;  %v71_v27 = vpack.c.bf16 %v51_v26, %v50_v25  ;;  %v1587_v29 = vld [vmem:[%s1982_s5] ss:$0 sm:$0xff]  ;;  %vm1593_vm2 = vmpackc.low %vm129_vm1, %vm129_vm1  ;;  %v272_v52 = vld [vmem:[%s1985_s7 + $0x8] sm:$0xff] }
   0x8   :  { %1190 = vmatpush3.bf16.msra.mxu0 %v1510_v6  ;;  %v1603_v40 = vld [vmem:[%s1983_s6] sm:$0x1]  ;;  %v267_v56 = vld [vmem:[%s1986_s1 + $0x8] sm:$0xff]  ;;  %v273_v58 = vld [vmem:[%s1985_s7 + $0x10] sm:$0xff] }
   0x9   :  { %1191 = vmatprep.subr.bf16.mxu0 %v1412_v0  ;;  %v52_v41 = vld [vmem:[%s1984_s2] sm:$0x1]  ;;  %v274_v59 = vld [vmem:[%s1985_s7 + $0x18] sm:$0xff]  ;;  %v276_v2 = vld [vmem:[%s1985_s7 + $0x28] sm:$0xff] }
   0xa   :  { %v271_v51 = vld [vmem:[%s1985_s7] sm:$0xff]  ;;  %v1635_v63 = vpack.c.bf16 %v274_v59, %v273_v58  ;;  %v277_v5 = vld [vmem:[%s1985_s7 + $0x30] sm:$0xff]  ;;  %v278_v7 = vld [vmem:[%s1985_s7 + $0x38] sm:$0xff] }
   0xb   :  { %v1620_v53 = vpack.c.bf16 %v272_v52, %v271_v51  ;;  %v266_v55 = vld [vmem:[%s1986_s1] sm:$0xff]  ;;  %v1656_v8 = vpack.c.bf16 %v278_v7, %v277_v5  ;;  %v280_v11 = vld [vmem:[%s1985_s7 + $0x48] sm:$0xff]  ;;  %v281_v14 = vld [vmem:[%s1985_s7 + $0x50] sm:$0xff] }
   0xc   :  { %1192 = vmatpush3.bf16.msra.mxu0 %v1520_v9  ;;  %v289_v61 = vpack.c.bf16 %v267_v56, %v266_v55  ;;  %v275_v1 = vld [vmem:[%s1985_s7 + $0x20] sm:$0xff]  ;;  %v282_v16 = vld [vmem:[%s1985_s7 + $0x58] sm:$0xff]  ;;  %v284_v20 = vld [vmem:[%s1985_s7 + $0x68] sm:$0xff] }
   0xd   :  { %1193 = vmatprep.subr.bf16.mxu0 %v1412_v0  ;;  %v1646_v3 = vpack.c.bf16 %v276_v2, %v275_v1  ;;  %v279_v10 = vld [vmem:[%s1985_s7 + $0x40] sm:$0xff]  ;;  %v1676_v17 = vpack.c.bf16 %v282_v16, %v281_v14  ;;  %v285_v23 = vld [vmem:[%s1985_s7 + $0x70] sm:$0xff]  ;;  %v286_v25 = vld [vmem:[%s1985_s7 + $0x78] sm:$0xff] }
   0xe   :  { %v1666_v13 = vpack.c.bf16 %v280_v11, %v279_v10  ;;  %v283_v19 = vld [vmem:[%s1985_s7 + $0x60] sm:$0xff]  ;;  %v1696_v26 = vpack.c.bf16 %v286_v25, %v285_v23 }
   0xf   :  { %v1686_v22 = vpack.c.bf16 %v284_v20, %v283_v19 }
  0x10   :  { %1194 = vmatpush3.bf16.msra.mxu0 %v1530_v12 }
  0x11   :  { %1195 = vmatprep.subr.bf16.mxu0 %v1412_v0 }
  0x14   :  { %1196 = vmatpush3.bf16.msra.mxu0 %v1540_v15 }
  0x15   :  { %1197 = vmatprep.subr.bf16.mxu0 %v1412_v0 }
  0x18   :  { %1198 = vmatpush3.bf16.msra.mxu0 %v1550_v18 }
  0x19   :  { %1199 = vmatprep.subr.bf16.mxu0 %v1412_v0 }
  0x1c   :  { %1200 = vmatpush3.bf16.msra.mxu0 %v1560_v21 }
  0x1d   :  { %1201 = vmatprep.subr.bf16.mxu0 %v1412_v0 }
  0x20   :  { %1202 = vmatpush3.bf16.msra.mxu0 %v1570_v24 }
  0x21   :  { %1347 = vmatprep.subr.bf16.mxu0 %v1414_v28 }
  0x23   :  { %1204 = vmatmul.mubr.bf16.vlgmr.msra.gmra.mrb[0].mxu0 %v71_v27 }
  0x24   :  { %1248 = vmatprep.mubr.msk.f32.mxu0 %vm1413_vm0, %v1412_v0 }
  0xf6   :  { %v120_v30 = vpop.f32.mrb[0].mxu0 }
  0xf7   :  { %v121_v31 = vadd.f32 %v1587_v29, %v120_v30  ;;  %v1205_v32 = vpop.f32.mrb[1].mxu0  ;;  %v269_v30 = vld [vmem:[%s1986_s1 + $0x18] sm:$0xff] }
  0xf8   :  { %v123_v33 = vpop.f32.mrb[2].mxu0 }
  0xf9   :  { %v124_v34 = vadd.f32 %v1587_v29, %v123_v33  ;;  %v1206_v35 = vpop.f32.mrb[3].mxu0  ;;  %1370 = vtanh.f32 %v121_v31 }
  0xfb   :  { %1372 = vtanh.f32 %v124_v34 }
 0x103   :  { %v1371_v36 = vpop.eup %1370 }
 0x105   :  { %v1373_v37 = vpop.eup %1372 }
 0x106   :  { %v1344_v39 = vpack.c.bf16 %v1373_v37, %v1371_v36  ;;  %v1717_v36 = vld [vmem:[%s1987_s8] ss:$0 sm:$0xff] }
 0x108   :  { %1346 = vmatpush3.bf16.xpose.msk.msra.mxu1 %vm1593_vm2, %v1344_v39 }
 0x109   :  { %1214 = vmatprep.subr.bf16.mxu1 %v1412_v0 }
 0x10f   :  { %1212 = vmatmul.mubr.msk.f32.vlgmr.msra.gmra.mrb[0].mxu1 %vm129_vm1, %v1603_v40 }
 0x110   :  { %1215 = vmatpush3.bf16.msra.mxu1 %v71_v27  ;;  %1216 = vmatprep.mubr.msk.bf16.mxu1 %vm1413_vm0, %v1412_v0  ;;  %v268_v27 = vld [vmem:[%s1986_s1 + $0x10] sm:$0xff] }
 0x111   :  { %1220 = vmatprep.subr.bf16.mxu1 %v1620_v53  ;;  %v290_v31 = vpack.c.bf16 %v269_v30, %v268_v27  ;;  %v1077_v30 = vld [vmem:[%s1984_s2 + $0x1] sm:$0x1] }
 0x1e2   :  { %v205_v42 = vpop.f32.mrb[0].mxu1 }
 0x1e3   :  { %v206_v43 = vadd.f32 %v205_v42, %v52_v41  ;;  %v1213_v44 = vpop.f32.mrb[1].mxu1 }
 0x1e5   :  { %v210_v45 = vsel %vm209_vm3, %v206_v43, -inf }
 0x1e6   :  { %211 = vmax.xlane.f32.xlu0 %v210_v45 }
 0x273   :  { %v212_v46 = vpop.xlane.xlu0 %211 }
 0x274   :  { %v213_v47 = vsub.f32 %v206_v43, %v212_v46 }
 0x276   :  { %v214_v48 = vmul.f32 1.442695, %v213_v47 }
 0x278   :  { %1374 = vpow2.f32 %v214_v48 }
 0x282   :  { %v1375_v49 = vpop.eup %1374 }
 0x283   :  { %v216_v50 = vsel %vm209_vm3, %v1375_v49, 0.0 }
 0x284   :  { %217 = vadd.xlane.f32.xlu0 %v216_v50 }
 0x311   :  { %v218_v54 = vpop.xlane.xlu0 %217 }
 0x312   :  { %1376 = vrcp.f32 %v218_v54  ;;  %v1732_v54 = vld [vmem:[%s1988_s9] sm:$0x1] }
 0x31c   :  { %v1377_v57 = vpop.eup %1376 }
 0x31d   :  { %v220_v60 = vmul.f32 %v1377_v57, %v1375_v49 }
 0x31f   :  { %v221_v62 = vpack.c.bf16 %v220_v60, %v220_v60 }
 0x321   :  { %1217 = vmatmul.mubr.msk.bf16.vlgmr.msra.gmra.mrb[4].mxu1 %vm222_vm4, %v221_v62 }
 0x322   :  { %1221 = vmatpush3.bf16.msra.mxu1 %v1620_v53  ;;  %1236 = vmatprep.mubr.bf16.mxu1 %v289_v61 }
 0x323   :  { %1222 = vmatprep.subr.bf16.mxu1 %v1635_v63 }
 0x326   :  { %1223 = vmatpush3.bf16.msra.mxu1 %v1635_v63 }
 0x327   :  { %1224 = vmatprep.subr.bf16.mxu1 %v1646_v3 }
 0x32a   :  { %1225 = vmatpush3.bf16.msra.mxu1 %v1646_v3 }
 0x32b   :  { %1226 = vmatprep.subr.bf16.mxu1 %v1656_v8 }
 0x32e   :  { %1227 = vmatpush3.bf16.msra.mxu1 %v1656_v8 }
 0x32f   :  { %1228 = vmatprep.subr.bf16.mxu1 %v1666_v13 }
 0x332   :  { %1229 = vmatpush3.bf16.msra.mxu1 %v1666_v13 }
 0x333   :  { %1230 = vmatprep.subr.bf16.mxu1 %v1676_v17 }
 0x336   :  { %1231 = vmatpush3.bf16.msra.mxu1 %v1676_v17 }
 0x337   :  { %1232 = vmatprep.subr.bf16.mxu1 %v1686_v22 }
 0x33a   :  { %1233 = vmatpush3.bf16.msra.mxu1 %v1686_v22 }
 0x33b   :  { %1234 = vmatprep.subr.bf16.mxu1 %v1696_v26 }
 0x33e   :  { %1235 = vmatpush3.bf16.msra.mxu1 %v1696_v26 }
 0x33f   :  { %1251 = vmatprep.subr.bf16.mxu1 %v1412_v0 }
 0x341   :  { %1237 = vmatmul.mubr.bf16.vlgmr.msra.gmra.mrb[8].mxu1 %v290_v31 }
 0x342   :  { %1252 = vmatpush3.bf16.msra.mxu1 %v289_v61  ;;  %1255 = vmatprep.mubr.msk.bf16.mxu1 %vm1413_vm0, %v1412_v0 }
 0x343   :  { %1253 = vmatprep.subr.bf16.mxu1 %v1412_v0 }
 0x346   :  { %1254 = vmatpush3.bf16.msra.mxu1 %v290_v31 }
 0x347   :  { %1355 = vmatprep.subr.bf16.mxu1 %v1414_v28 }
 0x3f4   :  { %v1712_v32 = vpop.f32.mrb[4].mxu1 }
 0x3f5   :  { %v1218_v33 = vpop.f32.mrb[5].mxu1 }
 0x3f6   :  { %v263_v34 = vpop.f32.mrb[6].mxu1 }
 0x3f7   :  { %v1219_v35 = vpop.f32.mrb[7].mxu1 }
 0x414   :  { %v1238_v37 = vpop.f32.mrb[8].mxu1 }
 0x415   :  { %v348_v39 = vadd.f32 %v1238_v37, %v1717_v36  ;;  %v339_v41 = vpop.f32.mrb[9].mxu1 }
 0x416   :  { %v340_v42 = vadd.f32 %v1717_v36, %v339_v41  ;;  %v1239_v43 = vpop.f32.mrb[10].mxu1 }
 0x417   :  { %1378 = vtanh.f32 %v348_v39  ;;  %v351_v44 = vadd.f32 %v1239_v43, %v1717_v36  ;;  %v342_v45 = vpop.f32.mrb[11].mxu1 }
 0x418   :  { %1380 = vtanh.f32 %v340_v42  ;;  %v343_v46 = vadd.f32 %v1717_v36, %v342_v45  ;;  %v1083_v45 = vld [vmem:[%s1986_s1 + $0x28] sm:$0xff] }
 0x419   :  { %1382 = vtanh.f32 %v351_v44  ;;  %v1082_v44 = vld [vmem:[%s1986_s1 + $0x20] sm:$0xff] }
 0x41a   :  { %1384 = vtanh.f32 %v343_v46 }
 0x421   :  { %v1379_v47 = vpop.eup %1378 }
 0x422   :  { %v1381_v48 = vpop.eup %1380 }
 0x423   :  { %v1383_v49 = vpop.eup %1382 }
 0x424   :  { %v1385_v50 = vpop.eup %1384  ;;  %v1352_v51 = vpack.c.bf16 %v1383_v49, %v1379_v47 }
 0x425   :  { %v1348_v52 = vpack.c.bf16 %v1385_v50, %v1381_v48  ;;  %v687_v48 = vpack.c.bf16 %v1083_v45, %v1082_v44  ;;  %v912_v44 = vld [vmem:[%s1990_s10 + $0xc0] sm:$0xff]  ;;  %v913_v45 = vld [vmem:[%s1990_s10 + $0xc8] sm:$0xff] }
 0x427   :  { %1350 = vmatpush3.bf16.xpose.msk.msra.mxu0 %vm1593_vm2, %v1348_v52 }
 0x428   :  { %1351 = vmatprep.subr.bf16.mxu0 %v1414_v28 }
 0x42f   :  { %1354 = vmatpush3.bf16.xpose.msk.msra.mxu0 %vm1593_vm2, %v1352_v51 }
 0x430   :  { %1259 = vmatprep.subr.bf16.mxu0 %v1412_v0 }
 0x436   :  { %1249 = vmatmul.mubr.msk.f32.vlgmr.msra.gmra.mrb[4].mxu0 %vm129_vm1, %v1732_v54 }
 0x437   :  { %1260 = vmatpush3.bf16.msra.mxu0 %v1502_v4  ;;  %1275 = vmatprep.mubr.msk.bf16.mxu0 %vm1413_vm0, %v1412_v0  ;;  %v1075_v4 = vld [vmem:[%s1981_s0 + $0x10] sm:$0xff] }
 0x438   :  { %1261 = vmatprep.subr.bf16.mxu0 %v1412_v0 }
 0x43b   :  { %1262 = vmatpush3.bf16.msra.mxu0 %v1510_v6  ;;  %v1076_v6 = vld [vmem:[%s1981_s0 + $0x18] sm:$0xff] }
 0x43c   :  { %1263 = vmatprep.subr.bf16.mxu0 %v1412_v0 }
 0x43f   :  { %1264 = vmatpush3.bf16.msra.mxu0 %v1520_v9  ;;  %v505_v9 = vpack.c.bf16 %v1076_v6, %v1075_v4 }
 0x440   :  { %1265 = vmatprep.subr.bf16.mxu0 %v1412_v0 }
 0x443   :  { %1266 = vmatpush3.bf16.msra.mxu0 %v1530_v12  ;;  %v270_v12 = vld [vmem:[%s1989_s3] sm:$0x1] }
 0x444   :  { %1267 = vmatprep.subr.bf16.mxu0 %v1412_v0 }
 0x447   :  { %1268 = vmatpush3.bf16.msra.mxu0 %v1540_v15 }
 0x448   :  { %1269 = vmatprep.subr.bf16.mxu0 %v1412_v0 }
 0x44b   :  { %1270 = vmatpush3.bf16.msra.mxu0 %v1550_v18 }
 0x44c   :  { %1271 = vmatprep.subr.bf16.mxu0 %v1412_v0 }
 0x44f   :  { %1272 = vmatpush3.bf16.msra.mxu0 %v1560_v21 }
 0x450   :  { %1273 = vmatprep.subr.bf16.mxu0 %v1412_v0 }
 0x453   :  { %1274 = vmatpush3.bf16.msra.mxu0 %v1570_v24 }
 0x454   :  { %1359 = vmatprep.subr.bf16.mxu0 %v1414_v28 }
 0x456   :  { %1276 = vmatmul.mubr.bf16.vlgmr.msra.gmra.mrb[8].mxu0 %v505_v9 }
 0x457   :  { %1320 = vmatprep.mubr.msk.f32.mxu0 %vm1413_vm0, %v1412_v0 }
 0x509   :  { %v439_v15 = vpop.f32.mrb[4].mxu0 }
 0x50a   :  { %v440_v18 = vadd.f32 %v439_v15, %v270_v12  ;;  %v1250_v21 = vpop.f32.mrb[5].mxu0 }
 0x50c   :  { %v444_v24 = vsel %vm443_vm5, %v440_v18, -inf }
 0x50d   :  { %445 = vmax.xlane.f32.xlu1 %v444_v24 }
 0x529   :  { %v540_v55 = vpop.f32.mrb[8].mxu0 }
 0x52a   :  { %v1277_v56 = vpop.f32.mrb[9].mxu0  ;;  %v541_v2 = vadd.f32 %v1587_v29, %v540_v55 }
 0x52b   :  { %v543_v57 = vpop.f32.mrb[10].mxu0 }
 0x52c   :  { %v1278_v58 = vpop.f32.mrb[11].mxu0  ;;  %v544_v5 = vadd.f32 %v1587_v29, %v543_v57 }
 0x59a   :  { %v446_v59 = vpop.xlane.xlu1 %445 }
 0x59b   :  { %v447_v60 = vsub.f32 %v440_v18, %v446_v59 }
 0x59d   :  { %v448_v61 = vmul.f32 1.442695, %v447_v60 }
 0x59f   :  { %1386 = vpow2.f32 %v448_v61 }
 0x5a0   :  { %1388 = vtanh.f32 %v541_v2  ;;  %v904_v2 = vld [vmem:[%s1990_s10 + $0x80] sm:$0xff] }
 0x5a1   :  { %1390 = vtanh.f32 %v544_v5  ;;  %v905_v5 = vld [vmem:[%s1990_s10 + $0x88] sm:$0xff] }
 0x5a9   :  { %v1387_v62 = vpop.eup %1386 }
 0x5aa   :  { %v450_v1 = vsel %vm443_vm5, %v1387_v62, 0.0  ;;  %v1389_v7 = vpop.eup %1388 }
 0x5ab   :  { %451 = vadd.xlane.f32.xlu1 %v450_v1  ;;  %v1391_v10 = vpop.eup %1390 }
 0x5ac   :  { %v1356_v11 = vpack.c.bf16 %v1391_v10, %v1389_v7  ;;  %v888_v7 = vld [vmem:[%s1990_s10] sm:$0xff]  ;;  %v930_v10 = vpack.c.bf16 %v905_v5, %v904_v2  ;;  %v995_v2 = vld [vmem:[%s1991_s12 + $0x8] sm:$0xff] }
 0x638   :  { %v452_v14 = vpop.xlane.xlu1 %451 }
 0x639   :  { %1392 = vrcp.f32 %v452_v14  ;;  %v906_v14 = vld [vmem:[%s1990_s10 + $0x90] sm:$0xff] }
 0x643   :  { %v1393_v16 = vpop.eup %1392 }
 0x644   :  { %v454_v19 = vmul.f32 %v1393_v16, %v1387_v62  ;;  %v907_v16 = vld [vmem:[%s1990_s10 + $0x98] sm:$0xff] }
 0x646   :  { %v455_v20 = vpack.c.bf16 %v454_v19, %v454_v19 }
 0x648   :  { %1256 = vmatmul.mubr.msk.bf16.vlgmr.msra.gmra.mrb[12].mxu1 %vm456_vm6, %v455_v20  ;;  %v931_v20 = vpack.c.bf16 %v907_v16, %v906_v14  ;;  %v1000_v16 = vld [vmem:[%s1991_s12 + $0x30] sm:$0xff] }
 0x649   :  { %1358 = vmatpush3.bf16.xpose.msk.msra.mxu1 %vm1593_vm2, %v1356_v11  ;;  %1283 = vmatprep.mubr.msk.f32.mxu1 %vm1413_vm0, %v1412_v0  ;;  %v889_v11 = vld [vmem:[%s1990_s10 + $0x8] sm:$0xff] }
 0x64a   :  { %1286 = vmatprep.subr.bf16.mxu1 %v1412_v0  ;;  %v922_v19 = vpack.c.bf16 %v889_v11, %v888_v7  ;;  %v996_v7 = vld [vmem:[%s1991_s12 + $0x10] sm:$0xff]  ;;  %v999_v11 = vld [vmem:[%s1991_s12 + $0x28] sm:$0xff] }
 0x650   :  { %1284 = vmatmul.mubr.msk.f32.vlgmr.msra.gmra.mrb[2].mxu1 %vm129_vm1, %v1603_v40 }
 0x651   :  { %1287 = vmatpush3.bf16.msra.mxu1 %v505_v9  ;;  %1288 = vmatprep.mubr.msk.bf16.mxu1 %vm1413_vm0, %v1412_v0 }
 0x652   :  { %1292 = vmatprep.subr.bf16.mxu1 %v1620_v53 }
 0x71b   :  { %v1780_v29 = vpop.f32.mrb[12].mxu1 }
 0x71c   :  { %v1257_v23 = vpop.f32.mrb[13].mxu1 }
 0x71d   :  { %v497_v25 = vpop.f32.mrb[14].mxu1  ;;  %v890_v23 = vld [vmem:[%s1990_s10 + $0x10] sm:$0xff] }
 0x71e   :  { %v1258_v27 = vpop.f32.mrb[15].mxu1  ;;  %v891_v25 = vld [vmem:[%s1990_s10 + $0x18] sm:$0xff] }
 0x71f   :  { %v908_v27 = vld [vmem:[%s1990_s10 + $0xa0] sm:$0xff] }
 0x723   :  { %v621_v31 = vpop.f32.mrb[2].mxu1 }
 0x724   :  { %v622_v33 = vadd.f32 %v1077_v30, %v621_v31  ;;  %v1285_v34 = vpop.f32.mrb[3].mxu1  ;;  %v909_v30 = vld [vmem:[%s1990_s10 + $0xa8] sm:$0xff]  ;;  %v923_v31 = vpack.c.bf16 %v891_v25, %v890_v23  ;;  %v19_v23 = vstv %s1992_s13 }
 0x725   :  { %v892_v34 = vld [vmem:[%s1990_s10 + $0x20] sm:$0xff]  ;;  %20 = vst [vmem:[#allocation2] sm:$0x1] %v19_v23 }
 0x726   :  { %v625_v40 = vsel %vm209_vm3, %v622_v33, -inf }
 0x727   :  { %626 = vmax.xlane.f32.xlu0 %v625_v40  ;;  %v893_v40 = vld [vmem:[%s1990_s10 + $0x28] sm:$0xff] }
 0x7b4   :  { %v627_v35 = vpop.xlane.xlu0 %626 }
 0x7b5   :  { %v628_v37 = vsub.f32 %v622_v33, %v627_v35  ;;  %v932_v33 = vpack.c.bf16 %v909_v30, %v908_v27  ;;  %v910_v35 = vld [vmem:[%s1990_s10 + $0xb0] sm:$0xff]  ;;  %v1093_v27 = vld [vmem:[%s1993_s11] ss:$0 sm:$0xff] }
 0x7b7   :  { %v629_v39 = vmul.f32 1.442695, %v628_v37  ;;  %v911_v37 = vld [vmem:[%s1990_s10 + $0xb8] sm:$0xff] }
 0x7b9   :  { %1394 = vpow2.f32 %v629_v39  ;;  %v924_v39 = vpack.c.bf16 %v893_v40, %v892_v34 }
 0x7c3   :  { %v1395_v41 = vpop.eup %1394 }
 0x7c4   :  { %v631_v42 = vsel %vm209_vm3, %v1395_v41, 0.0 }
 0x7c5   :  { %632 = vadd.xlane.f32.xlu1 %v631_v42  ;;  %v894_v42 = vld [vmem:[%s1990_s10 + $0x30] sm:$0xff] }
 0x852   :  { %v633_v43 = vpop.xlane.xlu1 %632 }
 0x853   :  { %1396 = vrcp.f32 %v633_v43  ;;  %v895_v43 = vld [vmem:[%s1990_s10 + $0x38] sm:$0xff] }
 0x85d   :  { %v1397_v46 = vpop.eup %1396 }
 0x85e   :  { %v635_v47 = vmul.f32 %v1397_v46, %v1395_v41  ;;  %v933_v41 = vpack.c.bf16 %v911_v37, %v910_v35  ;;  %v925_v46 = vpack.c.bf16 %v895_v43, %v894_v42 }
 0x860   :  { %v636_v49 = vpack.c.bf16 %v635_v47, %v635_v47  ;;  %v934_v47 = vpack.c.bf16 %v913_v45, %v912_v44 }
 0x862   :  { %1289 = vmatmul.mubr.msk.bf16.vlgmr.msra.gmra.mrb[16].mxu1 %vm222_vm4, %v636_v49  ;;  %v897_v49 = vld [vmem:[%s1990_s10 + $0x48] sm:$0xff] }
 0x863   :  { %1293 = vmatpush3.bf16.msra.mxu1 %v1620_v53  ;;  %1308 = vmatprep.mubr.bf16.mxu1 %v687_v48  ;;  %v1084_v53 = vld [vmem:[%s1986_s1 + $0x30] sm:$0xff] }
 0x864   :  { %1294 = vmatprep.subr.bf16.mxu1 %v1635_v63 }
 0x867   :  { %1295 = vmatpush3.bf16.msra.mxu1 %v1635_v63  ;;  %v1085_v63 = vld [vmem:[%s1986_s1 + $0x38] sm:$0xff] }
 0x868   :  { %1296 = vmatprep.subr.bf16.mxu1 %v1646_v3 }
 0x86b   :  { %1297 = vmatpush3.bf16.msra.mxu1 %v1646_v3  ;;  %v688_v3 = vpack.c.bf16 %v1085_v63, %v1084_v53  ;;  %v914_v53 = vld [vmem:[%s1990_s10 + $0xd0] sm:$0xff]  ;;  %v915_v63 = vld [vmem:[%s1990_s10 + $0xd8] sm:$0xff] }
 0x86c   :  { %1298 = vmatprep.subr.bf16.mxu1 %v1656_v8 }
 0x86f   :  { %1299 = vmatpush3.bf16.msra.mxu1 %v1656_v8 }
 0x870   :  { %1300 = vmatprep.subr.bf16.mxu1 %v1666_v13 }
 0x873   :  { %1301 = vmatpush3.bf16.msra.mxu1 %v1666_v13 }
 0x874   :  { %1302 = vmatprep.subr.bf16.mxu1 %v1676_v17 }
 0x877   :  { %1303 = vmatpush3.bf16.msra.mxu1 %v1676_v17 }
 0x878   :  { %1304 = vmatprep.subr.bf16.mxu1 %v1686_v22 }
 0x87b   :  { %1305 = vmatpush3.bf16.msra.mxu1 %v1686_v22 }
 0x87c   :  { %1306 = vmatprep.subr.bf16.mxu1 %v1696_v26 }
 0x87f   :  { %1307 = vmatpush3.bf16.msra.mxu1 %v1696_v26 }
 0x880   :  { %1160 = vmatprep.subr.bf16.mxu1 %v930_v10  ;;  %v998_v10 = vld [vmem:[%s1991_s12 + $0x20] sm:$0xff] }
 0x881   :  { %v1005_v14 = vpack.c.bf16 %v999_v11, %v998_v10 }
 0x882   :  { %1309 = vmatmul.mubr.bf16.vlgmr.msra.gmra.mrb[20].mxu1 %v688_v3 }
 0x883   :  { %1161 = vmatpush3.bf16.msra.mxu1 %v922_v19  ;;  %v1001_v19 = vld [vmem:[%s1991_s12 + $0x38] sm:$0xff] }
 0x884   :  { %1162 = vmatprep.subr.bf16.mxu1 %v931_v20  ;;  %v1006_v20 = vpack.c.bf16 %v1001_v19, %v1000_v16 }
 0x887   :  { %1163 = vmatpush3.bf16.msra.mxu1 %v923_v31 }
 0x888   :  { %1164 = vmatprep.subr.bf16.mxu1 %v932_v33 }
 0x88b   :  { %1165 = vmatpush3.bf16.msra.mxu1 %v924_v39 }
 0x88c   :  { %1166 = vmatprep.subr.bf16.mxu1 %v933_v41 }
 0x88f   :  { %1167 = vmatpush3.bf16.msra.mxu1 %v925_v46 }
 0x890   :  { %1168 = vmatprep.subr.bf16.mxu1 %v934_v47  ;;  %v1094_v47 = vld [vmem:[#allocation2] ss:$0 sm:$0xff] }
 0x935   :  { %v674_v8 = vpop.f32.mrb[16].mxu1 }
 0x936   :  { %v881_v13 = vrot.slane %v674_v8, 7  ;;  %v1290_v17 = vpop.f32.mrb[17].mxu1  ;;  %v935_v8 = vpack.c.bf16 %v915_v63, %v914_v53 }
 0x937   :  { %v677_v50 = vpop.f32.mrb[18].mxu1  ;;  %v899_v17 = vld [vmem:[%s1990_s10 + $0x58] sm:$0xff] }
 0x938   :  { %v1817_v22 = vsel %vm885_vm7, %v1712_v32, %v881_v13  ;;  %v1291_v51 = vpop.f32.mrb[19].mxu1  ;;  %v898_v13 = vld [vmem:[%s1990_s10 + $0x50] sm:$0xff]  ;;  %v916_v50 = vld [vmem:[%s1990_s10 + $0xe0] sm:$0xff] }
 0x939   :  { %v917_v51 = vld [vmem:[%s1990_s10 + $0xe8] sm:$0xff] }
 0x955   :  { %v1310_v52 = vpop.f32.mrb[20].mxu1 }
 0x956   :  { %v732_v4 = vadd.f32 %v1310_v52, %v1717_v36  ;;  %v723_v6 = vpop.f32.mrb[21].mxu1  ;;  %v927_v52 = vpack.c.bf16 %v899_v17, %v898_v13 }
 0x957   :  { %v724_v9 = vadd.f32 %v1717_v36, %v723_v6  ;;  %v1311_v12 = vpop.f32.mrb[22].mxu1 }
 0x958   :  { %1398 = vtanh.f32 %v732_v4  ;;  %v735_v26 = vadd.f32 %v1311_v12, %v1717_v36  ;;  %v726_v15 = vpop.f32.mrb[23].mxu1  ;;  %v936_v4 = vpack.c.bf16 %v917_v51, %v916_v50 }
 0x959   :  { %1400 = vtanh.f32 %v724_v9  ;;  %v727_v18 = vadd.f32 %v1717_v36, %v726_v15  ;;  %v900_v15 = vld [vmem:[%s1990_s10 + $0x60] sm:$0xff] }
 0x95a   :  { %1402 = vtanh.f32 %v735_v26 }
 0x95b   :  { %1404 = vtanh.f32 %v727_v18  ;;  %v901_v18 = vld [vmem:[%s1990_s10 + $0x68] sm:$0xff] }
 0x962   :  { %v1399_v21 = vpop.eup %1398 }
 0x963   :  { %v1401_v32 = vpop.eup %1400 }
 0x964   :  { %v1403_v24 = vpop.eup %1402 }
 0x965   :  { %v1405_v55 = vpop.eup %1404  ;;  %v1364_v56 = vpack.c.bf16 %v1403_v24, %v1399_v21  ;;  %v928_v21 = vpack.c.bf16 %v901_v18, %v900_v15  ;;  %v919_v24 = vld [vmem:[%s1990_s10 + $0xf8] sm:$0xff] }
 0x966   :  { %v1360_v57 = vpack.c.bf16 %v1405_v55, %v1401_v32  ;;  %v918_v32 = vld [vmem:[%s1990_s10 + $0xf0] sm:$0xff] }
 0x967   :  { %v937_v55 = vpack.c.bf16 %v919_v24, %v918_v32 }
 0x968   :  { %1362 = vmatpush3.bf16.xpose.msk.msra.mxu0 %vm1593_vm2, %v1360_v57  ;;  %v903_v57 = vld [vmem:[%s1990_s10 + $0x78] sm:$0xff] }
 0x969   :  { %1363 = vmatprep.subr.bf16.mxu0 %v1414_v28  ;;  %v1086_v28 = vld [vmem:[%s1989_s3 + $0x1] sm:$0x1] }
 0x970   :  { %1366 = vmatpush3.bf16.xpose.msk.msra.mxu0 %vm1593_vm2, %v1364_v56  ;;  %v902_v56 = vld [vmem:[%s1990_s10 + $0x70] sm:$0xff] }
 0x971   :  { %1323 = vmatprep.subr.bf16.mxu0 %v1412_v0 }
 0x977   :  { %1321 = vmatmul.mubr.msk.f32.vlgmr.msra.gmra.mrb[6].mxu0 %vm129_vm1, %v1732_v54 }
 0x978   :  { %1324 = vmatpush3.bf16.msra.mxu0 %v687_v48  ;;  %1327 = vmatprep.mubr.msk.bf16.mxu0 %vm1413_vm0, %v1412_v0  ;;  %v896_v48 = vld [vmem:[%s1990_s10 + $0x40] sm:$0xff] }
 0x979   :  { %1325 = vmatprep.subr.bf16.mxu0 %v1412_v0 }
 0x97c   :  { %1326 = vmatpush3.bf16.msra.mxu0 %v688_v3  ;;  %v926_v3 = vpack.c.bf16 %v897_v49, %v896_v48 }
 0x97d   :  { %1331 = vmatprep.subr.bf16.mxu0 %v1412_v0 }
 0x97e   :  { %1169 = vmatpush3.bf16.msra.mxu1 %v926_v3 }
 0x97f   :  { %1170 = vmatprep.subr.bf16.mxu1 %v935_v8 }
 0x982   :  { %1171 = vmatpush3.bf16.msra.mxu1 %v927_v52 }
 0x983   :  { %1172 = vmatprep.subr.bf16.mxu1 %v936_v4 }
 0x986   :  { %1173 = vmatpush3.bf16.msra.mxu1 %v928_v21 }
 0x987   :  { %1174 = vmatprep.subr.bf16.mxu1 %v937_v55 }
 0xa4a   :  { %v820_v38 = vpop.f32.mrb[6].mxu0 }
 0xa4b   :  { %v821_v36 = vadd.f32 %v1086_v28, %v820_v38  ;;  %v1322_v58 = vpop.f32.mrb[7].mxu0  ;;  %v929_v28 = vpack.c.bf16 %v903_v57, %v902_v56 }
 0xa4d   :  { %v824_v59 = vsel %vm443_vm5, %v821_v36, -inf  ;;  %1175 = vmatpush3.bf16.msra.mxu1 %v929_v28 }
 0xa4e   :  { %825 = vmax.xlane.f32.xlu0 %v824_v59 }
 0xadb   :  { %v826_v54 = vpop.xlane.xlu0 %825 }
 0xadc   :  { %v827_v60 = vsub.f32 %v821_v36, %v826_v54 }
 0xade   :  { %v828_v61 = vmul.f32 1.442695, %v827_v60 }
 0xae0   :  { %1406 = vpow2.f32 %v828_v61 }
 0xaea   :  { %v1407_v62 = vpop.eup %1406 }
 0xaeb   :  { %v830_v1 = vsel %vm443_vm5, %v1407_v62, 0.0 }
 0xaec   :  { %831 = vadd.xlane.f32.xlu1 %v830_v1  ;;  %v994_v1 = vld [vmem:[%s1991_s12] sm:$0xff] }
 0xaed   :  { %v1003_v5 = vpack.c.bf16 %v995_v2, %v994_v1 }
 0xb79   :  { %v832_v6 = vpop.xlane.xlu1 %831 }
 0xb7a   :  { %1408 = vrcp.f32 %v832_v6 }
 0xb84   :  { %v1409_v9 = vpop.eup %1408 }
 0xb85   :  { %v834_v12 = vmul.f32 %v1409_v9, %v1407_v62  ;;  %v920_v62 = vpack.c.bf16 %v1817_v22, %v1817_v22 }
 0xb87   :  { %v835_v26 = vpack.c.bf16 %v834_v12, %v834_v12 }
 0xb89   :  { %1328 = vmatmul.mubr.msk.bf16.vlgmr.msra.gmra.mrb[12].mxu0 %vm456_vm6, %v835_v26 }
 0xb8a   :  { %1339 = vmatprep.mubr.msk.bf16.mxu0 %vm1413_vm0, %v1412_v0  ;;  %1332 = vmatpush3.bf16.msra.mxu0 %v1003_v5 }
 0xb8b   :  { %1333 = vmatprep.subr.bf16.mxu0 %v1412_v0 }
 0xc5c   :  { %v873_v38 = vpop.f32.mrb[12].mxu0 }
 0xc5d   :  { %v882_v36 = vrot.slane %v873_v38, 7  ;;  %v1329_v58 = vpop.f32.mrb[13].mxu0 }
 0xc5e   :  { %v876_v59 = vpop.f32.mrb[14].mxu0 }
 0xc5f   :  { %v1330_v54 = vpop.f32.mrb[15].mxu0  ;;  %v887_v60 = vsel %vm885_vm7, %v1780_v29, %v882_v36  ;;  %v997_v29 = vld [vmem:[%s1991_s12 + $0x18] sm:$0xff] }
 0xc60   :  { %v921_v61 = vpack.c.bf16 %v887_v60, %v887_v60  ;;  %v1004_v22 = vpack.c.bf16 %v997_v29, %v996_v7 }
 0xc62   :  { %977 = vmatprep.mubr.bf16.mxu1 %v921_v61  ;;  %1334 = vmatpush3.bf16.msra.mxu0 %v1004_v22 }
 0xc63   :  { %978 = vmatmul.mubr.bf16.vlgmr.msra.gmra.mrb[24].mxu1 %v920_v62  ;;  %1335 = vmatprep.subr.bf16.mxu0 %v1412_v0 }
 0xc66   :  { %1336 = vmatpush3.bf16.msra.mxu0 %v1005_v14 }
 0xc67   :  { %1337 = vmatprep.subr.bf16.mxu0 %v1412_v0 }
 0xc6a   :  { %1338 = vmatpush3.bf16.msra.mxu0 %v1006_v20 }
 0xd36   :  { %v1176_v25 = vpop.f32.mrb[24].mxu1 }
 0xd37   :  { %v1177_v30 = vpop.f32.mrb[25].mxu1 }
 0xd38   :  { %v1178_v31 = vadd.f32 %v1177_v30, %v1176_v25  ;;  %v1179_v33 = vpop.f32.mrb[26].mxu1 }
 0xd39   :  { %v1180_v34 = vpop.f32.mrb[27].mxu1 }
 0xd3a   :  { %v980_v40 = vadd.f32 %v1178_v31, %v1093_v27 }
 0xd3c   :  { %v986_v35 = vmul.f32 0.044715, %v980_v40  ;;  %v985_v43 = vmul.f32 0.5, %v980_v40 }
 0xd3e   :  { %v987_v37 = vmul.f32 %v986_v35, %v980_v40 }
 0xd40   :  { %v988_v39 = vmul.f32 %v987_v37, %v980_v40 }
 0xd42   :  { %v989_v0 = vadd.f32 %v988_v39, %v980_v40 }
 0xd44   :  { %v990_v41 = vmul.f32 0.7978846, %v989_v0 }
 0xd46   :  { %1410 = vtanh.f32 %v990_v41 }
 0xd50   :  { %v1411_v42 = vpop.eup %1410 }
 0xd51   :  { %v992_v44 = vadd.f32 1.0, %v1411_v42 }
 0xd53   :  { %v993_v45 = vmul.f32 %v992_v44, %v985_v43 }
 0xd55   :  { %v1002_v46 = vpack.c.bf16 %v993_v45, %v993_v45 }
 0xd57   :  { %1340 = vmatmul.mubr.msk.bf16.vlgmr.msra.gmra.mrb[16].mxu0 %vm129_vm1, %v1002_v46 }
 0xe2a   :  { %v1051_v48 = vpop.f32.mrb[16].mxu0 }
 0xe2b   :  { %v1052_v49 = vadd.f32 %v1094_v47, %v1051_v48  ;;  %v1341_v53 = vpop.f32.mrb[17].mxu0 }
 0xe2c   :  { %v1054_v63 = vpop.f32.mrb[18].mxu0 }
 0xe2d   :  { %1058 = vst.msk [vmem:[%s1994_s14] sm:$0x3] %vm1057_vm8, %v1052_v49  ;;  %v1342_v3 = vpop.f32.mrb[19].mxu0 }

</bundles_post_ra>
